<compile_context>
chip_gen: v7x
topology: tpu7x:2x2x1
jax: 0.10.0
libtpu: 0.0.40
codegen_flags: <defaults>
</compile_context>

<pallas_src>
import functools

import jax
import jax.numpy as jnp
from jax.experimental import pallas as pl
from jax.experimental.pallas import tpu as pltpu

VMEM_LIMIT = 32 * 1024 * 1024   # explicit scoped-VMEM budget, safe on v5e/v6e/v7x
STAT_LANES = 128                # lane width of one partial-stat group (native lane tile)
TILE_CAP = 4096                 # default max lane tile over the M = N*Ho*Wo axis
TILE_BUDGET = 8 << 20           # byte budget for the double-buffered streaming blocks


def _pick_tm(M, bytes_per_col, cap=TILE_CAP, budget=TILE_BUDGET):
    """Largest power-of-two lane tile (multiple of 128) dividing M under budget."""
    if M % 128 != 0:
        return M                 # full-extent block along the lane axis (always legal)
    limit = min(cap, M, max(128, budget // max(bytes_per_col, 1)))
    tm = 128
    while tm * 2 <= limit and M % (tm * 2) == 0:
        tm *= 2
    return tm


def _pick_tn(N, cap=32):
    """Batch tile for the head: N itself if small, else a multiple-of-8 divisor."""
    if N <= cap:
        return N
    for t in range(cap, 7, -1):
        if N % t == 0 and t % 8 == 0:
            return t
    return N


# ----------------------------- Pallas kernels ------------------------------

def _conv_lrelu_kernel(w_ref, p_ref, o_ref):
    # w_ref: (C, K) bf16 resident; p_ref: (K, TM) bf16; o_ref: (C, TM) bf16.
    x = jnp.dot(w_ref[...], p_ref[...], preferred_element_type=jnp.float32)
    o_ref[...] = jnp.where(x > 0, x, 0.2 * x).astype(o_ref.dtype)


def conv_lrelu(w_t, patches_t, *, tile_cap=TILE_CAP):
    C, K = w_t.shape
    _, M = patches_t.shape
    tm = _pick_tm(M, 2 * 2 * (K + C), cap=tile_cap)
    return pl.pallas_call(
        _conv_lrelu_kernel,
        out_shape=jax.ShapeDtypeStruct((C, M), jnp.bfloat16),
        grid=(M // tm,),
        in_specs=[
            pl.BlockSpec((C, K), lambda i: (0, 0)),
            pl.BlockSpec((K, tm), lambda i: (0, i)),
        ],
        out_specs=pl.BlockSpec((C, tm), lambda i: (0, i)),
        compiler_params=pltpu.CompilerParams(
            dimension_semantics=("parallel",),
            vmem_limit_bytes=VMEM_LIMIT),
        cost_estimate=pl.CostEstimate(
            flops=2 * M * K * C, transcendentals=0,
            bytes_accessed=M * K * 2 + K * C * 2 + M * C * 2),
    )(w_t, patches_t)


def _conv_stats_kernel(w_ref, p_ref, y_ref, sum_ref, ssq_ref):
    # BN pass A: matmul tile + per-channel sum / sum-of-squares accumulation.
    # sum/ssq blocks are (C, 128) per outer grid index; the (C, 1) partial is
    # broadcast-added so every lane of the group holds the same accumulated value
    # (bn_lrelu divides by M*STAT_LANES to undo the replication).
    @pl.when(pl.program_id(1) == 0)
    def _():
        sum_ref[...] = jnp.zeros_like(sum_ref)
        ssq_ref[...] = jnp.zeros_like(ssq_ref)

    x = jnp.dot(w_ref[...], p_ref[...], preferred_element_type=jnp.float32)
    y_ref[...] = x.astype(y_ref.dtype)
    sum_ref[...] += jnp.sum(x, axis=1, keepdims=True)
    ssq_ref[...] += jnp.sum(x * x, axis=1, keepdims=True)


def conv_bn_stats(w_t, patches_t, *, tile_cap=TILE_CAP):
    C, K = w_t.shape
    _, M = patches_t.shape
    tm = _pick_tm(M, 2 * 2 * (K + C), cap=tile_cap)
    n_tiles = M // tm
    n_outer = 2 if (n_tiles >= 2 and n_tiles % 2 == 0) else 1   # 2 TCs on v7x
    n_inner = n_tiles // n_outer
    sw = n_outer * STAT_LANES
    return pl.pallas_call(
        _conv_stats_kernel,
        out_shape=(jax.ShapeDtypeStruct((C, M), jnp.bfloat16),
                   jax.ShapeDtypeStruct((C, sw), jnp.float32),
                   jax.ShapeDtypeStruct((C, sw), jnp.float32)),
        grid=(n_outer, n_inner),
        in_specs=[
            pl.BlockSpec((C, K), lambda o, i: (0, 0)),
            pl.BlockSpec((K, tm), lambda o, i: (0, o * n_inner + i)),
        ],
        out_specs=(
            pl.BlockSpec((C, tm), lambda o, i: (0, o * n_inner + i)),
            pl.BlockSpec((C, STAT_LANES), lambda o, i: (0, o)),   # resident per-o sum
            pl.BlockSpec((C, STAT_LANES), lambda o, i: (0, o)),   # resident per-o ssq
        ),
        compiler_params=pltpu.CompilerParams(
            dimension_semantics=("parallel", "arbitrary"),
            vmem_limit_bytes=VMEM_LIMIT),
        cost_estimate=pl.CostEstimate(
            flops=2 * M * K * C + 3 * M * C, transcendentals=0,
            bytes_accessed=M * K * 2 + K * C * 2 + M * C * 2 + 2 * C * sw * 4),
    )(w_t, patches_t)


def _bn_lrelu_kernel(y_ref, sum_ref, ssq_ref, g_ref, b_ref, o_ref, *, inv_count):
    # BN pass B: train-mode (biased-var) batch normalization + LeakyReLU(0.2).
    mean = jnp.sum(sum_ref[...], axis=1, keepdims=True) * inv_count      # (C, 1)
    ex2 = jnp.sum(ssq_ref[...], axis=1, keepdims=True) * inv_count
    var = jnp.maximum(ex2 - mean * mean, 0.0)
    scale = jax.lax.rsqrt(var + 1e-5) * g_ref[...]
    shift = b_ref[...] - mean * scale
    x = y_ref[...].astype(jnp.float32) * scale + shift
    o_ref[...] = jnp.where(x > 0, x, 0.2 * x).astype(o_ref.dtype)


def bn_lrelu(y, s, ss, gamma, beta, *, tile_cap=TILE_CAP):
    C, M = y.shape
    sw = s.shape[1]
    tm = _pick_tm(M, 2 * 2 * (2 * C), cap=tile_cap)
    kernel = functools.partial(_bn_lrelu_kernel,
                               inv_count=1.0 / (float(M) * STAT_LANES))
    return pl.pallas_call(
        kernel,
        out_shape=jax.ShapeDtypeStruct((C, M), jnp.bfloat16),
        grid=(M // tm,),
        in_specs=[
            pl.BlockSpec((C, tm), lambda i: (0, i)),
            pl.BlockSpec((C, sw), lambda i: (0, 0)),
            pl.BlockSpec((C, sw), lambda i: (0, 0)),
            pl.BlockSpec((C, 1), lambda i: (0, 0)),
            pl.BlockSpec((C, 1), lambda i: (0, 0)),
        ],
        out_specs=pl.BlockSpec((C, tm), lambda i: (0, i)),
        compiler_params=pltpu.CompilerParams(
            dimension_semantics=("parallel",),
            vmem_limit_bytes=VMEM_LIMIT),
        cost_estimate=pl.CostEstimate(
            flops=6 * M * C, transcendentals=C,
            bytes_accessed=2 * M * C * 2 + 2 * C * sw * 4 + 2 * C * 4),
    )(y, s, ss, gamma, beta)


def _head_kernel(x_ref, w_ref, b_ref, o_ref):
    # Folded Conv(8h,1,4,1,0) + Flatten + Linear(25,1) + Sigmoid.
    # Kept as VPU multiply + lane reduce with a lane-dense (1, 25*K5) weight:
    # an MXU dot would need the weight as (25*K5, 1), which lane-pads to ~6.5 MiB
    # in VMEM; the head is HBM-read bound so the compute form is irrelevant.
    x = x_ref[...].astype(jnp.float32)
    w = w_ref[...].astype(jnp.float32)
    y = jnp.sum(x * w, axis=1, keepdims=True) + b_ref[...]
    o_ref[...] = jax.nn.sigmoid(y)


def head_sigmoid(xf, w_comb, b):
    N, PK = xf.shape
    tn = _pick_tn(N)
    return pl.pallas_call(
        _head_kernel,
        out_shape=jax.ShapeDtypeStruct((N, 1), jnp.float32),
        grid=(N // tn,),
        in_specs=[
            pl.BlockSpec((tn, PK), lambda i: (i, 0)),
            pl.BlockSpec((1, PK), lambda i: (0, 0)),
            pl.BlockSpec((1, 1), lambda i: (0, 0)),
        ],
        out_specs=pl.BlockSpec((tn, 1), lambda i: (i, 0)),
        compiler_params=pltpu.CompilerParams(
            dimension_semantics=("parallel",),
            vmem_limit_bytes=VMEM_LIMIT),
        cost_estimate=pl.CostEstimate(
            flops=2 * N * PK, transcendentals=N,
            bytes_accessed=N * PK * 2 + PK * 2 + N * 4),
    )(xf, w_comb, b)


# ------------------------------ JAX glue ----------------------------------

def im2col_cm(x, kh, kw, stride, pad):
    """Channel-major im2col.

    x: (C, N, H, W) -> (kh*kw*C, N*Ho*Wo) patches (transposed for the channel-major
    matmul), K ordered (tap=(kh,kw) row-major, cin), M ordered (n, oh, ow).
    """
    C, N, H, W = x.shape
    if pad:
        x = jnp.pad(x, ((0, 0), (0, 0), (pad, pad), (pad, pad)))
    Hp, Wp = H + 2 * pad, W + 2 * pad
    Ho = (Hp - kh) // stride + 1
    Wo = (Wp - kw) // stride + 1
    taps = [x[:, :, i:i + Ho * stride:stride, j:j + Wo * stride:stride]
            for i in range(kh) for j in range(kw)]
    p = jnp.stack(taps, axis=0)                       # (kh*kw, C, N, Ho, Wo)
    return p.reshape(kh * kw * C, N * Ho * Wo), Ho, Wo


def init_params(key, hidden_size):
    h = hidden_size
    conv_io = [(3, h), (h, 2 * h), (2 * h, 4 * h), (4 * h, 8 * h)]
    keys = jax.random.split(key, len(conv_io) + 3)
    params = {}
    # Conv weights stored once in bf16, transposed channel-major im2col layout
    # (Cout, 4*4*Cin), K ordered (tap, cin); DCGAN-style N(0, 0.02) init.
    # All Conv2d layers use bias=False in the reference module -> no conv biases.
    params["conv_ws"] = [
        (0.02 * jax.random.normal(keys[i], (cout, 16 * cin), jnp.float32)
         ).astype(jnp.bfloat16)
        for i, (cin, cout) in enumerate(conv_io)
    ]
    # BatchNorm affine params (default init: gamma=1, beta=0), channel-major (C, 1).
    params["bn_gammas"] = [jnp.ones((c, 1), jnp.float32) for c in (2 * h, 4 * h, 8 * h)]
    params["bn_betas"] = [jnp.zeros((c, 1), jnp.float32) for c in (2 * h, 4 * h, 8 * h)]
    # Conv(8h,1,4,1,0) and Linear(25,1) are back-to-back linear maps (Flatten only
    # reorders), so they are folded once into a combined lane-dense weight.
    k5 = 16 * 8 * h
    w5 = 0.02 * jax.random.normal(keys[-3], (1, k5), jnp.float32)         # conv5 weight
    bound = 1.0 / 5.0                                                     # 1/sqrt(25)
    lin_w = jax.random.uniform(keys[-2], (25, 1), jnp.float32, -bound, bound)
    lin_b = jax.random.uniform(keys[-1], (1, 1), jnp.float32, -bound, bound)
    params["head_w"] = (lin_w * w5).reshape(1, 25 * k5).astype(jnp.bfloat16)
    params["head_b"] = lin_b
    return params


def discriminator_forward(img_nchw, params, *, tile_cap=TILE_CAP):
    # img: (N, 3, 128, 128) float32 (PyTorch NCHW).  Activations are carried
    # channel-major (C, N*H*W) in bf16 so every kernel load/store is lane-dense.
    N = img_nchw.shape[0]
    x = jnp.transpose(img_nchw, (1, 0, 2, 3)).astype(jnp.bfloat16)   # (3, N, H, W)

    # ---- Conv(3, h, 4, 2, 1) + LeakyReLU(0.2) (no BN) ----
    p, Ho, Wo = im2col_cm(x, 4, 4, 2, 1)
    w = params["conv_ws"][0]
    y = conv_lrelu(w, p, tile_cap=tile_cap)
    x = y.reshape(w.shape[0], N, Ho, Wo)

    # ---- 3 x [Conv + BatchNorm(batch stats) + LeakyReLU(0.2)] ----
    for li in range(1, 4):
        p, Ho, Wo = im2col_cm(x, 4, 4, 2, 1)
        w = params["conv_ws"][li]
        y_pre, s, ss = conv_bn_stats(w, p, tile_cap=tile_cap)
        y = bn_lrelu(y_pre, s, ss,
                     params["bn_gammas"][li - 1], params["bn_betas"][li - 1],
                     tile_cap=tile_cap)
        x = y.reshape(w.shape[0], N, Ho, Wo)

    # ---- Conv(8h, 1, 4, 1, 0) + Flatten + Linear(25, 1) + Sigmoid (fused head) ----
    p5, Ho, Wo = im2col_cm(x, 4, 4, 1, 0)            # (16*8h, N*25)
    K5 = p5.shape[0]
    P = Ho * Wo                                      # 25
    xf = p5.reshape(K5, N, P).transpose(1, 2, 0).reshape(N, P * K5)  # feat order (p, k)
    return head_sigmoid(xf, params["head_w"], params["head_b"])


if __name__ == "__main__":
    key = jax.random.PRNGKey(0)
    k_img, k_par = jax.random.split(key)

    hidden_size = 8
    img = jax.random.normal(k_img, (2, 3, 128, 128), jnp.float32)  # NCHW like PyTorch
    params = init_params(k_par, hidden_size)

    fwd = jax.jit(functools.partial(discriminator_forward, tile_cap=TILE_CAP))
    out = jax.block_until_ready(fwd(img, params))

    # Re-run with a small tile cap to exercise the multi-tile BN accumulation and
    # the split (parallel outer / arbitrary inner) stats grid; results must agree.
    fwd_small = jax.jit(functools.partial(discriminator_forward, tile_cap=512))
    out_small = jax.block_until_ready(fwd_small(img, params))

    assert out.shape == (2, 1), out.shape
    assert bool(jnp.all((out >= 0.0) & (out <= 1.0)))
    assert bool(jnp.allclose(out, out_small, atol=5e-3, rtol=0.0)), (out, out_small)
    print("KERNEL_OK")
</pallas_src>

<mosaic_0001>
module attributes {stable_mosaic.version = 11 : i64} {
  func.func @_conv_lrelu_kernel(%arg0: i32, %arg1: memref<8x48xbf16, #tpu.memory_space<vmem>>, %arg2: memref<48x4096xbf16, #tpu.memory_space<vmem>>, %arg3: memref<8x4096xbf16, #tpu.memory_space<vmem>>) attributes {dimension_semantics = [#tpu.dimension_semantics<parallel>], iteration_bounds = array<i64: 2>, scalar_prefetch = 0 : i64, scratch_operands = 0 : i64, tpu.core_type = #tpu.core_type<tc>, window_params = [{pipeline_mode = #tpu.pipeline_mode<synchronous>, transform_indices = @transform_0, window_bounds = array<i64: 8, 48>}, {transform_indices = @transform_1, window_bounds = array<i64: 48, 4096>}, {transform_indices = @transform_2, window_bounds = array<i64: 8, 4096>}]} {
    %c0 = arith.constant 0 : index
    %c0_0 = arith.constant 0 : index
    %0 = vector.load %arg1[%c0, %c0_0] : memref<8x48xbf16, #tpu.memory_space<vmem>>, vector<8x48xbf16>
    %c0_1 = arith.constant 0 : index
    %c0_2 = arith.constant 0 : index
    %1 = vector.load %arg2[%c0_1, %c0_2] : memref<48x4096xbf16, #tpu.memory_space<vmem>>, vector<48x4096xbf16>
    %cst = arith.constant dense<0.000000e+00> : vector<8x4096xf32>
    %2 = tpu.matmul %0, %1, %cst {dimension_numbers = #tpu.dot_dimension_numbers<[1], [0], [0], [1], [0, 0, 1, 1], [], []>} : vector<8x48xbf16>, vector<48x4096xbf16>, vector<8x4096xf32> -> vector<8x4096xf32>
    %cst_3 = arith.constant 0.000000e+00 : f32
    %3 = vector.broadcast %cst_3 : f32 to vector<8x4096xf32>
    %4 = arith.cmpf ogt, %2, %3 : vector<8x4096xf32>
    %cst_4 = arith.constant 2.000000e-01 : f32
    %5 = vector.broadcast %cst_4 : f32 to vector<8x4096xf32>
    %6 = arith.mulf %5, %2 : vector<8x4096xf32>
    %7 = arith.select %4, %2, %6 : vector<8x4096xi1>, vector<8x4096xf32>
    %8 = arith.truncf %7 : vector<8x4096xf32> to vector<8x4096xbf16>
    %c0_5 = arith.constant 0 : index
    %c0_6 = arith.constant 0 : index
    %9 = vector.load %arg3[%c0_5, %c0_6] : memref<8x4096xbf16, #tpu.memory_space<vmem>>, vector<8x4096xbf16>
    tpu.vector_store %arg3[%c0_5, %c0_6], %8 {strides = array<i32>} : memref<8x4096xbf16, #tpu.memory_space<vmem>>, vector<8x4096xbf16>,
    return
  }
  func.func @transform_0(%arg0: i32) -> (i32, i32) {
    %c0_i32 = arith.constant 0 : i32
    %c0_i32_0 = arith.constant 0 : i32
    %c0_i32_1 = arith.constant 0 : i32
    return %c0_i32, %c0_i32_0 : i32, i32
  }
  func.func @transform_1(%arg0: i32) -> (i32, i32) {
    %c0_i32 = arith.constant 0 : i32
    %c0_i32_0 = arith.constant 0 : i32
    return %c0_i32, %arg0 : i32, i32
  }
  func.func @transform_2(%arg0: i32) -> (i32, i32) {
    %c0_i32 = arith.constant 0 : i32
    %c0_i32_0 = arith.constant 0 : i32
    return %c0_i32, %arg0 : i32, i32
  }
}

module attributes {stable_mosaic.version = 11 : i64} {
  func.func @_conv_stats_kernel(%arg0: i32, %arg1: i32, %arg2: memref<16x128xbf16, #tpu.memory_space<vmem>>, %arg3: memref<128x2048xbf16, #tpu.memory_space<vmem>>, %arg4: memref<16x2048xbf16, #tpu.memory_space<vmem>>, %arg5: memref<16x128xf32, #tpu.memory_space<vmem>>, %arg6: memref<16x128xf32, #tpu.memory_space<vmem>>) attributes {dimension_semantics = [#tpu.dimension_semantics<parallel>, #tpu.dimension_semantics<arbitrary>], iteration_bounds = array<i64: 1, 1>, scalar_prefetch = 0 : i64, scratch_operands = 0 : i64, tpu.core_type = #tpu.core_type<tc>, window_params = [{pipeline_mode = #tpu.pipeline_mode<synchronous>, transform_indices = @transform_0, window_bounds = array<i64: 16, 128>}, {transform_indices = @transform_1, window_bounds = array<i64: 128, 2048>}, {transform_indices = @transform_2, window_bounds = array<i64: 16, 2048>}, {transform_indices = @transform_3, window_bounds = array<i64: 16, 128>}, {transform_indices = @transform_4, window_bounds = array<i64: 16, 128>}]} {
    %c0_i32 = arith.constant 0 : i32
    %0 = arith.cmpi eq, %arg1, %c0_i32 : i32
    %1 = arith.extui %0 : i1 to i32
    %c0_i32_0 = arith.constant 0 : i32
    %2 = arith.cmpi ne, %1, %c0_i32_0 : i32
    scf.if %2 {
      %cst_16 = arith.constant 0.000000e+00 : f32
      %21 = vector.broadcast %cst_16 : f32 to vector<16x128xf32>
      %c0_17 = arith.constant 0 : index
      %c0_18 = arith.constant 0 : index
      %22 = vector.load %arg5[%c0_17, %c0_18] : memref<16x128xf32, #tpu.memory_space<vmem>>, vector<16x128xf32>
      tpu.vector_store %arg5[%c0_17, %c0_18], %21 {strides = array<i32>} : memref<16x128xf32, #tpu.memory_space<vmem>>, vector<16x128xf32>,
      %cst_19 = arith.constant 0.000000e+00 : f32
      %23 = vector.broadcast %cst_19 : f32 to vector<16x128xf32>
      %c0_20 = arith.constant 0 : index
      %c0_21 = arith.constant 0 : index
      %24 = vector.load %arg6[%c0_20, %c0_21] : memref<16x128xf32, #tpu.memory_space<vmem>>, vector<16x128xf32>
      tpu.vector_store %arg6[%c0_20, %c0_21], %23 {strides = array<i32>} : memref<16x128xf32, #tpu.memory_space<vmem>>, vector<16x128xf32>,
    } else {
    }
    %c0 = arith.constant 0 : index
    %c0_1 = arith.constant 0 : index
    %3 = vector.load %arg2[%c0, %c0_1] : memref<16x128xbf16, #tpu.memory_space<vmem>>, vector<16x128xbf16>
    %c0_2 = arith.constant 0 : index
    %c0_3 = arith.constant 0 : index
    %4 = vector.load %arg3[%c0_2, %c0_3] : memref<128x2048xbf16, #tpu.memory_space<vmem>>, vector<128x2048xbf16>
    %cst = arith.constant dense<0.000000e+00> : vector<16x2048xf32>
    %5 = tpu.matmul %3, %4, %cst {dimension_numbers = #tpu.dot_dimension_numbers<[1], [0], [0], [1], [0, 0, 1, 1], [], []>} : vector<16x128xbf16>, vector<128x2048xbf16>, vector<16x2048xf32> -> vector<16x2048xf32>
    %6 = arith.truncf %5 : vector<16x2048xf32> to vector<16x2048xbf16>
    %c0_4 = arith.constant 0 : index
    %c0_5 = arith.constant 0 : index
    %7 = vector.load %arg4[%c0_4, %c0_5] : memref<16x2048xbf16, #tpu.memory_space<vmem>>, vector<16x2048xbf16>
    tpu.vector_store %arg4[%c0_4, %c0_5], %6 {strides = array<i32>} : memref<16x2048xbf16, #tpu.memory_space<vmem>>, vector<16x2048xbf16>,
    %c0_6 = arith.constant 0 : index
    %c0_7 = arith.constant 0 : index
    %8 = vector.load %arg5[%c0_6, %c0_7] : memref<16x128xf32, #tpu.memory_space<vmem>>, vector<16x128xf32>
    %cst_8 = arith.constant dense<0.000000e+00> : vector<16xf32>
    %9 = vector.multi_reduction <add>, %5, %cst_8 [1] : vector<16x2048xf32> to vector<16xf32>
    %10 = vector.shape_cast %9 : vector<16xf32> to vector<16x1xf32>
    %11 = vector.broadcast %10 : vector<16x1xf32> to vector<16x128xf32>
    %12 = arith.addf %8, %11 : vector<16x128xf32>
    %c0_9 = arith.constant 0 : index
    %c0_10 = arith.constant 0 : index
    %13 = vector.load %arg5[%c0_9, %c0_10] : memref<16x128xf32, #tpu.memory_space<vmem>>, vector<16x128xf32>
    tpu.vector_store %arg5[%c0_9, %c0_10], %12 {strides = array<i32>} : memref<16x128xf32, #tpu.memory_space<vmem>>, vector<16x128xf32>,
    %c0_11 = arith.constant 0 : index
    %c0_12 = arith.constant 0 : index
    %14 = vector.load %arg6[%c0_11, %c0_12] : memref<16x128xf32, #tpu.memory_space<vmem>>, vector<16x128xf32>
    %15 = arith.mulf %5, %5 : vector<16x2048xf32>
    %cst_13 = arith.constant dense<0.000000e+00> : vector<16xf32>
    %16 = vector.multi_reduction <add>, %15, %cst_13 [1] : vector<16x2048xf32> to vector<16xf32>
    %17 = vector.shape_cast %16 : vector<16xf32> to vector<16x1xf32>
    %18 = vector.broadcast %17 : vector<16x1xf32> to vector<16x128xf32>
    %19 = arith.addf %14, %18 : vector<16x128xf32>
    %c0_14 = arith.constant 0 : index
    %c0_15 = arith.constant 0 : index
    %20 = vector.load %arg6[%c0_14, %c0_15] : memref<16x128xf32, #tpu.memory_space<vmem>>, vector<16x128xf32>
    tpu.vector_store %arg6[%c0_14, %c0_15], %19 {strides = array<i32>} : memref<16x128xf32, #tpu.memory_space<vmem>>, vector<16x128xf32>,
    return
  }
  func.func @transform_0(%arg0: i32, %arg1: i32) -> (i32, i32) {
    %c0_i32 = arith.constant 0 : i32
    %c0_i32_0 = arith.constant 0 : i32
    %c0_i32_1 = arith.constant 0 : i32
    return %c0_i32, %c0_i32_0 : i32, i32
  }
  func.func @transform_1(%arg0: i32, %arg1: i32) -> (i32, i32) {
    %c1_i32 = arith.constant 1 : i32
    %0 = arith.muli %arg0, %c1_i32 : i32
    %1 = arith.addi %0, %arg1 : i32
    %c0_i32 = arith.constant 0 : i32
    %c0_i32_0 = arith.constant 0 : i32
    return %c0_i32, %1 : i32, i32
  }
  func.func @transform_2(%arg0: i32, %arg1: i32) -> (i32, i32) {
    %c1_i32 = arith.constant 1 : i32
    %0 = arith.muli %arg0, %c1_i32 : i32
    %1 = arith.addi %0, %arg1 : i32
    %c0_i32 = arith.constant 0 : i32
    %c0_i32_0 = arith.constant 0 : i32
    return %c0_i32, %1 : i32, i32
  }
  func.func @transform_3(%arg0: i32, %arg1: i32) -> (i32, i32) {
    %c0_i32 = arith.constant 0 : i32
    %c0_i32_0 = arith.constant 0 : i32
    return %c0_i32, %arg0 : i32, i32
  }
  func.func @transform_4(%arg0: i32, %arg1: i32) -> (i32, i32) {
    %c0_i32 = arith.constant 0 : i32
    %c0_i32_0 = arith.constant 0 : i32
    return %c0_i32, %arg0 : i32, i32
  }
}

module attributes {stable_mosaic.version = 11 : i64} {
  func.func @_bn_lrelu_kernel(%arg0: i32, %arg1: memref<16x2048xbf16, #tpu.memory_space<vmem>>, %arg2: memref<16x128xf32, #tpu.memory_space<vmem>>, %arg3: memref<16x128xf32, #tpu.memory_space<vmem>>, %arg4: memref<16x1xf32, #tpu.memory_space<vmem>>, %arg5: memref<16x1xf32, #tpu.memory_space<vmem>>, %arg6: memref<16x2048xbf16, #tpu.memory_space<vmem>>) attributes {dimension_semantics = [#tpu.dimension_semantics<parallel>], iteration_bounds = array<i64: 1>, scalar_prefetch = 0 : i64, scratch_operands = 0 : i64, tpu.core_type = #tpu.core_type<tc>, window_params = [{transform_indices = @transform_0, window_bounds = array<i64: 16, 2048>}, {pipeline_mode = #tpu.pipeline_mode<synchronous>, transform_indices = @transform_1, window_bounds = array<i64: 16, 128>}, {pipeline_mode = #tpu.pipeline_mode<synchronous>, transform_indices = @transform_2, window_bounds = array<i64: 16, 128>}, {pipeline_mode = #tpu.pipeline_mode<synchronous>, transform_indices = @transform_3, window_bounds = array<i64: 16, 1>}, {pipeline_mode = #tpu.pipeline_mode<synchronous>, transform_indices = @transform_4, window_bounds = array<i64: 16, 1>}, {transform_indices = @transform_5, window_bounds = array<i64: 16, 2048>}]} {
    %c0 = arith.constant 0 : index
    %c0_0 = arith.constant 0 : index
    %0 = vector.load %arg2[%c0, %c0_0] : memref<16x128xf32, #tpu.memory_space<vmem>>, vector<16x128xf32>
    %cst = arith.constant dense<0.000000e+00> : vector<16xf32>
    %1 = vector.multi_reduction <add>, %0, %cst [1] : vector<16x128xf32> to vector<16xf32>
    %2 = vector.shape_cast %1 : vector<16xf32> to vector<16x1xf32>
    %cst_1 = arith.constant 3.81469727E-6 : f32
    %3 = vector.broadcast %cst_1 : f32 to vector<16x1xf32>
    %4 = arith.mulf %2, %3 : vector<16x1xf32>
    %c0_2 = arith.constant 0 : index
    %c0_3 = arith.constant 0 : index
    %5 = vector.load %arg3[%c0_2, %c0_3] : memref<16x128xf32, #tpu.memory_space<vmem>>, vector<16x128xf32>
    %cst_4 = arith.constant dense<0.000000e+00> : vector<16xf32>
    %6 = vector.multi_reduction <add>, %5, %cst_4 [1] : vector<16x128xf32> to vector<16xf32>
    %7 = vector.shape_cast %6 : vector<16xf32> to vector<16x1xf32>
    %cst_5 = arith.constant 3.81469727E-6 : f32
    %8 = vector.broadcast %cst_5 : f32 to vector<16x1xf32>
    %9 = arith.mulf %7, %8 : vector<16x1xf32>
    %10 = arith.mulf %4, %4 : vector<16x1xf32>
    %11 = arith.subf %9, %10 : vector<16x1xf32>
    %cst_6 = arith.constant 0.000000e+00 : f32
    %12 = vector.broadcast %cst_6 : f32 to vector<16x1xf32>
    %13 = arith.maximumf %11, %12 : vector<16x1xf32>
    %cst_7 = arith.constant 9.99999974E-6 : f32
    %14 = vector.broadcast %cst_7 : f32 to vector<16x1xf32>
    %15 = arith.addf %13, %14 : vector<16x1xf32>
    %16 = math.rsqrt %15 : vector<16x1xf32>
    %c0_8 = arith.constant 0 : index
    %c0_9 = arith.constant 0 : index
    %17 = vector.load %arg4[%c0_8, %c0_9] : memref<16x1xf32, #tpu.memory_space<vmem>>, vector<16x1xf32>
    %18 = arith.mulf %16, %17 : vector<16x1xf32>
    %c0_10 = arith.constant 0 : index
    %c0_11 = arith.constant 0 : index
    %19 = vector.load %arg5[%c0_10, %c0_11] : memref<16x1xf32, #tpu.memory_space<vmem>>, vector<16x1xf32>
    %20 = arith.mulf %4, %18 : vector<16x1xf32>
    %21 = arith.subf %19, %20 : vector<16x1xf32>
    %c0_12 = arith.constant 0 : index
    %c0_13 = arith.constant 0 : index
    %22 = vector.load %arg1[%c0_12, %c0_13] : memref<16x2048xbf16, #tpu.memory_space<vmem>>, vector<16x2048xbf16>
    %23 = arith.extf %22 : vector<16x2048xbf16> to vector<16x2048xf32>
    %24 = vector.broadcast %18 : vector<16x1xf32> to vector<16x2048xf32>
    %25 = arith.mulf %23, %24 : vector<16x2048xf32>
    %26 = vector.broadcast %21 : vector<16x1xf32> to vector<16x2048xf32>
    %27 = arith.addf %25, %26 : vector<16x2048xf32>
    %cst_14 = arith.constant 0.000000e+00 : f32
    %28 = vector.broadcast %cst_14 : f32 to vector<16x2048xf32>
    %29 = arith.cmpf ogt, %27, %28 : vector<16x2048xf32>
    %cst_15 = arith.constant 2.000000e-01 : f32
    %30 = vector.broadcast %cst_15 : f32 to vector<16x2048xf32>
    %31 = arith.mulf %30, %27 : vector<16x2048xf32>
    %32 = arith.select %29, %27, %31 : vector<16x2048xi1>, vector<16x2048xf32>
    %33 = arith.truncf %32 : vector<16x2048xf32> to vector<16x2048xbf16>
    %c0_16 = arith.constant 0 : index
    %c0_17 = arith.constant 0 : index
    %34 = vector.load %arg6[%c0_16, %c0_17] : memref<16x2048xbf16, #tpu.memory_space<vmem>>, vector<16x2048xbf16>
    tpu.vector_store %arg6[%c0_16, %c0_17], %33 {strides = array<i32>} : memref<16x2048xbf16, #tpu.memory_space<vmem>>, vector<16x2048xbf16>,
    return
  }
  func.func @transform_0(%arg0: i32) -> (i32, i32) {
    %c0_i32 = arith.constant 0 : i32
    %c0_i32_0 = arith.constant 0 : i32
    return %c0_i32, %arg0 : i32, i32
  }
  func.func @transform_1(%arg0: i32) -> (i32, i32) {
    %c0_i32 = arith.constant 0 : i32
    %c0_i32_0 = arith.constant 0 : i32
    %c0_i32_1 = arith.constant 0 : i32
    return %c0_i32, %c0_i32_0 : i32, i32
  }
  func.func @transform_2(%arg0: i32) -> (i32, i32) {
    %c0_i32 = arith.constant 0 : i32
    %c0_i32_0 = arith.constant 0 : i32
    %c0_i32_1 = arith.constant 0 : i32
    return %c0_i32, %c0_i32_0 : i32, i32
  }
  func.func @transform_3(%arg0: i32) -> (i32, i32) {
    %c0_i32 = arith.constant 0 : i32
    %c0_i32_0 = arith.constant 0 : i32
    %c0_i32_1 = arith.constant 0 : i32
    return %c0_i32, %c0_i32_0 : i32, i32
  }
  func.func @transform_4(%arg0: i32) -> (i32, i32) {
    %c0_i32 = arith.constant 0 : i32
    %c0_i32_0 = arith.constant 0 : i32
    %c0_i32_1 = arith.constant 0 : i32
    return %c0_i32, %c0_i32_0 : i32, i32
  }
  func.func @transform_5(%arg0: i32) -> (i32, i32) {
    %c0_i32 = arith.constant 0 : i32
    %c0_i32_0 = arith.constant 0 : i32
    return %c0_i32, %arg0 : i32, i32
  }
}

module attributes {stable_mosaic.version = 11 : i64} {
  func.func @_conv_stats_kernel(%arg0: i32, %arg1: i32, %arg2: memref<32x256xbf16, #tpu.memory_space<vmem>>, %arg3: memref<256x512xbf16, #tpu.memory_space<vmem>>, %arg4: memref<32x512xbf16, #tpu.memory_space<vmem>>, %arg5: memref<32x128xf32, #tpu.memory_space<vmem>>, %arg6: memref<32x128xf32, #tpu.memory_space<vmem>>) attributes {dimension_semantics = [#tpu.dimension_semantics<parallel>, #tpu.dimension_semantics<arbitrary>], iteration_bounds = array<i64: 1, 1>, scalar_prefetch = 0 : i64, scratch_operands = 0 : i64, tpu.core_type = #tpu.core_type<tc>, window_params = [{pipeline_mode = #tpu.pipeline_mode<synchronous>, transform_indices = @transform_0, window_bounds = array<i64: 32, 256>}, {transform_indices = @transform_1, window_bounds = array<i64: 256, 512>}, {transform_indices = @transform_2, window_bounds = array<i64: 32, 512>}, {transform_indices = @transform_3, window_bounds = array<i64: 32, 128>}, {transform_indices = @transform_4, window_bounds = array<i64: 32, 128>}]} {
    %c0_i32 = arith.constant 0 : i32
    %0 = arith.cmpi eq, %arg1, %c0_i32 : i32
    %1 = arith.extui %0 : i1 to i32
    %c0_i32_0 = arith.constant 0 : i32
    %2 = arith.cmpi ne, %1, %c0_i32_0 : i32
    scf.if %2 {
      %cst_16 = arith.constant 0.000000e+00 : f32
      %21 = vector.broadcast %cst_16 : f32 to vector<32x128xf32>
      %c0_17 = arith.constant 0 : index
      %c0_18 = arith.constant 0 : index
      %22 = vector.load %arg5[%c0_17, %c0_18] : memref<32x128xf32, #tpu.memory_space<vmem>>, vector<32x128xf32>
      tpu.vector_store %arg5[%c0_17, %c0_18], %21 {strides = array<i32>} : memref<32x128xf32, #tpu.memory_space<vmem>>, vector<32x128xf32>,
      %cst_19 = arith.constant 0.000000e+00 : f32
      %23 = vector.broadcast %cst_19 : f32 to vector<32x128xf32>
      %c0_20 = arith.constant 0 : index
      %c0_21 = arith.constant 0 : index
      %24 = vector.load %arg6[%c0_20, %c0_21] : memref<32x128xf32, #tpu.memory_space<vmem>>, vector<32x128xf32>
      tpu.vector_store %arg6[%c0_20, %c0_21], %23 {strides = array<i32>} : memref<32x128xf32, #tpu.memory_space<vmem>>, vector<32x128xf32>,
    } else {
    }
    %c0 = arith.constant 0 : index
    %c0_1 = arith.constant 0 : index
    %3 = vector.load %arg2[%c0, %c0_1] : memref<32x256xbf16, #tpu.memory_space<vmem>>, vector<32x256xbf16>
    %c0_2 = arith.constant 0 : index
    %c0_3 = arith.constant 0 : index
    %4 = vector.load %arg3[%c0_2, %c0_3] : memref<256x512xbf16, #tpu.memory_space<vmem>>, vector<256x512xbf16>
    %cst = arith.constant dense<0.000000e+00> : vector<32x512xf32>
    %5 = tpu.matmul %3, %4, %cst {dimension_numbers = #tpu.dot_dimension_numbers<[1], [0], [0], [1], [0, 0, 1, 1], [], []>} : vector<32x256xbf16>, vector<256x512xbf16>, vector<32x512xf32> -> vector<32x512xf32>
    %6 = arith.truncf %5 : vector<32x512xf32> to vector<32x512xbf16>
    %c0_4 = arith.constant 0 : index
    %c0_5 = arith.constant 0 : index
    %7 = vector.load %arg4[%c0_4, %c0_5] : memref<32x512xbf16, #tpu.memory_space<vmem>>, vector<32x512xbf16>
    tpu.vector_store %arg4[%c0_4, %c0_5], %6 {strides = array<i32>} : memref<32x512xbf16, #tpu.memory_space<vmem>>, vector<32x512xbf16>,
    %c0_6 = arith.constant 0 : index
    %c0_7 = arith.constant 0 : index
    %8 = vector.load %arg5[%c0_6, %c0_7] : memref<32x128xf32, #tpu.memory_space<vmem>>, vector<32x128xf32>
    %cst_8 = arith.constant dense<0.000000e+00> : vector<32xf32>
    %9 = vector.multi_reduction <add>, %5, %cst_8 [1] : vector<32x512xf32> to vector<32xf32>
    %10 = vector.shape_cast %9 : vector<32xf32> to vector<32x1xf32>
    %11 = vector.broadcast %10 : vector<32x1xf32> to vector<32x128xf32>
    %12 = arith.addf %8, %11 : vector<32x128xf32>
    %c0_9 = arith.constant 0 : index
    %c0_10 = arith.constant 0 : index
    %13 = vector.load %arg5[%c0_9, %c0_10] : memref<32x128xf32, #tpu.memory_space<vmem>>, vector<32x128xf32>
    tpu.vector_store %arg5[%c0_9, %c0_10], %12 {strides = array<i32>} : memref<32x128xf32, #tpu.memory_space<vmem>>, vector<32x128xf32>,
    %c0_11 = arith.constant 0 : index
    %c0_12 = arith.constant 0 : index
    %14 = vector.load %arg6[%c0_11, %c0_12] : memref<32x128xf32, #tpu.memory_space<vmem>>, vector<32x128xf32>
    %15 = arith.mulf %5, %5 : vector<32x512xf32>
    %cst_13 = arith.constant dense<0.000000e+00> : vector<32xf32>
    %16 = vector.multi_reduction <add>, %15, %cst_13 [1] : vector<32x512xf32> to vector<32xf32>
    %17 = vector.shape_cast %16 : vector<32xf32> to vector<32x1xf32>
    %18 = vector.broadcast %17 : vector<32x1xf32> to vector<32x128xf32>
    %19 = arith.addf %14, %18 : vector<32x128xf32>
    %c0_14 = arith.constant 0 : index
    %c0_15 = arith.constant 0 : index
    %20 = vector.load %arg6[%c0_14, %c0_15] : memref<32x128xf32, #tpu.memory_space<vmem>>, vector<32x128xf32>
    tpu.vector_store %arg6[%c0_14, %c0_15], %19 {strides = array<i32>} : memref<32x128xf32, #tpu.memory_space<vmem>>, vector<32x128xf32>,
    return
  }
  func.func @transform_0(%arg0: i32, %arg1: i32) -> (i32, i32) {
    %c0_i32 = arith.constant 0 : i32
    %c0_i32_0 = arith.constant 0 : i32
    %c0_i32_1 = arith.constant 0 : i32
    return %c0_i32, %c0_i32_0 : i32, i32
  }
  func.func @transform_1(%arg0: i32, %arg1: i32) -> (i32, i32) {
    %c1_i32 = arith.constant 1 : i32
    %0 = arith.muli %arg0, %c1_i32 : i32
    %1 = arith.addi %0, %arg1 : i32
    %c0_i32 = arith.constant 0 : i32
    %c0_i32_0 = arith.constant 0 : i32
    return %c0_i32, %1 : i32, i32
  }
  func.func @transform_2(%arg0: i32, %arg1: i32) -> (i32, i32) {
    %c1_i32 = arith.constant 1 : i32
    %0 = arith.muli %arg0, %c1_i32 : i32
    %1 = arith.addi %0, %arg1 : i32
    %c0_i32 = arith.constant 0 : i32
    %c0_i32_0 = arith.constant 0 : i32
    return %c0_i32, %1 : i32, i32
  }
  func.func @transform_3(%arg0: i32, %arg1: i32) -> (i32, i32) {
    %c0_i32 = arith.constant 0 : i32
    %c0_i32_0 = arith.constant 0 : i32
    return %c0_i32, %arg0 : i32, i32
  }
  func.func @transform_4(%arg0: i32, %arg1: i32) -> (i32, i32) {
    %c0_i32 = arith.constant 0 : i32
    %c0_i32_0 = arith.constant 0 : i32
    return %c0_i32, %arg0 : i32, i32
  }
}

module attributes {stable_mosaic.version = 11 : i64} {
  func.func @_bn_lrelu_kernel(%arg0: i32, %arg1: memref<32x512xbf16, #tpu.memory_space<vmem>>, %arg2: memref<32x128xf32, #tpu.memory_space<vmem>>, %arg3: memref<32x128xf32, #tpu.memory_space<vmem>>, %arg4: memref<32x1xf32, #tpu.memory_space<vmem>>, %arg5: memref<32x1xf32, #tpu.memory_space<vmem>>, %arg6: memref<32x512xbf16, #tpu.memory_space<vmem>>) attributes {dimension_semantics = [#tpu.dimension_semantics<parallel>], iteration_bounds = array<i64: 1>, scalar_prefetch = 0 : i64, scratch_operands = 0 : i64, tpu.core_type = #tpu.core_type<tc>, window_params = [{transform_indices = @transform_0, window_bounds = array<i64: 32, 512>}, {pipeline_mode = #tpu.pipeline_mode<synchronous>, transform_indices = @transform_1, window_bounds = array<i64: 32, 128>}, {pipeline_mode = #tpu.pipeline_mode<synchronous>, transform_indices = @transform_2, window_bounds = array<i64: 32, 128>}, {pipeline_mode = #tpu.pipeline_mode<synchronous>, transform_indices = @transform_3, window_bounds = array<i64: 32, 1>}, {pipeline_mode = #tpu.pipeline_mode<synchronous>, transform_indices = @transform_4, window_bounds = array<i64: 32, 1>}, {transform_indices = @transform_5, window_bounds = array<i64: 32, 512>}]} {
    %c0 = arith.constant 0 : index
    %c0_0 = arith.constant 0 : index
    %0 = vector.load %arg2[%c0, %c0_0] : memref<32x128xf32, #tpu.memory_space<vmem>>, vector<32x128xf32>
    %cst = arith.constant dense<0.000000e+00> : vector<32xf32>
    %1 = vector.multi_reduction <add>, %0, %cst [1] : vector<32x128xf32> to vector<32xf32>
    %2 = vector.shape_cast %1 : vector<32xf32> to vector<32x1xf32>
    %cst_1 = arith.constant 1.52587891E-5 : f32
    %3 = vector.broadcast %cst_1 : f32 to vector<32x1xf32>
    %4 = arith.mulf %2, %3 : vector<32x1xf32>
    %c0_2 = arith.constant 0 : index
    %c0_3 = arith.constant 0 : index
    %5 = vector.load %arg3[%c0_2, %c0_3] : memref<32x128xf32, #tpu.memory_space<vmem>>, vector<32x128xf32>
    %cst_4 = arith.constant dense<0.000000e+00> : vector<32xf32>
    %6 = vector.multi_reduction <add>, %5, %cst_4 [1] : vector<32x128xf32> to vector<32xf32>
    %7 = vector.shape_cast %6 : vector<32xf32> to vector<32x1xf32>
    %cst_5 = arith.constant 1.52587891E-5 : f32
    %8 = vector.broadcast %cst_5 : f32 to vector<32x1xf32>
    %9 = arith.mulf %7, %8 : vector<32x1xf32>
    %10 = arith.mulf %4, %4 : vector<32x1xf32>
    %11 = arith.subf %9, %10 : vector<32x1xf32>
    %cst_6 = arith.constant 0.000000e+00 : f32
    %12 = vector.broadcast %cst_6 : f32 to vector<32x1xf32>
    %13 = arith.maximumf %11, %12 : vector<32x1xf32>
    %cst_7 = arith.constant 9.99999974E-6 : f32
    %14 = vector.broadcast %cst_7 : f32 to vector<32x1xf32>
    %15 = arith.addf %13, %14 : vector<32x1xf32>
    %16 = math.rsqrt %15 : vector<32x1xf32>
    %c0_8 = arith.constant 0 : index
    %c0_9 = arith.constant 0 : index
    %17 = vector.load %arg4[%c0_8, %c0_9] : memref<32x1xf32, #tpu.memory_space<vmem>>, vector<32x1xf32>
    %18 = arith.mulf %16, %17 : vector<32x1xf32>
    %c0_10 = arith.constant 0 : index
    %c0_11 = arith.constant 0 : index
    %19 = vector.load %arg5[%c0_10, %c0_11] : memref<32x1xf32, #tpu.memory_space<vmem>>, vector<32x1xf32>
    %20 = arith.mulf %4, %18 : vector<32x1xf32>
    %21 = arith.subf %19, %20 : vector<32x1xf32>
    %c0_12 = arith.constant 0 : index
    %c0_13 = arith.constant 0 : index
    %22 = vector.load %arg1[%c0_12, %c0_13] : memref<32x512xbf16, #tpu.memory_space<vmem>>, vector<32x512xbf16>
    %23 = arith.extf %22 : vector<32x512xbf16> to vector<32x512xf32>
    %24 = vector.broadcast %18 : vector<32x1xf32> to vector<32x512xf32>
    %25 = arith.mulf %23, %24 : vector<32x512xf32>
    %26 = vector.broadcast %21 : vector<32x1xf32> to vector<32x512xf32>
    %27 = arith.addf %25, %26 : vector<32x512xf32>
    %cst_14 = arith.constant 0.000000e+00 : f32
    %28 = vector.broadcast %cst_14 : f32 to vector<32x512xf32>
    %29 = arith.cmpf ogt, %27, %28 : vector<32x512xf32>
    %cst_15 = arith.constant 2.000000e-01 : f32
    %30 = vector.broadcast %cst_15 : f32 to vector<32x512xf32>
    %31 = arith.mulf %30, %27 : vector<32x512xf32>
    %32 = arith.select %29, %27, %31 : vector<32x512xi1>, vector<32x512xf32>
    %33 = arith.truncf %32 : vector<32x512xf32> to vector<32x512xbf16>
    %c0_16 = arith.constant 0 : index
    %c0_17 = arith.constant 0 : index
    %34 = vector.load %arg6[%c0_16, %c0_17] : memref<32x512xbf16, #tpu.memory_space<vmem>>, vector<32x512xbf16>
    tpu.vector_store %arg6[%c0_16, %c0_17], %33 {strides = array<i32>} : memref<32x512xbf16, #tpu.memory_space<vmem>>, vector<32x512xbf16>,
    return
  }
  func.func @transform_0(%arg0: i32) -> (i32, i32) {
    %c0_i32 = arith.constant 0 : i32
    %c0_i32_0 = arith.constant 0 : i32
    return %c0_i32, %arg0 : i32, i32
  }
  func.func @transform_1(%arg0: i32) -> (i32, i32) {
    %c0_i32 = arith.constant 0 : i32
    %c0_i32_0 = arith.constant 0 : i32
    %c0_i32_1 = arith.constant 0 : i32
    return %c0_i32, %c0_i32_0 : i32, i32
  }
  func.func @transform_2(%arg0: i32) -> (i32, i32) {
    %c0_i32 = arith.constant 0 : i32
    %c0_i32_0 = arith.constant 0 : i32
    %c0_i32_1 = arith.constant 0 : i32
    return %c0_i32, %c0_i32_0 : i32, i32
  }
  func.func @transform_3(%arg0: i32) -> (i32, i32) {
    %c0_i32 = arith.constant 0 : i32
    %c0_i32_0 = arith.constant 0 : i32
    %c0_i32_1 = arith.constant 0 : i32
    return %c0_i32, %c0_i32_0 : i32, i32
  }
  func.func @transform_4(%arg0: i32) -> (i32, i32) {
    %c0_i32 = arith.constant 0 : i32
    %c0_i32_0 = arith.constant 0 : i32
    %c0_i32_1 = arith.constant 0 : i32
    return %c0_i32, %c0_i32_0 : i32, i32
  }
  func.func @transform_5(%arg0: i32) -> (i32, i32) {
    %c0_i32 = arith.constant 0 : i32
    %c0_i32_0 = arith.constant 0 : i32
    return %c0_i32, %arg0 : i32, i32
  }
}

module attributes {stable_mosaic.version = 11 : i64} {
  func.func @_conv_stats_kernel(%arg0: i32, %arg1: i32, %arg2: memref<64x512xbf16, #tpu.memory_space<vmem>>, %arg3: memref<512x128xbf16, #tpu.memory_space<vmem>>, %arg4: memref<64x128xbf16, #tpu.memory_space<vmem>>, %arg5: memref<64x128xf32, #tpu.memory_space<vmem>>, %arg6: memref<64x128xf32, #tpu.memory_space<vmem>>) attributes {dimension_semantics = [#tpu.dimension_semantics<parallel>, #tpu.dimension_semantics<arbitrary>], iteration_bounds = array<i64: 1, 1>, scalar_prefetch = 0 : i64, scratch_operands = 0 : i64, tpu.core_type = #tpu.core_type<tc>, window_params = [{pipeline_mode = #tpu.pipeline_mode<synchronous>, transform_indices = @transform_0, window_bounds = array<i64: 64, 512>}, {transform_indices = @transform_1, window_bounds = array<i64: 512, 128>}, {transform_indices = @transform_2, window_bounds = array<i64: 64, 128>}, {transform_indices = @transform_3, window_bounds = array<i64: 64, 128>}, {transform_indices = @transform_4, window_bounds = array<i64: 64, 128>}]} {
    %c0_i32 = arith.constant 0 : i32
    %0 = arith.cmpi eq, %arg1, %c0_i32 : i32
    %1 = arith.extui %0 : i1 to i32
    %c0_i32_0 = arith.constant 0 : i32
    %2 = arith.cmpi ne, %1, %c0_i32_0 : i32
    scf.if %2 {
      %cst_16 = arith.constant 0.000000e+00 : f32
      %21 = vector.broadcast %cst_16 : f32 to vector<64x128xf32>
      %c0_17 = arith.constant 0 : index
      %c0_18 = arith.constant 0 : index
      %22 = vector.load %arg5[%c0_17, %c0_18] : memref<64x128xf32, #tpu.memory_space<vmem>>, vector<64x128xf32>
      tpu.vector_store %arg5[%c0_17, %c0_18], %21 {strides = array<i32>} : memref<64x128xf32, #tpu.memory_space<vmem>>, vector<64x128xf32>,
      %cst_19 = arith.constant 0.000000e+00 : f32
      %23 = vector.broadcast %cst_19 : f32 to vector<64x128xf32>
      %c0_20 = arith.constant 0 : index
      %c0_21 = arith.constant 0 : index
      %24 = vector.load %arg6[%c0_20, %c0_21] : memref<64x128xf32, #tpu.memory_space<vmem>>, vector<64x128xf32>
      tpu.vector_store %arg6[%c0_20, %c0_21], %23 {strides = array<i32>} : memref<64x128xf32, #tpu.memory_space<vmem>>, vector<64x128xf32>,
    } else {
    }
    %c0 = arith.constant 0 : index
    %c0_1 = arith.constant 0 : index
    %3 = vector.load %arg2[%c0, %c0_1] : memref<64x512xbf16, #tpu.memory_space<vmem>>, vector<64x512xbf16>
    %c0_2 = arith.constant 0 : index
    %c0_3 = arith.constant 0 : index
    %4 = vector.load %arg3[%c0_2, %c0_3] : memref<512x128xbf16, #tpu.memory_space<vmem>>, vector<512x128xbf16>
    %cst = arith.constant dense<0.000000e+00> : vector<64x128xf32>
    %5 = tpu.matmul %3, %4, %cst {dimension_numbers = #tpu.dot_dimension_numbers<[1], [0], [0], [1], [0, 0, 1, 1], [], []>} : vector<64x512xbf16>, vector<512x128xbf16>, vector<64x128xf32> -> vector<64x128xf32>
    %6 = arith.truncf %5 : vector<64x128xf32> to vector<64x128xbf16>
    %c0_4 = arith.constant 0 : index
    %c0_5 = arith.constant 0 : index
    %7 = vector.load %arg4[%c0_4, %c0_5] : memref<64x128xbf16, #tpu.memory_space<vmem>>, vector<64x128xbf16>
    tpu.vector_store %arg4[%c0_4, %c0_5], %6 {strides = array<i32>} : memref<64x128xbf16, #tpu.memory_space<vmem>>, vector<64x128xbf16>,
    %c0_6 = arith.constant 0 : index
    %c0_7 = arith.constant 0 : index
    %8 = vector.load %arg5[%c0_6, %c0_7] : memref<64x128xf32, #tpu.memory_space<vmem>>, vector<64x128xf32>
    %cst_8 = arith.constant dense<0.000000e+00> : vector<64xf32>
    %9 = vector.multi_reduction <add>, %5, %cst_8 [1] : vector<64x128xf32> to vector<64xf32>
    %10 = vector.shape_cast %9 : vector<64xf32> to vector<64x1xf32>
    %11 = vector.broadcast %10 : vector<64x1xf32> to vector<64x128xf32>
    %12 = arith.addf %8, %11 : vector<64x128xf32>
    %c0_9 = arith.constant 0 : index
    %c0_10 = arith.constant 0 : index
    %13 = vector.load %arg5[%c0_9, %c0_10] : memref<64x128xf32, #tpu.memory_space<vmem>>, vector<64x128xf32>
    tpu.vector_store %arg5[%c0_9, %c0_10], %12 {strides = array<i32>} : memref<64x128xf32, #tpu.memory_space<vmem>>, vector<64x128xf32>,
    %c0_11 = arith.constant 0 : index
    %c0_12 = arith.constant 0 : index
    %14 = vector.load %arg6[%c0_11, %c0_12] : memref<64x128xf32, #tpu.memory_space<vmem>>, vector<64x128xf32>
    %15 = arith.mulf %5, %5 : vector<64x128xf32>
    %cst_13 = arith.constant dense<0.000000e+00> : vector<64xf32>
    %16 = vector.multi_reduction <add>, %15, %cst_13 [1] : vector<64x128xf32> to vector<64xf32>
    %17 = vector.shape_cast %16 : vector<64xf32> to vector<64x1xf32>
    %18 = vector.broadcast %17 : vector<64x1xf32> to vector<64x128xf32>
    %19 = arith.addf %14, %18 : vector<64x128xf32>
    %c0_14 = arith.constant 0 : index
    %c0_15 = arith.constant 0 : index
    %20 = vector.load %arg6[%c0_14, %c0_15] : memref<64x128xf32, #tpu.memory_space<vmem>>, vector<64x128xf32>
    tpu.vector_store %arg6[%c0_14, %c0_15], %19 {strides = array<i32>} : memref<64x128xf32, #tpu.memory_space<vmem>>, vector<64x128xf32>,
    return
  }
  func.func @transform_0(%arg0: i32, %arg1: i32) -> (i32, i32) {
    %c0_i32 = arith.constant 0 : i32
    %c0_i32_0 = arith.constant 0 : i32
    %c0_i32_1 = arith.constant 0 : i32
    return %c0_i32, %c0_i32_0 : i32, i32
  }
  func.func @transform_1(%arg0: i32, %arg1: i32) -> (i32, i32) {
    %c1_i32 = arith.constant 1 : i32
    %0 = arith.muli %arg0, %c1_i32 : i32
    %1 = arith.addi %0, %arg1 : i32
    %c0_i32 = arith.constant 0 : i32
    %c0_i32_0 = arith.constant 0 : i32
    return %c0_i32, %1 : i32, i32
  }
  func.func @transform_2(%arg0: i32, %arg1: i32) -> (i32, i32) {
    %c1_i32 = arith.constant 1 : i32
    %0 = arith.muli %arg0, %c1_i32 : i32
    %1 = arith.addi %0, %arg1 : i32
    %c0_i32 = arith.constant 0 : i32
    %c0_i32_0 = arith.constant 0 : i32
    return %c0_i32, %1 : i32, i32
  }
  func.func @transform_3(%arg0: i32, %arg1: i32) -> (i32, i32) {
    %c0_i32 = arith.constant 0 : i32
    %c0_i32_0 = arith.constant 0 : i32
    return %c0_i32, %arg0 : i32, i32
  }
  func.func @transform_4(%arg0: i32, %arg1: i32) -> (i32, i32) {
    %c0_i32 = arith.constant 0 : i32
    %c0_i32_0 = arith.constant 0 : i32
    return %c0_i32, %arg0 : i32, i32
  }
}

module attributes {stable_mosaic.version = 11 : i64} {
  func.func @_bn_lrelu_kernel(%arg0: i32, %arg1: memref<64x128xbf16, #tpu.memory_space<vmem>>, %arg2: memref<64x128xf32, #tpu.memory_space<vmem>>, %arg3: memref<64x128xf32, #tpu.memory_space<vmem>>, %arg4: memref<64x1xf32, #tpu.memory_space<vmem>>, %arg5: memref<64x1xf32, #tpu.memory_space<vmem>>, %arg6: memref<64x128xbf16, #tpu.memory_space<vmem>>) attributes {dimension_semantics = [#tpu.dimension_semantics<parallel>], iteration_bounds = array<i64: 1>, scalar_prefetch = 0 : i64, scratch_operands = 0 : i64, tpu.core_type = #tpu.core_type<tc>, window_params = [{transform_indices = @transform_0, window_bounds = array<i64: 64, 128>}, {pipeline_mode = #tpu.pipeline_mode<synchronous>, transform_indices = @transform_1, window_bounds = array<i64: 64, 128>}, {pipeline_mode = #tpu.pipeline_mode<synchronous>, transform_indices = @transform_2, window_bounds = array<i64: 64, 128>}, {pipeline_mode = #tpu.pipeline_mode<synchronous>, transform_indices = @transform_3, window_bounds = array<i64: 64, 1>}, {pipeline_mode = #tpu.pipeline_mode<synchronous>, transform_indices = @transform_4, window_bounds = array<i64: 64, 1>}, {transform_indices = @transform_5, window_bounds = array<i64: 64, 128>}]} {
    %c0 = arith.constant 0 : index
    %c0_0 = arith.constant 0 : index
    %0 = vector.load %arg2[%c0, %c0_0] : memref<64x128xf32, #tpu.memory_space<vmem>>, vector<64x128xf32>
    %cst = arith.constant dense<0.000000e+00> : vector<64xf32>
    %1 = vector.multi_reduction <add>, %0, %cst [1] : vector<64x128xf32> to vector<64xf32>
    %2 = vector.shape_cast %1 : vector<64xf32> to vector<64x1xf32>
    %cst_1 = arith.constant 6.10351563E-5 : f32
    %3 = vector.broadcast %cst_1 : f32 to vector<64x1xf32>
    %4 = arith.mulf %2, %3 : vector<64x1xf32>
    %c0_2 = arith.constant 0 : index
    %c0_3 = arith.constant 0 : index
    %5 = vector.load %arg3[%c0_2, %c0_3] : memref<64x128xf32, #tpu.memory_space<vmem>>, vector<64x128xf32>
    %cst_4 = arith.constant dense<0.000000e+00> : vector<64xf32>
    %6 = vector.multi_reduction <add>, %5, %cst_4 [1] : vector<64x128xf32> to vector<64xf32>
    %7 = vector.shape_cast %6 : vector<64xf32> to vector<64x1xf32>
    %cst_5 = arith.constant 6.10351563E-5 : f32
    %8 = vector.broadcast %cst_5 : f32 to vector<64x1xf32>
    %9 = arith.mulf %7, %8 : vector<64x1xf32>
    %10 = arith.mulf %4, %4 : vector<64x1xf32>
    %11 = arith.subf %9, %10 : vector<64x1xf32>
    %cst_6 = arith.constant 0.000000e+00 : f32
    %12 = vector.broadcast %cst_6 : f32 to vector<64x1xf32>
    %13 = arith.maximumf %11, %12 : vector<64x1xf32>
    %cst_7 = arith.constant 9.99999974E-6 : f32
    %14 = vector.broadcast %cst_7 : f32 to vector<64x1xf32>
    %15 = arith.addf %13, %14 : vector<64x1xf32>
    %16 = math.rsqrt %15 : vector<64x1xf32>
    %c0_8 = arith.constant 0 : index
    %c0_9 = arith.constant 0 : index
    %17 = vector.load %arg4[%c0_8, %c0_9] : memref<64x1xf32, #tpu.memory_space<vmem>>, vector<64x1xf32>
    %18 = arith.mulf %16, %17 : vector<64x1xf32>
    %c0_10 = arith.constant 0 : index
    %c0_11 = arith.constant 0 : index
    %19 = vector.load %arg5[%c0_10, %c0_11] : memref<64x1xf32, #tpu.memory_space<vmem>>, vector<64x1xf32>
    %20 = arith.mulf %4, %18 : vector<64x1xf32>
    %21 = arith.subf %19, %20 : vector<64x1xf32>
    %c0_12 = arith.constant 0 : index
    %c0_13 = arith.constant 0 : index
    %22 = vector.load %arg1[%c0_12, %c0_13] : memref<64x128xbf16, #tpu.memory_space<vmem>>, vector<64x128xbf16>
    %23 = arith.extf %22 : vector<64x128xbf16> to vector<64x128xf32>
    %24 = vector.broadcast %18 : vector<64x1xf32> to vector<64x128xf32>
    %25 = arith.mulf %23, %24 : vector<64x128xf32>
    %26 = vector.broadcast %21 : vector<64x1xf32> to vector<64x128xf32>
    %27 = arith.addf %25, %26 : vector<64x128xf32>
    %cst_14 = arith.constant 0.000000e+00 : f32
    %28 = vector.broadcast %cst_14 : f32 to vector<64x128xf32>
    %29 = arith.cmpf ogt, %27, %28 : vector<64x128xf32>
    %cst_15 = arith.constant 2.000000e-01 : f32
    %30 = vector.broadcast %cst_15 : f32 to vector<64x128xf32>
    %31 = arith.mulf %30, %27 : vector<64x128xf32>
    %32 = arith.select %29, %27, %31 : vector<64x128xi1>, vector<64x128xf32>
    %33 = arith.truncf %32 : vector<64x128xf32> to vector<64x128xbf16>
    %c0_16 = arith.constant 0 : index
    %c0_17 = arith.constant 0 : index
    %34 = vector.load %arg6[%c0_16, %c0_17] : memref<64x128xbf16, #tpu.memory_space<vmem>>, vector<64x128xbf16>
    tpu.vector_store %arg6[%c0_16, %c0_17], %33 {strides = array<i32>} : memref<64x128xbf16, #tpu.memory_space<vmem>>, vector<64x128xbf16>,
    return
  }
  func.func @transform_0(%arg0: i32) -> (i32, i32) {
    %c0_i32 = arith.constant 0 : i32
    %c0_i32_0 = arith.constant 0 : i32
    return %c0_i32, %arg0 : i32, i32
  }
  func.func @transform_1(%arg0: i32) -> (i32, i32) {
    %c0_i32 = arith.constant 0 : i32
    %c0_i32_0 = arith.constant 0 : i32
    %c0_i32_1 = arith.constant 0 : i32
    return %c0_i32, %c0_i32_0 : i32, i32
  }
  func.func @transform_2(%arg0: i32) -> (i32, i32) {
    %c0_i32 = arith.constant 0 : i32
    %c0_i32_0 = arith.constant 0 : i32
    %c0_i32_1 = arith.constant 0 : i32
    return %c0_i32, %c0_i32_0 : i32, i32
  }
  func.func @transform_3(%arg0: i32) -> (i32, i32) {
    %c0_i32 = arith.constant 0 : i32
    %c0_i32_0 = arith.constant 0 : i32
    %c0_i32_1 = arith.constant 0 : i32
    return %c0_i32, %c0_i32_0 : i32, i32
  }
  func.func @transform_4(%arg0: i32) -> (i32, i32) {
    %c0_i32 = arith.constant 0 : i32
    %c0_i32_0 = arith.constant 0 : i32
    %c0_i32_1 = arith.constant 0 : i32
    return %c0_i32, %c0_i32_0 : i32, i32
  }
  func.func @transform_5(%arg0: i32) -> (i32, i32) {
    %c0_i32 = arith.constant 0 : i32
    %c0_i32_0 = arith.constant 0 : i32
    return %c0_i32, %arg0 : i32, i32
  }
}

module attributes {stable_mosaic.version = 11 : i64} {
  func.func @_head_kernel(%arg0: i32, %arg1: memref<2x25600xbf16, #tpu.memory_space<vmem>>, %arg2: memref<1x25600xbf16, #tpu.memory_space<vmem>>, %arg3: memref<1x1xf32, #tpu.memory_space<vmem>>, %arg4: memref<2x1xf32, #tpu.memory_space<vmem>>) attributes {dimension_semantics = [#tpu.dimension_semantics<parallel>], iteration_bounds = array<i64: 1>, scalar_prefetch = 0 : i64, scratch_operands = 0 : i64, tpu.core_type = #tpu.core_type<tc>, window_params = [{transform_indices = @transform_0, window_bounds = array<i64: 2, 25600>}, {pipeline_mode = #tpu.pipeline_mode<synchronous>, transform_indices = @transform_1, window_bounds = array<i64: 1, 25600>}, {pipeline_mode = #tpu.pipeline_mode<synchronous>, transform_indices = @transform_2, window_bounds = array<i64: 1, 1>}, {transform_indices = @transform_3, window_bounds = array<i64: 2, 1>}]} {
    %c0 = arith.constant 0 : index
    %c0_0 = arith.constant 0 : index
    %0 = vector.load %arg1[%c0, %c0_0] : memref<2x25600xbf16, #tpu.memory_space<vmem>>, vector<2x25600xbf16>
    %1 = arith.extf %0 : vector<2x25600xbf16> to vector<2x25600xf32>
    %c0_1 = arith.constant 0 : index
    %c0_2 = arith.constant 0 : index
    %2 = vector.load %arg2[%c0_1, %c0_2] : memref<1x25600xbf16, #tpu.memory_space<vmem>>, vector<1x25600xbf16>
    %3 = arith.extf %2 : vector<1x25600xbf16> to vector<1x25600xf32>
    %4 = vector.broadcast %3 : vector<1x25600xf32> to vector<2x25600xf32>
    %5 = arith.mulf %1, %4 : vector<2x25600xf32>
    %cst = arith.constant dense<0.000000e+00> : vector<2xf32>
    %6 = vector.multi_reduction <add>, %5, %cst [1] : vector<2x25600xf32> to vector<2xf32>
    %7 = vector.shape_cast %6 : vector<2xf32> to vector<2x1xf32>
    %c0_3 = arith.constant 0 : index
    %c0_4 = arith.constant 0 : index
    %8 = vector.load %arg3[%c0_3, %c0_4] : memref<1x1xf32, #tpu.memory_space<vmem>>, vector<1x1xf32>
    %9 = vector.broadcast %8 : vector<1x1xf32> to vector<2x1xf32>
    %10 = arith.addf %7, %9 : vector<2x1xf32>
    %11 = arith.negf %10 : vector<2x1xf32>
    %12 = math.exp %11 : vector<2x1xf32>
    %cst_5 = arith.constant 1.000000e+00 : f32
    %13 = vector.broadcast %cst_5 : f32 to vector<2x1xf32>
    %14 = arith.addf %13, %12 : vector<2x1xf32>
    %15 = arith.divf %13, %14 : vector<2x1xf32>
    %c0_6 = arith.constant 0 : index
    %c0_7 = arith.constant 0 : index
    %16 = vector.load %arg4[%c0_6, %c0_7] : memref<2x1xf32, #tpu.memory_space<vmem>>, vector<2x1xf32>
    tpu.vector_store %arg4[%c0_6, %c0_7], %15 {strides = array<i32>} : memref<2x1xf32, #tpu.memory_space<vmem>>, vector<2x1xf32>,
    return
  }
  func.func @transform_0(%arg0: i32) -> (i32, i32) {
    %c0_i32 = arith.constant 0 : i32
    %c0_i32_0 = arith.constant 0 : i32
    return %arg0, %c0_i32 : i32, i32
  }
  func.func @transform_1(%arg0: i32) -> (i32, i32) {
    %c0_i32 = arith.constant 0 : i32
    %c0_i32_0 = arith.constant 0 : i32
    %c0_i32_1 = arith.constant 0 : i32
    return %c0_i32, %c0_i32_0 : i32, i32
  }
  func.func @transform_2(%arg0: i32) -> (i32, i32) {
    %c0_i32 = arith.constant 0 : i32
    %c0_i32_0 = arith.constant 0 : i32
    %c0_i32_1 = arith.constant 0 : i32
    return %c0_i32, %c0_i32_0 : i32, i32
  }
  func.func @transform_3(%arg0: i32) -> (i32, i32) {
    %c0_i32 = arith.constant 0 : i32
    %c0_i32_0 = arith.constant 0 : i32
    return %arg0, %c0_i32 : i32, i32
  }
}

</mosaic_0001>

<bundles_post_ra>
// kernel: discriminator_forward.8
= control target key start
LH: loop header
LB: loop body
LE: loop exit
PB: predicated region body
PF: predicated region fallthrough
CT: control target
= control target key end

     0   :  { %s2119_s9 = smov 0   ;;  %s2121_s10 = smov 0   ;;  %s2536_s0 = inlined_call_operand.vmem [shape: bf16[8,48], index: 0, kind: input, shape index: {}]   ;;  %s2537_s1 = inlined_call_operand.vmem [shape: bf16[48,8192], index: 1, kind: input, shape index: {}]   ;;  %s2538_s2 = inlined_call_operand.vmem [shape: bf16[8,8192], index: 2, kind: output, shape index: {}]  }
   0x1   :  { %s2123_s11 = smov 0  }
   0x2 LB: > { %s1896_s12 = sadd.s32 4294967295, %s2101_s11   ;;  %s2136_s13 = sadd.s32 1, %s2101_s11   ;;  %s2101_s11 = sphi %s2123_s11, %s2541_s11   ;;  %s2097_s10 = sphi %s2121_s10, %s2540_s10   ;;  %s2093_s9 = sphi %s2119_s9, %s2539_s9  }
   0x3   : > { %s37_s14 = ssub.s32 %s2101_s11, %s2136_s13  ;;  %s40_s15 = sadd.s32 1, %s2097_s10 }
   0x4   : > { %p38_p0 = scmp.eq.s32.totalorder %s37_s14, 0  ;;  %p47_p1 = scmp.ne.s32.totalorder %s2097_s10, %s2093_s9 }
   0x5   : > { %p48_p2 = scmp.eq.s32.totalorder %s2101_s11, 0  ;;  %p1899_p4 = scmp.ge.s32.totalorder %s2101_s11, 2 }
   0x6   : > { %s2145_s16 = scalar_select %p38_p0, %s2097_s10, %s40_s15  }
   0x7   : > { %p49_p3 = por %p48_p2, %p47_p1  ;;  %102 = sbr.rel (%p1899_p4) target bundleno = 67 (0x43), region = 20 }
   0xe   : > { %105 = sbr.rel (!%p49_p3) target bundleno = 67 (0x43), region = 24  ;;  %s107_s17 = sand.u32 (%p49_p3), 1, %s2097_s10  }
   0xf   : > { %s2035_s18 = sshll.u32 (%p49_p3), %s2101_s11, 7  ;;  %s2052_s19 = smul.u32 (%p49_p3), 768, %s107_s17 }
  0x10   : > { %s2153_s22 = scalar_lea.vmem (%p49_p3), %s2537_s1, %s2035_s18 }
  0x11   : > { %v125_v0 = vld [vmem:[%s2153_s22] sm:$0xff] (%p49_p3)  ;;  %v127_v1 = vld [vmem:[%s2153_s22 + $0x8] sm:$0xff] (%p49_p3)  ;;  %v129_v2 = vld [vmem:[%s2153_s22 + $0x10] sm:$0xff] (%p49_p3)  ;;  %s2161_s23 = scalar_lea.vmem (%p49_p3), [#allocation2], %s2052_s19 }
  0x12   : > { %v131_v3 = vld [vmem:[%s2153_s22 + $0x18] sm:$0xff] (%p49_p3)  ;;  %v133_v4 = vld [vmem:[%s2153_s22 + $0x20] sm:$0xff] (%p49_p3)  ;;  %v135_v5 = vld [vmem:[%s2153_s22 + $0x28] sm:$0xff] (%p49_p3)  ;;  %126 = vst [vmem:[%s2161_s23] sm:$0xff] (%p49_p3), %v125_v0 }
  0x13   : > { %128 = vst [vmem:[%s2161_s23 + $0x8] sm:$0xff] (%p49_p3), %v127_v1  ;;  %130 = vst [vmem:[%s2161_s23 + $0x10] sm:$0xff] (%p49_p3), %v129_v2  ;;  %v137_v6 = vld [vmem:[%s2153_s22 + $0x30] sm:$0xff] (%p49_p3)  ;;  %v139_v7 = vld [vmem:[%s2153_s22 + $0x38] sm:$0xff] (%p49_p3) }
  0x14   : > { %132 = vst [vmem:[%s2161_s23 + $0x18] sm:$0xff] (%p49_p3), %v131_v3  ;;  %134 = vst [vmem:[%s2161_s23 + $0x20] sm:$0xff] (%p49_p3), %v133_v4  ;;  %v141_v8 = vld [vmem:[%s2153_s22 + $0x40] sm:$0xff] (%p49_p3)  ;;  %v143_v9 = vld [vmem:[%s2153_s22 + $0x48] sm:$0xff] (%p49_p3) }
  0x15   : > { %136 = vst [vmem:[%s2161_s23 + $0x28] sm:$0xff] %v135_v5  ;;  %138 = vst [vmem:[%s2161_s23 + $0x30] sm:$0xff] %v137_v6  ;;  %v145_v10 = vld [vmem:[%s2153_s22 + $0x50] sm:$0xff]  ;;  %v147_v11 = vld [vmem:[%s2153_s22 + $0x58] sm:$0xff] }
  0x16   : > { %140 = vst [vmem:[%s2161_s23 + $0x38] sm:$0xff] %v139_v7  ;;  %142 = vst [vmem:[%s2161_s23 + $0x40] sm:$0xff] %v141_v8  ;;  %v149_v12 = vld [vmem:[%s2153_s22 + $0x60] sm:$0xff]  ;;  %v151_v13 = vld [vmem:[%s2153_s22 + $0x68] sm:$0xff] }
  0x17   : > { %144 = vst [vmem:[%s2161_s23 + $0x48] sm:$0xff] %v143_v9  ;;  %146 = vst [vmem:[%s2161_s23 + $0x50] sm:$0xff] %v145_v10  ;;  %v153_v14 = vld [vmem:[%s2153_s22 + $0x70] sm:$0xff]  ;;  %v155_v15 = vld [vmem:[%s2153_s22 + $0x78] sm:$0xff] }
  0x18   : > { %148 = vst [vmem:[%s2161_s23 + $0x58] sm:$0xff] %v147_v11  ;;  %150 = vst [vmem:[%s2161_s23 + $0x60] sm:$0xff] %v149_v12  ;;  %v157_v16 = vld [vmem:[%s2153_s22 + $0x100] sm:$0xff]  ;;  %v159_v17 = vld [vmem:[%s2153_s22 + $0x108] sm:$0xff] }
  0x19   : > { %152 = vst [vmem:[%s2161_s23 + $0x68] sm:$0xff] %v151_v13  ;;  %154 = vst [vmem:[%s2161_s23 + $0x70] sm:$0xff] %v153_v14  ;;  %v161_v18 = vld [vmem:[%s2153_s22 + $0x110] sm:$0xff]  ;;  %v163_v19 = vld [vmem:[%s2153_s22 + $0x118] sm:$0xff] }
  0x1a   : > { %156 = vst [vmem:[%s2161_s23 + $0x78] sm:$0xff] %v155_v15  ;;  %158 = vst [vmem:[%s2161_s23 + $0x80] sm:$0xff] %v157_v16  ;;  %v165_v20 = vld [vmem:[%s2153_s22 + $0x120] sm:$0xff]  ;;  %v167_v21 = vld [vmem:[%s2153_s22 + $0x128] sm:$0xff] }
  0x1b   : > { %160 = vst [vmem:[%s2161_s23 + $0x88] sm:$0xff] %v159_v17  ;;  %162 = vst [vmem:[%s2161_s23 + $0x90] sm:$0xff] %v161_v18  ;;  %v169_v22 = vld [vmem:[%s2153_s22 + $0x130] sm:$0xff]  ;;  %v171_v23 = vld [vmem:[%s2153_s22 + $0x138] sm:$0xff] }
  0x1c   : > { %164 = vst [vmem:[%s2161_s23 + $0x98] sm:$0xff] %v163_v19  ;;  %166 = vst [vmem:[%s2161_s23 + $0xa0] sm:$0xff] %v165_v20  ;;  %v173_v24 = vld [vmem:[%s2153_s22 + $0x140] sm:$0xff]  ;;  %v175_v25 = vld [vmem:[%s2153_s22 + $0x148] sm:$0xff] }
  0x1d   : > { %168 = vst [vmem:[%s2161_s23 + $0xa8] sm:$0xff] %v167_v21  ;;  %170 = vst [vmem:[%s2161_s23 + $0xb0] sm:$0xff] %v169_v22  ;;  %v177_v26 = vld [vmem:[%s2153_s22 + $0x150] sm:$0xff]  ;;  %v179_v27 = vld [vmem:[%s2153_s22 + $0x158] sm:$0xff] }
  0x1e   : > { %172 = vst [vmem:[%s2161_s23 + $0xb8] sm:$0xff] %v171_v23  ;;  %174 = vst [vmem:[%s2161_s23 + $0xc0] sm:$0xff] %v173_v24  ;;  %v181_v28 = vld [vmem:[%s2153_s22 + $0x160] sm:$0xff]  ;;  %v183_v29 = vld [vmem:[%s2153_s22 + $0x168] sm:$0xff] }
  0x1f   : > { %176 = vst [vmem:[%s2161_s23 + $0xc8] sm:$0xff] %v175_v25  ;;  %178 = vst [vmem:[%s2161_s23 + $0xd0] sm:$0xff] %v177_v26  ;;  %v185_v30 = vld [vmem:[%s2153_s22 + $0x170] sm:$0xff]  ;;  %v187_v31 = vld [vmem:[%s2153_s22 + $0x178] sm:$0xff] }
  0x20   : > { %180 = vst [vmem:[%s2161_s23 + $0xd8] sm:$0xff] %v179_v27  ;;  %182 = vst [vmem:[%s2161_s23 + $0xe0] sm:$0xff] %v181_v28  ;;  %v189_v32 = vld [vmem:[%s2153_s22 + $0x200] sm:$0xff]  ;;  %v191_v33 = vld [vmem:[%s2153_s22 + $0x208] sm:$0xff] }
  0x21   : > { %184 = vst [vmem:[%s2161_s23 + $0xe8] sm:$0xff] %v183_v29  ;;  %186 = vst [vmem:[%s2161_s23 + $0xf0] sm:$0xff] %v185_v30  ;;  %v193_v34 = vld [vmem:[%s2153_s22 + $0x210] sm:$0xff]  ;;  %v195_v35 = vld [vmem:[%s2153_s22 + $0x218] sm:$0xff] }
  0x22   : > { %188 = vst [vmem:[%s2161_s23 + $0xf8] sm:$0xff] %v187_v31  ;;  %190 = vst [vmem:[%s2161_s23 + $0x100] sm:$0xff] %v189_v32  ;;  %v197_v36 = vld [vmem:[%s2153_s22 + $0x220] sm:$0xff]  ;;  %v199_v37 = vld [vmem:[%s2153_s22 + $0x228] sm:$0xff] }
  0x23   : > { %192 = vst [vmem:[%s2161_s23 + $0x108] sm:$0xff] %v191_v33  ;;  %194 = vst [vmem:[%s2161_s23 + $0x110] sm:$0xff] %v193_v34  ;;  %v201_v38 = vld [vmem:[%s2153_s22 + $0x230] sm:$0xff]  ;;  %v203_v39 = vld [vmem:[%s2153_s22 + $0x238] sm:$0xff] }
  0x24   : > { %196 = vst [vmem:[%s2161_s23 + $0x118] sm:$0xff] %v195_v35  ;;  %198 = vst [vmem:[%s2161_s23 + $0x120] sm:$0xff] %v197_v36  ;;  %v205_v40 = vld [vmem:[%s2153_s22 + $0x240] sm:$0xff]  ;;  %v207_v41 = vld [vmem:[%s2153_s22 + $0x248] sm:$0xff] }
  0x25   : > { %200 = vst [vmem:[%s2161_s23 + $0x128] sm:$0xff] %v199_v37  ;;  %202 = vst [vmem:[%s2161_s23 + $0x130] sm:$0xff] %v201_v38  ;;  %v209_v42 = vld [vmem:[%s2153_s22 + $0x250] sm:$0xff]  ;;  %v211_v43 = vld [vmem:[%s2153_s22 + $0x258] sm:$0xff] }
  0x26   : > { %204 = vst [vmem:[%s2161_s23 + $0x138] sm:$0xff] %v203_v39  ;;  %206 = vst [vmem:[%s2161_s23 + $0x140] sm:$0xff] %v205_v40  ;;  %v213_v44 = vld [vmem:[%s2153_s22 + $0x260] sm:$0xff]  ;;  %v215_v45 = vld [vmem:[%s2153_s22 + $0x268] sm:$0xff] }
  0x27   : > { %208 = vst [vmem:[%s2161_s23 + $0x148] sm:$0xff] %v207_v41  ;;  %210 = vst [vmem:[%s2161_s23 + $0x150] sm:$0xff] %v209_v42  ;;  %v217_v46 = vld [vmem:[%s2153_s22 + $0x270] sm:$0xff]  ;;  %v219_v47 = vld [vmem:[%s2153_s22 + $0x278] sm:$0xff] }
  0x28   : > { %212 = vst [vmem:[%s2161_s23 + $0x158] sm:$0xff] %v211_v43  ;;  %214 = vst [vmem:[%s2161_s23 + $0x160] sm:$0xff] %v213_v44  ;;  %v221_v48 = vld [vmem:[%s2153_s22 + $0x300] sm:$0xff]  ;;  %v223_v49 = vld [vmem:[%s2153_s22 + $0x308] sm:$0xff] }
  0x29   : > { %216 = vst [vmem:[%s2161_s23 + $0x168] sm:$0xff] %v215_v45  ;;  %218 = vst [vmem:[%s2161_s23 + $0x170] sm:$0xff] %v217_v46  ;;  %v225_v50 = vld [vmem:[%s2153_s22 + $0x310] sm:$0xff]  ;;  %v227_v51 = vld [vmem:[%s2153_s22 + $0x318] sm:$0xff] }
  0x2a   : > { %220 = vst [vmem:[%s2161_s23 + $0x178] sm:$0xff] %v219_v47  ;;  %222 = vst [vmem:[%s2161_s23 + $0x180] sm:$0xff] %v221_v48  ;;  %v229_v52 = vld [vmem:[%s2153_s22 + $0x320] sm:$0xff]  ;;  %v231_v53 = vld [vmem:[%s2153_s22 + $0x328] sm:$0xff] }
  0x2b   : > { %224 = vst [vmem:[%s2161_s23 + $0x188] sm:$0xff] %v223_v49  ;;  %226 = vst [vmem:[%s2161_s23 + $0x190] sm:$0xff] %v225_v50  ;;  %v233_v54 = vld [vmem:[%s2153_s22 + $0x330] sm:$0xff]  ;;  %v235_v55 = vld [vmem:[%s2153_s22 + $0x338] sm:$0xff] }
  0x2c   : > { %228 = vst [vmem:[%s2161_s23 + $0x198] sm:$0xff] %v227_v51  ;;  %230 = vst [vmem:[%s2161_s23 + $0x1a0] sm:$0xff] %v229_v52  ;;  %v237_v56 = vld [vmem:[%s2153_s22 + $0x340] sm:$0xff]  ;;  %v239_v57 = vld [vmem:[%s2153_s22 + $0x348] sm:$0xff] }
  0x2d   : > { %232 = vst [vmem:[%s2161_s23 + $0x1a8] sm:$0xff] %v231_v53  ;;  %234 = vst [vmem:[%s2161_s23 + $0x1b0] sm:$0xff] %v233_v54  ;;  %v241_v58 = vld [vmem:[%s2153_s22 + $0x350] sm:$0xff]  ;;  %v243_v59 = vld [vmem:[%s2153_s22 + $0x358] sm:$0xff] }
  0x2e   : > { %236 = vst [vmem:[%s2161_s23 + $0x1b8] sm:$0xff] %v235_v55  ;;  %238 = vst [vmem:[%s2161_s23 + $0x1c0] sm:$0xff] %v237_v56  ;;  %v245_v60 = vld [vmem:[%s2153_s22 + $0x360] sm:$0xff]  ;;  %v247_v61 = vld [vmem:[%s2153_s22 + $0x368] sm:$0xff] }
  0x2f   : > { %240 = vst [vmem:[%s2161_s23 + $0x1c8] sm:$0xff] %v239_v57  ;;  %242 = vst [vmem:[%s2161_s23 + $0x1d0] sm:$0xff] %v241_v58  ;;  %v249_v62 = vld [vmem:[%s2153_s22 + $0x370] sm:$0xff]  ;;  %v251_v63 = vld [vmem:[%s2153_s22 + $0x378] sm:$0xff] }
  0x30   : > { %244 = vst [vmem:[%s2161_s23 + $0x1d8] sm:$0xff] %v243_v59  ;;  %246 = vst [vmem:[%s2161_s23 + $0x1e0] sm:$0xff] %v245_v60  ;;  %v253_v0 = vld [vmem:[%s2153_s22 + $0x400] sm:$0xff]  ;;  %v255_v1 = vld [vmem:[%s2153_s22 + $0x408] sm:$0xff] }
  0x31   : > { %248 = vst [vmem:[%s2161_s23 + $0x1e8] sm:$0xff] %v247_v61  ;;  %250 = vst [vmem:[%s2161_s23 + $0x1f0] sm:$0xff] %v249_v62  ;;  %v257_v2 = vld [vmem:[%s2153_s22 + $0x410] sm:$0xff]  ;;  %v259_v3 = vld [vmem:[%s2153_s22 + $0x418] sm:$0xff] }
  0x32   : > { %252 = vst [vmem:[%s2161_s23 + $0x1f8] sm:$0xff] %v251_v63  ;;  %254 = vst [vmem:[%s2161_s23 + $0x200] sm:$0xff] %v253_v0  ;;  %v261_v4 = vld [vmem:[%s2153_s22 + $0x420] sm:$0xff]  ;;  %v263_v5 = vld [vmem:[%s2153_s22 + $0x428] sm:$0xff] }
  0x33   : > { %256 = vst [vmem:[%s2161_s23 + $0x208] sm:$0xff] %v255_v1  ;;  %258 = vst [vmem:[%s2161_s23 + $0x210] sm:$0xff] %v257_v2  ;;  %v265_v6 = vld [vmem:[%s2153_s22 + $0x430] sm:$0xff]  ;;  %v267_v7 = vld [vmem:[%s2153_s22 + $0x438] sm:$0xff] }
  0x34   : > { %260 = vst [vmem:[%s2161_s23 + $0x218] sm:$0xff] %v259_v3  ;;  %262 = vst [vmem:[%s2161_s23 + $0x220] sm:$0xff] %v261_v4  ;;  %v269_v8 = vld [vmem:[%s2153_s22 + $0x440] sm:$0xff]  ;;  %v271_v9 = vld [vmem:[%s2153_s22 + $0x448] sm:$0xff] }
  0x35   : > { %264 = vst [vmem:[%s2161_s23 + $0x228] sm:$0xff] %v263_v5  ;;  %266 = vst [vmem:[%s2161_s23 + $0x230] sm:$0xff] %v265_v6  ;;  %v273_v10 = vld [vmem:[%s2153_s22 + $0x450] sm:$0xff]  ;;  %v275_v11 = vld [vmem:[%s2153_s22 + $0x458] sm:$0xff] }
  0x36   : > { %268 = vst [vmem:[%s2161_s23 + $0x238] sm:$0xff] %v267_v7  ;;  %270 = vst [vmem:[%s2161_s23 + $0x240] sm:$0xff] %v269_v8  ;;  %v277_v12 = vld [vmem:[%s2153_s22 + $0x460] sm:$0xff]  ;;  %v279_v13 = vld [vmem:[%s2153_s22 + $0x468] sm:$0xff] }
  0x37   : > { %272 = vst [vmem:[%s2161_s23 + $0x248] sm:$0xff] %v271_v9  ;;  %274 = vst [vmem:[%s2161_s23 + $0x250] sm:$0xff] %v273_v10  ;;  %v281_v14 = vld [vmem:[%s2153_s22 + $0x470] sm:$0xff]  ;;  %v283_v15 = vld [vmem:[%s2153_s22 + $0x478] sm:$0xff] }
  0x38   : > { %276 = vst [vmem:[%s2161_s23 + $0x258] sm:$0xff] %v275_v11  ;;  %278 = vst [vmem:[%s2161_s23 + $0x260] sm:$0xff] %v277_v12  ;;  %v285_v16 = vld [vmem:[%s2153_s22 + $0x500] sm:$0xff]  ;;  %v287_v17 = vld [vmem:[%s2153_s22 + $0x508] sm:$0xff] }
  0x39   : > { %280 = vst [vmem:[%s2161_s23 + $0x268] sm:$0xff] %v279_v13  ;;  %282 = vst [vmem:[%s2161_s23 + $0x270] sm:$0xff] %v281_v14  ;;  %v289_v18 = vld [vmem:[%s2153_s22 + $0x510] sm:$0xff]  ;;  %v291_v19 = vld [vmem:[%s2153_s22 + $0x518] sm:$0xff] }
  0x3a   : > { %284 = vst [vmem:[%s2161_s23 + $0x278] sm:$0xff] %v283_v15  ;;  %286 = vst [vmem:[%s2161_s23 + $0x280] sm:$0xff] %v285_v16  ;;  %v293_v20 = vld [vmem:[%s2153_s22 + $0x520] sm:$0xff]  ;;  %v295_v21 = vld [vmem:[%s2153_s22 + $0x528] sm:$0xff] }
  0x3b   : > { %288 = vst [vmem:[%s2161_s23 + $0x288] sm:$0xff] %v287_v17  ;;  %290 = vst [vmem:[%s2161_s23 + $0x290] sm:$0xff] %v289_v18  ;;  %v297_v22 = vld [vmem:[%s2153_s22 + $0x530] sm:$0xff]  ;;  %v299_v23 = vld [vmem:[%s2153_s22 + $0x538] sm:$0xff] }
  0x3c   : > { %292 = vst [vmem:[%s2161_s23 + $0x298] sm:$0xff] %v291_v19  ;;  %294 = vst [vmem:[%s2161_s23 + $0x2a0] sm:$0xff] %v293_v20  ;;  %v301_v24 = vld [vmem:[%s2153_s22 + $0x540] sm:$0xff]  ;;  %v303_v25 = vld [vmem:[%s2153_s22 + $0x548] sm:$0xff] }
  0x3d   : > { %296 = vst [vmem:[%s2161_s23 + $0x2a8] sm:$0xff] %v295_v21  ;;  %298 = vst [vmem:[%s2161_s23 + $0x2b0] sm:$0xff] %v297_v22  ;;  %v305_v26 = vld [vmem:[%s2153_s22 + $0x550] sm:$0xff]  ;;  %v307_v27 = vld [vmem:[%s2153_s22 + $0x558] sm:$0xff] }
  0x3e   : > { %300 = vst [vmem:[%s2161_s23 + $0x2b8] sm:$0xff] %v299_v23  ;;  %302 = vst [vmem:[%s2161_s23 + $0x2c0] sm:$0xff] %v301_v24  ;;  %v309_v28 = vld [vmem:[%s2153_s22 + $0x560] sm:$0xff]  ;;  %v311_v29 = vld [vmem:[%s2153_s22 + $0x568] sm:$0xff] }
  0x3f   : > { %304 = vst [vmem:[%s2161_s23 + $0x2c8] sm:$0xff] %v303_v25  ;;  %306 = vst [vmem:[%s2161_s23 + $0x2d0] sm:$0xff] %v305_v26  ;;  %v313_v30 = vld [vmem:[%s2153_s22 + $0x570] sm:$0xff]  ;;  %v315_v31 = vld [vmem:[%s2153_s22 + $0x578] sm:$0xff] }
  0x40   : > { %308 = vst [vmem:[%s2161_s23 + $0x2d8] sm:$0xff] %v307_v27  ;;  %310 = vst [vmem:[%s2161_s23 + $0x2e0] sm:$0xff] %v309_v28 }
  0x41   : > { %312 = vst [vmem:[%s2161_s23 + $0x2e8] sm:$0xff] %v311_v29  ;;  %314 = vst [vmem:[%s2161_s23 + $0x2f0] sm:$0xff] %v313_v30 }
  0x42   : > { %316 = vst [vmem:[%s2161_s23 + $0x2f8] sm:$0xff] %v315_v31 }
  0x43 PF: > { %p1902_p5 = scmp.ge.s32.totalorder %s2101_s11, 1  ;;  %p321_p6 = scmp.lt.s32.totalorder %s2101_s11, 3 }
  0x45   : > { %p322_p7 = pnand %p1902_p5, %p321_p6 }
  0x46   : > { %s328_s24 = sand.u32 (!%p322_p7), 1, %s2093_s9   ;;  %v2103_v32 = vmov (!%p322_p7), 0   ;;  %v2379_v3 = vld [vmem:[%s2536_s0] sm:$0xf] (!%p322_p7)  ;;  %vm934_vm0 = vcmask (!%p322_p7), 392192   ;;  %s1903_s29 = sshll.u32 (!%p322_p7), %s1896_s12, 5 }
  0x47   : > { %325 = sbr.rel (%p322_p7) target bundleno = 395 (0x18b), region = 47  ;;  %970 = vmatprep.mubr.bf16.mxu0 (!%p322_p7), %v2103_v32  ;;  %1011 = vmatprep.mubr.bf16.mxu1 (!%p322_p7), %v2103_v32  ;;  %p351_p8 = scmp.lt.s32.totalorder (!%p322_p7), %s1903_s29, 63 }
  0x48   : > { %s2053_s25 = smul.u32 (!%p322_p7), 768, %s328_s24 }
  0x4a   : > { %s2354_s26 = scalar_lea.vmem (!%p322_p7), [#allocation2], %s2053_s25 }
  0x4b   : > { %v358_v33 = vld [vmem:[%s2354_s26] sm:$0xff] (!%p322_p7)  ;;  %v359_v35 = vld [vmem:[%s2354_s26 + $0x8] sm:$0xff] (!%p322_p7)  ;;  %v360_v55 = vld [vmem:[%s2354_s26 + $0x10] sm:$0xff] (!%p322_p7) }
  0x4c   : > { %v374_v34 = vld [vmem:[%s2354_s26 + $0x80] sm:$0xff] (!%p322_p7)  ;;  %v375_v37 = vld [vmem:[%s2354_s26 + $0x88] sm:$0xff] (!%p322_p7)  ;;  %v376_v56 = vld [vmem:[%s2354_s26 + $0x90] sm:$0xff] (!%p322_p7) }
  0x4d   : > { %v1906_v36 = vcombine.high (!%p322_p7), %v358_v33, %v374_v34  ;;  %v1905_v38 = vcombine.low (!%p322_p7), %v358_v33, %v374_v34  ;;  %v390_v39 = vld [vmem:[%s2354_s26 + $0x100] sm:$0xff] (!%p322_p7)  ;;  %v1908_v41 = vcombine.high (!%p322_p7), %v359_v35, %v375_v37  ;;  %v1907_v42 = vcombine.low (!%p322_p7), %v359_v35, %v375_v37  ;;  %v391_v44 = vld [vmem:[%s2354_s26 + $0x108] sm:$0xff] (!%p322_p7)  ;;  %v361_v57 = vld [vmem:[%s2354_s26 + $0x18] sm:$0xff] (!%p322_p7) }
  0x4e   : > { %v406_v40 = vld [vmem:[%s2354_s26 + $0x180] sm:$0xff]  ;;  %v407_v45 = vld [vmem:[%s2354_s26 + $0x188] sm:$0xff]  ;;  %v377_v58 = vld [vmem:[%s2354_s26 + $0x98] sm:$0xff]  ;;  %v1910_v61 = vcombine.high %v360_v55, %v376_v56  ;;  %v1909_v4 = vcombine.low %v360_v55, %v376_v56  ;;  %s2543_s29 = smov (!%p351_p8, %s1903_s29), 63 }
  0x4f   : > { %v1938_v43 = vcombine.high %v390_v39, %v406_v40  ;;  %v422_v46 = vld [vmem:[%s2354_s26 + $0x200] sm:$0xff]  ;;  %938 = vmatprep.subr.bf16.mxu0 %v1906_v36  ;;  %v1940_v47 = vcombine.high %v391_v44, %v407_v45  ;;  %v423_v49 = vld [vmem:[%s2354_s26 + $0x208] sm:$0xff]  ;;  %979 = vmatprep.subr.bf16.mxu1 %v1908_v41  ;;  %v1937_v51 = vcombine.low %v390_v39, %v406_v40  ;;  %v392_v63 = vld [vmem:[%s2354_s26 + $0x110] sm:$0xff]  ;;  %s1904_s30 = sshll.u32 %s2543_s29, 2 }
  0x50   : > { %v438_v48 = vld [vmem:[%s2354_s26 + $0x280] sm:$0xff]  ;;  %v439_v50 = vld [vmem:[%s2354_s26 + $0x288] sm:$0xff]  ;;  %939 = vmatpush1.bf16.msra.mxu0 %v1905_v38  ;;  %980 = vmatpush1.bf16.msra.mxu1 %v1907_v42  ;;  %v1939_v52 = vcombine.low %v391_v44, %v407_v45  ;;  %v1912_v62 = vcombine.high %v361_v57, %v377_v58  ;;  %v408_v0 = vld [vmem:[%s2354_s26 + $0x190] sm:$0xff]  ;;  %v1911_v5 = vcombine.low %v361_v57, %v377_v58  ;;  %s2508_s5 = scalar_lea.vmem %s2538_s2, %s1904_s30 }
  0x51   : > { %940 = vmatprep.subr.bf16.mxu0 %v1938_v43  ;;  %v1970_v53 = vcombine.high %v422_v46, %v438_v48  ;;  %981 = vmatprep.subr.bf16.mxu1 %v1940_v47  ;;  %v1972_v54 = vcombine.high %v423_v49, %v439_v50  ;;  %v1969_v59 = vcombine.low %v422_v46, %v438_v48  ;;  %v393_v1 = vld [vmem:[%s2354_s26 + $0x118] sm:$0xff]  ;;  %v424_v8 = vld [vmem:[%s2354_s26 + $0x210] sm:$0xff]  ;;  %v362_v16 = vld [vmem:[%s2354_s26 + $0x20] sm:$0xff] }
  0x52   : > { %v1971_v60 = vcombine.low %v423_v49, %v439_v50  ;;  %v409_v2 = vld [vmem:[%s2354_s26 + $0x198] sm:$0xff]  ;;  %v1942_v6 = vcombine.high %v392_v63, %v408_v0  ;;  %v440_v9 = vld [vmem:[%s2354_s26 + $0x290] sm:$0xff]  ;;  %v1941_v12 = vcombine.low %v392_v63, %v408_v0  ;;  %v378_v17 = vld [vmem:[%s2354_s26 + $0xa0] sm:$0xff] }
  0x53   : > { %v1944_v7 = vcombine.high %v393_v1, %v409_v2  ;;  %v425_v10 = vld [vmem:[%s2354_s26 + $0x218] sm:$0xff]  ;;  %v1943_v13 = vcombine.low %v393_v1, %v409_v2  ;;  %v1974_v14 = vcombine.high %v424_v8, %v440_v9  ;;  %v363_v18 = vld [vmem:[%s2354_s26 + $0x28] sm:$0xff]  ;;  %v1973_v20 = vcombine.low %v424_v8, %v440_v9  ;;  %v394_v24 = vld [vmem:[%s2354_s26 + $0x120] sm:$0xff] }
  0x54   : > { %941 = vmatpush1.bf16.msra.mxu0 %v1937_v51  ;;  %982 = vmatpush1.bf16.msra.mxu1 %v1939_v52  ;;  %v441_v11 = vld [vmem:[%s2354_s26 + $0x298] sm:$0xff]  ;;  %v379_v19 = vld [vmem:[%s2354_s26 + $0xa8] sm:$0xff]  ;;  %v1914_v22 = vcombine.high %v362_v16, %v378_v17  ;;  %v410_v25 = vld [vmem:[%s2354_s26 + $0x1a0] sm:$0xff]  ;;  %v1913_v28 = vcombine.low %v362_v16, %v378_v17 }
  0x55   : > { %942 = vmatprep.subr.bf16.mxu0 %v1970_v53  ;;  %983 = vmatprep.subr.bf16.mxu1 %v1972_v54  ;;  %v1976_v15 = vcombine.high %v425_v10, %v441_v11  ;;  %v1975_v21 = vcombine.low %v425_v10, %v441_v11  ;;  %v1916_v23 = vcombine.high %v363_v18, %v379_v19  ;;  %v395_v26 = vld [vmem:[%s2354_s26 + $0x128] sm:$0xff]  ;;  %v426_v33 = vld [vmem:[%s2354_s26 + $0x220] sm:$0xff]  ;;  %v364_v41 = vld [vmem:[%s2354_s26 + $0x30] sm:$0xff] }
  0x56   : > { %v411_v27 = vld [vmem:[%s2354_s26 + $0x1a8] sm:$0xff]  ;;  %v1915_v29 = vcombine.low %v363_v18, %v379_v19  ;;  %v1946_v30 = vcombine.high %v394_v24, %v410_v25  ;;  %v442_v34 = vld [vmem:[%s2354_s26 + $0x2a0] sm:$0xff]  ;;  %v1945_v37 = vcombine.low %v394_v24, %v410_v25  ;;  %v380_v42 = vld [vmem:[%s2354_s26 + $0xb0] sm:$0xff] }
  0x57   : > { %v1948_v31 = vcombine.high %v395_v26, %v411_v27  ;;  %v427_v35 = vld [vmem:[%s2354_s26 + $0x228] sm:$0xff]  ;;  %v1947_v38 = vcombine.low %v395_v26, %v411_v27  ;;  %v1978_v39 = vcombine.high %v426_v33, %v442_v34  ;;  %v365_v43 = vld [vmem:[%s2354_s26 + $0x38] sm:$0xff]  ;;  %v1977_v45 = vcombine.low %v426_v33, %v442_v34  ;;  %v396_v49 = vld [vmem:[%s2354_s26 + $0x130] sm:$0xff] }
  0x58   : > { %943 = vmatpush1.bf16.msra.mxu0 %v1969_v59  ;;  %984 = vmatpush1.bf16.msra.mxu1 %v1971_v60  ;;  %v443_v36 = vld [vmem:[%s2354_s26 + $0x2a8] sm:$0xff]  ;;  %v381_v44 = vld [vmem:[%s2354_s26 + $0xb8] sm:$0xff]  ;;  %v1918_v47 = vcombine.high %v364_v41, %v380_v42  ;;  %v412_v50 = vld [vmem:[%s2354_s26 + $0x1b0] sm:$0xff]  ;;  %v1917_v53 = vcombine.low %v364_v41, %v380_v42 }
  0x59   : > { %1020 = vmatprep.subr.bf16.mxu0 %v1910_v61  ;;  %1061 = vmatprep.subr.bf16.mxu1 %v1912_v62  ;;  %v1980_v40 = vcombine.high %v427_v35, %v443_v36  ;;  %v1979_v46 = vcombine.low %v427_v35, %v443_v36  ;;  %v1920_v48 = vcombine.high %v365_v43, %v381_v44  ;;  %v397_v51 = vld [vmem:[%s2354_s26 + $0x138] sm:$0xff]  ;;  %v428_v57 = vld [vmem:[%s2354_s26 + $0x230] sm:$0xff]  ;;  %v366_v1 = vld [vmem:[%s2354_s26 + $0x40] sm:$0xff] }
  0x5a   : > { %v413_v52 = vld [vmem:[%s2354_s26 + $0x1b8] sm:$0xff]  ;;  %v1919_v54 = vcombine.low %v365_v43, %v381_v44  ;;  %v1950_v55 = vcombine.high %v396_v49, %v412_v50  ;;  %v444_v58 = vld [vmem:[%s2354_s26 + $0x2b0] sm:$0xff]  ;;  %v1949_v61 = vcombine.low %v396_v49, %v412_v50  ;;  %v382_v2 = vld [vmem:[%s2354_s26 + $0xc0] sm:$0xff] }
  0x5b   : > { %2001 = vmatmul.mubr.msk.bf16.vlgmr.msra.gmra.mrb[0].mxu0 %vm934_vm0, %v2379_v3  ;;  %2002 = vmatmul.mubr.msk.bf16.vlgmr.msra.gmra.mrb[0].mxu1 %vm934_vm0, %v2379_v3  ;;  %v1952_v56 = vcombine.high %v397_v51, %v413_v52  ;;  %v429_v59 = vld [vmem:[%s2354_s26 + $0x238] sm:$0xff]  ;;  %v1951_v62 = vcombine.low %v397_v51, %v413_v52  ;;  %v1982_v63 = vcombine.high %v428_v57, %v444_v58  ;;  %v398_v10 = vld [vmem:[%s2354_s26 + $0x140] sm:$0xff]  ;;  %v368_v26 = vld [vmem:[%s2354_s26 + $0x50] sm:$0xff] }
  0x5c   : > { %1021 = vmatpush1.bf16.msra.mxu0 %v1909_v4  ;;  %1062 = vmatpush1.bf16.msra.mxu1 %v1911_v5  ;;  %v445_v60 = vld [vmem:[%s2354_s26 + $0x2b8] sm:$0xff]  ;;  %v367_v4 = vld [vmem:[%s2354_s26 + $0x48] sm:$0xff]  ;;  %v1922_v8 = vcombine.high %v366_v1, %v382_v2  ;;  %v414_v11 = vld [vmem:[%s2354_s26 + $0x1c0] sm:$0xff] }
  0x5d   : > { %1022 = vmatprep.subr.bf16.mxu0 %v1942_v6  ;;  %1063 = vmatprep.subr.bf16.mxu1 %v1944_v7  ;;  %v1984_v0 = vcombine.high %v429_v59, %v445_v60  ;;  %v383_v5 = vld [vmem:[%s2354_s26 + $0xc8] sm:$0xff]  ;;  %v1981_v6 = vcombine.low %v428_v57, %v444_v58  ;;  %v1983_v7 = vcombine.low %v429_v59, %v445_v60  ;;  %v430_v18 = vld [vmem:[%s2354_s26 + $0x240] sm:$0xff]  ;;  %v384_v27 = vld [vmem:[%s2354_s26 + $0xd0] sm:$0xff] }
  0x5e   : > { %1052 = vmatprep.mubr.bf16.mxu0 %v2103_v32  ;;  %1093 = vmatprep.mubr.bf16.mxu1 %v2103_v32  ;;  %v1924_v9 = vcombine.high %v367_v4, %v383_v5  ;;  %v1954_v16 = vcombine.high %v398_v10, %v414_v11  ;;  %v446_v19 = vld [vmem:[%s2354_s26 + $0x2c0] sm:$0xff]  ;;  %v1926_v33 = vcombine.high %v368_v26, %v384_v27  ;;  %v400_v35 = vld [vmem:[%s2354_s26 + $0x150] sm:$0xff] }
  0x5f   : > { %v1986_v24 = vcombine.high %v430_v18, %v446_v19  ;;  %v416_v36 = vld [vmem:[%s2354_s26 + $0x1d0] sm:$0xff]  ;;  %v370_v51 = vld [vmem:[%s2354_s26 + $0x60] sm:$0xff] }
  0x60   : > { %1023 = vmatpush1.bf16.msra.mxu0 %v1941_v12  ;;  %1064 = vmatpush1.bf16.msra.mxu1 %v1943_v13  ;;  %v399_v12 = vld [vmem:[%s2354_s26 + $0x148] sm:$0xff]  ;;  %v1958_v41 = vcombine.high %v400_v35, %v416_v36  ;;  %v432_v43 = vld [vmem:[%s2354_s26 + $0x250] sm:$0xff]  ;;  %v386_v52 = vld [vmem:[%s2354_s26 + $0xe0] sm:$0xff] }
  0x61   : > { %1024 = vmatprep.subr.bf16.mxu0 %v1974_v14  ;;  %1065 = vmatprep.subr.bf16.mxu1 %v1976_v15  ;;  %v415_v13 = vld [vmem:[%s2354_s26 + $0x1c8] sm:$0xff]  ;;  %v1921_v14 = vcombine.low %v366_v1, %v382_v2  ;;  %v1923_v15 = vcombine.low %v367_v4, %v383_v5  ;;  %v448_v44 = vld [vmem:[%s2354_s26 + $0x2d0] sm:$0xff]  ;;  %v1930_v57 = vcombine.high %v370_v51, %v386_v52  ;;  %v402_v59 = vld [vmem:[%s2354_s26 + $0x160] sm:$0xff] }
  0x62   : > { %v1956_v17 = vcombine.high %v399_v12, %v415_v13  ;;  %v1990_v49 = vcombine.high %v432_v43, %v448_v44  ;;  %v418_v60 = vld [vmem:[%s2354_s26 + $0x1e0] sm:$0xff] }
  0x63   : > { %v1962_v1 = vcombine.high %v402_v59, %v418_v60  ;;  %v434_v4 = vld [vmem:[%s2354_s26 + $0x260] sm:$0xff] }
  0x64   : > { %1025 = vmatpush1.bf16.msra.mxu0 %v1973_v20  ;;  %1066 = vmatpush1.bf16.msra.mxu1 %v1975_v21  ;;  %v431_v20 = vld [vmem:[%s2354_s26 + $0x248] sm:$0xff]  ;;  %v450_v5 = vld [vmem:[%s2354_s26 + $0x2e0] sm:$0xff] }
  0x65   : > { %1102 = vmatprep.subr.bf16.mxu0 %v1914_v22  ;;  %1143 = vmatprep.subr.bf16.mxu1 %v1916_v23  ;;  %v447_v21 = vld [vmem:[%s2354_s26 + $0x2c8] sm:$0xff]  ;;  %v1953_v22 = vcombine.low %v398_v10, %v414_v11  ;;  %v1955_v23 = vcombine.low %v399_v12, %v415_v13  ;;  %v1994_v10 = vcombine.high %v434_v4, %v450_v5  ;;  %v372_v12 = vld [vmem:[%s2354_s26 + $0x70] sm:$0xff] }
  0x66   : > { %v1988_v25 = vcombine.high %v431_v20, %v447_v21  ;;  %v388_v13 = vld [vmem:[%s2354_s26 + $0xf0] sm:$0xff] }
  0x67   : > { %2003 = vmatmul.mubr.msk.bf16.vlgmr.msra.gmra.mrb[4].mxu0 %vm934_vm0, %v2379_v3  ;;  %2004 = vmatmul.mubr.msk.bf16.vlgmr.msra.gmra.mrb[4].mxu1 %vm934_vm0, %v2379_v3 }
  0x68   : > { %1103 = vmatpush1.bf16.msra.mxu0 %v1913_v28  ;;  %1144 = vmatpush1.bf16.msra.mxu1 %v1915_v29  ;;  %v369_v28 = vld [vmem:[%s2354_s26 + $0x58] sm:$0xff] }
  0x69   : > { %1104 = vmatprep.subr.bf16.mxu0 %v1946_v30  ;;  %1145 = vmatprep.subr.bf16.mxu1 %v1948_v31  ;;  %v385_v29 = vld [vmem:[%s2354_s26 + $0xd8] sm:$0xff]  ;;  %v1985_v30 = vcombine.low %v430_v18, %v446_v19  ;;  %v1987_v31 = vcombine.low %v431_v20, %v447_v21  ;;  %v1934_v18 = vcombine.high %v372_v12, %v388_v13  ;;  %v404_v20 = vld [vmem:[%s2354_s26 + $0x170] sm:$0xff] }
  0x6a   : > { %1134 = vmatprep.mubr.bf16.mxu0 %v2103_v32  ;;  %1175 = vmatprep.mubr.bf16.mxu1 %v2103_v32  ;;  %v1928_v34 = vcombine.high %v369_v28, %v385_v29  ;;  %v420_v21 = vld [vmem:[%s2354_s26 + $0x1f0] sm:$0xff] }
  0x6c   : > { %1105 = vmatpush1.bf16.msra.mxu0 %v1945_v37  ;;  %1146 = vmatpush1.bf16.msra.mxu1 %v1947_v38  ;;  %v401_v37 = vld [vmem:[%s2354_s26 + $0x158] sm:$0xff] }
  0x6d   : > { %1106 = vmatprep.subr.bf16.mxu0 %v1978_v39  ;;  %1147 = vmatprep.subr.bf16.mxu1 %v1980_v40  ;;  %v417_v38 = vld [vmem:[%s2354_s26 + $0x1d8] sm:$0xff]  ;;  %v1925_v39 = vcombine.low %v368_v26, %v384_v27  ;;  %v1927_v40 = vcombine.low %v369_v28, %v385_v29  ;;  %v1966_v26 = vcombine.high %v404_v20, %v420_v21  ;;  %v436_v28 = vld [vmem:[%s2354_s26 + $0x270] sm:$0xff] }
  0x6e   : > { %v1960_v42 = vcombine.high %v401_v37, %v417_v38  ;;  %v452_v29 = vld [vmem:[%s2354_s26 + $0x2f0] sm:$0xff] }
  0x70   : > { %1107 = vmatpush1.bf16.msra.mxu0 %v1977_v45  ;;  %1148 = vmatpush1.bf16.msra.mxu1 %v1979_v46  ;;  %v433_v45 = vld [vmem:[%s2354_s26 + $0x258] sm:$0xff] }
  0x71   : > { %1184 = vmatprep.subr.bf16.mxu0 %v1918_v47  ;;  %1225 = vmatprep.subr.bf16.mxu1 %v1920_v48  ;;  %v449_v46 = vld [vmem:[%s2354_s26 + $0x2d8] sm:$0xff]  ;;  %v1957_v47 = vcombine.low %v400_v35, %v416_v36  ;;  %v1959_v48 = vcombine.low %v401_v37, %v417_v38  ;;  %v1998_v35 = vcombine.high %v436_v28, %v452_v29 }
  0x72   : > { %v1992_v50 = vcombine.high %v433_v45, %v449_v46  ;;  %v1997_v37 = vcombine.low %v436_v28, %v452_v29 }
  0x73   : > { %2005 = vmatmul.mubr.msk.bf16.vlgmr.msra.gmra.mrb[8].mxu0 %vm934_vm0, %v2379_v3  ;;  %2006 = vmatmul.mubr.msk.bf16.vlgmr.msra.gmra.mrb[8].mxu1 %vm934_vm0, %v2379_v3 }
  0x74   : > { %1185 = vmatpush1.bf16.msra.mxu0 %v1917_v53  ;;  %1226 = vmatpush1.bf16.msra.mxu1 %v1919_v54  ;;  %v371_v53 = vld [vmem:[%s2354_s26 + $0x68] sm:$0xff] }
  0x75   : > { %1186 = vmatprep.subr.bf16.mxu0 %v1950_v55  ;;  %1227 = vmatprep.subr.bf16.mxu1 %v1952_v56  ;;  %v387_v54 = vld [vmem:[%s2354_s26 + $0xe8] sm:$0xff]  ;;  %v1989_v55 = vcombine.low %v432_v43, %v448_v44  ;;  %v1991_v56 = vcombine.low %v433_v45, %v449_v46 }
  0x76   : > { %1216 = vmatprep.mubr.bf16.mxu0 %v2103_v32  ;;  %1257 = vmatprep.mubr.bf16.mxu1 %v2103_v32  ;;  %v1932_v58 = vcombine.high %v371_v53, %v387_v54 }
  0x78   : > { %1187 = vmatpush1.bf16.msra.mxu0 %v1949_v61  ;;  %1228 = vmatpush1.bf16.msra.mxu1 %v1951_v62  ;;  %v403_v61 = vld [vmem:[%s2354_s26 + $0x168] sm:$0xff] }
  0x79   : > { %1188 = vmatprep.subr.bf16.mxu0 %v1982_v63  ;;  %1229 = vmatprep.subr.bf16.mxu1 %v1984_v0  ;;  %v419_v62 = vld [vmem:[%s2354_s26 + $0x1e8] sm:$0xff]  ;;  %v1929_v63 = vcombine.low %v370_v51, %v386_v52  ;;  %v1931_v0 = vcombine.low %v371_v53, %v387_v54 }
  0x7a   : > { %v1964_v2 = vcombine.high %v403_v61, %v419_v62 }
  0x7c   : > { %1189 = vmatpush1.bf16.msra.mxu0 %v1981_v6  ;;  %1230 = vmatpush1.bf16.msra.mxu1 %v1983_v7  ;;  %v435_v6 = vld [vmem:[%s2354_s26 + $0x268] sm:$0xff] }
  0x7d   : > { %1266 = vmatprep.subr.bf16.mxu0 %v1922_v8  ;;  %1307 = vmatprep.subr.bf16.mxu1 %v1924_v9  ;;  %v451_v7 = vld [vmem:[%s2354_s26 + $0x2e8] sm:$0xff]  ;;  %v1961_v8 = vcombine.low %v402_v59, %v418_v60  ;;  %v1963_v9 = vcombine.low %v403_v61, %v419_v62 }
  0x7e   : > { %v1996_v11 = vcombine.high %v435_v6, %v451_v7 }
  0x7f   : > { %2007 = vmatmul.mubr.msk.bf16.vlgmr.msra.gmra.mrb[12].mxu0 %vm934_vm0, %v2379_v3  ;;  %2008 = vmatmul.mubr.msk.bf16.vlgmr.msra.gmra.mrb[12].mxu1 %vm934_vm0, %v2379_v3 }
  0x80   : > { %1267 = vmatpush1.bf16.msra.mxu0 %v1921_v14  ;;  %1308 = vmatpush1.bf16.msra.mxu1 %v1923_v15  ;;  %v373_v14 = vld [vmem:[%s2354_s26 + $0x78] sm:$0xff] }
  0x81   : > { %1268 = vmatprep.subr.bf16.mxu0 %v1954_v16  ;;  %1309 = vmatprep.subr.bf16.mxu1 %v1956_v17  ;;  %v389_v15 = vld [vmem:[%s2354_s26 + $0xf8] sm:$0xff]  ;;  %v1993_v16 = vcombine.low %v434_v4, %v450_v5  ;;  %v1995_v17 = vcombine.low %v435_v6, %v451_v7 }
  0x82   : > { %1298 = vmatprep.mubr.bf16.mxu0 %v2103_v32  ;;  %1339 = vmatprep.mubr.bf16.mxu1 %v2103_v32  ;;  %v1936_v19 = vcombine.high %v373_v14, %v389_v15 }
  0x84   : > { %1269 = vmatpush1.bf16.msra.mxu0 %v1953_v22  ;;  %1310 = vmatpush1.bf16.msra.mxu1 %v1955_v23  ;;  %v405_v22 = vld [vmem:[%s2354_s26 + $0x178] sm:$0xff] }
  0x85   : > { %1270 = vmatprep.subr.bf16.mxu0 %v1986_v24  ;;  %1311 = vmatprep.subr.bf16.mxu1 %v1988_v25  ;;  %v421_v23 = vld [vmem:[%s2354_s26 + $0x1f8] sm:$0xff]  ;;  %v1933_v24 = vcombine.low %v372_v12, %v388_v13  ;;  %v1935_v25 = vcombine.low %v373_v14, %v389_v15 }
  0x86   : > { %v1968_v27 = vcombine.high %v405_v22, %v421_v23 }
  0x88   : > { %1271 = vmatpush1.bf16.msra.mxu0 %v1985_v30  ;;  %1312 = vmatpush1.bf16.msra.mxu1 %v1987_v31  ;;  %v437_v30 = vld [vmem:[%s2354_s26 + $0x278] sm:$0xff] }
  0x89   : > { %1348 = vmatprep.subr.bf16.mxu0 %v1926_v33  ;;  %1389 = vmatprep.subr.bf16.mxu1 %v1928_v34  ;;  %v453_v31 = vld [vmem:[%s2354_s26 + $0x2f8] sm:$0xff]  ;;  %v1965_v33 = vcombine.low %v404_v20, %v420_v21  ;;  %v1967_v34 = vcombine.low %v405_v22, %v421_v23 }
  0x8a   : > { %v2000_v36 = vcombine.high %v437_v30, %v453_v31  ;;  %v1999_v38 = vcombine.low %v437_v30, %v453_v31 }
  0x8b   : > { %2009 = vmatmul.mubr.msk.bf16.vlgmr.msra.gmra.mrb[16].mxu0 %vm934_vm0, %v2379_v3  ;;  %2010 = vmatmul.mubr.msk.bf16.vlgmr.msra.gmra.mrb[16].mxu1 %vm934_vm0, %v2379_v3 }
  0x8c   : > { %1349 = vmatpush1.bf16.msra.mxu0 %v1925_v39  ;;  %1390 = vmatpush1.bf16.msra.mxu1 %v1927_v40 }
  0x8d   : > { %1350 = vmatprep.subr.bf16.mxu0 %v1958_v41  ;;  %1391 = vmatprep.subr.bf16.mxu1 %v1960_v42 }
  0x8e   : > { %1380 = vmatprep.mubr.bf16.mxu0 %v2103_v32  ;;  %1421 = vmatprep.mubr.bf16.mxu1 %v2103_v32 }
  0x90   : > { %1351 = vmatpush1.bf16.msra.mxu0 %v1957_v47  ;;  %1392 = vmatpush1.bf16.msra.mxu1 %v1959_v48 }
  0x91   : > { %1352 = vmatprep.subr.bf16.mxu0 %v1990_v49  ;;  %1393 = vmatprep.subr.bf16.mxu1 %v1992_v50 }
  0x94   : > { %1353 = vmatpush1.bf16.msra.mxu0 %v1989_v55  ;;  %1394 = vmatpush1.bf16.msra.mxu1 %v1991_v56 }
  0x95   : > { %1430 = vmatprep.subr.bf16.mxu0 %v1930_v57  ;;  %1471 = vmatprep.subr.bf16.mxu1 %v1932_v58 }
  0x97   : > { %2011 = vmatmul.mubr.msk.bf16.vlgmr.msra.gmra.mrb[20].mxu0 %vm934_vm0, %v2379_v3  ;;  %2012 = vmatmul.mubr.msk.bf16.vlgmr.msra.gmra.mrb[20].mxu1 %vm934_vm0, %v2379_v3 }
  0x98   : > { %1431 = vmatpush1.bf16.msra.mxu0 %v1929_v63  ;;  %1472 = vmatpush1.bf16.msra.mxu1 %v1931_v0 }
  0x99   : > { %1432 = vmatprep.subr.bf16.mxu0 %v1962_v1  ;;  %1473 = vmatprep.subr.bf16.mxu1 %v1964_v2 }
  0x9a   : > { %1462 = vmatprep.mubr.bf16.mxu0 %v2103_v32  ;;  %1503 = vmatprep.mubr.bf16.mxu1 %v2103_v32 }
  0x9c   : > { %1433 = vmatpush1.bf16.msra.mxu0 %v1961_v8  ;;  %1474 = vmatpush1.bf16.msra.mxu1 %v1963_v9 }
  0x9d   : > { %1434 = vmatprep.subr.bf16.mxu0 %v1994_v10  ;;  %1475 = vmatprep.subr.bf16.mxu1 %v1996_v11 }
  0xa0   : > { %1435 = vmatpush1.bf16.msra.mxu0 %v1993_v16  ;;  %1476 = vmatpush1.bf16.msra.mxu1 %v1995_v17 }
  0xa1   : > { %1512 = vmatprep.subr.bf16.mxu0 %v1934_v18  ;;  %1553 = vmatprep.subr.bf16.mxu1 %v1936_v19 }
  0xa3   : > { %2013 = vmatmul.mubr.msk.bf16.vlgmr.msra.gmra.mrb[24].mxu0 %vm934_vm0, %v2379_v3  ;;  %2014 = vmatmul.mubr.msk.bf16.vlgmr.msra.gmra.mrb[24].mxu1 %vm934_vm0, %v2379_v3 }
  0xa4   : > { %1513 = vmatpush1.bf16.msra.mxu0 %v1933_v24  ;;  %1554 = vmatpush1.bf16.msra.mxu1 %v1935_v25 }
  0xa5   : > { %1514 = vmatprep.subr.bf16.mxu0 %v1966_v26  ;;  %1555 = vmatprep.subr.bf16.mxu1 %v1968_v27 }
  0xa6   : > { %1544 = vmatprep.mubr.bf16.mxu0 %v2103_v32  ;;  %1585 = vmatprep.mubr.bf16.mxu1 %v2103_v32 }
  0xa8   : > { %1515 = vmatpush1.bf16.msra.mxu0 %v1965_v33  ;;  %1556 = vmatpush1.bf16.msra.mxu1 %v1967_v34 }
  0xa9   : > { %1516 = vmatprep.subr.bf16.mxu0 %v1998_v35  ;;  %1557 = vmatprep.subr.bf16.mxu1 %v2000_v36 }
  0xac   : > { %1517 = vmatpush1.bf16.msra.mxu0 %v1997_v37  ;;  %1558 = vmatpush1.bf16.msra.mxu1 %v1999_v38 }
  0xaf   : > { %2015 = vmatmul.mubr.msk.bf16.vlgmr.msra.gmra.mrb[28].mxu0 %vm934_vm0, %v2379_v3  ;;  %2016 = vmatmul.mubr.msk.bf16.vlgmr.msra.gmra.mrb[28].mxu1 %vm934_vm0, %v2379_v3 }
 0x12e   : > { %v972_v39 = vpop.f32.mrb[0].mxu0  ;;  %v1013_v40 = vpop.f32.mrb[0].mxu1 }
 0x12f   : > { %vm1594_vm1 = vcmp.gt.f32.partialorder %v972_v39, 0.0  ;;  %v1626_v32 = vmul.f32 0.2, %v972_v39  ;;  %v974_v41 = vpop.f32.mrb[1].mxu0  ;;  %vm1596_vm2 = vcmp.gt.f32.partialorder %v1013_v40, 0.0  ;;  %v1015_v45 = vpop.f32.mrb[1].mxu1 }
 0x130   : > { %v1628_v42 = vmul.f32 0.2, %v1013_v40  ;;  %vm1595_vm3 = vcmp.gt.f32.partialorder %v974_v41, 0.0  ;;  %v1627_v43 = vmul.f32 0.2, %v974_v41  ;;  %v976_v46 = vpop.f32.mrb[2].mxu0 }
 0x131   : > { %v1658_v44 = vsel %vm1594_vm1, %v972_v39, %v1626_v32  ;;  %vm1597_vm4 = vcmp.gt.f32.partialorder %v1015_v45, 0.0  ;;  %v1629_v48 = vmul.f32 0.2, %v1015_v45  ;;  %v1017_v49 = vpop.f32.mrb[2].mxu1  ;;  %v977_v50 = vpop.f32.mrb[3].mxu0 }
 0x132   : > { %v1660_v47 = vsel %vm1596_vm2, %v1013_v40, %v1628_v42  ;;  %v1659_v3 = vsel %vm1595_vm3, %v974_v41, %v1627_v43  ;;  %v1018_v52 = vpop.f32.mrb[3].mxu1 }
 0x133   : > { %v2036_v51 = vpack.c.bf16 %v1659_v3, %v1658_v44  ;;  %v1661_v53 = vsel %vm1597_vm4, %v1015_v45, %v1629_v48 }
 0x134   : > { %v2037_v54 = vpack.c.bf16 %v1661_v53, %v1660_v47 }
 0x135   : > { %1818 = vst [vmem:[%s2508_s5] sm:$0xff] %v2036_v51 }
 0x136   : > { %1819 = vst [vmem:[%s2508_s5 + $0x8] sm:$0xff] %v2037_v54 }
 0x13a   : > { %v1054_v55 = vpop.f32.mrb[4].mxu0  ;;  %v1095_v57 = vpop.f32.mrb[4].mxu1 }
 0x13b   : > { %vm1598_vm5 = vcmp.gt.f32.partialorder %v1054_v55, 0.0  ;;  %v1630_v56 = vmul.f32 0.2, %v1054_v55  ;;  %v1056_v58 = vpop.f32.mrb[5].mxu0  ;;  %vm1600_vm6 = vcmp.gt.f32.partialorder %v1095_v57, 0.0  ;;  %v1097_v62 = vpop.f32.mrb[5].mxu1 }
 0x13c   : > { %v1632_v59 = vmul.f32 0.2, %v1095_v57  ;;  %vm1599_vm7 = vcmp.gt.f32.partialorder %v1056_v58, 0.0  ;;  %v1631_v60 = vmul.f32 0.2, %v1056_v58  ;;  %v1058_v63 = vpop.f32.mrb[6].mxu0 }
 0x13d   : > { %v1662_v61 = vsel %vm1598_vm5, %v1054_v55, %v1630_v56  ;;  %vm1601_vm8 = vcmp.gt.f32.partialorder %v1097_v62, 0.0  ;;  %v1633_v2 = vmul.f32 0.2, %v1097_v62  ;;  %v1099_v4 = vpop.f32.mrb[6].mxu1  ;;  %v1059_v5 = vpop.f32.mrb[7].mxu0 }
 0x13e   : > { %v1664_v0 = vsel %vm1600_vm6, %v1095_v57, %v1632_v59  ;;  %v1663_v1 = vsel %vm1599_vm7, %v1056_v58, %v1631_v60  ;;  %v1100_v7 = vpop.f32.mrb[7].mxu1 }
 0x13f   : > { %v2038_v6 = vpack.c.bf16 %v1663_v1, %v1662_v61  ;;  %v1665_v8 = vsel %vm1601_vm8, %v1097_v62, %v1633_v2 }
 0x140   : > { %v2039_v9 = vpack.c.bf16 %v1665_v8, %v1664_v0 }
 0x141   : > { %1820 = vst [vmem:[%s2508_s5 + $0x10] sm:$0xff] %v2038_v6 }
 0x142   : > { %1821 = vst [vmem:[%s2508_s5 + $0x18] sm:$0xff] %v2039_v9 }
 0x146   : > { %v1136_v10 = vpop.f32.mrb[8].mxu0  ;;  %v1177_v12 = vpop.f32.mrb[8].mxu1 }
 0x147   : > { %vm1602_vm9 = vcmp.gt.f32.partialorder %v1136_v10, 0.0  ;;  %v1634_v11 = vmul.f32 0.2, %v1136_v10  ;;  %v1138_v13 = vpop.f32.mrb[9].mxu0  ;;  %vm1604_vm10 = vcmp.gt.f32.partialorder %v1177_v12, 0.0  ;;  %v1179_v17 = vpop.f32.mrb[9].mxu1 }
 0x148   : > { %v1636_v14 = vmul.f32 0.2, %v1177_v12  ;;  %vm1603_vm11 = vcmp.gt.f32.partialorder %v1138_v13, 0.0  ;;  %v1635_v15 = vmul.f32 0.2, %v1138_v13  ;;  %v1140_v18 = vpop.f32.mrb[10].mxu0 }
 0x149   : > { %v1666_v16 = vsel %vm1602_vm9, %v1136_v10, %v1634_v11  ;;  %vm1605_vm12 = vcmp.gt.f32.partialorder %v1179_v17, 0.0  ;;  %v1637_v21 = vmul.f32 0.2, %v1179_v17  ;;  %v1181_v22 = vpop.f32.mrb[10].mxu1  ;;  %v1141_v23 = vpop.f32.mrb[11].mxu0 }
 0x14a   : > { %v1668_v19 = vsel %vm1604_vm10, %v1177_v12, %v1636_v14  ;;  %v1667_v20 = vsel %vm1603_vm11, %v1138_v13, %v1635_v15  ;;  %v1182_v25 = vpop.f32.mrb[11].mxu1 }
 0x14b   : > { %v2040_v24 = vpack.c.bf16 %v1667_v20, %v1666_v16  ;;  %v1669_v26 = vsel %vm1605_vm12, %v1179_v17, %v1637_v21 }
 0x14c   : > { %v2041_v27 = vpack.c.bf16 %v1669_v26, %v1668_v19 }
 0x14d   : > { %1822 = vst [vmem:[%s2508_s5 + $0x20] sm:$0xff] %v2040_v24 }
 0x14e   : > { %1823 = vst [vmem:[%s2508_s5 + $0x28] sm:$0xff] %v2041_v27 }
 0x152   : > { %v1218_v28 = vpop.f32.mrb[12].mxu0  ;;  %v1259_v30 = vpop.f32.mrb[12].mxu1 }
 0x153   : > { %vm1606_vm13 = vcmp.gt.f32.partialorder %v1218_v28, 0.0  ;;  %v1638_v29 = vmul.f32 0.2, %v1218_v28  ;;  %v1220_v31 = vpop.f32.mrb[13].mxu0  ;;  %vm1608_vm14 = vcmp.gt.f32.partialorder %v1259_v30, 0.0  ;;  %v1261_v36 = vpop.f32.mrb[13].mxu1 }
 0x154   : > { %v1640_v33 = vmul.f32 0.2, %v1259_v30  ;;  %vm1607_vm15 = vcmp.gt.f32.partialorder %v1220_v31, 0.0  ;;  %v1639_v34 = vmul.f32 0.2, %v1220_v31  ;;  %v1222_v37 = vpop.f32.mrb[14].mxu0 }
 0x155   : > { %v1670_v35 = vsel %vm1606_vm13, %v1218_v28, %v1638_v29  ;;  %vm1609_vm0 = vcmp.gt.f32.partialorder %v1261_v36, 0.0  ;;  %v1641_v32 = vmul.f32 0.2, %v1261_v36  ;;  %v1263_v40 = vpop.f32.mrb[14].mxu1  ;;  %v1223_v41 = vpop.f32.mrb[15].mxu0 }
 0x156   : > { %v1672_v38 = vsel %vm1608_vm14, %v1259_v30, %v1640_v33  ;;  %v1671_v39 = vsel %vm1607_vm15, %v1220_v31, %v1639_v34  ;;  %v1264_v43 = vpop.f32.mrb[15].mxu1 }
 0x157   : > { %v2042_v42 = vpack.c.bf16 %v1671_v39, %v1670_v35  ;;  %v1673_v44 = vsel %vm1609_vm0, %v1261_v36, %v1641_v32 }
 0x158   : > { %v2043_v45 = vpack.c.bf16 %v1673_v44, %v1672_v38 }
 0x159   : > { %1824 = vst [vmem:[%s2508_s5 + $0x30] sm:$0xff] %v2042_v42 }
 0x15a   : > { %1825 = vst [vmem:[%s2508_s5 + $0x38] sm:$0xff] %v2043_v45 }
 0x15e   : > { %v1300_v46 = vpop.f32.mrb[16].mxu0  ;;  %v1341_v3 = vpop.f32.mrb[16].mxu1 }
 0x15f   : > { %vm1610_vm1 = vcmp.gt.f32.partialorder %v1300_v46, 0.0  ;;  %v1642_v47 = vmul.f32 0.2, %v1300_v46  ;;  %v1302_v48 = vpop.f32.mrb[17].mxu0  ;;  %vm1612_vm2 = vcmp.gt.f32.partialorder %v1341_v3, 0.0  ;;  %v1343_v52 = vpop.f32.mrb[17].mxu1 }
 0x160   : > { %v1644_v49 = vmul.f32 0.2, %v1341_v3  ;;  %vm1611_vm3 = vcmp.gt.f32.partialorder %v1302_v48, 0.0  ;;  %v1643_v50 = vmul.f32 0.2, %v1302_v48  ;;  %v1304_v53 = vpop.f32.mrb[18].mxu0 }
 0x161   : > { %v1674_v51 = vsel %vm1610_vm1, %v1300_v46, %v1642_v47  ;;  %vm1613_vm4 = vcmp.gt.f32.partialorder %v1343_v52, 0.0  ;;  %v1645_v56 = vmul.f32 0.2, %v1343_v52  ;;  %v1345_v57 = vpop.f32.mrb[18].mxu1  ;;  %v1305_v58 = vpop.f32.mrb[19].mxu0 }
 0x162   : > { %v1676_v54 = vsel %vm1612_vm2, %v1341_v3, %v1644_v49  ;;  %v1675_v55 = vsel %vm1611_vm3, %v1302_v48, %v1643_v50  ;;  %v1346_v60 = vpop.f32.mrb[19].mxu1 }
 0x163   : > { %v2044_v59 = vpack.c.bf16 %v1675_v55, %v1674_v51  ;;  %v1677_v61 = vsel %vm1613_vm4, %v1343_v52, %v1645_v56 }
 0x164   : > { %v2045_v62 = vpack.c.bf16 %v1677_v61, %v1676_v54 }
 0x165   : > { %1826 = vst [vmem:[%s2508_s5 + $0x40] sm:$0xff] %v2044_v59 }
 0x166   : > { %1827 = vst [vmem:[%s2508_s5 + $0x48] sm:$0xff] %v2045_v62 }
 0x16a   : > { %v1382_v63 = vpop.f32.mrb[20].mxu0  ;;  %v1423_v1 = vpop.f32.mrb[20].mxu1 }
 0x16b   : > { %vm1614_vm5 = vcmp.gt.f32.partialorder %v1382_v63, 0.0  ;;  %v1646_v0 = vmul.f32 0.2, %v1382_v63  ;;  %v1384_v2 = vpop.f32.mrb[21].mxu0  ;;  %vm1616_vm6 = vcmp.gt.f32.partialorder %v1423_v1, 0.0  ;;  %v1425_v7 = vpop.f32.mrb[21].mxu1 }
 0x16c   : > { %v1648_v4 = vmul.f32 0.2, %v1423_v1  ;;  %vm1615_vm7 = vcmp.gt.f32.partialorder %v1384_v2, 0.0  ;;  %v1647_v5 = vmul.f32 0.2, %v1384_v2  ;;  %v1386_v8 = vpop.f32.mrb[22].mxu0 }
 0x16d   : > { %v1678_v6 = vsel %vm1614_vm5, %v1382_v63, %v1646_v0  ;;  %vm1617_vm8 = vcmp.gt.f32.partialorder %v1425_v7, 0.0  ;;  %v1649_v11 = vmul.f32 0.2, %v1425_v7  ;;  %v1427_v12 = vpop.f32.mrb[22].mxu1  ;;  %v1387_v13 = vpop.f32.mrb[23].mxu0 }
 0x16e   : > { %v1680_v9 = vsel %vm1616_vm6, %v1423_v1, %v1648_v4  ;;  %v1679_v10 = vsel %vm1615_vm7, %v1384_v2, %v1647_v5  ;;  %v1428_v15 = vpop.f32.mrb[23].mxu1 }
 0x16f   : > { %v2046_v14 = vpack.c.bf16 %v1679_v10, %v1678_v6  ;;  %v1681_v16 = vsel %vm1617_vm8, %v1425_v7, %v1649_v11 }
 0x170   : > { %v2047_v17 = vpack.c.bf16 %v1681_v16, %v1680_v9 }
 0x171   : > { %1828 = vst [vmem:[%s2508_s5 + $0x50] sm:$0xff] %v2046_v14 }
 0x172   : > { %1829 = vst [vmem:[%s2508_s5 + $0x58] sm:$0xff] %v2047_v17 }
 0x176   : > { %v1464_v18 = vpop.f32.mrb[24].mxu0  ;;  %v1505_v20 = vpop.f32.mrb[24].mxu1 }
 0x177   : > { %vm1618_vm9 = vcmp.gt.f32.partialorder %v1464_v18, 0.0  ;;  %v1650_v19 = vmul.f32 0.2, %v1464_v18  ;;  %v1466_v21 = vpop.f32.mrb[25].mxu0  ;;  %vm1620_vm10 = vcmp.gt.f32.partialorder %v1505_v20, 0.0  ;;  %v1507_v25 = vpop.f32.mrb[25].mxu1 }
 0x178   : > { %v1652_v22 = vmul.f32 0.2, %v1505_v20  ;;  %vm1619_vm11 = vcmp.gt.f32.partialorder %v1466_v21, 0.0  ;;  %v1651_v23 = vmul.f32 0.2, %v1466_v21  ;;  %v1468_v26 = vpop.f32.mrb[26].mxu0 }
 0x179   : > { %v1682_v24 = vsel %vm1618_vm9, %v1464_v18, %v1650_v19  ;;  %vm1621_vm12 = vcmp.gt.f32.partialorder %v1507_v25, 0.0  ;;  %v1653_v29 = vmul.f32 0.2, %v1507_v25  ;;  %v1509_v30 = vpop.f32.mrb[26].mxu1  ;;  %v1469_v31 = vpop.f32.mrb[27].mxu0 }
 0x17a   : > { %v1684_v27 = vsel %vm1620_vm10, %v1505_v20, %v1652_v22  ;;  %v1683_v28 = vsel %vm1619_vm11, %v1466_v21, %v1651_v23  ;;  %v1510_v34 = vpop.f32.mrb[27].mxu1 }
 0x17b   : > { %v2048_v33 = vpack.c.bf16 %v1683_v28, %v1682_v24  ;;  %v1685_v35 = vsel %vm1621_vm12, %v1507_v25, %v1653_v29 }
 0x17c   : > { %v2049_v36 = vpack.c.bf16 %v1685_v35, %v1684_v27 }
 0x17d   : > { %1830 = vst [vmem:[%s2508_s5 + $0x60] sm:$0xff] %v2048_v33 }
 0x17e   : > { %1831 = vst [vmem:[%s2508_s5 + $0x68] sm:$0xff] %v2049_v36 }
 0x182   : > { %v1546_v37 = vpop.f32.mrb[28].mxu0  ;;  %v1587_v39 = vpop.f32.mrb[28].mxu1 }
 0x183   : > { %vm1622_vm13 = vcmp.gt.f32.partialorder %v1546_v37, 0.0  ;;  %v1654_v38 = vmul.f32 0.2, %v1546_v37  ;;  %v1548_v32 = vpop.f32.mrb[29].mxu0  ;;  %vm1624_vm14 = vcmp.gt.f32.partialorder %v1587_v39, 0.0  ;;  %v1589_v43 = vpop.f32.mrb[29].mxu1 }
 0x184   : > { %v1656_v40 = vmul.f32 0.2, %v1587_v39  ;;  %vm1623_vm15 = vcmp.gt.f32.partialorder %v1548_v32, 0.0  ;;  %v1655_v41 = vmul.f32 0.2, %v1548_v32  ;;  %v1550_v44 = vpop.f32.mrb[30].mxu0 }
 0x185   : > { %v1686_v42 = vsel %vm1622_vm13, %v1546_v37, %v1654_v38  ;;  %vm1625_vm0 = vcmp.gt.f32.partialorder %v1589_v43, 0.0  ;;  %v1657_v47 = vmul.f32 0.2, %v1589_v43  ;;  %v1591_v3 = vpop.f32.mrb[30].mxu1  ;;  %v1551_v48 = vpop.f32.mrb[31].mxu0 }
 0x186   : > { %v1688_v45 = vsel %vm1624_vm14, %v1587_v39, %v1656_v40  ;;  %v1687_v46 = vsel %vm1623_vm15, %v1548_v32, %v1655_v41  ;;  %v1592_v50 = vpop.f32.mrb[31].mxu1 }
 0x187   : > { %v2050_v49 = vpack.c.bf16 %v1687_v46, %v1686_v42  ;;  %v1689_v51 = vsel %vm1625_vm0, %v1589_v43, %v1657_v47 }
 0x188   : > { %v2051_v52 = vpack.c.bf16 %v1689_v51, %v1688_v45 }
 0x189   : > { %1832 = vst [vmem:[%s2508_s5 + $0x70] sm:$0xff] %v2050_v49 }
 0x18a   : > { %1833 = vst [vmem:[%s2508_s5 + $0x78] sm:$0xff] %v2051_v52 }
 0x18b PF: > { %p9_p9 = scmp.ge.s32.totalorder %s2136_s13, 4   ;;  %s2539_s9 = smov %s2097_s10 }
 0x18c   : > { %s2540_s10 = smov %s2145_s16  ;;  %s2541_s11 = smov %s2136_s13 }
 0x18d   :  { %11 = sbr.rel (!%p9_p9) target bundleno = 2 (0x2), region = 86 }

// kernel: discriminator_forward.9
= control target key start
LH: loop header
LB: loop body
LE: loop exit
PB: predicated region body
PF: predicated region fallthrough
CT: control target
= control target key end

     0   :  { %v1607_v3 = vmov 0   ;;  %s2098_s1 = inlined_call_operand.vmem [shape: bf16[128,2048], index: 1, kind: input, shape index: {}]   ;;  %s2099_s0 = inlined_call_operand.vmem [shape: bf16[16,128], index: 0, kind: input, shape index: {}]   ;;  %s2100_s2 = inlined_call_operand.vmem [shape: bf16[16,2048], index: 2, kind: output, shape index: {0}]   ;;  %s2101_s3 = inlined_call_operand.vmem [shape: f32[16,128], index: 3, kind: output, shape index: {1}]   ;;  %s2102_s4 = inlined_call_operand.vmem [shape: f32[16,128], index: 4, kind: output, shape index: {2}]  }
   0x1   :  { %v61_v0 = vld [vmem:[%s2098_s1] sm:$0xff]  ;;  %v62_v2 = vld [vmem:[%s2098_s1 + $0x8] sm:$0xff]  ;;  %867 = vmatprep.mubr.bf16.mxu0 %v1607_v3  ;;  %910 = vmatprep.mubr.bf16.mxu1 %v1607_v3  ;;  %v63_v63 = vld [vmem:[%s2098_s1 + $0x10] sm:$0xff] }
   0x2   :  { %v69_v1 = vld [vmem:[%s2098_s1 + $0x40] sm:$0xff]  ;;  %v70_v6 = vld [vmem:[%s2098_s1 + $0x48] sm:$0xff] }
   0x3   :  { %v1445_v4 = vcombine.high %v61_v0, %v69_v1  ;;  %v1444_v5 = vcombine.low %v61_v0, %v69_v1  ;;  %v77_v7 = vld [vmem:[%s2098_s1 + $0x80] sm:$0xff]  ;;  %v1447_v9 = vcombine.high %v62_v2, %v70_v6  ;;  %v1446_v10 = vcombine.low %v62_v2, %v70_v6  ;;  %v78_v12 = vld [vmem:[%s2098_s1 + $0x88] sm:$0xff]  ;;  %v71_v0 = vld [vmem:[%s2098_s1 + $0x50] sm:$0xff] }
   0x4   :  { %v85_v8 = vld [vmem:[%s2098_s1 + $0xc0] sm:$0xff]  ;;  %v86_v13 = vld [vmem:[%s2098_s1 + $0xc8] sm:$0xff]  ;;  %v64_v1 = vld [vmem:[%s2098_s1 + $0x18] sm:$0xff]  ;;  %v1449_v6 = vcombine.high %v63_v63, %v71_v0 }
   0x5   :  { %v1461_v11 = vcombine.high %v77_v7, %v85_v8  ;;  %v93_v14 = vld [vmem:[%s2098_s1 + $0x100] sm:$0xff]  ;;  %835 = vmatprep.subr.bf16.mxu0 %v1445_v4  ;;  %v1463_v15 = vcombine.high %v78_v12, %v86_v13  ;;  %v94_v17 = vld [vmem:[%s2098_s1 + $0x108] sm:$0xff]  ;;  %878 = vmatprep.subr.bf16.mxu1 %v1447_v9  ;;  %v1460_v19 = vcombine.low %v77_v7, %v85_v8  ;;  %v72_v2 = vld [vmem:[%s2098_s1 + $0x58] sm:$0xff] }
   0x6   :  { %v101_v16 = vld [vmem:[%s2098_s1 + $0x140] sm:$0xff]  ;;  %v102_v18 = vld [vmem:[%s2098_s1 + $0x148] sm:$0xff]  ;;  %836 = vmatpush1.bf16.msra.mxu0 %v1444_v5  ;;  %879 = vmatpush1.bf16.msra.mxu1 %v1446_v10  ;;  %v1462_v20 = vcombine.low %v78_v12, %v86_v13  ;;  %v1451_v7 = vcombine.high %v64_v1, %v72_v2  ;;  %v79_v8 = vld [vmem:[%s2098_s1 + $0x90] sm:$0xff]  ;;  %v1448_v13 = vcombine.low %v63_v63, %v71_v0 }
   0x7   :  { %837 = vmatprep.subr.bf16.mxu0 %v1461_v11  ;;  %v1477_v21 = vcombine.high %v93_v14, %v101_v16  ;;  %880 = vmatprep.subr.bf16.mxu1 %v1463_v15  ;;  %v1479_v22 = vcombine.high %v94_v17, %v102_v18  ;;  %v109_v23 = vld [vmem:[%s2098_s1 + $0x180] sm:$0xff]  ;;  %v110_v25 = vld [vmem:[%s2098_s1 + $0x188] sm:$0xff]  ;;  %v1476_v27 = vcombine.low %v93_v14, %v101_v16  ;;  %v87_v9 = vld [vmem:[%s2098_s1 + $0xd0] sm:$0xff] }
   0x8   :  { %v117_v24 = vld [vmem:[%s2098_s1 + $0x1c0] sm:$0xff]  ;;  %v118_v26 = vld [vmem:[%s2098_s1 + $0x1c8] sm:$0xff]  ;;  %v1478_v28 = vcombine.low %v94_v17, %v102_v18  ;;  %v80_v11 = vld [vmem:[%s2098_s1 + $0x98] sm:$0xff]  ;;  %v1450_v14 = vcombine.low %v64_v1, %v72_v2  ;;  %v1465_v15 = vcombine.high %v79_v8, %v87_v9 }
   0x9   :  { %v1493_v29 = vcombine.high %v109_v23, %v117_v24  ;;  %v1495_v30 = vcombine.high %v110_v25, %v118_v26  ;;  %v125_v31 = vld [vmem:[%s2098_s1 + $0x200] sm:$0xff]  ;;  %v126_v33 = vld [vmem:[%s2098_s1 + $0x208] sm:$0xff]  ;;  %v1492_v35 = vcombine.low %v109_v23, %v117_v24  ;;  %v1494_v36 = vcombine.low %v110_v25, %v118_v26  ;;  %v88_v12 = vld [vmem:[%s2098_s1 + $0xd8] sm:$0xff] }
   0xa   :  { %838 = vmatpush1.bf16.msra.mxu0 %v1460_v19  ;;  %881 = vmatpush1.bf16.msra.mxu1 %v1462_v20  ;;  %v133_v32 = vld [vmem:[%s2098_s1 + $0x240] sm:$0xff]  ;;  %v134_v34 = vld [vmem:[%s2098_s1 + $0x248] sm:$0xff]  ;;  %v1467_v16 = vcombine.high %v80_v11, %v88_v12  ;;  %v95_v17 = vld [vmem:[%s2098_s1 + $0x110] sm:$0xff] }
   0xb   :  { %839 = vmatprep.subr.bf16.mxu0 %v1477_v21  ;;  %882 = vmatprep.subr.bf16.mxu1 %v1479_v22  ;;  %v1509_v37 = vcombine.high %v125_v31, %v133_v32  ;;  %v1511_v38 = vcombine.high %v126_v33, %v134_v34  ;;  %v141_v39 = vld [vmem:[%s2098_s1 + $0x280] sm:$0xff]  ;;  %v142_v41 = vld [vmem:[%s2098_s1 + $0x288] sm:$0xff]  ;;  %v1508_v43 = vcombine.low %v125_v31, %v133_v32  ;;  %v103_v18 = vld [vmem:[%s2098_s1 + $0x150] sm:$0xff] }
   0xc   :  { %v149_v40 = vld [vmem:[%s2098_s1 + $0x2c0] sm:$0xff]  ;;  %v150_v42 = vld [vmem:[%s2098_s1 + $0x2c8] sm:$0xff]  ;;  %v1510_v44 = vcombine.low %v126_v33, %v134_v34  ;;  %v96_v19 = vld [vmem:[%s2098_s1 + $0x118] sm:$0xff]  ;;  %v1464_v21 = vcombine.low %v79_v8, %v87_v9  ;;  %v1466_v22 = vcombine.low %v80_v11, %v88_v12  ;;  %v1481_v23 = vcombine.high %v95_v17, %v103_v18 }
   0xd   :  { %v1525_v45 = vcombine.high %v141_v39, %v149_v40  ;;  %v1527_v46 = vcombine.high %v142_v41, %v150_v42  ;;  %v157_v47 = vld [vmem:[%s2098_s1 + $0x300] sm:$0xff]  ;;  %v158_v49 = vld [vmem:[%s2098_s1 + $0x308] sm:$0xff]  ;;  %v1524_v51 = vcombine.low %v141_v39, %v149_v40  ;;  %v1526_v52 = vcombine.low %v142_v41, %v150_v42  ;;  %v104_v20 = vld [vmem:[%s2098_s1 + $0x158] sm:$0xff] }
   0xe   :  { %840 = vmatpush1.bf16.msra.mxu0 %v1476_v27  ;;  %883 = vmatpush1.bf16.msra.mxu1 %v1478_v28  ;;  %v165_v48 = vld [vmem:[%s2098_s1 + $0x340] sm:$0xff]  ;;  %v166_v50 = vld [vmem:[%s2098_s1 + $0x348] sm:$0xff]  ;;  %v1483_v24 = vcombine.high %v96_v19, %v104_v20  ;;  %v111_v25 = vld [vmem:[%s2098_s1 + $0x190] sm:$0xff] }
   0xf   :  { %841 = vmatprep.subr.bf16.mxu0 %v1493_v29  ;;  %884 = vmatprep.subr.bf16.mxu1 %v1495_v30  ;;  %v1541_v53 = vcombine.high %v157_v47, %v165_v48  ;;  %v1543_v54 = vcombine.high %v158_v49, %v166_v50  ;;  %v173_v55 = vld [vmem:[%s2098_s1 + $0x380] sm:$0xff]  ;;  %v174_v57 = vld [vmem:[%s2098_s1 + $0x388] sm:$0xff]  ;;  %v1540_v59 = vcombine.low %v157_v47, %v165_v48  ;;  %v119_v26 = vld [vmem:[%s2098_s1 + $0x1d0] sm:$0xff] }
  0x10   :  { %v181_v56 = vld [vmem:[%s2098_s1 + $0x3c0] sm:$0xff]  ;;  %v182_v58 = vld [vmem:[%s2098_s1 + $0x3c8] sm:$0xff]  ;;  %v1542_v60 = vcombine.low %v158_v49, %v166_v50  ;;  %v112_v27 = vld [vmem:[%s2098_s1 + $0x198] sm:$0xff]  ;;  %v1480_v29 = vcombine.low %v95_v17, %v103_v18  ;;  %v1482_v30 = vcombine.low %v96_v19, %v104_v20  ;;  %v1497_v31 = vcombine.high %v111_v25, %v119_v26 }
  0x11   :  { %v1557_v61 = vcombine.high %v173_v55, %v181_v56  ;;  %v1559_v62 = vcombine.high %v174_v57, %v182_v58  ;;  %v1556_v4 = vcombine.low %v173_v55, %v181_v56  ;;  %v1558_v5 = vcombine.low %v174_v57, %v182_v58  ;;  %v1752_v10 = vld [vmem:[%s2099_s0] sm:$0xff]   ;;  %v120_v28 = vld [vmem:[%s2098_s1 + $0x1d8] sm:$0xff]  ;;  %v127_v33 = vld [vmem:[%s2098_s1 + $0x210] sm:$0xff] }
  0x12   :  { %842 = vmatpush1.bf16.msra.mxu0 %v1492_v35  ;;  %885 = vmatpush1.bf16.msra.mxu1 %v1494_v36  ;;  %v1499_v32 = vcombine.high %v112_v27, %v120_v28  ;;  %v135_v34 = vld [vmem:[%s2098_s1 + $0x250] sm:$0xff]  ;;  %v128_v35 = vld [vmem:[%s2098_s1 + $0x218] sm:$0xff]  ;;  %v65_v1 = vld [vmem:[%s2098_s1 + $0x20] sm:$0xff] }
  0x13   :  { %843 = vmatprep.subr.bf16.mxu0 %v1509_v37  ;;  %886 = vmatprep.subr.bf16.mxu1 %v1511_v38  ;;  %v136_v36 = vld [vmem:[%s2098_s1 + $0x258] sm:$0xff]  ;;  %v1496_v37 = vcombine.low %v111_v25, %v119_v26  ;;  %v1498_v38 = vcombine.low %v112_v27, %v120_v28  ;;  %v1513_v39 = vcombine.high %v127_v33, %v135_v34  ;;  %v143_v41 = vld [vmem:[%s2098_s1 + $0x290] sm:$0xff]  ;;  %v73_v2 = vld [vmem:[%s2098_s1 + $0x60] sm:$0xff] }
  0x14   :  { %v1515_v40 = vcombine.high %v128_v35, %v136_v36  ;;  %v151_v42 = vld [vmem:[%s2098_s1 + $0x2d0] sm:$0xff]  ;;  %v1453_v8 = vcombine.high %v65_v1, %v73_v2  ;;  %v81_v11 = vld [vmem:[%s2098_s1 + $0xa0] sm:$0xff] }
  0x15   :  { %v1529_v47 = vcombine.high %v143_v41, %v151_v42  ;;  %v159_v49 = vld [vmem:[%s2098_s1 + $0x310] sm:$0xff]  ;;  %v89_v12 = vld [vmem:[%s2098_s1 + $0xe0] sm:$0xff] }
  0x16   :  { %844 = vmatpush1.bf16.msra.mxu0 %v1508_v43  ;;  %887 = vmatpush1.bf16.msra.mxu1 %v1510_v44  ;;  %v144_v43 = vld [vmem:[%s2098_s1 + $0x298] sm:$0xff]  ;;  %v167_v50 = vld [vmem:[%s2098_s1 + $0x350] sm:$0xff]  ;;  %v1469_v17 = vcombine.high %v81_v11, %v89_v12  ;;  %v97_v19 = vld [vmem:[%s2098_s1 + $0x120] sm:$0xff] }
  0x17   :  { %845 = vmatprep.subr.bf16.mxu0 %v1525_v45  ;;  %888 = vmatprep.subr.bf16.mxu1 %v1527_v46  ;;  %v152_v44 = vld [vmem:[%s2098_s1 + $0x2d8] sm:$0xff]  ;;  %v1512_v45 = vcombine.low %v127_v33, %v135_v34  ;;  %v1514_v46 = vcombine.low %v128_v35, %v136_v36  ;;  %v1545_v55 = vcombine.high %v159_v49, %v167_v50  ;;  %v175_v57 = vld [vmem:[%s2098_s1 + $0x390] sm:$0xff]  ;;  %v105_v20 = vld [vmem:[%s2098_s1 + $0x160] sm:$0xff] }
  0x18   :  { %v1531_v48 = vcombine.high %v144_v43, %v152_v44  ;;  %v183_v58 = vld [vmem:[%s2098_s1 + $0x3d0] sm:$0xff]  ;;  %v1485_v25 = vcombine.high %v97_v19, %v105_v20  ;;  %v113_v27 = vld [vmem:[%s2098_s1 + $0x1a0] sm:$0xff] }
  0x19   :  { %v1561_v63 = vcombine.high %v175_v57, %v183_v58  ;;  %v121_v28 = vld [vmem:[%s2098_s1 + $0x1e0] sm:$0xff] }
  0x1a   :  { %846 = vmatpush1.bf16.msra.mxu0 %v1524_v51  ;;  %889 = vmatpush1.bf16.msra.mxu1 %v1526_v52  ;;  %v160_v51 = vld [vmem:[%s2098_s1 + $0x318] sm:$0xff]  ;;  %v1501_v33 = vcombine.high %v113_v27, %v121_v28  ;;  %v129_v35 = vld [vmem:[%s2098_s1 + $0x220] sm:$0xff] }
  0x1b   :  { %847 = vmatprep.subr.bf16.mxu0 %v1541_v53  ;;  %890 = vmatprep.subr.bf16.mxu1 %v1543_v54  ;;  %v168_v52 = vld [vmem:[%s2098_s1 + $0x358] sm:$0xff]  ;;  %v1528_v53 = vcombine.low %v143_v41, %v151_v42  ;;  %v1530_v54 = vcombine.low %v144_v43, %v152_v44  ;;  %v137_v36 = vld [vmem:[%s2098_s1 + $0x260] sm:$0xff] }
  0x1c   :  { %v1547_v56 = vcombine.high %v160_v51, %v168_v52  ;;  %v1517_v41 = vcombine.high %v129_v35, %v137_v36  ;;  %v145_v43 = vld [vmem:[%s2098_s1 + $0x2a0] sm:$0xff] }
  0x1d   :  { %v153_v44 = vld [vmem:[%s2098_s1 + $0x2e0] sm:$0xff] }
  0x1e   :  { %848 = vmatpush1.bf16.msra.mxu0 %v1540_v59  ;;  %891 = vmatpush1.bf16.msra.mxu1 %v1542_v60  ;;  %v176_v59 = vld [vmem:[%s2098_s1 + $0x398] sm:$0xff] }
  0x1f   :  { %849 = vmatprep.subr.bf16.mxu0 %v1557_v61  ;;  %892 = vmatprep.subr.bf16.mxu1 %v1559_v62  ;;  %v184_v60 = vld [vmem:[%s2098_s1 + $0x3d8] sm:$0xff]  ;;  %v1544_v61 = vcombine.low %v159_v49, %v167_v50  ;;  %v1546_v62 = vcombine.low %v160_v51, %v168_v52  ;;  %v1533_v49 = vcombine.high %v145_v43, %v153_v44  ;;  %v161_v51 = vld [vmem:[%s2098_s1 + $0x320] sm:$0xff] }
  0x20   :  { %v1563_v0 = vcombine.high %v176_v59, %v184_v60  ;;  %v169_v52 = vld [vmem:[%s2098_s1 + $0x360] sm:$0xff] }
  0x22   :  { %850 = vmatpush1.bf16.msra.mxu0 %v1556_v4  ;;  %893 = vmatpush1.bf16.msra.mxu1 %v1558_v5  ;;  %v66_v4 = vld [vmem:[%s2098_s1 + $0x28] sm:$0xff] }
  0x23   :  { %921 = vmatprep.subr.bf16.mxu0 %v1449_v6  ;;  %964 = vmatprep.subr.bf16.mxu1 %v1451_v7  ;;  %v74_v5 = vld [vmem:[%s2098_s1 + $0x68] sm:$0xff]  ;;  %v1560_v6 = vcombine.low %v175_v57, %v183_v58  ;;  %v1562_v7 = vcombine.low %v176_v59, %v184_v60  ;;  %v1549_v57 = vcombine.high %v161_v51, %v169_v52  ;;  %v177_v59 = vld [vmem:[%s2098_s1 + $0x3a0] sm:$0xff] }
  0x24   :  { %v1455_v9 = vcombine.high %v66_v4, %v74_v5  ;;  %v185_v60 = vld [vmem:[%s2098_s1 + $0x3e0] sm:$0xff] }
  0x25   :  { %868 = vmatmul.mubr.bf16.vlgmr.msra.gmra.mrb[0].mxu0 %v1752_v10  ;;  %911 = vmatmul.mubr.bf16.vlgmr.msra.gmra.mrb[0].mxu1 %v1752_v10 }
  0x26   :  { %922 = vmatpush1.bf16.msra.mxu0 %v1448_v13  ;;  %965 = vmatpush1.bf16.msra.mxu1 %v1450_v14  ;;  %v82_v13 = vld [vmem:[%s2098_s1 + $0xa8] sm:$0xff] }
  0x27   :  { %923 = vmatprep.subr.bf16.mxu0 %v1465_v15  ;;  %966 = vmatprep.subr.bf16.mxu1 %v1467_v16  ;;  %v90_v14 = vld [vmem:[%s2098_s1 + $0xe8] sm:$0xff]  ;;  %v1452_v15 = vcombine.low %v65_v1, %v73_v2  ;;  %v1454_v16 = vcombine.low %v66_v4, %v74_v5  ;;  %v1565_v1 = vcombine.high %v177_v59, %v185_v60  ;;  %v67_v4 = vld [vmem:[%s2098_s1 + $0x30] sm:$0xff] }
  0x28   :  { %953 = vmatprep.mubr.bf16.mxu0 %v1607_v3  ;;  %996 = vmatprep.mubr.bf16.mxu1 %v1607_v3  ;;  %v1471_v18 = vcombine.high %v82_v13, %v90_v14  ;;  %v75_v5 = vld [vmem:[%s2098_s1 + $0x70] sm:$0xff] }
  0x2a   :  { %924 = vmatpush1.bf16.msra.mxu0 %v1464_v21  ;;  %967 = vmatpush1.bf16.msra.mxu1 %v1466_v22  ;;  %v98_v21 = vld [vmem:[%s2098_s1 + $0x128] sm:$0xff] }
  0x2b   :  { %925 = vmatprep.subr.bf16.mxu0 %v1481_v23  ;;  %968 = vmatprep.subr.bf16.mxu1 %v1483_v24  ;;  %v106_v22 = vld [vmem:[%s2098_s1 + $0x168] sm:$0xff]  ;;  %v1468_v23 = vcombine.low %v81_v11, %v89_v12  ;;  %v1470_v24 = vcombine.low %v82_v13, %v90_v14  ;;  %v1457_v11 = vcombine.high %v67_v4, %v75_v5  ;;  %v83_v13 = vld [vmem:[%s2098_s1 + $0xb0] sm:$0xff] }
  0x2c   :  { %v1487_v26 = vcombine.high %v98_v21, %v106_v22  ;;  %v91_v14 = vld [vmem:[%s2098_s1 + $0xf0] sm:$0xff] }
  0x2e   :  { %926 = vmatpush1.bf16.msra.mxu0 %v1480_v29  ;;  %969 = vmatpush1.bf16.msra.mxu1 %v1482_v30  ;;  %v114_v29 = vld [vmem:[%s2098_s1 + $0x1a8] sm:$0xff] }
  0x2f   :  { %927 = vmatprep.subr.bf16.mxu0 %v1497_v31  ;;  %970 = vmatprep.subr.bf16.mxu1 %v1499_v32  ;;  %v122_v30 = vld [vmem:[%s2098_s1 + $0x1e8] sm:$0xff]  ;;  %v1484_v31 = vcombine.low %v97_v19, %v105_v20  ;;  %v1486_v32 = vcombine.low %v98_v21, %v106_v22  ;;  %v1473_v19 = vcombine.high %v83_v13, %v91_v14  ;;  %v99_v21 = vld [vmem:[%s2098_s1 + $0x130] sm:$0xff] }
  0x30   :  { %v1503_v34 = vcombine.high %v114_v29, %v122_v30  ;;  %v107_v22 = vld [vmem:[%s2098_s1 + $0x170] sm:$0xff] }
  0x32   :  { %928 = vmatpush1.bf16.msra.mxu0 %v1496_v37  ;;  %971 = vmatpush1.bf16.msra.mxu1 %v1498_v38  ;;  %v130_v37 = vld [vmem:[%s2098_s1 + $0x228] sm:$0xff] }
  0x33   :  { %929 = vmatprep.subr.bf16.mxu0 %v1513_v39  ;;  %972 = vmatprep.subr.bf16.mxu1 %v1515_v40  ;;  %v138_v38 = vld [vmem:[%s2098_s1 + $0x268] sm:$0xff]  ;;  %v1500_v39 = vcombine.low %v113_v27, %v121_v28  ;;  %v1502_v40 = vcombine.low %v114_v29, %v122_v30  ;;  %v1489_v27 = vcombine.high %v99_v21, %v107_v22  ;;  %v115_v29 = vld [vmem:[%s2098_s1 + $0x1b0] sm:$0xff] }
  0x34   :  { %v1519_v42 = vcombine.high %v130_v37, %v138_v38  ;;  %v123_v30 = vld [vmem:[%s2098_s1 + $0x1f0] sm:$0xff] }
  0x36   :  { %930 = vmatpush1.bf16.msra.mxu0 %v1512_v45  ;;  %973 = vmatpush1.bf16.msra.mxu1 %v1514_v46  ;;  %v146_v45 = vld [vmem:[%s2098_s1 + $0x2a8] sm:$0xff] }
  0x37   :  { %931 = vmatprep.subr.bf16.mxu0 %v1529_v47  ;;  %974 = vmatprep.subr.bf16.mxu1 %v1531_v48  ;;  %v154_v46 = vld [vmem:[%s2098_s1 + $0x2e8] sm:$0xff]  ;;  %v1516_v47 = vcombine.low %v129_v35, %v137_v36  ;;  %v1518_v48 = vcombine.low %v130_v37, %v138_v38  ;;  %v1505_v35 = vcombine.high %v115_v29, %v123_v30  ;;  %v131_v37 = vld [vmem:[%s2098_s1 + $0x230] sm:$0xff] }
  0x38   :  { %v1535_v50 = vcombine.high %v146_v45, %v154_v46  ;;  %v139_v38 = vld [vmem:[%s2098_s1 + $0x270] sm:$0xff] }
  0x3a   :  { %932 = vmatpush1.bf16.msra.mxu0 %v1528_v53  ;;  %975 = vmatpush1.bf16.msra.mxu1 %v1530_v54  ;;  %v162_v53 = vld [vmem:[%s2098_s1 + $0x328] sm:$0xff] }
  0x3b   :  { %933 = vmatprep.subr.bf16.mxu0 %v1545_v55  ;;  %976 = vmatprep.subr.bf16.mxu1 %v1547_v56  ;;  %v170_v54 = vld [vmem:[%s2098_s1 + $0x368] sm:$0xff]  ;;  %v1532_v55 = vcombine.low %v145_v43, %v153_v44  ;;  %v1534_v56 = vcombine.low %v146_v45, %v154_v46  ;;  %v147_v44 = vld [vmem:[%s2098_s1 + $0x2b0] sm:$0xff]  ;;  %v148_v46 = vld [vmem:[%s2098_s1 + $0x2b8] sm:$0xff] }
  0x3c   :  { %v1551_v58 = vcombine.high %v162_v53, %v170_v54  ;;  %v155_v45 = vld [vmem:[%s2098_s1 + $0x2f0] sm:$0xff] }
  0x3e   :  { %934 = vmatpush1.bf16.msra.mxu0 %v1544_v61  ;;  %977 = vmatpush1.bf16.msra.mxu1 %v1546_v62  ;;  %v178_v61 = vld [vmem:[%s2098_s1 + $0x3a8] sm:$0xff] }
  0x3f   :  { %935 = vmatprep.subr.bf16.mxu0 %v1561_v63  ;;  %978 = vmatprep.subr.bf16.mxu1 %v1563_v0  ;;  %v186_v62 = vld [vmem:[%s2098_s1 + $0x3e8] sm:$0xff]  ;;  %v1548_v63 = vcombine.low %v161_v51, %v169_v52  ;;  %v1550_v0 = vcombine.low %v162_v53, %v170_v54  ;;  %v163_v52 = vld [vmem:[%s2098_s1 + $0x330] sm:$0xff]  ;;  %v164_v54 = vld [vmem:[%s2098_s1 + $0x338] sm:$0xff] }
  0x40   :  { %v1567_v2 = vcombine.high %v178_v61, %v186_v62  ;;  %v171_v53 = vld [vmem:[%s2098_s1 + $0x370] sm:$0xff] }
  0x42   :  { %936 = vmatpush1.bf16.msra.mxu0 %v1560_v6  ;;  %979 = vmatpush1.bf16.msra.mxu1 %v1562_v7  ;;  %v68_v6 = vld [vmem:[%s2098_s1 + $0x38] sm:$0xff] }
  0x43   :  { %1007 = vmatprep.subr.bf16.mxu0 %v1453_v8  ;;  %1050 = vmatprep.subr.bf16.mxu1 %v1455_v9  ;;  %v76_v7 = vld [vmem:[%s2098_s1 + $0x78] sm:$0xff]  ;;  %v1564_v8 = vcombine.low %v177_v59, %v185_v60  ;;  %v1566_v9 = vcombine.low %v178_v61, %v186_v62  ;;  %v179_v60 = vld [vmem:[%s2098_s1 + $0x3b0] sm:$0xff] }
  0x44   :  { %v1459_v12 = vcombine.high %v68_v6, %v76_v7  ;;  %v187_v61 = vld [vmem:[%s2098_s1 + $0x3f0] sm:$0xff]  ;;  %v180_v62 = vld [vmem:[%s2098_s1 + $0x3b8] sm:$0xff] }
  0x45   :  { %954 = vmatmul.mubr.bf16.vlgmr.msra.gmra.mrb[4].mxu0 %v1752_v10  ;;  %997 = vmatmul.mubr.bf16.vlgmr.msra.gmra.mrb[4].mxu1 %v1752_v10 }
  0x46   :  { %1008 = vmatpush1.bf16.msra.mxu0 %v1452_v15  ;;  %1051 = vmatpush1.bf16.msra.mxu1 %v1454_v16  ;;  %v84_v15 = vld [vmem:[%s2098_s1 + $0xb8] sm:$0xff] }
  0x47   :  { %1009 = vmatprep.subr.bf16.mxu0 %v1469_v17  ;;  %1052 = vmatprep.subr.bf16.mxu1 %v1471_v18  ;;  %v92_v16 = vld [vmem:[%s2098_s1 + $0xf8] sm:$0xff]  ;;  %v1456_v17 = vcombine.low %v67_v4, %v75_v5  ;;  %v1458_v18 = vcombine.low %v68_v6, %v76_v7  ;;  %v1568_v5 = vcombine.low %v179_v60, %v187_v61 }
  0x48   :  { %1039 = vmatprep.mubr.bf16.mxu0 %v1607_v3  ;;  %1082 = vmatprep.mubr.bf16.mxu1 %v1607_v3  ;;  %v1475_v20 = vcombine.high %v84_v15, %v92_v16 }
  0x4a   :  { %1010 = vmatpush1.bf16.msra.mxu0 %v1468_v23  ;;  %1053 = vmatpush1.bf16.msra.mxu1 %v1470_v24  ;;  %v100_v23 = vld [vmem:[%s2098_s1 + $0x138] sm:$0xff] }
  0x4b   :  { %1011 = vmatprep.subr.bf16.mxu0 %v1485_v25  ;;  %1054 = vmatprep.subr.bf16.mxu1 %v1487_v26  ;;  %v108_v24 = vld [vmem:[%s2098_s1 + $0x178] sm:$0xff]  ;;  %v1472_v25 = vcombine.low %v83_v13, %v91_v14  ;;  %v1474_v26 = vcombine.low %v84_v15, %v92_v16 }
  0x4c   :  { %v1491_v28 = vcombine.high %v100_v23, %v108_v24 }
  0x4e   :  { %1012 = vmatpush1.bf16.msra.mxu0 %v1484_v31  ;;  %1055 = vmatpush1.bf16.msra.mxu1 %v1486_v32  ;;  %v116_v31 = vld [vmem:[%s2098_s1 + $0x1b8] sm:$0xff] }
  0x4f   :  { %1013 = vmatprep.subr.bf16.mxu0 %v1501_v33  ;;  %1056 = vmatprep.subr.bf16.mxu1 %v1503_v34  ;;  %v124_v32 = vld [vmem:[%s2098_s1 + $0x1f8] sm:$0xff]  ;;  %v1488_v33 = vcombine.low %v99_v21, %v107_v22  ;;  %v1490_v34 = vcombine.low %v100_v23, %v108_v24 }
  0x50   :  { %v1507_v36 = vcombine.high %v116_v31, %v124_v32 }
  0x52   :  { %1014 = vmatpush1.bf16.msra.mxu0 %v1500_v39  ;;  %1057 = vmatpush1.bf16.msra.mxu1 %v1502_v40  ;;  %v140_v39 = vld [vmem:[%s2098_s1 + $0x278] sm:$0xff]  ;;  %v1504_v40 = vcombine.low %v115_v29, %v123_v30 }
  0x53   :  { %1015 = vmatprep.subr.bf16.mxu0 %v1517_v41  ;;  %1058 = vmatprep.subr.bf16.mxu1 %v1519_v42  ;;  %v1506_v41 = vcombine.low %v116_v31, %v124_v32  ;;  %v1521_v42 = vcombine.high %v131_v37, %v139_v38 }
  0x56   :  { %1016 = vmatpush1.bf16.msra.mxu0 %v1516_v47  ;;  %1059 = vmatpush1.bf16.msra.mxu1 %v1518_v48  ;;  %v156_v47 = vld [vmem:[%s2098_s1 + $0x2f8] sm:$0xff]  ;;  %v1520_v48 = vcombine.low %v131_v37, %v139_v38 }
  0x57   :  { %1017 = vmatprep.subr.bf16.mxu0 %v1533_v49  ;;  %1060 = vmatprep.subr.bf16.mxu1 %v1535_v50  ;;  %v1537_v50 = vcombine.high %v147_v44, %v155_v45  ;;  %v1539_v51 = vcombine.high %v148_v46, %v156_v47 }
  0x5a   :  { %1018 = vmatpush1.bf16.msra.mxu0 %v1532_v55  ;;  %1061 = vmatpush1.bf16.msra.mxu1 %v1534_v56  ;;  %v172_v55 = vld [vmem:[%s2098_s1 + $0x378] sm:$0xff]  ;;  %v1536_v56 = vcombine.low %v147_v44, %v155_v45 }
  0x5b   :  { %1019 = vmatprep.subr.bf16.mxu0 %v1549_v57  ;;  %1062 = vmatprep.subr.bf16.mxu1 %v1551_v58  ;;  %v1538_v57 = vcombine.low %v148_v46, %v156_v47  ;;  %v1553_v58 = vcombine.high %v163_v52, %v171_v53  ;;  %v1555_v59 = vcombine.high %v164_v54, %v172_v55 }
  0x5e   :  { %1020 = vmatpush1.bf16.msra.mxu0 %v1548_v63  ;;  %1063 = vmatpush1.bf16.msra.mxu1 %v1550_v0  ;;  %v188_v63 = vld [vmem:[%s2098_s1 + $0x3f8] sm:$0xff]  ;;  %v1552_v0 = vcombine.low %v163_v52, %v171_v53 }
  0x5f   :  { %1021 = vmatprep.subr.bf16.mxu0 %v1565_v1  ;;  %1064 = vmatprep.subr.bf16.mxu1 %v1567_v2  ;;  %v1554_v1 = vcombine.low %v164_v54, %v172_v55  ;;  %v1569_v2 = vcombine.high %v179_v60, %v187_v61  ;;  %v1571_v4 = vcombine.high %v180_v62, %v188_v63 }
  0x60   :  { %v1570_v6 = vcombine.low %v180_v62, %v188_v63 }
  0x62   :  { %1022 = vmatpush1.bf16.msra.mxu0 %v1564_v8  ;;  %1065 = vmatpush1.bf16.msra.mxu1 %v1566_v9 }
  0x63   :  { %1093 = vmatprep.subr.bf16.mxu0 %v1457_v11  ;;  %1136 = vmatprep.subr.bf16.mxu1 %v1459_v12 }
  0x65   :  { %1040 = vmatmul.mubr.bf16.vlgmr.msra.gmra.mrb[8].mxu0 %v1752_v10  ;;  %1083 = vmatmul.mubr.bf16.vlgmr.msra.gmra.mrb[8].mxu1 %v1752_v10 }
  0x66   :  { %1094 = vmatpush1.bf16.msra.mxu0 %v1456_v17  ;;  %1137 = vmatpush1.bf16.msra.mxu1 %v1458_v18 }
  0x67   :  { %1095 = vmatprep.subr.bf16.mxu0 %v1473_v19  ;;  %1138 = vmatprep.subr.bf16.mxu1 %v1475_v20 }
  0x68   :  { %1125 = vmatprep.mubr.bf16.mxu0 %v1607_v3  ;;  %1168 = vmatprep.mubr.bf16.mxu1 %v1607_v3  ;;  %v132_v3 = vld [vmem:[%s2098_s1 + $0x238] sm:$0xff] }
  0x69   :  { %v1523_v43 = vcombine.high %v132_v3, %v140_v39  ;;  %v1522_v49 = vcombine.low %v132_v3, %v140_v39 }
  0x6a   :  { %1096 = vmatpush1.bf16.msra.mxu0 %v1472_v25  ;;  %1139 = vmatpush1.bf16.msra.mxu1 %v1474_v26 }
  0x6b   :  { %1097 = vmatprep.subr.bf16.mxu0 %v1489_v27  ;;  %1140 = vmatprep.subr.bf16.mxu1 %v1491_v28 }
  0x6e   :  { %1098 = vmatpush1.bf16.msra.mxu0 %v1488_v33  ;;  %1141 = vmatpush1.bf16.msra.mxu1 %v1490_v34 }
  0x6f   :  { %1099 = vmatprep.subr.bf16.mxu0 %v1505_v35  ;;  %1142 = vmatprep.subr.bf16.mxu1 %v1507_v36 }
  0x72   :  { %1100 = vmatpush1.bf16.msra.mxu0 %v1504_v40  ;;  %1143 = vmatpush1.bf16.msra.mxu1 %v1506_v41 }
  0x73   :  { %1101 = vmatprep.subr.bf16.mxu0 %v1521_v42  ;;  %1144 = vmatprep.subr.bf16.mxu1 %v1523_v43 }
  0x76   :  { %1102 = vmatpush1.bf16.msra.mxu0 %v1520_v48  ;;  %1145 = vmatpush1.bf16.msra.mxu1 %v1522_v49 }
  0x77   :  { %1103 = vmatprep.subr.bf16.mxu0 %v1537_v50  ;;  %1146 = vmatprep.subr.bf16.mxu1 %v1539_v51 }
  0x7a   :  { %1104 = vmatpush1.bf16.msra.mxu0 %v1536_v56  ;;  %1147 = vmatpush1.bf16.msra.mxu1 %v1538_v57 }
  0x7b   :  { %1105 = vmatprep.subr.bf16.mxu0 %v1553_v58  ;;  %1148 = vmatprep.subr.bf16.mxu1 %v1555_v59 }
  0x7e   :  { %1106 = vmatpush1.bf16.msra.mxu0 %v1552_v0  ;;  %1149 = vmatpush1.bf16.msra.mxu1 %v1554_v1 }
  0x7f   :  { %1107 = vmatprep.subr.bf16.mxu0 %v1569_v2  ;;  %1150 = vmatprep.subr.bf16.mxu1 %v1571_v4 }
  0x82   :  { %1108 = vmatpush1.bf16.msra.mxu0 %v1568_v5  ;;  %1151 = vmatpush1.bf16.msra.mxu1 %v1570_v6 }
  0x85   :  { %1126 = vmatmul.mubr.bf16.vlgmr.msra.gmra.mrb[12].mxu0 %v1752_v10  ;;  %1169 = vmatmul.mubr.bf16.vlgmr.msra.gmra.mrb[12].mxu1 %v1752_v10 }
  0xf8   :  { %v869_v7 = vpop.f32.mrb[0].mxu0  ;;  %v912_v11 = vpop.f32.mrb[0].mxu1 }
  0xf9   :  { %v1333_v8 = vmul.f32 %v869_v7, %v869_v7  ;;  %v871_v9 = vpop.f32.mrb[1].mxu0  ;;  %v1335_v16 = vmul.f32 %v912_v11, %v912_v11  ;;  %v914_v17 = vpop.f32.mrb[1].mxu1 }
  0xfa   :  { %v1588_v12 = vpack.c.bf16 %v871_v9, %v869_v7  ;;  %v1293_v13 = vadd.f32 %v871_v9, %v869_v7  ;;  %v1334_v14 = vmul.f32 %v871_v9, %v871_v9  ;;  %v873_v15 = vpop.f32.mrb[2].mxu0  ;;  %v1589_v20 = vpack.c.bf16 %v914_v17, %v912_v11  ;;  %v916_v22 = vpop.f32.mrb[2].mxu1 }
  0xfb   :  { %v1349_v18 = vmul.f32 %v873_v15, %v873_v15  ;;  %v875_v19 = vpop.f32.mrb[3].mxu0  ;;  %v1336_v21 = vmul.f32 %v914_v17, %v914_v17  ;;  %v918_v26 = vpop.f32.mrb[3].mxu1  ;;  %v1351_v28 = vmul.f32 %v916_v22, %v916_v22 }
  0xfc   :  { %1275 = vst [vmem:[%s2100_s2] sm:$0xff] %v1588_v12  ;;  %v1365_v10 = vadd.f32 %v1334_v14, %v1333_v8  ;;  %v1294_v23 = vadd.f32 %v1293_v13, %v912_v11  ;;  %v1596_v24 = vpack.c.bf16 %v875_v19, %v873_v15  ;;  %v1310_v25 = vadd.f32 %v875_v19, %v873_v15 }
  0xfd   :  { %v1350_v27 = vmul.f32 %v875_v19, %v875_v19  ;;  %1276 = vst [vmem:[%s2100_s2 + $0x8] sm:$0xff] %v1589_v20  ;;  %v1597_v29 = vpack.c.bf16 %v918_v26, %v916_v22  ;;  %v1352_v37 = vmul.f32 %v918_v26, %v918_v26 }
  0xfe   :  { %v1366_v30 = vadd.f32 %v1365_v10, %v1335_v16  ;;  %1283 = vst [vmem:[%s2100_s2 + $0x40] sm:$0xff] %v1596_v24  ;;  %v1295_v31 = vadd.f32 %v1294_v23, %v914_v17  ;;  %v1311_v32 = vadd.f32 %v1310_v25, %v916_v22 }
  0xff   :  { %v1382_v33 = vadd.f32 %v1350_v27, %v1349_v18  ;;  %1284 = vst [vmem:[%s2100_s2 + $0x48] sm:$0xff] %v1597_v29 }
 0x100   :  { %v1367_v34 = vadd.f32 %v1366_v30, %v1336_v21  ;;  %v1312_v35 = vadd.f32 %v1311_v32, %v918_v26 }
 0x101   :  { %v1383_v36 = vadd.f32 %v1382_v33, %v1351_v28 }
 0x103   :  { %v1384_v38 = vadd.f32 %v1383_v36, %v1352_v37 }
 0x118   :  { %v955_v3 = vpop.f32.mrb[4].mxu0  ;;  %v998_v42 = vpop.f32.mrb[4].mxu1 }
 0x119   :  { %v1296_v39 = vadd.f32 %v1295_v31, %v955_v3  ;;  %v1337_v40 = vmul.f32 %v955_v3, %v955_v3  ;;  %v957_v41 = vpop.f32.mrb[5].mxu0  ;;  %v1339_v46 = vmul.f32 %v998_v42, %v998_v42  ;;  %v1000_v47 = vpop.f32.mrb[5].mxu1 }
 0x11a   :  { %v1590_v43 = vpack.c.bf16 %v957_v41, %v955_v3  ;;  %v1338_v44 = vmul.f32 %v957_v41, %v957_v41  ;;  %v959_v45 = vpop.f32.mrb[6].mxu0  ;;  %v1002_v53 = vpop.f32.mrb[6].mxu1  ;;  %v1591_v56 = vpack.c.bf16 %v1000_v47, %v998_v42  ;;  %v1340_v57 = vmul.f32 %v1000_v47, %v1000_v47 }
 0x11b   :  { %v1368_v48 = vadd.f32 %v1367_v34, %v1337_v40  ;;  %v1297_v49 = vadd.f32 %v1296_v39, %v957_v41  ;;  %v1313_v50 = vadd.f32 %v1312_v35, %v959_v45  ;;  %v1353_v51 = vmul.f32 %v959_v45, %v959_v45  ;;  %v961_v52 = vpop.f32.mrb[7].mxu0  ;;  %v1004_v58 = vpop.f32.mrb[7].mxu1 }
 0x11c   :  { %1277 = vst [vmem:[%s2100_s2 + $0x10] sm:$0xff] %v1590_v43  ;;  %v1598_v54 = vpack.c.bf16 %v961_v52, %v959_v45  ;;  %v1354_v55 = vmul.f32 %v961_v52, %v961_v52  ;;  %1278 = vst [vmem:[%s2100_s2 + $0x18] sm:$0xff] %v1591_v56  ;;  %v1355_v63 = vmul.f32 %v1002_v53, %v1002_v53 }
 0x11d   :  { %v1369_v59 = vadd.f32 %v1368_v48, %v1338_v44  ;;  %v1385_v60 = vadd.f32 %v1384_v38, %v1353_v51  ;;  %v1298_v61 = vadd.f32 %v1297_v49, %v998_v42  ;;  %v1314_v62 = vadd.f32 %v1313_v50, %v961_v52 }
 0x11e   :  { %1285 = vst [vmem:[%s2100_s2 + $0x50] sm:$0xff] %v1598_v54  ;;  %v1599_v0 = vpack.c.bf16 %v1004_v58, %v1002_v53  ;;  %v1356_v9 = vmul.f32 %v1004_v58, %v1004_v58 }
 0x11f   :  { %v1370_v1 = vadd.f32 %v1369_v59, %v1339_v46  ;;  %v1386_v2 = vadd.f32 %v1385_v60, %v1354_v55  ;;  %v1299_v4 = vadd.f32 %v1298_v61, %v1000_v47  ;;  %v1315_v5 = vadd.f32 %v1314_v62, %v1002_v53 }
 0x120   :  { %1286 = vst [vmem:[%s2100_s2 + $0x58] sm:$0xff] %v1599_v0 }
 0x121   :  { %v1371_v6 = vadd.f32 %v1370_v1, %v1340_v57  ;;  %v1387_v7 = vadd.f32 %v1386_v2, %v1355_v63  ;;  %v1316_v8 = vadd.f32 %v1315_v5, %v1004_v58 }
 0x123   :  { %v1388_v11 = vadd.f32 %v1387_v7, %v1356_v9 }
 0x138   :  { %v1041_v12 = vpop.f32.mrb[8].mxu0  ;;  %v1084_v16 = vpop.f32.mrb[8].mxu1 }
 0x139   :  { %v1300_v13 = vadd.f32 %v1299_v4, %v1041_v12  ;;  %v1341_v14 = vmul.f32 %v1041_v12, %v1041_v12  ;;  %v1043_v15 = vpop.f32.mrb[9].mxu0  ;;  %v1343_v20 = vmul.f32 %v1084_v16, %v1084_v16  ;;  %v1086_v21 = vpop.f32.mrb[9].mxu1 }
 0x13a   :  { %v1592_v17 = vpack.c.bf16 %v1043_v15, %v1041_v12  ;;  %v1342_v18 = vmul.f32 %v1043_v15, %v1043_v15  ;;  %v1045_v19 = vpop.f32.mrb[10].mxu0  ;;  %v1088_v26 = vpop.f32.mrb[10].mxu1  ;;  %v1593_v29 = vpack.c.bf16 %v1086_v21, %v1084_v16  ;;  %v1344_v30 = vmul.f32 %v1086_v21, %v1086_v21 }
 0x13b   :  { %v1372_v22 = vadd.f32 %v1371_v6, %v1341_v14  ;;  %v1301_v10 = vadd.f32 %v1300_v13, %v1043_v15  ;;  %v1317_v23 = vadd.f32 %v1316_v8, %v1045_v19  ;;  %v1357_v24 = vmul.f32 %v1045_v19, %v1045_v19  ;;  %v1047_v25 = vpop.f32.mrb[11].mxu0  ;;  %v1090_v31 = vpop.f32.mrb[11].mxu1 }
 0x13c   :  { %1279 = vst [vmem:[%s2100_s2 + $0x20] sm:$0xff] %v1592_v17  ;;  %v1600_v27 = vpack.c.bf16 %v1047_v25, %v1045_v19  ;;  %v1358_v28 = vmul.f32 %v1047_v25, %v1047_v25  ;;  %1280 = vst [vmem:[%s2100_s2 + $0x28] sm:$0xff] %v1593_v29  ;;  %v1359_v36 = vmul.f32 %v1088_v26, %v1088_v26 }
 0x13d   :  { %v1373_v32 = vadd.f32 %v1372_v22, %v1342_v18  ;;  %v1389_v33 = vadd.f32 %v1388_v11, %v1357_v24  ;;  %v1302_v34 = vadd.f32 %v1301_v10, %v1084_v16  ;;  %v1318_v35 = vadd.f32 %v1317_v23, %v1047_v25 }
 0x13e   :  { %1287 = vst [vmem:[%s2100_s2 + $0x60] sm:$0xff] %v1600_v27  ;;  %v1601_v37 = vpack.c.bf16 %v1090_v31, %v1088_v26  ;;  %v1360_v44 = vmul.f32 %v1090_v31, %v1090_v31 }
 0x13f   :  { %v1374_v38 = vadd.f32 %v1373_v32, %v1343_v20  ;;  %v1390_v3 = vadd.f32 %v1389_v33, %v1358_v28  ;;  %v1303_v39 = vadd.f32 %v1302_v34, %v1086_v21  ;;  %v1319_v40 = vadd.f32 %v1318_v35, %v1088_v26 }
 0x140   :  { %1288 = vst [vmem:[%s2100_s2 + $0x68] sm:$0xff] %v1601_v37 }
 0x141   :  { %v1375_v41 = vadd.f32 %v1374_v38, %v1344_v30  ;;  %v1391_v42 = vadd.f32 %v1390_v3, %v1359_v36  ;;  %v1320_v43 = vadd.f32 %v1319_v40, %v1090_v31 }
 0x143   :  { %v1392_v45 = vadd.f32 %v1391_v42, %v1360_v44 }
 0x158   :  { %v1127_v46 = vpop.f32.mrb[12].mxu0  ;;  %v1170_v50 = vpop.f32.mrb[12].mxu1 }
 0x159   :  { %v1304_v47 = vadd.f32 %v1303_v39, %v1127_v46  ;;  %v1345_v48 = vmul.f32 %v1127_v46, %v1127_v46  ;;  %v1129_v49 = vpop.f32.mrb[13].mxu0  ;;  %v1172_v54 = vpop.f32.mrb[13].mxu1  ;;  %v1347_v61 = vmul.f32 %v1170_v50, %v1170_v50 }
 0x15a   :  { %v1594_v51 = vpack.c.bf16 %v1129_v49, %v1127_v46  ;;  %v1346_v52 = vmul.f32 %v1129_v49, %v1129_v49  ;;  %v1131_v53 = vpop.f32.mrb[14].mxu0  ;;  %v1174_v60 = vpop.f32.mrb[14].mxu1  ;;  %v1595_v62 = vpack.c.bf16 %v1172_v54, %v1170_v50  ;;  %v1348_v13 = vmul.f32 %v1172_v54, %v1172_v54 }
 0x15b   :  { %v1376_v55 = vadd.f32 %v1375_v41, %v1345_v48  ;;  %v1305_v56 = vadd.f32 %v1304_v47, %v1129_v49  ;;  %v1321_v57 = vadd.f32 %v1320_v43, %v1131_v53  ;;  %v1361_v58 = vmul.f32 %v1131_v53, %v1131_v53  ;;  %v1133_v59 = vpop.f32.mrb[15].mxu0  ;;  %v1176_v1 = vpop.f32.mrb[15].mxu1 }
 0x15c   :  { %1281 = vst [vmem:[%s2100_s2 + $0x30] sm:$0xff] %v1594_v51  ;;  %v1602_v63 = vpack.c.bf16 %v1133_v59, %v1131_v53  ;;  %v1362_v0 = vmul.f32 %v1133_v59, %v1133_v59  ;;  %v1603_v5 = vpack.c.bf16 %v1176_v1, %v1174_v60  ;;  %1282 = vst [vmem:[%s2100_s2 + $0x38] sm:$0xff] %v1595_v62 }
 0x15d   :  { %v1393_v2 = vadd.f32 %v1392_v45, %v1361_v58  ;;  %v1322_v4 = vadd.f32 %v1321_v57, %v1133_v59  ;;  %v1306_v6 = vadd.f32 %v1305_v56, %v1170_v50  ;;  %v1377_v7 = vadd.f32 %v1376_v55, %v1346_v52 }
 0x15e   :  { %1289 = vst [vmem:[%s2100_s2 + $0x70] sm:$0xff] %v1602_v63  ;;  %v1363_v9 = vmul.f32 %v1174_v60, %v1174_v60  ;;  %1290 = vst [vmem:[%s2100_s2 + $0x78] sm:$0xff] %v1603_v5  ;;  %v1364_v15 = vmul.f32 %v1176_v1, %v1176_v1 }
 0x15f   :  { %v1394_v8 = vadd.f32 %v1393_v2, %v1362_v0  ;;  %v1323_v11 = vadd.f32 %v1322_v4, %v1174_v60  ;;  %v1307_v12 = vadd.f32 %v1306_v6, %v1172_v54  ;;  %v1378_v14 = vadd.f32 %v1377_v7, %v1347_v61 }
 0x161   :  { %v1324_v16 = vadd.f32 %v1323_v11, %v1176_v1  ;;  %v1395_v17 = vadd.f32 %v1394_v8, %v1363_v9  ;;  %1308 = vadd.xlane.f32.xlu0 %v1307_v12  ;;  %v1379_v18 = vadd.f32 %v1378_v14, %v1348_v13 }
 0x163   :  { %v1396_v19 = vadd.f32 %v1395_v17, %v1364_v15  ;;  %1380 = vadd.xlane.f32.xlu1 %v1379_v18 }
 0x165   :  { %1325 = vadd.xlane.f32.xlu0 %v1324_v16 }
 0x167   :  { %1397 = vadd.xlane.f32.xlu1 %v1396_v19 }
 0x1ee   :  { %v1309_v20 = vpop.xlane.xlu0 %1308 }
 0x1ef   :  { %1329 = vst [vmem:[%s2101_s3] sm:$0xff] %v1309_v20 }
 0x1f0   :  { %v1381_v21 = vpop.xlane.xlu1 %1380 }
 0x1f1   :  { %1401 = vst [vmem:[%s2102_s4] sm:$0xff] %v1381_v21 }
 0x1f2   :  { %v1326_v22 = vpop.xlane.xlu0 %1325 }
 0x1f3   :  { %1330 = vst [vmem:[%s2101_s3 + $0x8] sm:$0xff] %v1326_v22 }
 0x1f4   :  { %v1398_v10 = vpop.xlane.xlu1 %1397 }
 0x1f5   :  { %1402 = vst [vmem:[%s2102_s4 + $0x8] sm:$0xff] %v1398_v10 }

// kernel: discriminator_forward.10
= control target key start
LH: loop header
LB: loop body
LE: loop exit
PB: predicated region body
PF: predicated region fallthrough
CT: control target
= control target key end

     0   :  { %v439_v4 = vmov 0   ;;  %s694_s1 = inlined_call_operand.vmem [shape: f32[16,128], index: 1, kind: input, shape index: {}]   ;;  %s695_s2 = inlined_call_operand.vmem [shape: f32[16,128], index: 2, kind: input, shape index: {}]   ;;  %s696_s3 = inlined_call_operand.vmem [shape: f32[16,1], index: 3, kind: input, shape index: {}]   ;;  %s697_s4 = inlined_call_operand.vmem [shape: f32[16,1], index: 4, kind: input, shape index: {}]   ;;  %s698_s0 = inlined_call_operand.vmem [shape: bf16[16,2048], index: 0, kind: input, shape index: {}]   ;;  %s699_s5 = inlined_call_operand.vmem [shape: bf16[16,2048], index: 5, kind: output, shape index: {}]  }
   0x1   :  { %v20_v0 = vld [vmem:[%s694_s1] sm:$0xff]  ;;  %v21_v2 = vld [vmem:[%s694_s1 + $0x8] sm:$0xff]  ;;  %433 = vset.pattern.permute.xlu0 %v439_v4  ;;  %434 = vset.pattern.permute.xlu1 %v439_v4  ;;  %v58_v35 = vld [vmem:[%s698_s0 + $0x10] sm:$0xff] }
   0x2   :  { %v28_v1 = vld [vmem:[%s695_s2] sm:$0xff]  ;;  %22 = vadd.xlane.f32.xlu0 %v20_v0  ;;  %v29_v3 = vld [vmem:[%s695_s2 + $0x8] sm:$0xff]  ;;  %v59_v36 = vld [vmem:[%s698_s0 + $0x18] sm:$0xff]  ;;  %v76_v45 = vunpack.c.l.bf16 %v58_v35  ;;  %v77_v46 = vunpack.c.h.bf16 %v58_v35 }
   0x3   :  { %30 = vadd.xlane.f32.xlu1 %v28_v1  ;;  %v46_v21 = vld [vmem:[%s696_s3] sm:$0xff]  ;;  %v47_v24 = vld [vmem:[%s696_s3 + $0x8] sm:$0xff]  ;;  %v62_v39 = vld [vmem:[%s698_s0 + $0x30] sm:$0xff]  ;;  %v78_v47 = vunpack.c.l.bf16 %v59_v36  ;;  %v79_v48 = vunpack.c.h.bf16 %v59_v36 }
   0x4   :  { %v50_v28 = vld [vmem:[%s697_s4] sm:$0xff]  ;;  %v51_v31 = vld [vmem:[%s697_s4 + $0x8] sm:$0xff]  ;;  %v63_v40 = vld [vmem:[%s698_s0 + $0x38] sm:$0xff]  ;;  %v84_v57 = vunpack.c.l.bf16 %v62_v39  ;;  %v85_v58 = vunpack.c.h.bf16 %v62_v39 }
   0x5   :  { %v56_v33 = vld [vmem:[%s698_s0] sm:$0xff]  ;;  %v57_v34 = vld [vmem:[%s698_s0 + $0x8] sm:$0xff]  ;;  %v66_v55 = vld [vmem:[%s698_s0 + $0x50] sm:$0xff]  ;;  %v86_v59 = vunpack.c.l.bf16 %v63_v40  ;;  %v87_v60 = vunpack.c.h.bf16 %v63_v40 }
   0x6   :  { %24 = vadd.xlane.f32.xlu0 %v21_v2  ;;  %v60_v37 = vld [vmem:[%s698_s0 + $0x20] sm:$0xff]  ;;  %v61_v38 = vld [vmem:[%s698_s0 + $0x28] sm:$0xff]  ;;  %v72_v41 = vunpack.c.l.bf16 %v56_v33  ;;  %v73_v42 = vunpack.c.h.bf16 %v56_v33  ;;  %v74_v43 = vunpack.c.l.bf16 %v57_v34  ;;  %v75_v44 = vunpack.c.h.bf16 %v57_v34  ;;  %v67_v56 = vld [vmem:[%s698_s0 + $0x58] sm:$0xff] }
   0x7   :  { %32 = vadd.xlane.f32.xlu1 %v29_v3  ;;  %v64_v49 = vld [vmem:[%s698_s0 + $0x40] sm:$0xff]  ;;  %v65_v50 = vld [vmem:[%s698_s0 + $0x48] sm:$0xff]  ;;  %v80_v51 = vunpack.c.l.bf16 %v60_v37  ;;  %v81_v52 = vunpack.c.h.bf16 %v60_v37  ;;  %v82_v53 = vunpack.c.l.bf16 %v61_v38  ;;  %v83_v54 = vunpack.c.h.bf16 %v61_v38  ;;  %v70_v63 = vld [vmem:[%s698_s0 + $0x70] sm:$0xff] }
   0x8   :  { %v68_v61 = vld [vmem:[%s698_s0 + $0x60] sm:$0xff]  ;;  %v69_v62 = vld [vmem:[%s698_s0 + $0x68] sm:$0xff]  ;;  %v71_v0 = vld [vmem:[%s698_s0 + $0x78] sm:$0xff]  ;;  %v88_v1 = vunpack.c.l.bf16 %v64_v49  ;;  %v89_v2 = vunpack.c.h.bf16 %v64_v49  ;;  %v90_v3 = vunpack.c.l.bf16 %v65_v50  ;;  %v91_v4 = vunpack.c.h.bf16 %v65_v50 }
  0x8f   :  { %v23_v5 = vpop.xlane.xlu0 %22 }
  0x90   :  { %v31_v6 = vpop.xlane.xlu1 %30  ;;  %v26_v7 = vmul.f32 3.8146973e-06, %v23_v5  ;;  %v92_v5 = vunpack.c.l.bf16 %v66_v55 }
  0x91   :  { %v34_v8 = vmul.f32 3.8146973e-06, %v31_v6  ;;  %v93_v6 = vunpack.c.h.bf16 %v66_v55 }
  0x92   :  { %v36_v9 = vmul.f32 %v26_v7, %v26_v7 }
  0x93   :  { %v25_v10 = vpop.xlane.xlu0 %24 }
  0x94   :  { %v33_v11 = vpop.xlane.xlu1 %32  ;;  %v38_v12 = vsub.f32 %v34_v8, %v36_v9  ;;  %v27_v13 = vmul.f32 3.8146973e-06, %v25_v10  ;;  %v95_v8 = vunpack.c.h.bf16 %v67_v56  ;;  %v96_v9 = vunpack.c.l.bf16 %v68_v61 }
  0x95   :  { %v35_v14 = vmul.f32 3.8146973e-06, %v33_v11  ;;  %v97_v10 = vunpack.c.h.bf16 %v68_v61  ;;  %v98_v11 = vunpack.c.l.bf16 %v69_v62 }
  0x96   :  { %v40_v15 = vmax.f32 %v38_v12, 0.0  ;;  %v37_v16 = vmul.f32 %v27_v13, %v27_v13  ;;  %v99_v12 = vunpack.c.h.bf16 %v69_v62 }
  0x98   :  { %v42_v17 = vadd.f32 1e-05, %v40_v15  ;;  %v39_v18 = vsub.f32 %v35_v14, %v37_v16  ;;  %v100_v14 = vunpack.c.l.bf16 %v70_v63  ;;  %v101_v15 = vunpack.c.h.bf16 %v70_v63 }
  0x99   :  { %v102_v16 = vunpack.c.l.bf16 %v71_v0 }
  0x9a   :  { %435 = vrsqrt.f32 %v42_v17  ;;  %v41_v19 = vmax.f32 %v39_v18, 0.0  ;;  %v103_v17 = vunpack.c.h.bf16 %v71_v0 }
  0x9c   :  { %v43_v20 = vadd.f32 1e-05, %v41_v19 }
  0x9e   :  { %437 = vrsqrt.f32 %v43_v20 }
  0xa4   :  { %v436_v22 = vpop.eup %435 }
  0xa5   :  { %v48_v23 = vmul.f32 %v436_v22, %v46_v21 }
  0xa7   :  { %106 = vperm.xlu0 %433, %v48_v23   ;;  %v52_v27 = vmul.f32 %v48_v23, %v26_v7  ;;  %v94_v7 = vunpack.c.l.bf16 %v67_v56 }
  0xa8   :  { %v438_v25 = vpop.eup %437 }
  0xa9   :  { %v49_v26 = vmul.f32 %v438_v25, %v47_v24  ;;  %v54_v29 = vsub.f32 %v50_v28, %v52_v27 }
  0xab   :  { %111 = vperm.xlu1 %434, %v49_v26   ;;  %v53_v30 = vmul.f32 %v49_v26, %v27_v13 }
  0xad   :  { %v55_v32 = vsub.f32 %v51_v31, %v53_v30 }
  0xaf   :  { %148 = vperm.xlu1 %434, %v54_v29  }
  0xb3   :  { %153 = vperm.xlu1 %434, %v55_v32  }
 0x126   :  { %v107_v13 = vpop.permute.xlu0 %106 }
 0x127   :  { %v114_v18 = vmul.f32 %v107_v13, %v72_v41  ;;  %v115_v19 = vmul.f32 %v107_v13, %v73_v42  ;;  %v116_v20 = vmul.f32 %v107_v13, %v74_v43  ;;  %v117_v21 = vmul.f32 %v107_v13, %v75_v44 }
 0x128   :  { %v118_v22 = vmul.f32 %v107_v13, %v76_v45  ;;  %v119_v23 = vmul.f32 %v107_v13, %v77_v46  ;;  %v120_v24 = vmul.f32 %v107_v13, %v78_v47  ;;  %v121_v25 = vmul.f32 %v107_v13, %v79_v48 }
 0x129   :  { %v122_v26 = vmul.f32 %v107_v13, %v80_v51  ;;  %v123_v27 = vmul.f32 %v107_v13, %v81_v52  ;;  %v124_v28 = vmul.f32 %v107_v13, %v82_v53  ;;  %v125_v29 = vmul.f32 %v107_v13, %v83_v54 }
 0x12a   :  { %v126_v30 = vmul.f32 %v107_v13, %v84_v57  ;;  %v127_v31 = vmul.f32 %v107_v13, %v85_v58  ;;  %v128_v32 = vmul.f32 %v107_v13, %v86_v59  ;;  %v129_v33 = vmul.f32 %v107_v13, %v87_v60  ;;  %v112_v34 = vpop.permute.xlu1 %111 }
 0x12b   :  { %v130_v35 = vmul.f32 %v112_v34, %v88_v1  ;;  %v131_v36 = vmul.f32 %v112_v34, %v89_v2  ;;  %v542_v37 = vmul.f32 %v112_v34, %v90_v3  ;;  %v544_v38 = vmul.f32 %v112_v34, %v91_v4 }
 0x12c   :  { %v546_v39 = vmul.f32 %v112_v34, %v92_v5  ;;  %v548_v40 = vmul.f32 %v112_v34, %v93_v6  ;;  %v550_v41 = vmul.f32 %v112_v34, %v94_v7  ;;  %v552_v42 = vmul.f32 %v112_v34, %v95_v8 }
 0x12d   :  { %v554_v43 = vmul.f32 %v112_v34, %v96_v9  ;;  %v556_v44 = vmul.f32 %v112_v34, %v97_v10  ;;  %v558_v45 = vmul.f32 %v112_v34, %v98_v11  ;;  %v560_v46 = vmul.f32 %v112_v34, %v99_v12 }
 0x12e   :  { %v149_v47 = vpop.permute.xlu1 %148  ;;  %v562_v48 = vmul.f32 %v112_v34, %v100_v14  ;;  %v564_v49 = vmul.f32 %v112_v34, %v101_v15  ;;  %v566_v50 = vmul.f32 %v112_v34, %v102_v16  ;;  %v568_v51 = vmul.f32 %v112_v34, %v103_v17 }
 0x12f   :  { %v156_v52 = vadd.f32 %v149_v47, %v114_v18  ;;  %v157_v53 = vadd.f32 %v149_v47, %v115_v19  ;;  %v158_v54 = vadd.f32 %v149_v47, %v116_v20  ;;  %v159_v55 = vadd.f32 %v149_v47, %v117_v21 }
 0x130   :  { %v160_v56 = vadd.f32 %v149_v47, %v118_v22  ;;  %v161_v57 = vadd.f32 %v149_v47, %v119_v23  ;;  %v162_v58 = vadd.f32 %v149_v47, %v120_v24  ;;  %v163_v59 = vadd.f32 %v149_v47, %v121_v25 }
 0x131   :  { %v164_v60 = vadd.f32 %v149_v47, %v122_v26  ;;  %v165_v61 = vadd.f32 %v149_v47, %v123_v27  ;;  %v166_v62 = vadd.f32 %v149_v47, %v124_v28  ;;  %v167_v63 = vadd.f32 %v149_v47, %v125_v29 }
 0x132   :  { %v168_v0 = vadd.f32 %v149_v47, %v126_v30  ;;  %v169_v1 = vadd.f32 %v149_v47, %v127_v31  ;;  %v170_v2 = vadd.f32 %v149_v47, %v128_v32  ;;  %v171_v3 = vadd.f32 %v149_v47, %v129_v33  ;;  %v570_v4 = vpop.permute.xlu1 %153 }
 0x133   :  { %vm188_vm0 = vcmp.gt.f32.partialorder %v156_v52, 0.0  ;;  %vm189_vm1 = vcmp.gt.f32.partialorder %v157_v53, 0.0  ;;  %vm190_vm2 = vcmp.gt.f32.partialorder %v158_v54, 0.0  ;;  %vm191_vm3 = vcmp.gt.f32.partialorder %v159_v55, 0.0 }
 0x134   :  { %vm192_vm4 = vcmp.gt.f32.partialorder %v160_v56, 0.0  ;;  %vm193_vm5 = vcmp.gt.f32.partialorder %v161_v57, 0.0  ;;  %vm194_vm6 = vcmp.gt.f32.partialorder %v162_v58, 0.0  ;;  %vm195_vm7 = vcmp.gt.f32.partialorder %v163_v59, 0.0 }
 0x135   :  { %vm196_vm8 = vcmp.gt.f32.partialorder %v164_v60, 0.0  ;;  %vm197_vm9 = vcmp.gt.f32.partialorder %v165_v61, 0.0  ;;  %vm198_vm10 = vcmp.gt.f32.partialorder %v166_v62, 0.0  ;;  %vm199_vm11 = vcmp.gt.f32.partialorder %v167_v63, 0.0 }
 0x136   :  { %vm200_vm12 = vcmp.gt.f32.partialorder %v168_v0, 0.0  ;;  %vm201_vm13 = vcmp.gt.f32.partialorder %v169_v1, 0.0  ;;  %vm202_vm14 = vcmp.gt.f32.partialorder %v170_v2, 0.0  ;;  %vm203_vm15 = vcmp.gt.f32.partialorder %v171_v3, 0.0 }
 0x137   :  { %v220_v5 = vmul.f32 0.2, %v156_v52  ;;  %v221_v6 = vmul.f32 0.2, %v157_v53  ;;  %v222_v7 = vmul.f32 0.2, %v158_v54  ;;  %v573_v8 = vadd.f32 %v570_v4, %v130_v35 }
 0x138   :  { %v223_v9 = vmul.f32 0.2, %v159_v55  ;;  %v224_v10 = vmul.f32 0.2, %v160_v56  ;;  %v225_v11 = vmul.f32 0.2, %v161_v57  ;;  %v576_v12 = vadd.f32 %v570_v4, %v131_v36 }
 0x139   :  { %v226_v13 = vmul.f32 0.2, %v162_v58  ;;  %v227_v14 = vmul.f32 0.2, %v163_v59  ;;  %v228_v15 = vmul.f32 0.2, %v164_v60  ;;  %v252_v16 = vsel %vm188_vm0, %v156_v52, %v220_v5 }
 0x13a   :  { %v229_v17 = vmul.f32 0.2, %v165_v61  ;;  %v230_v18 = vmul.f32 0.2, %v166_v62  ;;  %v231_v19 = vmul.f32 0.2, %v167_v63  ;;  %v253_v20 = vsel %vm189_vm1, %v157_v53, %v221_v6 }
 0x13b   :  { %v232_v21 = vmul.f32 0.2, %v168_v0  ;;  %v233_v22 = vmul.f32 0.2, %v169_v1  ;;  %v234_v23 = vmul.f32 0.2, %v170_v2  ;;  %v254_v24 = vsel %vm190_vm2, %v158_v54, %v222_v7 }
 0x13c   :  { %v235_v25 = vmul.f32 0.2, %v171_v3  ;;  %v255_v26 = vsel %vm191_vm3, %v159_v55, %v223_v9  ;;  %v256_v27 = vsel %vm192_vm4, %v160_v56, %v224_v10  ;;  %v257_v28 = vsel %vm193_vm5, %v161_v57, %v225_v11 }
 0x13d   :  { %v258_v29 = vsel %vm194_vm6, %v162_v58, %v226_v13  ;;  %v259_v30 = vsel %vm195_vm7, %v163_v59, %v227_v14  ;;  %v260_v31 = vsel %vm196_vm8, %v164_v60, %v228_v15  ;;  %v261_v32 = vsel %vm197_vm9, %v165_v61, %v229_v17 }
 0x13e   :  { %v262_v33 = vsel %vm198_vm10, %v166_v62, %v230_v18  ;;  %v263_v34 = vsel %vm199_vm11, %v167_v63, %v231_v19  ;;  %v264_v35 = vsel %vm200_vm12, %v168_v0, %v232_v21  ;;  %v265_v36 = vsel %vm201_vm13, %v169_v1, %v233_v22 }
 0x13f   :  { %v266_v47 = vsel %vm202_vm14, %v170_v2, %v234_v23  ;;  %v267_v52 = vsel %vm203_vm15, %v171_v3, %v235_v25  ;;  %v416_v53 = vpack.c.bf16 %v253_v20, %v252_v16  ;;  %v417_v54 = vpack.c.bf16 %v255_v26, %v254_v24 }
 0x140   :  { %v418_v55 = vpack.c.bf16 %v257_v28, %v256_v27  ;;  %v419_v56 = vpack.c.bf16 %v259_v30, %v258_v29  ;;  %v420_v57 = vpack.c.bf16 %v261_v32, %v260_v31  ;;  %v421_v58 = vpack.c.bf16 %v263_v34, %v262_v33 }
 0x141   :  { %v422_v59 = vpack.c.bf16 %v265_v36, %v264_v35  ;;  %v423_v60 = vpack.c.bf16 %v267_v52, %v266_v47  ;;  %380 = vst [vmem:[%s699_s5] sm:$0xff] %v416_v53  ;;  %381 = vst [vmem:[%s699_s5 + $0x8] sm:$0xff] %v417_v54  ;;  %v174_v61 = vadd.f32 %v570_v4, %v542_v37  ;;  %vm204_vm0 = vcmp.gt.f32.partialorder %v573_v8, 0.0 }
 0x142   :  { %v175_v62 = vadd.f32 %v570_v4, %v544_v38  ;;  %382 = vst [vmem:[%s699_s5 + $0x10] sm:$0xff] %v418_v55  ;;  %383 = vst [vmem:[%s699_s5 + $0x18] sm:$0xff] %v419_v56  ;;  %v176_v37 = vadd.f32 %v570_v4, %v546_v39  ;;  %v177_v38 = vadd.f32 %v570_v4, %v548_v40  ;;  %vm205_vm1 = vcmp.gt.f32.partialorder %v576_v12, 0.0 }
 0x143   :  { %384 = vst [vmem:[%s699_s5 + $0x20] sm:$0xff] %v420_v57  ;;  %385 = vst [vmem:[%s699_s5 + $0x28] sm:$0xff] %v421_v58  ;;  %v178_v63 = vadd.f32 %v570_v4, %v550_v41  ;;  %v179_v0 = vadd.f32 %v570_v4, %v552_v42  ;;  %v180_v39 = vadd.f32 %v570_v4, %v554_v43  ;;  %vm206_vm2 = vcmp.gt.f32.partialorder %v174_v61, 0.0 }
 0x144   :  { %386 = vst [vmem:[%s699_s5 + $0x30] sm:$0xff] %v422_v59  ;;  %387 = vst [vmem:[%s699_s5 + $0x38] sm:$0xff] %v423_v60  ;;  %v181_v40 = vadd.f32 %v570_v4, %v556_v44  ;;  %v182_v41 = vadd.f32 %v570_v4, %v558_v45  ;;  %v183_v42 = vadd.f32 %v570_v4, %v560_v46  ;;  %vm207_vm3 = vcmp.gt.f32.partialorder %v175_v62, 0.0 }
 0x145   :  { %v184_v1 = vadd.f32 %v570_v4, %v562_v48  ;;  %v185_v2 = vadd.f32 %v570_v4, %v564_v49  ;;  %v186_v3 = vadd.f32 %v570_v4, %v566_v50  ;;  %v187_v43 = vadd.f32 %v570_v4, %v568_v51 }
 0x146   :  { %vm208_vm4 = vcmp.gt.f32.partialorder %v176_v37, 0.0  ;;  %vm209_vm5 = vcmp.gt.f32.partialorder %v177_v38, 0.0  ;;  %vm210_vm6 = vcmp.gt.f32.partialorder %v178_v63, 0.0  ;;  %vm211_vm7 = vcmp.gt.f32.partialorder %v179_v0, 0.0 }
 0x147   :  { %vm212_vm8 = vcmp.gt.f32.partialorder %v180_v39, 0.0  ;;  %vm213_vm9 = vcmp.gt.f32.partialorder %v181_v40, 0.0  ;;  %vm214_vm10 = vcmp.gt.f32.partialorder %v182_v41, 0.0  ;;  %vm215_vm11 = vcmp.gt.f32.partialorder %v183_v42, 0.0 }
 0x148   :  { %vm216_vm12 = vcmp.gt.f32.partialorder %v184_v1, 0.0  ;;  %vm217_vm13 = vcmp.gt.f32.partialorder %v185_v2, 0.0  ;;  %vm218_vm14 = vcmp.gt.f32.partialorder %v186_v3, 0.0  ;;  %vm219_vm15 = vcmp.gt.f32.partialorder %v187_v43, 0.0 }
 0x149   :  { %v236_v44 = vmul.f32 0.2, %v573_v8  ;;  %v237_v45 = vmul.f32 0.2, %v576_v12  ;;  %v238_v46 = vmul.f32 0.2, %v174_v61 }
 0x14a   :  { %v239_v48 = vmul.f32 0.2, %v175_v62  ;;  %v240_v49 = vmul.f32 0.2, %v176_v37  ;;  %v241_v50 = vmul.f32 0.2, %v177_v38 }
 0x14b   :  { %v242_v51 = vmul.f32 0.2, %v178_v63  ;;  %v243_v4 = vmul.f32 0.2, %v179_v0  ;;  %v244_v5 = vmul.f32 0.2, %v180_v39  ;;  %v268_v6 = vsel %vm204_vm0, %v573_v8, %v236_v44 }
 0x14c   :  { %v245_v7 = vmul.f32 0.2, %v181_v40  ;;  %v246_v9 = vmul.f32 0.2, %v182_v41  ;;  %v247_v10 = vmul.f32 0.2, %v183_v42  ;;  %v269_v11 = vsel %vm205_vm1, %v576_v12, %v237_v45 }
 0x14d   :  { %v248_v13 = vmul.f32 0.2, %v184_v1  ;;  %v249_v14 = vmul.f32 0.2, %v185_v2  ;;  %v250_v15 = vmul.f32 0.2, %v186_v3  ;;  %v270_v16 = vsel %vm206_vm2, %v174_v61, %v238_v46 }
 0x14e   :  { %v251_v17 = vmul.f32 0.2, %v187_v43  ;;  %v271_v18 = vsel %vm207_vm3, %v175_v62, %v239_v48  ;;  %v272_v19 = vsel %vm208_vm4, %v176_v37, %v240_v49  ;;  %v273_v20 = vsel %vm209_vm5, %v177_v38, %v241_v50 }
 0x14f   :  { %v274_v8 = vsel %vm210_vm6, %v178_v63, %v242_v51  ;;  %v275_v21 = vsel %vm211_vm7, %v179_v0, %v243_v4  ;;  %v276_v22 = vsel %vm212_vm8, %v180_v39, %v244_v5  ;;  %v277_v12 = vsel %vm213_vm9, %v181_v40, %v245_v7 }
 0x150   :  { %v278_v23 = vsel %vm214_vm10, %v182_v41, %v246_v9  ;;  %v279_v24 = vsel %vm215_vm11, %v183_v42, %v247_v10  ;;  %v280_v25 = vsel %vm216_vm12, %v184_v1, %v248_v13  ;;  %v281_v26 = vsel %vm217_vm13, %v185_v2, %v249_v14 }
 0x151   :  { %v282_v27 = vsel %vm218_vm14, %v186_v3, %v250_v15  ;;  %v283_v28 = vsel %vm219_vm15, %v187_v43, %v251_v17  ;;  %v424_v29 = vpack.c.bf16 %v269_v11, %v268_v6  ;;  %v425_v30 = vpack.c.bf16 %v271_v18, %v270_v16 }
 0x152   :  { %v426_v31 = vpack.c.bf16 %v273_v20, %v272_v19  ;;  %v427_v32 = vpack.c.bf16 %v275_v21, %v274_v8  ;;  %v428_v33 = vpack.c.bf16 %v277_v12, %v276_v22  ;;  %v429_v34 = vpack.c.bf16 %v279_v24, %v278_v23 }
 0x153   :  { %v430_v35 = vpack.c.bf16 %v281_v26, %v280_v25  ;;  %v431_v36 = vpack.c.bf16 %v283_v28, %v282_v27  ;;  %388 = vst [vmem:[%s699_s5 + $0x40] sm:$0xff] %v424_v29  ;;  %389 = vst [vmem:[%s699_s5 + $0x48] sm:$0xff] %v425_v30 }
 0x154   :  { %390 = vst [vmem:[%s699_s5 + $0x50] sm:$0xff] %v426_v31  ;;  %391 = vst [vmem:[%s699_s5 + $0x58] sm:$0xff] %v427_v32 }
 0x155   :  { %392 = vst [vmem:[%s699_s5 + $0x60] sm:$0xff] %v428_v33  ;;  %393 = vst [vmem:[%s699_s5 + $0x68] sm:$0xff] %v429_v34 }
 0x156   :  { %394 = vst [vmem:[%s699_s5 + $0x70] sm:$0xff] %v430_v35  ;;  %395 = vst [vmem:[%s699_s5 + $0x78] sm:$0xff] %v431_v36 }

// kernel: discriminator_forward.11
= control target key start
LH: loop header
LB: loop body
LE: loop exit
PB: predicated region body
PF: predicated region fallthrough
CT: control target
= control target key end

     0   :  { %s1216_s1 = inlined_call_operand.vmem [shape: bf16[256,512], index: 1, kind: input, shape index: {}]   ;;  %s1217_s0 = inlined_call_operand.vmem [shape: bf16[32,256], index: 0, kind: input, shape index: {}]   ;;  %s1218_s2 = inlined_call_operand.vmem [shape: bf16[32,512], index: 2, kind: output, shape index: {0}]   ;;  %s1219_s3 = inlined_call_operand.vmem [shape: f32[32,128], index: 3, kind: output, shape index: {1}]   ;;  %s1220_s4 = inlined_call_operand.vmem [shape: f32[32,128], index: 4, kind: output, shape index: {2}]  }
   0x1   :  { %v837_v0 = vld [vmem:[%s1216_s1 + $0x4] ss:$16 sps:$4 sm:$0xff]   ;;  %v839_v1 = vld [vmem:[%s1216_s1 + $0xc] ss:$16 sps:$4 sm:$0xff]   ;;  %v841_v2 = vld [vmem:[%s1216_s1] ss:$16 sps:$4 sm:$0xff]  }
   0x2   :  { %470 = vmatprep.subr.bf16.mxu0 %v837_v0  ;;  %v842_v3 = vld [vmem:[%s1216_s1 + $0x8] ss:$16 sps:$4 sm:$0xff]   ;;  %523 = vmatprep.subr.bf16.mxu1 %v839_v1  ;;  %v843_v4 = vld [vmem:[%s1216_s1 + $0x24] ss:$16 sps:$4 sm:$0xff]   ;;  %v845_v5 = vld [vmem:[%s1216_s1 + $0x2c] ss:$16 sps:$4 sm:$0xff]  }
   0x3   :  { %471 = vmatpush1.bf16.msra.mxu0 %v841_v2  ;;  %524 = vmatpush1.bf16.msra.mxu1 %v842_v3  ;;  %v847_v6 = vld [vmem:[%s1216_s1 + $0x20] ss:$16 sps:$4 sm:$0xff]   ;;  %v848_v7 = vld [vmem:[%s1216_s1 + $0x28] ss:$16 sps:$4 sm:$0xff]   ;;  %v849_v8 = vld [vmem:[%s1216_s1 + $0x44] ss:$16 sps:$4 sm:$0xff]  }
   0x4   :  { %472 = vmatprep.subr.bf16.mxu0 %v843_v4  ;;  %525 = vmatprep.subr.bf16.mxu1 %v845_v5  ;;  %v851_v9 = vld [vmem:[%s1216_s1 + $0x4c] ss:$16 sps:$4 sm:$0xff]   ;;  %v853_v10 = vld [vmem:[%s1216_s1 + $0x40] ss:$16 sps:$4 sm:$0xff]   ;;  %v854_v11 = vld [vmem:[%s1216_s1 + $0x48] ss:$16 sps:$4 sm:$0xff]  }
   0x5   :  { %v855_v12 = vld [vmem:[%s1216_s1 + $0x64] ss:$16 sps:$4 sm:$0xff]   ;;  %v857_v13 = vld [vmem:[%s1216_s1 + $0x6c] ss:$16 sps:$4 sm:$0xff]   ;;  %v859_v14 = vld [vmem:[%s1216_s1 + $0x60] ss:$16 sps:$4 sm:$0xff]  }
   0x6   :  { %v860_v15 = vld [vmem:[%s1216_s1 + $0x68] ss:$16 sps:$4 sm:$0xff]   ;;  %v861_v16 = vld [vmem:[%s1216_s1 + $0x84] ss:$16 sps:$4 sm:$0xff]   ;;  %v863_v17 = vld [vmem:[%s1216_s1 + $0x8c] ss:$16 sps:$4 sm:$0xff]  }
   0x7   :  { %473 = vmatpush1.bf16.msra.mxu0 %v847_v6  ;;  %526 = vmatpush1.bf16.msra.mxu1 %v848_v7  ;;  %v865_v18 = vld [vmem:[%s1216_s1 + $0x80] ss:$16 sps:$4 sm:$0xff]   ;;  %v866_v19 = vld [vmem:[%s1216_s1 + $0x88] ss:$16 sps:$4 sm:$0xff]   ;;  %v867_v20 = vld [vmem:[%s1216_s1 + $0xa4] ss:$16 sps:$4 sm:$0xff]  }
   0x8   :  { %474 = vmatprep.subr.bf16.mxu0 %v849_v8  ;;  %527 = vmatprep.subr.bf16.mxu1 %v851_v9  ;;  %v869_v21 = vld [vmem:[%s1216_s1 + $0xac] ss:$16 sps:$4 sm:$0xff]   ;;  %v871_v22 = vld [vmem:[%s1216_s1 + $0xa0] ss:$16 sps:$4 sm:$0xff]   ;;  %v872_v23 = vld [vmem:[%s1216_s1 + $0xa8] ss:$16 sps:$4 sm:$0xff]  }
   0x9   :  { %v873_v24 = vld [vmem:[%s1216_s1 + $0xc4] ss:$16 sps:$4 sm:$0xff]   ;;  %v875_v25 = vld [vmem:[%s1216_s1 + $0xcc] ss:$16 sps:$4 sm:$0xff]   ;;  %v877_v26 = vld [vmem:[%s1216_s1 + $0xc0] ss:$16 sps:$4 sm:$0xff]  }
   0xa   :  { %v878_v27 = vld [vmem:[%s1216_s1 + $0xc8] ss:$16 sps:$4 sm:$0xff]   ;;  %v879_v28 = vld [vmem:[%s1216_s1 + $0xe4] ss:$16 sps:$4 sm:$0xff]   ;;  %v881_v29 = vld [vmem:[%s1216_s1 + $0xec] ss:$16 sps:$4 sm:$0xff]  }
   0xb   :  { %475 = vmatpush1.bf16.msra.mxu0 %v853_v10  ;;  %528 = vmatpush1.bf16.msra.mxu1 %v854_v11  ;;  %v883_v30 = vld [vmem:[%s1216_s1 + $0xe0] ss:$16 sps:$4 sm:$0xff]   ;;  %v884_v31 = vld [vmem:[%s1216_s1 + $0xe8] ss:$16 sps:$4 sm:$0xff]   ;;  %v885_v32 = vld [vmem:[%s1216_s1 + $0x104] ss:$16 sps:$4 sm:$0xff]  }
   0xc   :  { %476 = vmatprep.subr.bf16.mxu0 %v855_v12  ;;  %529 = vmatprep.subr.bf16.mxu1 %v857_v13  ;;  %v887_v33 = vld [vmem:[%s1216_s1 + $0x10c] ss:$16 sps:$4 sm:$0xff]   ;;  %v889_v34 = vld [vmem:[%s1216_s1 + $0x100] ss:$16 sps:$4 sm:$0xff]   ;;  %v890_v35 = vld [vmem:[%s1216_s1 + $0x108] ss:$16 sps:$4 sm:$0xff]  }
   0xd   :  { %v891_v36 = vld [vmem:[%s1216_s1 + $0x124] ss:$16 sps:$4 sm:$0xff]   ;;  %v893_v37 = vld [vmem:[%s1216_s1 + $0x12c] ss:$16 sps:$4 sm:$0xff]   ;;  %v895_v38 = vld [vmem:[%s1216_s1 + $0x120] ss:$16 sps:$4 sm:$0xff]  }
   0xe   :  { %v896_v39 = vld [vmem:[%s1216_s1 + $0x128] ss:$16 sps:$4 sm:$0xff]   ;;  %v897_v40 = vld [vmem:[%s1216_s1 + $0x144] ss:$16 sps:$4 sm:$0xff]   ;;  %v899_v41 = vld [vmem:[%s1216_s1 + $0x14c] ss:$16 sps:$4 sm:$0xff]  }
   0xf   :  { %477 = vmatpush1.bf16.msra.mxu0 %v859_v14  ;;  %530 = vmatpush1.bf16.msra.mxu1 %v860_v15  ;;  %v901_v42 = vld [vmem:[%s1216_s1 + $0x140] ss:$16 sps:$4 sm:$0xff]   ;;  %v902_v43 = vld [vmem:[%s1216_s1 + $0x148] ss:$16 sps:$4 sm:$0xff]   ;;  %v903_v44 = vld [vmem:[%s1216_s1 + $0x164] ss:$16 sps:$4 sm:$0xff]  }
  0x10   :  { %478 = vmatprep.subr.bf16.mxu0 %v861_v16  ;;  %531 = vmatprep.subr.bf16.mxu1 %v863_v17  ;;  %v905_v45 = vld [vmem:[%s1216_s1 + $0x16c] ss:$16 sps:$4 sm:$0xff]   ;;  %v907_v46 = vld [vmem:[%s1216_s1 + $0x160] ss:$16 sps:$4 sm:$0xff]   ;;  %v908_v48 = vld [vmem:[%s1216_s1 + $0x168] ss:$16 sps:$4 sm:$0xff]  }
  0x11   :  { %v935_v47 = vld [vmem:[%s1217_s0 + $0x4] ss:$8 sps:$4 sm:$0xff]   ;;  %v913_v51 = vld [vmem:[%s1216_s1 + $0x180] ss:$16 sps:$4 sm:$0xff]   ;;  %v914_v52 = vld [vmem:[%s1216_s1 + $0x188] ss:$16 sps:$4 sm:$0xff]  }
  0x12   :  { %v909_v49 = vld [vmem:[%s1216_s1 + $0x184] ss:$16 sps:$4 sm:$0xff]   ;;  %v911_v50 = vld [vmem:[%s1216_s1 + $0x18c] ss:$16 sps:$4 sm:$0xff]   ;;  %502 = vmatprep.mubr.bf16.mxu0 %v935_v47  ;;  %555 = vmatprep.mubr.bf16.mxu1 %v935_v47  ;;  %v919_v55 = vld [vmem:[%s1216_s1 + $0x1a0] ss:$16 sps:$4 sm:$0xff]  }
  0x13   :  { %479 = vmatpush1.bf16.msra.mxu0 %v865_v18  ;;  %532 = vmatpush1.bf16.msra.mxu1 %v866_v19  ;;  %v915_v53 = vld [vmem:[%s1216_s1 + $0x1a4] ss:$16 sps:$4 sm:$0xff]   ;;  %v917_v54 = vld [vmem:[%s1216_s1 + $0x1ac] ss:$16 sps:$4 sm:$0xff]   ;;  %v920_v56 = vld [vmem:[%s1216_s1 + $0x1a8] ss:$16 sps:$4 sm:$0xff]  }
  0x14   :  { %480 = vmatprep.subr.bf16.mxu0 %v867_v20  ;;  %533 = vmatprep.subr.bf16.mxu1 %v869_v21  ;;  %v921_v57 = vld [vmem:[%s1216_s1 + $0x1c4] ss:$16 sps:$4 sm:$0xff]   ;;  %v923_v58 = vld [vmem:[%s1216_s1 + $0x1cc] ss:$16 sps:$4 sm:$0xff]   ;;  %v925_v59 = vld [vmem:[%s1216_s1 + $0x1c0] ss:$16 sps:$4 sm:$0xff]  }
  0x15   :  { %v926_v60 = vld [vmem:[%s1216_s1 + $0x1c8] ss:$16 sps:$4 sm:$0xff]   ;;  %v927_v61 = vld [vmem:[%s1216_s1 + $0x1e4] ss:$16 sps:$4 sm:$0xff]   ;;  %v929_v62 = vld [vmem:[%s1216_s1 + $0x1ec] ss:$16 sps:$4 sm:$0xff]  }
  0x16   :  { %v931_v63 = vld [vmem:[%s1216_s1 + $0x1e0] ss:$16 sps:$4 sm:$0xff]   ;;  %v932_v0 = vld [vmem:[%s1216_s1 + $0x1e8] ss:$16 sps:$4 sm:$0xff]   ;;  %v936_v2 = vld [vmem:[%s1217_s0 + $0x14] ss:$8 sps:$4 sm:$0xff]  }
  0x17   :  { %481 = vmatpush1.bf16.msra.mxu0 %v871_v22  ;;  %534 = vmatpush1.bf16.msra.mxu1 %v872_v23  ;;  %v933_v1 = vld [vmem:[%s1217_s0] ss:$8 sps:$4 sm:$0xff]   ;;  %v938_v3 = vld [vmem:[%s1217_s0 + $0x10] ss:$8 sps:$4 sm:$0xff]  }
  0x18   :  { %482 = vmatprep.subr.bf16.mxu0 %v873_v24  ;;  %535 = vmatprep.subr.bf16.mxu1 %v875_v25 }
  0x1b   :  { %483 = vmatpush1.bf16.msra.mxu0 %v877_v26  ;;  %536 = vmatpush1.bf16.msra.mxu1 %v878_v27 }
  0x1c   :  { %484 = vmatprep.subr.bf16.mxu0 %v879_v28  ;;  %537 = vmatprep.subr.bf16.mxu1 %v881_v29 }
  0x1f   :  { %485 = vmatpush1.bf16.msra.mxu0 %v883_v30  ;;  %538 = vmatpush1.bf16.msra.mxu1 %v884_v31 }
  0x20   :  { %486 = vmatprep.subr.bf16.mxu0 %v885_v32  ;;  %539 = vmatprep.subr.bf16.mxu1 %v887_v33 }
  0x23   :  { %487 = vmatpush1.bf16.msra.mxu0 %v889_v34  ;;  %540 = vmatpush1.bf16.msra.mxu1 %v890_v35 }
  0x24   :  { %488 = vmatprep.subr.bf16.mxu0 %v891_v36  ;;  %541 = vmatprep.subr.bf16.mxu1 %v893_v37 }
  0x27   :  { %489 = vmatpush1.bf16.msra.mxu0 %v895_v38  ;;  %542 = vmatpush1.bf16.msra.mxu1 %v896_v39 }
  0x28   :  { %490 = vmatprep.subr.bf16.mxu0 %v897_v40  ;;  %543 = vmatprep.subr.bf16.mxu1 %v899_v41 }
  0x2b   :  { %491 = vmatpush1.bf16.msra.mxu0 %v901_v42  ;;  %544 = vmatpush1.bf16.msra.mxu1 %v902_v43 }
  0x2c   :  { %492 = vmatprep.subr.bf16.mxu0 %v903_v44  ;;  %545 = vmatprep.subr.bf16.mxu1 %v905_v45 }
  0x2f   :  { %493 = vmatpush1.bf16.msra.mxu0 %v907_v46  ;;  %546 = vmatpush1.bf16.msra.mxu1 %v908_v48 }
  0x30   :  { %494 = vmatprep.subr.bf16.mxu0 %v909_v49  ;;  %547 = vmatprep.subr.bf16.mxu1 %v911_v50 }
  0x33   :  { %495 = vmatpush1.bf16.msra.mxu0 %v913_v51  ;;  %548 = vmatpush1.bf16.msra.mxu1 %v914_v52 }
  0x34   :  { %496 = vmatprep.subr.bf16.mxu0 %v915_v53  ;;  %549 = vmatprep.subr.bf16.mxu1 %v917_v54 }
  0x37   :  { %497 = vmatpush1.bf16.msra.mxu0 %v919_v55  ;;  %550 = vmatpush1.bf16.msra.mxu1 %v920_v56 }
  0x38   :  { %498 = vmatprep.subr.bf16.mxu0 %v921_v57  ;;  %551 = vmatprep.subr.bf16.mxu1 %v923_v58 }
  0x3b   :  { %499 = vmatpush1.bf16.msra.mxu0 %v925_v59  ;;  %552 = vmatpush1.bf16.msra.mxu1 %v926_v60 }
  0x3c   :  { %500 = vmatprep.subr.bf16.mxu0 %v927_v61  ;;  %553 = vmatprep.subr.bf16.mxu1 %v929_v62 }
  0x3f   :  { %501 = vmatpush1.bf16.msra.mxu0 %v931_v63  ;;  %554 = vmatpush1.bf16.msra.mxu1 %v932_v0 }
  0x42   :  { %503 = vmatmul.mubr.bf16.vlgmr.msra.gmra.mrb[0].mxu0 %v933_v1  ;;  %556 = vmatmul.mubr.bf16.vlgmr.msra.gmra.mrb[0].mxu1 %v933_v1 }
  0x43   :  { %512 = vmatprep.mubr.bf16.mxu0 %v936_v2  ;;  %565 = vmatprep.mubr.bf16.mxu1 %v936_v2 }
  0x4a   :  { %513 = vmatmul.mubr.bf16.gmra.mrb[4].mxu0 %v938_v3  ;;  %566 = vmatmul.mubr.bf16.gmra.mrb[4].mxu1 %v938_v3 }
 0x115   :  { %v504_v4 = vpop.f32.mrb[0].mxu0  ;;  %v557_v5 = vpop.f32.mrb[0].mxu1 }
 0x116   :  { %v668_v6 = vmul.f32 %v504_v4, %v504_v4  ;;  %v506_v7 = vpop.f32.mrb[1].mxu0  ;;  %v559_v8 = vpop.f32.mrb[1].mxu1  ;;  %v670_v15 = vmul.f32 %v557_v5, %v557_v5 }
 0x117   :  { %v828_v9 = vpack.c.bf16 %v506_v7, %v504_v4  ;;  %v636_v10 = vadd.f32 %v506_v7, %v504_v4  ;;  %v669_v11 = vmul.f32 %v506_v7, %v506_v7  ;;  %v829_v12 = vpack.c.bf16 %v559_v8, %v557_v5  ;;  %v508_v13 = vpop.f32.mrb[2].mxu0  ;;  %v561_v14 = vpop.f32.mrb[2].mxu1 }
 0x118   :  { %v672_v16 = vmul.f32 %v508_v13, %v508_v13  ;;  %v510_v17 = vpop.f32.mrb[3].mxu0  ;;  %v563_v18 = vpop.f32.mrb[3].mxu1  ;;  %v674_v25 = vmul.f32 %v561_v14, %v561_v14  ;;  %v671_v29 = vmul.f32 %v559_v8, %v559_v8 }
 0x119   :  { %624 = vst [vmem:[%s1218_s2] sm:$0xff] %v828_v9  ;;  %625 = vst [vmem:[%s1218_s2 + $0x8] sm:$0xff] %v829_v12  ;;  %v830_v19 = vpack.c.bf16 %v510_v17, %v508_v13  ;;  %v641_v20 = vadd.f32 %v510_v17, %v508_v13  ;;  %v673_v21 = vmul.f32 %v510_v17, %v510_v17 }
 0x11a   :  { %v831_v22 = vpack.c.bf16 %v563_v18, %v561_v14  ;;  %v637_v23 = vadd.f32 %v636_v10, %v557_v5  ;;  %v684_v24 = vadd.f32 %v669_v11, %v668_v6  ;;  %v675_v38 = vmul.f32 %v563_v18, %v563_v18 }
 0x11b   :  { %626 = vst [vmem:[%s1218_s2 + $0x10] sm:$0xff] %v830_v19  ;;  %v689_v26 = vadd.f32 %v673_v21, %v672_v16  ;;  %v642_v27 = vadd.f32 %v641_v20, %v561_v14 }
 0x11c   :  { %627 = vst [vmem:[%s1218_s2 + $0x18] sm:$0xff] %v831_v22  ;;  %v638_v28 = vadd.f32 %v637_v23, %v559_v8  ;;  %v685_v30 = vadd.f32 %v684_v24, %v670_v15 }
 0x11d   :  { %v567_v31 = vpop.f32.mrb[4].mxu1  ;;  %v514_v32 = vpop.f32.mrb[4].mxu0  ;;  %v690_v33 = vadd.f32 %v689_v26, %v674_v25  ;;  %v643_v34 = vadd.f32 %v642_v27, %v563_v18 }
 0x11e   :  { %639 = vadd.xlane.f32.xlu0 %v638_v28  ;;  %v676_v35 = vmul.f32 %v514_v32, %v514_v32  ;;  %v516_v36 = vpop.f32.mrb[5].mxu0  ;;  %v569_v37 = vpop.f32.mrb[5].mxu1  ;;  %v686_v39 = vadd.f32 %v685_v30, %v671_v29  ;;  %v678_v46 = vmul.f32 %v567_v31, %v567_v31 }
 0x11f   :  { %v832_v40 = vpack.c.bf16 %v516_v36, %v514_v32  ;;  %v646_v41 = vadd.f32 %v516_v36, %v514_v32  ;;  %v677_v42 = vmul.f32 %v516_v36, %v516_v36  ;;  %v833_v43 = vpack.c.bf16 %v569_v37, %v567_v31  ;;  %v518_v44 = vpop.f32.mrb[6].mxu0  ;;  %v571_v45 = vpop.f32.mrb[6].mxu1 }
 0x120   :  { %v680_v47 = vmul.f32 %v518_v44, %v518_v44  ;;  %v520_v48 = vpop.f32.mrb[7].mxu0  ;;  %v573_v49 = vpop.f32.mrb[7].mxu1  ;;  %v691_v50 = vadd.f32 %v690_v33, %v675_v38  ;;  %v682_v57 = vmul.f32 %v571_v45, %v571_v45  ;;  %v679_v61 = vmul.f32 %v569_v37, %v569_v37 }
 0x121   :  { %628 = vst [vmem:[%s1218_s2 + $0x20] sm:$0xff] %v832_v40  ;;  %629 = vst [vmem:[%s1218_s2 + $0x28] sm:$0xff] %v833_v43  ;;  %v834_v51 = vpack.c.bf16 %v520_v48, %v518_v44  ;;  %v651_v52 = vadd.f32 %v520_v48, %v518_v44  ;;  %v681_v53 = vmul.f32 %v520_v48, %v520_v48 }
 0x122   :  { %v835_v54 = vpack.c.bf16 %v573_v49, %v571_v45  ;;  %692 = vadd.xlane.f32.xlu1 %v691_v50  ;;  %644 = vadd.xlane.f32.xlu0 %v643_v34  ;;  %v647_v55 = vadd.f32 %v646_v41, %v567_v31  ;;  %v694_v56 = vadd.f32 %v677_v42, %v676_v35 }
 0x123   :  { %630 = vst [vmem:[%s1218_s2 + $0x30] sm:$0xff] %v834_v51  ;;  %v699_v58 = vadd.f32 %v681_v53, %v680_v47  ;;  %v652_v59 = vadd.f32 %v651_v52, %v571_v45  ;;  %v683_v63 = vmul.f32 %v573_v49, %v573_v49 }
 0x124   :  { %631 = vst [vmem:[%s1218_s2 + $0x38] sm:$0xff] %v835_v54  ;;  %v648_v60 = vadd.f32 %v647_v55, %v569_v37  ;;  %v695_v62 = vadd.f32 %v694_v56, %v678_v46 }
 0x125   :  { %v653_v0 = vadd.f32 %v652_v59, %v573_v49  ;;  %v700_v1 = vadd.f32 %v699_v58, %v682_v57 }
 0x126   :  { %687 = vadd.xlane.f32.xlu0 %v686_v39  ;;  %649 = vadd.xlane.f32.xlu1 %v648_v60  ;;  %v696_v2 = vadd.f32 %v695_v62, %v679_v61 }
 0x127   :  { %v701_v3 = vadd.f32 %v700_v1, %v683_v63 }
 0x12a   :  { %697 = vadd.xlane.f32.xlu0 %v696_v2  ;;  %654 = vadd.xlane.f32.xlu1 %v653_v0 }
 0x12e   :  { %702 = vadd.xlane.f32.xlu1 %v701_v3 }
 0x1ab   :  { %v640_v4 = vpop.xlane.xlu0 %639 }
 0x1ac   :  { %660 = vst [vmem:[%s1219_s3] sm:$0xff] %v640_v4 }
 0x1af   :  { %v693_v5 = vpop.xlane.xlu1 %692  ;;  %v645_v6 = vpop.xlane.xlu0 %644 }
 0x1b0   :  { %709 = vst [vmem:[%s1220_s4 + $0x8] sm:$0xff] %v693_v5  ;;  %661 = vst [vmem:[%s1219_s3 + $0x8] sm:$0xff] %v645_v6 }
 0x1b3   :  { %v688_v7 = vpop.xlane.xlu0 %687  ;;  %v650_v8 = vpop.xlane.xlu1 %649 }
 0x1b4   :  { %708 = vst [vmem:[%s1220_s4] sm:$0xff] %v688_v7  ;;  %662 = vst [vmem:[%s1219_s3 + $0x10] sm:$0xff] %v650_v8 }
 0x1b7   :  { %v698_v9 = vpop.xlane.xlu0 %697  ;;  %v655_v10 = vpop.xlane.xlu1 %654 }
 0x1b8   :  { %710 = vst [vmem:[%s1220_s4 + $0x10] sm:$0xff] %v698_v9  ;;  %663 = vst [vmem:[%s1219_s3 + $0x18] sm:$0xff] %v655_v10 }
 0x1bb   :  { %v703_v11 = vpop.xlane.xlu1 %702 }
 0x1bc   :  { %711 = vst [vmem:[%s1220_s4 + $0x18] sm:$0xff] %v703_v11 }

// kernel: discriminator_forward.12
= control target key start
LH: loop header
LB: loop body
LE: loop exit
PB: predicated region body
PF: predicated region fallthrough
CT: control target
= control target key end

     0   :  { %v323_v8 = vmov 0   ;;  %s453_s1 = inlined_call_operand.vmem [shape: f32[32,128], index: 1, kind: input, shape index: {}]   ;;  %s454_s2 = inlined_call_operand.vmem [shape: f32[32,128], index: 2, kind: input, shape index: {}]   ;;  %s455_s3 = inlined_call_operand.vmem [shape: f32[32,1], index: 3, kind: input, shape index: {}]   ;;  %s456_s4 = inlined_call_operand.vmem [shape: f32[32,1], index: 4, kind: input, shape index: {}]   ;;  %s457_s0 = inlined_call_operand.vmem [shape: bf16[32,512], index: 0, kind: input, shape index: {}]   ;;  %s458_s5 = inlined_call_operand.vmem [shape: bf16[32,512], index: 5, kind: output, shape index: {}]  }
   0x1   :  { %v22_v0 = vld [vmem:[%s453_s1 + $0x10] sm:$0xff]  ;;  %v20_v1 = vld [vmem:[%s453_s1] sm:$0xff]  ;;  %v23_v2 = vld [vmem:[%s453_s1 + $0x18] sm:$0xff]  ;;  %314 = vset.pattern.permute.xlu1 %v323_v8  ;;  %313 = vset.pattern.permute.xlu0 %v323_v8 }
   0x2   :  { %28 = vadd.xlane.f32.xlu1 %v22_v0  ;;  %24 = vadd.xlane.f32.xlu0 %v20_v1  ;;  %v21_v3 = vld [vmem:[%s453_s1 + $0x8] sm:$0xff]  ;;  %v36_v5 = vld [vmem:[%s454_s2] sm:$0xff]  ;;  %v39_v6 = vld [vmem:[%s454_s2 + $0x18] sm:$0xff] }
   0x3   :  { %v37_v4 = vld [vmem:[%s454_s2 + $0x8] sm:$0xff]  ;;  %v38_v7 = vld [vmem:[%s454_s2 + $0x10] sm:$0xff]  ;;  %v72_v42 = vld [vmem:[%s455_s3] sm:$0xff] }
   0x4   :  { %v73_v41 = vld [vmem:[%s455_s3 + $0x8] sm:$0xff]  ;;  %v74_v47 = vld [vmem:[%s455_s3 + $0x10] sm:$0xff]  ;;  %v75_v51 = vld [vmem:[%s455_s3 + $0x18] sm:$0xff] }
   0x5   :  { %v80_v54 = vld [vmem:[%s456_s4] sm:$0xff]  ;;  %v81_v57 = vld [vmem:[%s456_s4 + $0x8] sm:$0xff]  ;;  %v82_v60 = vld [vmem:[%s456_s4 + $0x10] sm:$0xff] }
   0x6   :  { %30 = vadd.xlane.f32.xlu1 %v23_v2  ;;  %26 = vadd.xlane.f32.xlu0 %v21_v3  ;;  %v83_v63 = vld [vmem:[%s456_s4 + $0x18] sm:$0xff]  ;;  %v94_v2 = vld [vmem:[%s457_s0 + $0x10] sm:$0xff]  ;;  %v97_v8 = vld [vmem:[%s457_s0 + $0x28] sm:$0xff] }
   0x7   :  { %v95_v3 = vld [vmem:[%s457_s0 + $0x18] sm:$0xff] }
   0xa   :  { %42 = vadd.xlane.f32.xlu1 %v37_v4  ;;  %40 = vadd.xlane.f32.xlu0 %v36_v5  ;;  %v92_v4 = vld [vmem:[%s457_s0] sm:$0xff]  ;;  %v93_v5 = vld [vmem:[%s457_s0 + $0x8] sm:$0xff] }
   0xe   :  { %46 = vadd.xlane.f32.xlu1 %v39_v6  ;;  %44 = vadd.xlane.f32.xlu0 %v38_v7  ;;  %v96_v7 = vld [vmem:[%s457_s0 + $0x20] sm:$0xff] }
  0x8f   :  { %v29_v9 = vpop.xlane.xlu1 %28  ;;  %v25_v10 = vpop.xlane.xlu0 %24 }
  0x90   :  { %v32_v13 = vmul.f32 1.5258789e-05, %v25_v10  ;;  %v34_v15 = vmul.f32 1.5258789e-05, %v29_v9  ;;  %v104_v9 = vunpack.c.l.bf16 %v94_v2  ;;  %v105_v10 = vunpack.c.h.bf16 %v94_v2 }
  0x92   :  { %v52_v19 = vmul.f32 %v32_v13, %v32_v13  ;;  %v54_v25 = vmul.f32 %v34_v15, %v34_v15 }
  0x93   :  { %v31_v11 = vpop.xlane.xlu1 %30  ;;  %v27_v12 = vpop.xlane.xlu0 %26 }
  0x94   :  { %v33_v14 = vmul.f32 1.5258789e-05, %v27_v12  ;;  %v35_v16 = vmul.f32 1.5258789e-05, %v31_v11  ;;  %v106_v11 = vunpack.c.l.bf16 %v95_v3  ;;  %v98_v12 = vld [vmem:[%s457_s0 + $0x30] sm:$0xff] }
  0x96   :  { %v53_v20 = vmul.f32 %v33_v14, %v33_v14  ;;  %v55_v26 = vmul.f32 %v35_v16, %v35_v16 }
  0x97   :  { %v43_v17 = vpop.xlane.xlu1 %42  ;;  %v41_v18 = vpop.xlane.xlu0 %40 }
  0x98   :  { %v49_v21 = vmul.f32 1.5258789e-05, %v43_v17  ;;  %v48_v22 = vmul.f32 1.5258789e-05, %v41_v18  ;;  %v103_v17 = vunpack.c.h.bf16 %v93_v5  ;;  %v107_v18 = vunpack.c.h.bf16 %v95_v3 }
  0x9a   :  { %v57_v23 = vsub.f32 %v49_v21, %v53_v20  ;;  %v56_v24 = vsub.f32 %v48_v22, %v52_v19  ;;  %v108_v20 = vunpack.c.l.bf16 %v96_v7  ;;  %v109_v21 = vunpack.c.h.bf16 %v96_v7 }
  0x9b   :  { %v47_v27 = vpop.xlane.xlu1 %46  ;;  %v45_v28 = vpop.xlane.xlu0 %44  ;;  %v110_v22 = vunpack.c.l.bf16 %v97_v8 }
  0x9c   :  { %v61_v29 = vmax.f32 %v57_v23, 0.0  ;;  %v60_v30 = vmax.f32 %v56_v24, 0.0  ;;  %v51_v31 = vmul.f32 1.5258789e-05, %v47_v27  ;;  %v50_v32 = vmul.f32 1.5258789e-05, %v45_v28 }
  0x9d   :  { %v111_v24 = vunpack.c.h.bf16 %v97_v8 }
  0x9e   :  { %v65_v33 = vadd.f32 1e-05, %v61_v29  ;;  %v64_v34 = vadd.f32 1e-05, %v60_v30  ;;  %v59_v35 = vsub.f32 %v51_v31, %v55_v26  ;;  %v58_v36 = vsub.f32 %v50_v32, %v54_v25 }
  0x9f   :  { %v112_v25 = vunpack.c.l.bf16 %v98_v12  ;;  %v113_v26 = vunpack.c.h.bf16 %v98_v12 }
  0xa0   :  { %315 = vrsqrt.f32 %v65_v33  ;;  %v63_v37 = vmax.f32 %v59_v35, 0.0  ;;  %v62_v38 = vmax.f32 %v58_v36, 0.0 }
  0xa1   :  { %317 = vrsqrt.f32 %v64_v34 }
  0xa2   :  { %v66_v39 = vadd.f32 1e-05, %v62_v38  ;;  %v67_v40 = vadd.f32 1e-05, %v63_v37 }
  0xa4   :  { %319 = vrsqrt.f32 %v66_v39 }
  0xa5   :  { %321 = vrsqrt.f32 %v67_v40 }
  0xaa   :  { %v316_v43 = vpop.eup %315 }
  0xab   :  { %v318_v44 = vpop.eup %317  ;;  %v77_v45 = vmul.f32 %v316_v43, %v73_v41 }
  0xac   :  { %v76_v46 = vmul.f32 %v318_v44, %v72_v42 }
  0xad   :  { %123 = vperm.xlu1 %314, %v77_v45   ;;  %v85_v56 = vmul.f32 %v77_v45, %v33_v14  ;;  %v100_v14 = vunpack.c.l.bf16 %v92_v4 }
  0xae   :  { %118 = vperm.xlu0 %313, %v76_v46   ;;  %v320_v48 = vpop.eup %319  ;;  %v84_v53 = vmul.f32 %v76_v46, %v32_v13  ;;  %v99_v13 = vld [vmem:[%s457_s0 + $0x38] sm:$0xff] }
  0xaf   :  { %v78_v49 = vmul.f32 %v320_v48, %v74_v47  ;;  %v322_v50 = vpop.eup %321  ;;  %v89_v58 = vsub.f32 %v81_v57, %v85_v56  ;;  %v114_v27 = vunpack.c.l.bf16 %v99_v13  ;;  %v115_v31 = vunpack.c.h.bf16 %v99_v13 }
  0xb0   :  { %v79_v52 = vmul.f32 %v322_v50, %v75_v51  ;;  %v88_v55 = vsub.f32 %v80_v54, %v84_v53 }
  0xb1   :  { %128 = vperm.xlu1 %314, %v78_v49   ;;  %v86_v59 = vmul.f32 %v78_v49, %v34_v15  ;;  %v101_v15 = vunpack.c.h.bf16 %v92_v4 }
  0xb2   :  { %v87_v62 = vmul.f32 %v79_v52, %v35_v16  ;;  %v102_v16 = vunpack.c.l.bf16 %v93_v5 }
  0xb3   :  { %v90_v61 = vsub.f32 %v82_v60, %v86_v59 }
  0xb4   :  { %v91_v0 = vsub.f32 %v83_v63, %v87_v62 }
  0xb5   :  { %133 = vperm.xlu1 %314, %v79_v52  }
  0xb9   :  { %154 = vperm.xlu1 %314, %v88_v55  }
  0xbd   :  { %159 = vperm.xlu1 %314, %v89_v58  }
  0xc1   :  { %164 = vperm.xlu1 %314, %v90_v61  }
  0xc5   :  { %169 = vperm.xlu1 %314, %v91_v0  }
 0x12c   :  { %v124_v1 = vpop.permute.xlu1 %123 }
 0x12d   :  { %v119_v19 = vpop.permute.xlu0 %118  ;;  %v140_v28 = vmul.f32 %v124_v1, %v104_v9  ;;  %v141_v29 = vmul.f32 %v124_v1, %v105_v10  ;;  %v142_v30 = vmul.f32 %v124_v1, %v106_v11  ;;  %v143_v36 = vmul.f32 %v124_v1, %v107_v18 }
 0x12e   :  { %v136_v32 = vmul.f32 %v119_v19, %v100_v14  ;;  %v137_v33 = vmul.f32 %v119_v19, %v101_v15  ;;  %v138_v34 = vmul.f32 %v119_v19, %v102_v16  ;;  %v139_v35 = vmul.f32 %v119_v19, %v103_v17 }
 0x130   :  { %v129_v6 = vpop.permute.xlu1 %128 }
 0x131   :  { %v144_v37 = vmul.f32 %v129_v6, %v108_v20  ;;  %v145_v38 = vmul.f32 %v129_v6, %v109_v21  ;;  %v146_v39 = vmul.f32 %v129_v6, %v110_v22  ;;  %v147_v45 = vmul.f32 %v129_v6, %v111_v24 }
 0x134   :  { %v134_v23 = vpop.permute.xlu1 %133 }
 0x135   :  { %v148_v46 = vmul.f32 %v134_v23, %v112_v25  ;;  %v149_v47 = vmul.f32 %v134_v23, %v113_v26  ;;  %v150_v48 = vmul.f32 %v134_v23, %v114_v27  ;;  %v151_v53 = vmul.f32 %v134_v23, %v115_v31 }
 0x138   :  { %v155_v40 = vpop.permute.xlu1 %154 }
 0x139   :  { %v172_v41 = vadd.f32 %v155_v40, %v136_v32  ;;  %v173_v42 = vadd.f32 %v155_v40, %v137_v33  ;;  %v174_v43 = vadd.f32 %v155_v40, %v138_v34  ;;  %v175_v44 = vadd.f32 %v155_v40, %v139_v35 }
 0x13b   :  { %vm188_vm0 = vcmp.gt.f32.partialorder %v172_v41, 0.0  ;;  %vm189_vm1 = vcmp.gt.f32.partialorder %v173_v42, 0.0  ;;  %vm190_vm2 = vcmp.gt.f32.partialorder %v174_v43, 0.0  ;;  %vm191_vm3 = vcmp.gt.f32.partialorder %v175_v44, 0.0 }
 0x13c   :  { %v204_v49 = vmul.f32 0.2, %v172_v41  ;;  %v205_v50 = vmul.f32 0.2, %v173_v42  ;;  %v206_v51 = vmul.f32 0.2, %v174_v43  ;;  %v160_v52 = vpop.permute.xlu1 %159 }
 0x13d   :  { %v207_v54 = vmul.f32 0.2, %v175_v44  ;;  %v176_v55 = vadd.f32 %v160_v52, %v140_v28  ;;  %v177_v56 = vadd.f32 %v160_v52, %v141_v29  ;;  %v178_v57 = vadd.f32 %v160_v52, %v142_v30 }
 0x13e   :  { %v220_v58 = vsel %vm188_vm0, %v172_v41, %v204_v49  ;;  %v221_v59 = vsel %vm189_vm1, %v173_v42, %v205_v50  ;;  %v222_v60 = vsel %vm190_vm2, %v174_v43, %v206_v51  ;;  %v179_v61 = vadd.f32 %v160_v52, %v143_v36 }
 0x13f   :  { %v223_v62 = vsel %vm191_vm3, %v175_v44, %v207_v54  ;;  %v304_v63 = vpack.c.bf16 %v221_v59, %v220_v58  ;;  %vm192_vm4 = vcmp.gt.f32.partialorder %v176_v55, 0.0  ;;  %vm193_vm5 = vcmp.gt.f32.partialorder %v177_v56, 0.0 }
 0x140   :  { %v305_v0 = vpack.c.bf16 %v223_v62, %v222_v60  ;;  %vm194_vm6 = vcmp.gt.f32.partialorder %v178_v57, 0.0  ;;  %vm195_vm7 = vcmp.gt.f32.partialorder %v179_v61, 0.0  ;;  %v208_v1 = vmul.f32 0.2, %v176_v55  ;;  %v165_v2 = vpop.permute.xlu1 %164 }
 0x141   :  { %284 = vst [vmem:[%s458_s5] sm:$0xff] %v304_v63  ;;  %v209_v3 = vmul.f32 0.2, %v177_v56  ;;  %v210_v4 = vmul.f32 0.2, %v178_v57  ;;  %v211_v5 = vmul.f32 0.2, %v179_v61  ;;  %v180_v6 = vadd.f32 %v165_v2, %v144_v37 }
 0x142   :  { %285 = vst [vmem:[%s458_s5 + $0x8] sm:$0xff] %v305_v0  ;;  %v224_v7 = vsel %vm192_vm4, %v176_v55, %v208_v1  ;;  %v181_v8 = vadd.f32 %v165_v2, %v145_v38  ;;  %v182_v9 = vadd.f32 %v165_v2, %v146_v39  ;;  %v183_v10 = vadd.f32 %v165_v2, %v147_v45 }
 0x143   :  { %v225_v11 = vsel %vm193_vm5, %v177_v56, %v209_v3  ;;  %v226_v12 = vsel %vm194_vm6, %v178_v57, %v210_v4  ;;  %v227_v13 = vsel %vm195_vm7, %v179_v61, %v211_v5  ;;  %vm196_vm8 = vcmp.gt.f32.partialorder %v180_v6, 0.0 }
 0x144   :  { %v306_v14 = vpack.c.bf16 %v225_v11, %v224_v7  ;;  %v307_v15 = vpack.c.bf16 %v227_v13, %v226_v12  ;;  %vm197_vm9 = vcmp.gt.f32.partialorder %v181_v8, 0.0  ;;  %vm198_vm10 = vcmp.gt.f32.partialorder %v182_v9, 0.0  ;;  %v170_v16 = vpop.permute.xlu1 %169 }
 0x145   :  { %vm199_vm11 = vcmp.gt.f32.partialorder %v183_v10, 0.0  ;;  %v212_v17 = vmul.f32 0.2, %v180_v6  ;;  %v213_v18 = vmul.f32 0.2, %v181_v8  ;;  %v184_v19 = vadd.f32 %v170_v16, %v148_v46 }
 0x146   :  { %286 = vst [vmem:[%s458_s5 + $0x10] sm:$0xff] %v306_v14  ;;  %287 = vst [vmem:[%s458_s5 + $0x18] sm:$0xff] %v307_v15  ;;  %v214_v20 = vmul.f32 0.2, %v182_v9  ;;  %v215_v21 = vmul.f32 0.2, %v183_v10  ;;  %v185_v22 = vadd.f32 %v170_v16, %v149_v47  ;;  %v186_v23 = vadd.f32 %v170_v16, %v150_v48 }
 0x147   :  { %v228_v24 = vsel %vm196_vm8, %v180_v6, %v212_v17  ;;  %v229_v25 = vsel %vm197_vm9, %v181_v8, %v213_v18  ;;  %v187_v26 = vadd.f32 %v170_v16, %v151_v53  ;;  %vm200_vm12 = vcmp.gt.f32.partialorder %v184_v19, 0.0 }
 0x148   :  { %v230_v27 = vsel %vm198_vm10, %v182_v9, %v214_v20  ;;  %v231_v28 = vsel %vm199_vm11, %v183_v10, %v215_v21  ;;  %v308_v29 = vpack.c.bf16 %v229_v25, %v228_v24  ;;  %vm201_vm13 = vcmp.gt.f32.partialorder %v185_v22, 0.0 }
 0x149   :  { %v309_v30 = vpack.c.bf16 %v231_v28, %v230_v27  ;;  %vm202_vm14 = vcmp.gt.f32.partialorder %v186_v23, 0.0  ;;  %vm203_vm15 = vcmp.gt.f32.partialorder %v187_v26, 0.0  ;;  %v216_v31 = vmul.f32 0.2, %v184_v19 }
 0x14a   :  { %288 = vst [vmem:[%s458_s5 + $0x20] sm:$0xff] %v308_v29  ;;  %v217_v32 = vmul.f32 0.2, %v185_v22  ;;  %v218_v33 = vmul.f32 0.2, %v186_v23 }
 0x14b   :  { %v219_v34 = vmul.f32 0.2, %v187_v26  ;;  %289 = vst [vmem:[%s458_s5 + $0x28] sm:$0xff] %v309_v30  ;;  %v232_v35 = vsel %vm200_vm12, %v184_v19, %v216_v31 }
 0x14c   :  { %v233_v36 = vsel %vm201_vm13, %v185_v22, %v217_v32  ;;  %v234_v37 = vsel %vm202_vm14, %v186_v23, %v218_v33 }
 0x14d   :  { %v235_v38 = vsel %vm203_vm15, %v187_v26, %v219_v34  ;;  %v310_v39 = vpack.c.bf16 %v233_v36, %v232_v35 }
 0x14e   :  { %v311_v40 = vpack.c.bf16 %v235_v38, %v234_v37 }
 0x14f   :  { %290 = vst [vmem:[%s458_s5 + $0x30] sm:$0xff] %v310_v39 }
 0x150   :  { %291 = vst [vmem:[%s458_s5 + $0x38] sm:$0xff] %v311_v40 }

// kernel: discriminator_forward.13
= control target key start
LH: loop header
LB: loop body
LE: loop exit
PB: predicated region body
PF: predicated region fallthrough
CT: control target
= control target key end

     0   :  { %s1163_s1 = inlined_call_operand.vmem [shape: bf16[512,128], index: 1, kind: input, shape index: {}]   ;;  %s1164_s0 = inlined_call_operand.vmem [shape: bf16[64,512], index: 0, kind: input, shape index: {}]   ;;  %s1165_s2 = inlined_call_operand.vmem [shape: bf16[64,128], index: 2, kind: output, shape index: {0}]   ;;  %s1166_s3 = inlined_call_operand.vmem [shape: f32[64,128], index: 3, kind: output, shape index: {1}]   ;;  %s1167_s4 = inlined_call_operand.vmem [shape: f32[64,128], index: 4, kind: output, shape index: {2}]  }
   0x1   :  { %v878_v0 = vld [vmem:[%s1163_s1 + $0x40] sm:$0xff]   ;;  %v882_v4 = vld [vmem:[%s1163_s1 + $0x48] sm:$0xff]   ;;  %v886_v8 = vld [vmem:[%s1163_s1 + $0x50] sm:$0xff]  }
   0x2   :  { %v879_v1 = vld [vmem:[%s1163_s1 + $0xc0] sm:$0xff]   ;;  %797 = vmatprep.subr.bf16.mxu0 %v878_v0  ;;  %v883_v5 = vld [vmem:[%s1163_s1 + $0xc8] sm:$0xff]   ;;  %v887_v9 = vld [vmem:[%s1163_s1 + $0xd0] sm:$0xff]  }
   0x3   :  { %v880_v2 = vld [vmem:[%s1163_s1] sm:$0xff]   ;;  %837 = vmatprep.subr.bf16.mxu1 %v879_v1  ;;  %v884_v6 = vld [vmem:[%s1163_s1 + $0x8] sm:$0xff]   ;;  %v888_v10 = vld [vmem:[%s1163_s1 + $0x10] sm:$0xff]  }
   0x4   :  { %v881_v3 = vld [vmem:[%s1163_s1 + $0x80] sm:$0xff]   ;;  %798 = vmatpush3.bf16.msra.mxu0 %v880_v2  ;;  %v885_v7 = vld [vmem:[%s1163_s1 + $0x88] sm:$0xff]   ;;  %v889_v11 = vld [vmem:[%s1163_s1 + $0x90] sm:$0xff]  }
   0x5   :  { %838 = vmatpush3.bf16.msra.mxu1 %v881_v3  ;;  %799 = vmatprep.subr.bf16.mxu0 %v882_v4  ;;  %v890_v12 = vld [vmem:[%s1163_s1 + $0x58] sm:$0xff]   ;;  %v894_v16 = vld [vmem:[%s1163_s1 + $0x60] sm:$0xff]   ;;  %v898_v20 = vld [vmem:[%s1163_s1 + $0x68] sm:$0xff]  }
   0x6   :  { %839 = vmatprep.subr.bf16.mxu1 %v883_v5  ;;  %v891_v13 = vld [vmem:[%s1163_s1 + $0xd8] sm:$0xff]   ;;  %v895_v17 = vld [vmem:[%s1163_s1 + $0xe0] sm:$0xff]   ;;  %v899_v21 = vld [vmem:[%s1163_s1 + $0xe8] sm:$0xff]  }
   0x7   :  { %v892_v14 = vld [vmem:[%s1163_s1 + $0x18] sm:$0xff]   ;;  %v896_v18 = vld [vmem:[%s1163_s1 + $0x20] sm:$0xff]   ;;  %v900_v22 = vld [vmem:[%s1163_s1 + $0x28] sm:$0xff]  }
   0x8   :  { %800 = vmatpush3.bf16.msra.mxu0 %v884_v6  ;;  %v893_v15 = vld [vmem:[%s1163_s1 + $0x98] sm:$0xff]   ;;  %v897_v19 = vld [vmem:[%s1163_s1 + $0xa0] sm:$0xff]   ;;  %v901_v23 = vld [vmem:[%s1163_s1 + $0xa8] sm:$0xff]  }
   0x9   :  { %840 = vmatpush3.bf16.msra.mxu1 %v885_v7  ;;  %801 = vmatprep.subr.bf16.mxu0 %v886_v8  ;;  %v902_v24 = vld [vmem:[%s1163_s1 + $0x70] sm:$0xff]   ;;  %v906_v28 = vld [vmem:[%s1163_s1 + $0x78] sm:$0xff]  }
   0xa   :  { %841 = vmatprep.subr.bf16.mxu1 %v887_v9  ;;  %v903_v25 = vld [vmem:[%s1163_s1 + $0xf0] sm:$0xff]   ;;  %v907_v29 = vld [vmem:[%s1163_s1 + $0xf8] sm:$0xff]  }
   0xb   :  { %v904_v26 = vld [vmem:[%s1163_s1 + $0x30] sm:$0xff]   ;;  %v908_v30 = vld [vmem:[%s1163_s1 + $0x38] sm:$0xff]  }
   0xc   :  { %802 = vmatpush3.bf16.msra.mxu0 %v888_v10  ;;  %v905_v27 = vld [vmem:[%s1163_s1 + $0xb0] sm:$0xff]   ;;  %v909_v31 = vld [vmem:[%s1163_s1 + $0xb8] sm:$0xff]  }
   0xd   :  { %842 = vmatpush3.bf16.msra.mxu1 %v889_v11  ;;  %803 = vmatprep.subr.bf16.mxu0 %v890_v12  ;;  %v910_v32 = vld [vmem:[%s1164_s0] ss:$16 sps:$4 sm:$0xff]   ;;  %v912_v33 = vld [vmem:[%s1164_s0 + $0x4] ss:$16 sps:$4 sm:$0xff]   ;;  %v913_v34 = vld [vmem:[%s1164_s0 + $0x8] ss:$16 sps:$4 sm:$0xff]  }
   0xe   :  { %843 = vmatprep.subr.bf16.mxu1 %v891_v13  ;;  %v915_v35 = vld [vmem:[%s1164_s0 + $0xc] ss:$16 sps:$4 sm:$0xff]   ;;  %447 = vmatprep.mubr.bf16.mxu0 %v912_v33  ;;  %v916_v36 = vld [vmem:[%s1164_s0 + $0x24] ss:$16 sps:$4 sm:$0xff]   ;;  %v920_v38 = vld [vmem:[%s1164_s0 + $0x20] ss:$16 sps:$4 sm:$0xff]  }
   0xf   :  { %512 = vmatprep.mubr.bf16.mxu1 %v915_v35  ;;  %v918_v37 = vld [vmem:[%s1164_s0 + $0x2c] ss:$16 sps:$4 sm:$0xff]   ;;  %v921_v39 = vld [vmem:[%s1164_s0 + $0x28] ss:$16 sps:$4 sm:$0xff]   ;;  %v922_v40 = vld [vmem:[%s1164_s0 + $0x44] ss:$16 sps:$4 sm:$0xff]  }
  0x10   :  { %804 = vmatpush3.bf16.msra.mxu0 %v892_v14  ;;  %v924_v41 = vld [vmem:[%s1164_s0 + $0x4c] ss:$16 sps:$4 sm:$0xff]   ;;  %v926_v42 = vld [vmem:[%s1164_s0 + $0x40] ss:$16 sps:$4 sm:$0xff]   ;;  %v927_v43 = vld [vmem:[%s1164_s0 + $0x48] ss:$16 sps:$4 sm:$0xff]  }
  0x11   :  { %844 = vmatpush3.bf16.msra.mxu1 %v893_v15  ;;  %805 = vmatprep.subr.bf16.mxu0 %v894_v16  ;;  %v928_v44 = vld [vmem:[%s1164_s0 + $0x64] ss:$16 sps:$4 sm:$0xff]   ;;  %v930_v45 = vld [vmem:[%s1164_s0 + $0x6c] ss:$16 sps:$4 sm:$0xff]   ;;  %v932_v46 = vld [vmem:[%s1164_s0 + $0x60] ss:$16 sps:$4 sm:$0xff]  }
  0x12   :  { %845 = vmatprep.subr.bf16.mxu1 %v895_v17  ;;  %v933_v47 = vld [vmem:[%s1164_s0 + $0x68] ss:$16 sps:$4 sm:$0xff]  }
  0x14   :  { %806 = vmatpush3.bf16.msra.mxu0 %v896_v18 }
  0x15   :  { %846 = vmatpush3.bf16.msra.mxu1 %v897_v19  ;;  %807 = vmatprep.subr.bf16.mxu0 %v898_v20 }
  0x16   :  { %847 = vmatprep.subr.bf16.mxu1 %v899_v21 }
  0x18   :  { %808 = vmatpush3.bf16.msra.mxu0 %v900_v22 }
  0x19   :  { %848 = vmatpush3.bf16.msra.mxu1 %v901_v23  ;;  %809 = vmatprep.subr.bf16.mxu0 %v902_v24 }
  0x1a   :  { %849 = vmatprep.subr.bf16.mxu1 %v903_v25 }
  0x1c   :  { %810 = vmatpush3.bf16.msra.mxu0 %v904_v26 }
  0x1d   :  { %850 = vmatpush3.bf16.msra.mxu1 %v905_v27  ;;  %811 = vmatprep.subr.bf16.mxu0 %v906_v28 }
  0x1e   :  { %851 = vmatprep.subr.bf16.mxu1 %v907_v29 }
  0x20   :  { %812 = vmatpush3.bf16.msra.mxu0 %v908_v30 }
  0x21   :  { %852 = vmatpush3.bf16.msra.mxu1 %v909_v31 }
  0x23   :  { %448 = vmatmul.mubr.bf16.vlgmr.msra.gmra.mrb[0].mxu0 %v910_v32 }
  0x24   :  { %513 = vmatmul.mubr.bf16.vlgmr.msra.gmra.mrb[0].mxu1 %v913_v34  ;;  %455 = vmatprep.mubr.bf16.mxu0 %v916_v36 }
  0x25   :  { %520 = vmatprep.mubr.bf16.mxu1 %v918_v37 }
  0x2b   :  { %456 = vmatmul.mubr.bf16.gmra.mrb[4].mxu0 %v920_v38 }
  0x2c   :  { %521 = vmatmul.mubr.bf16.gmra.mrb[4].mxu1 %v921_v39  ;;  %463 = vmatprep.mubr.bf16.mxu0 %v922_v40 }
  0x2d   :  { %528 = vmatprep.mubr.bf16.mxu1 %v924_v41 }
  0x33   :  { %464 = vmatmul.mubr.bf16.gmra.mrb[8].mxu0 %v926_v42 }
  0x34   :  { %529 = vmatmul.mubr.bf16.gmra.mrb[8].mxu1 %v927_v43  ;;  %471 = vmatprep.mubr.bf16.mxu0 %v928_v44 }
  0x35   :  { %536 = vmatprep.mubr.bf16.mxu1 %v930_v45 }
  0x3b   :  { %472 = vmatmul.mubr.bf16.gmra.mrb[12].mxu0 %v932_v46 }
  0x3c   :  { %537 = vmatmul.mubr.bf16.gmra.mrb[12].mxu1 %v933_v47 }
  0xf6   :  { %v813_v48 = vpop.f32.mrb[0].mxu0 }
  0xf7   :  { %v853_v49 = vpop.f32.mrb[0].mxu1  ;;  %v814_v50 = vpop.f32.mrb[1].mxu0 }
  0xf8   :  { %v815_v51 = vadd.f32 %v814_v50, %v813_v48  ;;  %v854_v52 = vpop.f32.mrb[1].mxu1  ;;  %v816_v53 = vpop.f32.mrb[2].mxu0 }
  0xf9   :  { %v855_v54 = vadd.f32 %v854_v52, %v853_v49  ;;  %v856_v55 = vpop.f32.mrb[2].mxu1  ;;  %v817_v56 = vpop.f32.mrb[3].mxu0 }
  0xfa   :  { %v818_v57 = vadd.f32 %v817_v56, %v816_v53  ;;  %v857_v58 = vpop.f32.mrb[3].mxu1 }
  0xfb   :  { %v515_v59 = vadd.f32 %v855_v54, %v815_v51  ;;  %v858_v60 = vadd.f32 %v857_v58, %v856_v55 }
  0xfd   :  { %v518_v61 = vadd.f32 %v858_v60, %v818_v57  ;;  %593 = vadd.xlane.f32.xlu0 %v515_v59  ;;  %v633_v13 = vmul.f32 %v515_v59, %v515_v59 }
  0xfe   :  { %v819_v62 = vpop.f32.mrb[4].mxu0 }
  0xff   :  { %v777_v63 = vpack.c.bf16 %v518_v61, %v515_v59  ;;  %v859_v0 = vpop.f32.mrb[4].mxu1  ;;  %v820_v1 = vpop.f32.mrb[5].mxu0  ;;  %v634_v2 = vmul.f32 %v518_v61, %v518_v61 }
 0x100   :  { %v821_v3 = vadd.f32 %v820_v1, %v819_v62  ;;  %v860_v4 = vpop.f32.mrb[5].mxu1  ;;  %v822_v5 = vpop.f32.mrb[6].mxu0 }
 0x101   :  { %778 = vst [vmem:[%s1165_s2] sm:$0xff] %v777_v63   ;;  %v861_v6 = vadd.f32 %v860_v4, %v859_v0  ;;  %v862_v7 = vpop.f32.mrb[6].mxu1  ;;  %643 = vadd.xlane.f32.xlu1 %v634_v2  ;;  %595 = vadd.xlane.f32.xlu0 %v518_v61  ;;  %v823_v8 = vpop.f32.mrb[7].mxu0 }
 0x102   :  { %v824_v9 = vadd.f32 %v823_v8, %v822_v5  ;;  %v863_v10 = vpop.f32.mrb[7].mxu1 }
 0x103   :  { %v523_v11 = vadd.f32 %v861_v6, %v821_v3  ;;  %v864_v12 = vadd.f32 %v863_v10, %v862_v7 }
 0x105   :  { %v526_v14 = vadd.f32 %v864_v12, %v824_v9  ;;  %597 = vadd.xlane.f32.xlu1 %v523_v11  ;;  %641 = vadd.xlane.f32.xlu0 %v633_v13  ;;  %v635_v19 = vmul.f32 %v523_v11, %v523_v11 }
 0x106   :  { %v825_v15 = vpop.f32.mrb[8].mxu0 }
 0x107   :  { %v782_v16 = vpack.c.bf16 %v526_v14, %v523_v11  ;;  %v865_v17 = vpop.f32.mrb[8].mxu1  ;;  %v826_v18 = vpop.f32.mrb[9].mxu0  ;;  %v636_v30 = vmul.f32 %v526_v14, %v526_v14 }
 0x108   :  { %v827_v20 = vadd.f32 %v826_v18, %v825_v15  ;;  %v866_v21 = vpop.f32.mrb[9].mxu1  ;;  %v828_v22 = vpop.f32.mrb[10].mxu0 }
 0x109   :  { %794 = vst [vmem:[%s1165_s2 + $0x8] sm:$0xff] %v782_v16   ;;  %v867_v23 = vadd.f32 %v866_v21, %v865_v17  ;;  %v868_v24 = vpop.f32.mrb[10].mxu1  ;;  %599 = vadd.xlane.f32.xlu1 %v526_v14  ;;  %645 = vadd.xlane.f32.xlu0 %v635_v19  ;;  %v829_v25 = vpop.f32.mrb[11].mxu0 }
 0x10a   :  { %v830_v26 = vadd.f32 %v829_v25, %v828_v22  ;;  %v869_v27 = vpop.f32.mrb[11].mxu1 }
 0x10b   :  { %v531_v28 = vadd.f32 %v867_v23, %v827_v20  ;;  %v870_v29 = vadd.f32 %v869_v27, %v868_v24 }
 0x10d   :  { %v534_v31 = vadd.f32 %v870_v29, %v830_v26  ;;  %647 = vadd.xlane.f32.xlu1 %v636_v30  ;;  %601 = vadd.xlane.f32.xlu0 %v531_v28  ;;  %v637_v32 = vmul.f32 %v531_v28, %v531_v28 }
 0x10e   :  { %v831_v33 = vpop.f32.mrb[12].mxu0 }
 0x10f   :  { %v787_v34 = vpack.c.bf16 %v534_v31, %v531_v28  ;;  %v871_v35 = vpop.f32.mrb[12].mxu1  ;;  %v832_v36 = vpop.f32.mrb[13].mxu0  ;;  %v638_v47 = vmul.f32 %v534_v31, %v534_v31 }
 0x110   :  { %v833_v37 = vadd.f32 %v832_v36, %v831_v33  ;;  %v872_v38 = vpop.f32.mrb[13].mxu1  ;;  %v834_v39 = vpop.f32.mrb[14].mxu0 }
 0x111   :  { %795 = vst [vmem:[%s1165_s2 + $0x10] sm:$0xff] %v787_v34   ;;  %v873_v40 = vadd.f32 %v872_v38, %v871_v35  ;;  %v874_v41 = vpop.f32.mrb[14].mxu1  ;;  %603 = vadd.xlane.f32.xlu1 %v534_v31  ;;  %649 = vadd.xlane.f32.xlu0 %v637_v32  ;;  %v835_v42 = vpop.f32.mrb[15].mxu0 }
 0x112   :  { %v836_v43 = vadd.f32 %v835_v42, %v834_v39  ;;  %v875_v44 = vpop.f32.mrb[15].mxu1 }
 0x113   :  { %v539_v45 = vadd.f32 %v873_v40, %v833_v37  ;;  %v876_v46 = vadd.f32 %v875_v44, %v874_v41 }
 0x115   :  { %v542_v48 = vadd.f32 %v876_v46, %v836_v43  ;;  %651 = vadd.xlane.f32.xlu1 %v638_v47  ;;  %605 = vadd.xlane.f32.xlu0 %v539_v45  ;;  %v639_v49 = vmul.f32 %v539_v45, %v539_v45 }
 0x117   :  { %v792_v50 = vpack.c.bf16 %v542_v48, %v539_v45  ;;  %v640_v51 = vmul.f32 %v542_v48, %v542_v48 }
 0x119   :  { %796 = vst [vmem:[%s1165_s2 + $0x18] sm:$0xff] %v792_v50   ;;  %607 = vadd.xlane.f32.xlu1 %v542_v48  ;;  %653 = vadd.xlane.f32.xlu0 %v639_v49 }
 0x11d   :  { %655 = vadd.xlane.f32.xlu1 %v640_v51 }
 0x18a   :  { %v594_v52 = vpop.xlane.xlu0 %593 }
 0x18b   :  { %617 = vst [vmem:[%s1166_s3] sm:$0xff] %v594_v52 }
 0x18e   :  { %v644_v53 = vpop.xlane.xlu1 %643  ;;  %v596_v54 = vpop.xlane.xlu0 %595 }
 0x18f   :  { %666 = vst [vmem:[%s1167_s4 + $0x8] sm:$0xff] %v644_v53  ;;  %618 = vst [vmem:[%s1166_s3 + $0x8] sm:$0xff] %v596_v54 }
 0x192   :  { %v598_v55 = vpop.xlane.xlu1 %597  ;;  %v642_v56 = vpop.xlane.xlu0 %641 }
 0x193   :  { %619 = vst [vmem:[%s1166_s3 + $0x10] sm:$0xff] %v598_v55  ;;  %665 = vst [vmem:[%s1167_s4] sm:$0xff] %v642_v56 }
 0x196   :  { %v600_v57 = vpop.xlane.xlu1 %599  ;;  %v646_v58 = vpop.xlane.xlu0 %645 }
 0x197   :  { %620 = vst [vmem:[%s1166_s3 + $0x18] sm:$0xff] %v600_v57  ;;  %667 = vst [vmem:[%s1167_s4 + $0x10] sm:$0xff] %v646_v58 }
 0x19a   :  { %v648_v59 = vpop.xlane.xlu1 %647  ;;  %v602_v60 = vpop.xlane.xlu0 %601 }
 0x19b   :  { %668 = vst [vmem:[%s1167_s4 + $0x18] sm:$0xff] %v648_v59  ;;  %621 = vst [vmem:[%s1166_s3 + $0x20] sm:$0xff] %v602_v60 }
 0x19e   :  { %v604_v61 = vpop.xlane.xlu1 %603  ;;  %v650_v62 = vpop.xlane.xlu0 %649 }
 0x19f   :  { %622 = vst [vmem:[%s1166_s3 + $0x28] sm:$0xff] %v604_v61  ;;  %669 = vst [vmem:[%s1167_s4 + $0x20] sm:$0xff] %v650_v62 }
 0x1a2   :  { %v652_v63 = vpop.xlane.xlu1 %651  ;;  %v606_v0 = vpop.xlane.xlu0 %605 }
 0x1a3   :  { %670 = vst [vmem:[%s1167_s4 + $0x28] sm:$0xff] %v652_v63  ;;  %623 = vst [vmem:[%s1166_s3 + $0x30] sm:$0xff] %v606_v0 }
 0x1a6   :  { %v608_v1 = vpop.xlane.xlu1 %607  ;;  %v654_v2 = vpop.xlane.xlu0 %653 }
 0x1a7   :  { %624 = vst [vmem:[%s1166_s3 + $0x38] sm:$0xff] %v608_v1  ;;  %671 = vst [vmem:[%s1167_s4 + $0x30] sm:$0xff] %v654_v2 }
 0x1aa   :  { %v656_v3 = vpop.xlane.xlu1 %655 }
 0x1ab   :  { %672 = vst [vmem:[%s1167_s4 + $0x38] sm:$0xff] %v656_v3 }

// kernel: discriminator_forward.14
= control target key start
LH: loop header
LB: loop body
LE: loop exit
PB: predicated region body
PF: predicated region fallthrough
CT: control target
= control target key end

     0   :  { %v421_v16 = vmov 0   ;;  %s612_s1 = inlined_call_operand.vmem [shape: f32[64,128], index: 1, kind: input, shape index: {}]   ;;  %s613_s2 = inlined_call_operand.vmem [shape: f32[64,128], index: 2, kind: input, shape index: {}]   ;;  %s614_s3 = inlined_call_operand.vmem [shape: f32[64,1], index: 3, kind: input, shape index: {}]   ;;  %s615_s4 = inlined_call_operand.vmem [shape: f32[64,1], index: 4, kind: input, shape index: {}]   ;;  %s616_s0 = inlined_call_operand.vmem [shape: bf16[64,128], index: 0, kind: input, shape index: {}]   ;;  %s617_s5 = inlined_call_operand.vmem [shape: bf16[64,128], index: 5, kind: output, shape index: {}]  }
   0x1   :  { %v22_v0 = vld [vmem:[%s612_s1 + $0x10] sm:$0xff]  ;;  %v20_v1 = vld [vmem:[%s612_s1] sm:$0xff]  ;;  %v23_v2 = vld [vmem:[%s612_s1 + $0x18] sm:$0xff]  ;;  %404 = vset.pattern.permute.xlu1 %v421_v16  ;;  %403 = vset.pattern.permute.xlu0 %v421_v16 }
   0x2   :  { %32 = vadd.xlane.f32.xlu1 %v22_v0  ;;  %28 = vadd.xlane.f32.xlu0 %v20_v1  ;;  %v21_v3 = vld [vmem:[%s612_s1 + $0x8] sm:$0xff]  ;;  %v24_v5 = vld [vmem:[%s612_s1 + $0x20] sm:$0xff]  ;;  %v27_v6 = vld [vmem:[%s612_s1 + $0x38] sm:$0xff] }
   0x3   :  { %v25_v4 = vld [vmem:[%s612_s1 + $0x28] sm:$0xff]  ;;  %v26_v7 = vld [vmem:[%s612_s1 + $0x30] sm:$0xff]  ;;  %v52_v9 = vld [vmem:[%s613_s2] sm:$0xff] }
   0x4   :  { %v53_v8 = vld [vmem:[%s613_s2 + $0x8] sm:$0xff]  ;;  %v55_v10 = vld [vmem:[%s613_s2 + $0x18] sm:$0xff]  ;;  %v54_v11 = vld [vmem:[%s613_s2 + $0x10] sm:$0xff] }
   0x5   :  { %v57_v12 = vld [vmem:[%s613_s2 + $0x28] sm:$0xff]  ;;  %v56_v13 = vld [vmem:[%s613_s2 + $0x20] sm:$0xff]  ;;  %v59_v14 = vld [vmem:[%s613_s2 + $0x38] sm:$0xff] }
   0x6   :  { %34 = vadd.xlane.f32.xlu1 %v23_v2  ;;  %30 = vadd.xlane.f32.xlu0 %v21_v3  ;;  %v58_v15 = vld [vmem:[%s613_s2 + $0x30] sm:$0xff] }
   0xa   :  { %38 = vadd.xlane.f32.xlu1 %v25_v4  ;;  %36 = vadd.xlane.f32.xlu0 %v24_v5 }
   0xe   :  { %42 = vadd.xlane.f32.xlu1 %v27_v6  ;;  %40 = vadd.xlane.f32.xlu0 %v26_v7 }
  0x12   :  { %62 = vadd.xlane.f32.xlu1 %v53_v8  ;;  %60 = vadd.xlane.f32.xlu0 %v52_v9 }
  0x16   :  { %66 = vadd.xlane.f32.xlu1 %v55_v10  ;;  %64 = vadd.xlane.f32.xlu0 %v54_v11 }
  0x1a   :  { %70 = vadd.xlane.f32.xlu1 %v57_v12  ;;  %68 = vadd.xlane.f32.xlu0 %v56_v13 }
  0x1e   :  { %74 = vadd.xlane.f32.xlu1 %v59_v14  ;;  %72 = vadd.xlane.f32.xlu0 %v58_v15  ;;  %v125_v14 = vld [vmem:[%s614_s3 + $0x8] sm:$0xff]  ;;  %v124_v15 = vld [vmem:[%s614_s3] sm:$0xff] }
  0x8f   :  { %v33_v17 = vpop.xlane.xlu1 %32  ;;  %v29_v18 = vpop.xlane.xlu0 %28 }
  0x90   :  { %v500_v25 = vmul.f32 6.1035156e-05, %v29_v18  ;;  %v504_v27 = vmul.f32 6.1035156e-05, %v33_v17 }
  0x92   :  { %v84_v31 = vmul.f32 %v500_v25, %v500_v25  ;;  %v86_v37 = vmul.f32 %v504_v27, %v504_v27 }
  0x93   :  { %v35_v19 = vpop.xlane.xlu1 %34  ;;  %v31_v20 = vpop.xlane.xlu0 %30 }
  0x94   :  { %v502_v26 = vmul.f32 6.1035156e-05, %v31_v20  ;;  %v506_v28 = vmul.f32 6.1035156e-05, %v35_v19 }
  0x96   :  { %v85_v32 = vmul.f32 %v502_v26, %v502_v26  ;;  %v87_v38 = vmul.f32 %v506_v28, %v506_v28 }
  0x97   :  { %v39_v21 = vpop.xlane.xlu1 %38  ;;  %v37_v22 = vpop.xlane.xlu0 %36 }
  0x98   :  { %v516_v39 = vmul.f32 6.1035156e-05, %v39_v21  ;;  %v518_v46 = vmul.f32 6.1035156e-05, %v37_v22  ;;  %v141_v22 = vld [vmem:[%s615_s4 + $0x8] sm:$0xff] }
  0x9a   :  { %v89_v51 = vmul.f32 %v516_v39, %v516_v39  ;;  %v88_v58 = vmul.f32 %v518_v46, %v518_v46 }
  0x9b   :  { %v43_v23 = vpop.xlane.xlu1 %42  ;;  %v41_v24 = vpop.xlane.xlu0 %40 }
  0x9c   :  { %v522_v52 = vmul.f32 6.1035156e-05, %v43_v23  ;;  %v526_v59 = vmul.f32 6.1035156e-05, %v41_v24  ;;  %v127_v23 = vld [vmem:[%s614_s3 + $0x18] sm:$0xff] }
  0x9e   :  { %v91_v0 = vmul.f32 %v522_v52, %v522_v52  ;;  %v90_v7 = vmul.f32 %v526_v59, %v526_v59 }
  0x9f   :  { %v63_v29 = vpop.xlane.xlu1 %62  ;;  %v61_v30 = vpop.xlane.xlu0 %60 }
  0xa0   :  { %v77_v33 = vmul.f32 6.1035156e-05, %v63_v29  ;;  %v76_v34 = vmul.f32 6.1035156e-05, %v61_v30  ;;  %v126_v29 = vld [vmem:[%s614_s3 + $0x10] sm:$0xff] }
  0xa2   :  { %v93_v35 = vsub.f32 %v77_v33, %v85_v32  ;;  %v92_v36 = vsub.f32 %v76_v34, %v84_v31 }
  0xa3   :  { %v67_v40 = vpop.xlane.xlu1 %66  ;;  %v65_v41 = vpop.xlane.xlu0 %64 }
  0xa4   :  { %v101_v42 = vmax.f32 %v93_v35, 0.0  ;;  %v100_v43 = vmax.f32 %v92_v36, 0.0  ;;  %v79_v44 = vmul.f32 6.1035156e-05, %v67_v40  ;;  %v78_v45 = vmul.f32 6.1035156e-05, %v65_v41  ;;  %v143_v36 = vld [vmem:[%s615_s4 + $0x18] sm:$0xff] }
  0xa6   :  { %v109_v47 = vadd.f32 1e-05, %v101_v42  ;;  %v108_v48 = vadd.f32 1e-05, %v100_v43  ;;  %v95_v49 = vsub.f32 %v79_v44, %v87_v38  ;;  %v94_v50 = vsub.f32 %v78_v45, %v86_v37  ;;  %v129_v37 = vld [vmem:[%s614_s3 + $0x28] sm:$0xff]  ;;  %v131_v43 = vld [vmem:[%s614_s3 + $0x38] sm:$0xff] }
  0xa7   :  { %v71_v53 = vpop.xlane.xlu1 %70  ;;  %v69_v54 = vpop.xlane.xlu0 %68  ;;  %v145_v42 = vld [vmem:[%s615_s4 + $0x28] sm:$0xff] }
  0xa8   :  { %405 = vrsqrt.f32 %v109_v47  ;;  %v103_v55 = vmax.f32 %v95_v49, 0.0  ;;  %v102_v56 = vmax.f32 %v94_v50, 0.0  ;;  %v81_v57 = vmul.f32 6.1035156e-05, %v71_v53 }
  0xa9   :  { %407 = vrsqrt.f32 %v108_v48  ;;  %v80_v60 = vmul.f32 6.1035156e-05, %v69_v54 }
  0xaa   :  { %v111_v61 = vadd.f32 1e-05, %v103_v55  ;;  %v110_v62 = vadd.f32 1e-05, %v102_v56  ;;  %v97_v63 = vsub.f32 %v81_v57, %v89_v51  ;;  %v147_v51 = vld [vmem:[%s615_s4 + $0x38] sm:$0xff]  ;;  %v130_v55 = vld [vmem:[%s614_s3 + $0x30] sm:$0xff] }
  0xab   :  { %v96_v1 = vsub.f32 %v80_v60, %v88_v58  ;;  %v75_v2 = vpop.xlane.xlu1 %74  ;;  %v73_v3 = vpop.xlane.xlu0 %72  ;;  %v140_v58 = vld [vmem:[%s615_s4] sm:$0xff] }
  0xac   :  { %409 = vrsqrt.f32 %v111_v61  ;;  %v105_v4 = vmax.f32 %v97_v63, 0.0  ;;  %v83_v5 = vmul.f32 6.1035156e-05, %v75_v2  ;;  %v82_v6 = vmul.f32 6.1035156e-05, %v73_v3  ;;  %v142_v61 = vld [vmem:[%s615_s4 + $0x10] sm:$0xff] }
  0xad   :  { %411 = vrsqrt.f32 %v110_v62  ;;  %v104_v8 = vmax.f32 %v96_v1, 0.0 }
  0xae   :  { %v113_v9 = vadd.f32 1e-05, %v105_v4  ;;  %v99_v10 = vsub.f32 %v83_v5, %v91_v0  ;;  %v98_v12 = vsub.f32 %v82_v6, %v90_v7  ;;  %v361_v7 = vld [vmem:[%s616_s0] sm:$0xff]  }
  0xaf   :  { %v112_v11 = vadd.f32 1e-05, %v104_v8 }
  0xb0   :  { %413 = vrsqrt.f32 %v113_v9  ;;  %v107_v13 = vmax.f32 %v99_v10, 0.0  ;;  %v106_v19 = vmax.f32 %v98_v12, 0.0  ;;  %v363_v9 = vunpack.c.h.bf16 %v361_v7 }
  0xb1   :  { %415 = vrsqrt.f32 %v112_v11 }
  0xb2   :  { %v406_v16 = vpop.eup %405  ;;  %v115_v17 = vadd.f32 1e-05, %v107_v13  ;;  %v114_v32 = vadd.f32 1e-05, %v106_v19 }
  0xb3   :  { %v408_v18 = vpop.eup %407  ;;  %v133_v20 = vmul.f32 %v406_v16, %v125_v14  ;;  %v362_v14 = vunpack.c.l.bf16 %v361_v7 }
  0xb4   :  { %417 = vrsqrt.f32 %v115_v17  ;;  %v132_v21 = vmul.f32 %v408_v18, %v124_v15  ;;  %v397_v18 = vld [vmem:[%s616_s0 + $0x10] sm:$0xff]  }
  0xb5   :  { %187 = vperm.xlu1 %404, %v133_v20   ;;  %v149_v24 = vmul.f32 %v133_v20, %v502_v26  ;;  %419 = vrsqrt.f32 %v114_v32  ;;  %v371_v20 = vunpack.c.h.bf16 %v397_v18 }
  0xb6   :  { %v410_v30 = vpop.eup %409  ;;  %182 = vperm.xlu0 %403, %v132_v21   ;;  %v148_v57 = vmul.f32 %v132_v21, %v500_v25  ;;  %v144_v25 = vld [vmem:[%s615_s4 + $0x20] sm:$0xff] }
  0xb7   :  { %v412_v31 = vpop.eup %411  ;;  %v157_v33 = vsub.f32 %v141_v22, %v149_v24  ;;  %v135_v34 = vmul.f32 %v410_v30, %v127_v23 }
  0xb8   :  { %v134_v35 = vmul.f32 %v412_v31, %v126_v29  ;;  %v398_v29 = vld [vmem:[%s616_s0 + $0x18] sm:$0xff]  }
  0xb9   :  { %v151_v26 = vmul.f32 %v135_v34, %v506_v28  ;;  %v128_v28 = vld [vmem:[%s614_s3 + $0x20] sm:$0xff]  ;;  %v375_v32 = vunpack.c.h.bf16 %v398_v29 }
  0xba   :  { %v414_v38 = vpop.eup %413  ;;  %235 = vperm.xlu0 %403, %v157_v33   ;;  %192 = vperm.xlu1 %404, %v134_v35   ;;  %v150_v60 = vmul.f32 %v134_v35, %v504_v27  ;;  %v146_v27 = vld [vmem:[%s615_s4 + $0x30] sm:$0xff] }
  0xbb   :  { %v159_v40 = vsub.f32 %v143_v36, %v151_v26  ;;  %v137_v41 = vmul.f32 %v414_v38, %v129_v37  ;;  %v416_v44 = vpop.eup %415  ;;  %v370_v36 = vunpack.c.l.bf16 %v397_v18 }
  0xbc   :  { %v136_v50 = vmul.f32 %v416_v44, %v128_v28  ;;  %v158_v62 = vsub.f32 %v142_v61, %v150_v60 }
  0xbd   :  { %v153_v45 = vmul.f32 %v137_v41, %v516_v39 }
  0xbe   :  { %v418_v47 = vpop.eup %417  ;;  %245 = vperm.xlu0 %403, %v159_v40   ;;  %197 = vperm.xlu1 %404, %v135_v34   ;;  %v152_v63 = vmul.f32 %v136_v50, %v518_v46 }
  0xbf   :  { %v161_v48 = vsub.f32 %v145_v42, %v153_v45  ;;  %v139_v49 = vmul.f32 %v418_v47, %v131_v43  ;;  %v420_v39 = vpop.eup %419  ;;  %v374_v47 = vunpack.c.l.bf16 %v398_v29 }
  0xc0   :  { %v138_v56 = vmul.f32 %v420_v39, %v130_v55  ;;  %v160_v0 = vsub.f32 %v144_v25, %v152_v63 }
  0xc1   :  { %v155_v53 = vmul.f32 %v139_v49, %v522_v52  ;;  %v156_v52 = vsub.f32 %v140_v58, %v148_v57 }
  0xc2   :  { %255 = vperm.xlu0 %403, %v161_v48   ;;  %202 = vperm.xlu1 %404, %v136_v50   ;;  %v154_v1 = vmul.f32 %v138_v56, %v526_v59  ;;  %v396_v59 = vld [vmem:[%s616_s0 + $0x8] sm:$0xff]  }
  0xc3   :  { %v163_v54 = vsub.f32 %v147_v51, %v155_v53  ;;  %v367_v11 = vunpack.c.h.bf16 %v396_v59  ;;  %v366_v22 = vunpack.c.l.bf16 %v396_v59 }
  0xc4   :  { %v162_v2 = vsub.f32 %v146_v27, %v154_v1 }
  0xc6   :  { %265 = vperm.xlu0 %403, %v163_v54   ;;  %207 = vperm.xlu1 %404, %v137_v41  }
  0xca   :  { %212 = vperm.xlu1 %404, %v138_v56  }
  0xce   :  { %217 = vperm.xlu1 %404, %v139_v49  }
  0xd2   :  { %230 = vperm.xlu1 %404, %v156_v52  }
  0xd6   :  { %240 = vperm.xlu1 %404, %v158_v62  }
  0xda   :  { %250 = vperm.xlu1 %404, %v160_v0  }
  0xde   :  { %260 = vperm.xlu1 %404, %v162_v2  }
 0x134   :  { %v188_v3 = vpop.permute.xlu1 %187 }
 0x135   :  { %v183_v6 = vpop.permute.xlu0 %182  ;;  %v221_v13 = vmul.f32 %v363_v9, %v188_v3 }
 0x136   :  { %v220_v21 = vmul.f32 %v362_v14, %v183_v6 }
 0x139   :  { %v193_v4 = vpop.permute.xlu1 %192  ;;  %v236_v10 = vpop.permute.xlu0 %235 }
 0x13a   :  { %v269_v15 = vadd.f32 %v236_v10, %v221_v13  ;;  %v222_v35 = vmul.f32 %v366_v22, %v193_v4 }
 0x13c   :  { %v285_v23 = vmul.f32 0.2, %v269_v15  ;;  %vm277_vm0 = vcmp.gt.f32.partialorder %v269_v15, 0.0 }
 0x13d   :  { %v198_v5 = vpop.permute.xlu1 %197  ;;  %v246_v17 = vpop.permute.xlu0 %245 }
 0x13e   :  { %v223_v16 = vmul.f32 %v367_v11, %v198_v5  ;;  %v293_v26 = vsel %vm277_vm0, %v269_v15, %v285_v23 }
 0x140   :  { %v271_v24 = vadd.f32 %v246_v17, %v223_v16 }
 0x141   :  { %v203_v46 = vpop.permute.xlu1 %202  ;;  %v256_v34 = vpop.permute.xlu0 %255 }
 0x142   :  { %vm279_vm2 = vcmp.gt.f32.partialorder %v271_v24, 0.0  ;;  %v287_v38 = vmul.f32 0.2, %v271_v24  ;;  %v224_v28 = vmul.f32 %v370_v36, %v203_v46 }
 0x144   :  { %v295_v49 = vsel %vm279_vm2, %v271_v24, %v287_v38 }
 0x145   :  { %v208_v8 = vpop.permute.xlu1 %207  ;;  %v266_v50 = vpop.permute.xlu0 %265 }
 0x146   :  { %v225_v31 = vmul.f32 %v371_v20, %v208_v8 }
 0x148   :  { %v273_v41 = vadd.f32 %v256_v34, %v225_v31 }
 0x149   :  { %v213_v12 = vpop.permute.xlu1 %212 }
 0x14a   :  { %v289_v53 = vmul.f32 0.2, %v273_v41  ;;  %vm281_vm4 = vcmp.gt.f32.partialorder %v273_v41, 0.0  ;;  %v226_v57 = vmul.f32 %v374_v47, %v213_v12 }
 0x14c   :  { %v297_v62 = vsel %vm281_vm4, %v273_v41, %v289_v53 }
 0x14d   :  { %v218_v19 = vpop.permute.xlu1 %217 }
 0x14e   :  { %v227_v42 = vmul.f32 %v375_v32, %v218_v19 }
 0x150   :  { %v275_v54 = vadd.f32 %v266_v50, %v227_v42 }
 0x151   :  { %v231_v30 = vpop.permute.xlu1 %230 }
 0x152   :  { %v268_v33 = vadd.f32 %v231_v30, %v220_v21  ;;  %v291_v60 = vmul.f32 0.2, %v275_v54  ;;  %vm283_vm6 = vcmp.gt.f32.partialorder %v275_v54, 0.0 }
 0x154   :  { %vm276_vm1 = vcmp.gt.f32.partialorder %v268_v33, 0.0  ;;  %v284_v37 = vmul.f32 0.2, %v268_v33  ;;  %v299_v27 = vsel %vm283_vm6, %v275_v54, %v291_v60 }
 0x155   :  { %v241_v40 = vpop.permute.xlu1 %240 }
 0x156   :  { %v292_v43 = vsel %vm276_vm1, %v268_v33, %v284_v37  ;;  %v270_v44 = vadd.f32 %v241_v40, %v222_v35 }
 0x157   :  { %v379_v45 = vpack.c.bf16 %v293_v26, %v292_v43 }
 0x158   :  { %vm278_vm3 = vcmp.gt.f32.partialorder %v270_v44, 0.0  ;;  %v286_v48 = vmul.f32 0.2, %v270_v44 }
 0x159   :  { %380 = vst [vmem:[%s617_s5] sm:$0xff] %v379_v45   ;;  %v251_v51 = vpop.permute.xlu1 %250 }
 0x15a   :  { %v294_v39 = vsel %vm278_vm3, %v270_v44, %v286_v48  ;;  %v272_v55 = vadd.f32 %v251_v51, %v224_v28 }
 0x15b   :  { %v384_v56 = vpack.c.bf16 %v295_v49, %v294_v39 }
 0x15c   :  { %vm280_vm5 = vcmp.gt.f32.partialorder %v272_v55, 0.0  ;;  %v288_v58 = vmul.f32 0.2, %v272_v55 }
 0x15d   :  { %399 = vst [vmem:[%s617_s5 + $0x8] sm:$0xff] %v384_v56   ;;  %v261_v52 = vpop.permute.xlu1 %260 }
 0x15e   :  { %v296_v61 = vsel %vm280_vm5, %v272_v55, %v288_v58  ;;  %v274_v63 = vadd.f32 %v261_v52, %v226_v57 }
 0x15f   :  { %v389_v25 = vpack.c.bf16 %v297_v62, %v296_v61 }
 0x160   :  { %vm282_vm7 = vcmp.gt.f32.partialorder %v274_v63, 0.0  ;;  %v290_v0 = vmul.f32 0.2, %v274_v63 }
 0x161   :  { %400 = vst [vmem:[%s617_s5 + $0x10] sm:$0xff] %v389_v25  }
 0x162   :  { %v298_v1 = vsel %vm282_vm7, %v274_v63, %v290_v0 }
 0x163   :  { %v394_v2 = vpack.c.bf16 %v299_v27, %v298_v1 }
 0x165   :  { %401 = vst [vmem:[%s617_s5 + $0x18] sm:$0xff] %v394_v2  }

// kernel: discriminator_forward.15
= control target key start
LH: loop header
LB: loop body
LE: loop exit
PB: predicated region body
PF: predicated region fallthrough
CT: control target
= control target key end

     0   :  { %v216_v1 = vlaneseq  ;;  %v4695_v10 = vmov 1983009808   ;;  %vm4266_vm0 = vcmask 1041408   ;;  %vm4682_vm1 = vcmask 1024   ;;  %s7637_s2 = inlined_call_operand.<no memory space> [shape: f32[1,1], index: 2, kind: input, shape index: {}]   ;;  %s7638_s1 = inlined_call_operand.vmem [shape: bf16[1,25600], index: 1, kind: input, shape index: {}]   ;;  %s7639_s0 = inlined_call_operand.vmem [shape: bf16[2,25600], index: 0, kind: input, shape index: {}]   ;;  %s7640_s3 = inlined_call_operand.vmem [shape: f32[2,1], index: 3, kind: output, shape index: {}]  }
   0x1   :  { %v8_v0 = vstv %s7637_s2  ;;  %v95_v2 = vld [vmem:[%s7638_s1 + $0x20] sm:$0xff]  ;;  %v96_v4 = vld [vmem:[%s7638_s1 + $0x28] sm:$0xff]  ;;  %v97_v8 = vld [vmem:[%s7638_s1 + $0x30] sm:$0xff]  ;;  %v4744_v11 = vunpack.c.l.s4 %v4695_v10 }
   0x2   :  { %9 = vst [vmem:[#allocation2] sm:$0x1] %v8_v0  ;;  %v4722_v3 = vshrl.u32 %v216_v1, 7  ;;  %v4730_v5 = vld [vmem:[%s7639_s0 + $0x20] sm:$0xff]  ;;  %v4735_v6 = vld [vmem:[%s7639_s0 + $0x28] sm:$0xff]  ;;  %v4737_v7 = vunpack.c.l.bf16 %v95_v2  ;;  %v4742_v9 = vunpack.c.h.bf16 %v95_v2  ;;  %v4746_v12 = vunpack.c.l.bf16 %v96_v4  ;;  %v98_v19 = vld [vmem:[%s7638_s1 + $0x38] sm:$0xff] }
   0x3   :  { %7738 = vst [vmem:[#allocation3_spill] sm:$0xff] %v4730_v5  ;;  %7739 = vst [vmem:[#allocation4_spill] sm:$0xff] %v4735_v6  ;;  %v4763_v20 = vunpack.c.h.bf16 %v96_v4  ;;  %v4765_v21 = vunpack.c.l.bf16 %v97_v8  ;;  %v99_v25 = vld [vmem:[%s7638_s1 + $0x40] sm:$0xff]  ;;  %v4776_v26 = vunpack.c.h.bf16 %v97_v8  ;;  %v4784_v30 = vunpack.c.l.bf16 %v98_v19  ;;  %v100_v34 = vld [vmem:[%s7638_s1 + $0x48] sm:$0xff] }
   0x4   :  { %v4749_v13 = vsub.s32 2, %v4722_v3  ;;  %v4752_v14 = vsub.s32 4, %v4722_v3  ;;  %v4755_v15 = vsub.s32 6, %v4722_v3  ;;  %v4795_v35 = vunpack.c.h.bf16 %v98_v19  ;;  %v101_v43 = vld [vmem:[%s7638_s1 + $0x50] sm:$0xff]  ;;  %v102_v52 = vld [vmem:[%s7638_s1 + $0x58] sm:$0xff]  ;;  %v103_v61 = vld [vmem:[%s7638_s1 + $0x60] sm:$0xff] }
   0x5   :  { %v4803_v39 = vunpack.c.l.bf16 %v99_v25  ;;  %v4814_v44 = vunpack.c.h.bf16 %v99_v25  ;;  %v4822_v48 = vunpack.c.l.bf16 %v100_v34  ;;  %v4833_v53 = vunpack.c.h.bf16 %v100_v34  ;;  %v104_v19 = vld [vmem:[%s7638_s1 + $0x68] sm:$0xff]  ;;  %v105_v34 = vld [vmem:[%s7638_s1 + $0x70] sm:$0xff]  ;;  %v106_v18 = vld [vmem:[%s7638_s1 + $0x78] sm:$0xff] }
   0x6   :  { %7740 = vst [vmem:[#allocation5_spill] sm:$0xff] %v4749_v13  ;;  %7741 = vst [vmem:[#allocation6_spill] sm:$0xff] %v4752_v14  ;;  %v4841_v57 = vunpack.c.l.bf16 %v101_v43  ;;  %v4852_v62 = vunpack.c.h.bf16 %v101_v43  ;;  %v4860_v2 = vunpack.c.l.bf16 %v102_v52  ;;  %v4871_v25 = vunpack.c.h.bf16 %v102_v52  ;;  %v107_v16 = vld [vmem:[%s7638_s1 + $0x80] sm:$0xff]  ;;  %v108_v52 = vld [vmem:[%s7638_s1 + $0x88] sm:$0xff] }
   0x7   :  { %7742 = vst [vmem:[#allocation7_spill] sm:$0xff] %v4755_v15  ;;  %v4879_v17 = vunpack.c.l.bf16 %v103_v61  ;;  %v4890_v8 = vunpack.c.h.bf16 %v103_v61  ;;  %v4898_v4 = vunpack.c.l.bf16 %v104_v19  ;;  %v4909_v1 = vunpack.c.h.bf16 %v104_v19  ;;  %v109_v61 = vld [vmem:[%s7638_s1 + $0x90] sm:$0xff]  ;;  %v110_v19 = vld [vmem:[%s7638_s1 + $0x98] sm:$0xff]  ;;  %v5140_v32 = vld [vmem:[%s7639_s0 + $0x40] sm:$0xff] }
   0x8   :  { %v4917_v0 = vunpack.c.l.bf16 %v105_v34  ;;  %v4928_v63 = vunpack.c.h.bf16 %v105_v34  ;;  %v4936_v60 = vunpack.c.l.bf16 %v106_v18  ;;  %v4947_v59 = vunpack.c.h.bf16 %v106_v18  ;;  %v111_v34 = vld [vmem:[%s7638_s1 + $0xa0] sm:$0xff]  ;;  %v112_v18 = vld [vmem:[%s7638_s1 + $0xa8] sm:$0xff]  ;;  %7745 = vst [vmem:[#allocation10_spill] sm:$0xff] %v5140_v32  ;;  %v5157_v31 = vld [vmem:[%s7639_s0 + $0x50] sm:$0xff] }
   0x9   :  { %v4955_v58 = vunpack.c.l.bf16 %v107_v16  ;;  %v4966_v56 = vunpack.c.h.bf16 %v107_v16  ;;  %v4974_v55 = vunpack.c.l.bf16 %v108_v52  ;;  %v4985_v54 = vunpack.c.h.bf16 %v108_v52  ;;  %v113_v16 = vld [vmem:[%s7638_s1 + $0xb0] sm:$0xff]  ;;  %v114_v52 = vld [vmem:[%s7638_s1 + $0xb8] sm:$0xff]  ;;  %v5145_v33 = vld [vmem:[%s7639_s0 + $0x48] sm:$0xff]  ;;  %7747 = vst [vmem:[#allocation12_spill] sm:$0xff] %v5157_v31 }
   0xa   :  { %v4993_v51 = vunpack.c.l.bf16 %v109_v61  ;;  %v5004_v50 = vunpack.c.h.bf16 %v109_v61  ;;  %v5012_v49 = vunpack.c.l.bf16 %v110_v19  ;;  %v5023_v47 = vunpack.c.h.bf16 %v110_v19  ;;  %v115_v61 = vld [vmem:[%s7638_s1 + $0xc0] sm:$0xff]  ;;  %7746 = vst [vmem:[#allocation11_spill] sm:$0xff] %v5145_v33  ;;  %v5162_v29 = vld [vmem:[%s7639_s0 + $0x58] sm:$0xff]  ;;  %v5179_v27 = vld [vmem:[%s7639_s0 + $0x68] sm:$0xff] }
   0xb   :  { %v5031_v46 = vunpack.c.l.bf16 %v111_v34  ;;  %v5042_v45 = vunpack.c.h.bf16 %v111_v34  ;;  %v5050_v42 = vunpack.c.l.bf16 %v112_v18  ;;  %v5061_v41 = vunpack.c.h.bf16 %v112_v18  ;;  %v5107_v18 = vld [vmem:[%s7639_s0 + $0x30] sm:$0xff]  ;;  %7748 = vst [vmem:[#allocation13_spill] sm:$0xff] %v5162_v29  ;;  %v5174_v28 = vld [vmem:[%s7639_s0 + $0x60] sm:$0xff]  ;;  %7750 = vst [vmem:[#allocation15_spill] sm:$0xff] %v5179_v27 }
   0xc   :  { %v5069_v40 = vunpack.c.l.bf16 %v113_v16  ;;  %v5080_v38 = vunpack.c.h.bf16 %v113_v16  ;;  %v5088_v37 = vunpack.c.l.bf16 %v114_v52  ;;  %v5096_v36 = vunpack.c.h.bf16 %v114_v52  ;;  %7743 = vst [vmem:[#allocation8_spill] sm:$0xff] %v5107_v18  ;;  %v5128_v52 = vld [vmem:[%s7639_s0 + $0x38] sm:$0xff]  ;;  %7749 = vst [vmem:[#allocation14_spill] sm:$0xff] %v5174_v28  ;;  %v5191_v24 = vld [vmem:[%s7639_s0 + $0x70] sm:$0xff] }
   0xd   :  { %v5109_v10 = vunpack.c.l.bf16 %v115_v61  ;;  %v5117_v43 = vunpack.c.h.bf16 %v115_v61  ;;  %7744 = vst [vmem:[#allocation9_spill] sm:$0xff] %v5128_v52  ;;  %7751 = vst [vmem:[#allocation16_spill] sm:$0xff] %v5191_v24  ;;  %v5200_v19 = vld [vmem:[%s7639_s0 + $0x78] sm:$0xff]  ;;  %v5205_v34 = vld [vmem:[%s7639_s0 + $0x80] sm:$0xff]  ;;  %v2220_v23 = vunpack.c.0.s8 %v4744_v11  ;;  %v5247_v52 = vsub.s32 0, %v4722_v3 }
   0xe   :  { %7752 = vst [vmem:[#allocation17_spill] sm:$0xff] %v5200_v19  ;;  %7753 = vst [vmem:[#allocation18_spill] sm:$0xff] %v5205_v34  ;;  %v5214_v18 = vld [vmem:[%s7639_s0 + $0x88] sm:$0xff]  ;;  %v5219_v32 = vld [vmem:[%s7639_s0 + $0x90] sm:$0xff] }
   0xf   :  { %7754 = vst [vmem:[#allocation19_spill] sm:$0xff] %v5214_v18  ;;  %7755 = vst [vmem:[#allocation20_spill] sm:$0xff] %v5219_v32  ;;  %v5228_v16 = vld [vmem:[%s7639_s0 + $0x98] sm:$0xff]  ;;  %v5233_v31 = vld [vmem:[%s7639_s0 + $0xa0] sm:$0xff]  ;;  %v347_v5 = vrot.slane %v4737_v7, %v5247_v52  ;;  %v363_v15 = vrot.slane %v4742_v9, %v5247_v52  ;;  %v5259_v33 = vsub.s32 %v2220_v23, %v4722_v3 }
  0x10   :  { %7756 = vst [vmem:[#allocation21_spill] sm:$0xff] %v5228_v16  ;;  %7757 = vst [vmem:[#allocation22_spill] sm:$0xff] %v5233_v31  ;;  %v379_v61 = vrot.slane %v4746_v12, %v5247_v52  ;;  %v395_v11 = vrot.slane %v4763_v20, %v5247_v52  ;;  %v411_v28 = vrot.slane %v4765_v21, %v5247_v52  ;;  %v7761_v32 = vld [vmem:[#allocation7_spill] sm:$0xff] }
  0x11   :  { %7758 = vst [vmem:[#allocation23_spill] sm:$0xff] %v5247_v52  ;;  %v427_v29 = vrot.slane %v4776_v26, %v5247_v52  ;;  %v443_v22 = vrot.slane %v4784_v30, %v5247_v52  ;;  %v5342_v6 = vrot.slane %v347_v5, %v5247_v52  ;;  %v7759_v3 = vrot.slane %v4737_v7, %v4749_v13 }
  0x12   :  { %v7760_v31 = vrot.slane %v4737_v7, %v4752_v14  ;;  %v7762_v34 = vrot.slane %v4737_v7, %v7761_v32  ;;  %v5363_v5 = vrot.slane %v363_v15, %v5247_v52  ;;  %v7766_v7 = vrot.slane %v4742_v9, %v7761_v32 }
  0x13   :  { %v5348_v23 = vrot.slane %v7759_v3, %v5247_v52  ;;  %v7763_v3 = vrot.slane %v4742_v9, %v4749_v13  ;;  %v5384_v15 = vrot.slane %v379_v61, %v5247_v52  ;;  %v5405_v61 = vrot.slane %v395_v11, %v5247_v52 }
  0x14   :  { %v5354_v16 = vrot.slane %v7760_v31, %v5247_v52  ;;  %v5360_v18 = vrot.slane %v7762_v34, %v5247_v52  ;;  %v7764_v31 = vrot.slane %v4742_v9, %v4752_v14  ;;  %v5381_v34 = vrot.slane %v7766_v7, %v5247_v52 }
  0x15   :  { %v5369_v19 = vrot.slane %v7763_v3, %v5247_v52  ;;  %7767 = vst [vmem:[#allocation25_spill] sm:$0xff] %v5384_v15  ;;  %v7768_v3 = vrot.slane %v4746_v12, %v4749_v13  ;;  %v7771_v9 = vrot.slane %v4746_v12, %v7761_v32  ;;  %7772 = vst [vmem:[#allocation27_spill] sm:$0xff] %v5405_v61 }
  0x16   :  { %v5375_v24 = vrot.slane %v7764_v31, %v5247_v52  ;;  %v7769_v31 = vrot.slane %v4746_v12, %v4752_v14  ;;  %v7776_v12 = vrot.slane %v4763_v20, %v7761_v32  ;;  %v5426_v11 = vrot.slane %v411_v28, %v5247_v52 }
  0x17   :  { %v5390_v27 = vrot.slane %v7768_v3, %v5247_v52  ;;  %v5402_v7 = vrot.slane %v7771_v9, %v5247_v52  ;;  %v7773_v3 = vrot.slane %v4763_v20, %v4749_v13  ;;  %v5447_v28 = vrot.slane %v427_v29, %v5247_v52 }
  0x18   :  { %7765 = vst [vmem:[#allocation24_spill] sm:$0xff] %v5375_v24  ;;  %v5396_v24 = vrot.slane %v7769_v31, %v5247_v52  ;;  %v7774_v31 = vrot.slane %v4763_v20, %v4752_v14  ;;  %v5423_v9 = vrot.slane %v7776_v12, %v5247_v52  ;;  %7777 = vst [vmem:[#allocation29_spill] sm:$0xff] %v5426_v11 }
  0x19   :  { %v5411_v15 = vrot.slane %v7773_v3, %v5247_v52  ;;  %v7778_v3 = vrot.slane %v4765_v21, %v4749_v13  ;;  %v7781_v20 = vrot.slane %v4765_v21, %v7761_v32  ;;  %7782 = vst [vmem:[#allocation31_spill] sm:$0xff] %v5447_v28  ;;  %v5468_v29 = vrot.slane %v443_v22, %v5247_v52 }
  0x1a   :  { %7770 = vst [vmem:[#allocation26_spill] sm:$0xff] %v5396_v24  ;;  %v5417_v24 = vrot.slane %v7774_v31, %v5247_v52  ;;  %v7779_v31 = vrot.slane %v4765_v21, %v4752_v14  ;;  %v7786_v21 = vrot.slane %v4776_v26, %v7761_v32  ;;  %v7793_v22 = vrot.slane %v4795_v35, %v5247_v52 }
  0x1b   :  { %v5432_v61 = vrot.slane %v7778_v3, %v5247_v52  ;;  %v5444_v12 = vrot.slane %v7781_v20, %v5247_v52  ;;  %v7783_v3 = vrot.slane %v4776_v26, %v4749_v13  ;;  %7787 = vst [vmem:[#allocation33_spill] sm:$0xff] %v5468_v29 }
  0x1c   :  { %7775 = vst [vmem:[#allocation28_spill] sm:$0xff] %v5417_v24  ;;  %v5438_v24 = vrot.slane %v7779_v31, %v5247_v52  ;;  %v7784_v31 = vrot.slane %v4776_v26, %v4752_v14  ;;  %v5465_v20 = vrot.slane %v7786_v21, %v5247_v52  ;;  %v7792_v26 = vrot.slane %v4784_v30, %v7761_v32 }
  0x1d   :  { %v5453_v11 = vrot.slane %v7783_v3, %v5247_v52  ;;  %v7788_v3 = vrot.slane %v4784_v30, %v4749_v13  ;;  %v5492_v29 = vrot.slane %v7793_v22, %v5247_v52  ;;  %v7800_v22 = vrot.slane %v4803_v39, %v5247_v52 }
  0x1e   :  { %7780 = vst [vmem:[#allocation30_spill] sm:$0xff] %v5438_v24  ;;  %v5459_v24 = vrot.slane %v7784_v31, %v5247_v52  ;;  %v7790_v31 = vrot.slane %v4784_v30, %v4752_v14  ;;  %v5486_v21 = vrot.slane %v7792_v26, %v5247_v52  ;;  %v7799_v30 = vrot.slane %v4795_v35, %v7761_v32 }
  0x1f   :  { %v5474_v28 = vrot.slane %v7788_v3, %v5247_v52  ;;  %7794 = vst [vmem:[#allocation36_spill] sm:$0xff] %v5492_v29  ;;  %v7795_v3 = vrot.slane %v4795_v35, %v4749_v13  ;;  %v5516_v29 = vrot.slane %v7800_v22, %v5247_v52  ;;  %v7807_v22 = vrot.slane %v4814_v44, %v5247_v52 }
  0x20   :  { %7785 = vst [vmem:[#allocation32_spill] sm:$0xff] %v5459_v24  ;;  %v5480_v24 = vrot.slane %v7790_v31, %v5247_v52  ;;  %v7797_v31 = vrot.slane %v4795_v35, %v4752_v14  ;;  %v5510_v26 = vrot.slane %v7799_v30, %v5247_v52  ;;  %v7806_v35 = vrot.slane %v4803_v39, %v7761_v32 }
  0x21   :  { %7789 = vst [vmem:[#allocation34_spill] sm:$0xff] %v5474_v28  ;;  %v5498_v28 = vrot.slane %v7795_v3, %v5247_v52  ;;  %7801 = vst [vmem:[#allocation39_spill] sm:$0xff] %v5516_v29  ;;  %v7802_v3 = vrot.slane %v4803_v39, %v4749_v13  ;;  %v5540_v29 = vrot.slane %v7807_v22, %v5247_v52 }
  0x22   :  { %7791 = vst [vmem:[#allocation35_spill] sm:$0xff] %v5480_v24  ;;  %v5504_v24 = vrot.slane %v7797_v31, %v5247_v52  ;;  %v7804_v31 = vrot.slane %v4803_v39, %v4752_v14  ;;  %v5534_v30 = vrot.slane %v7806_v35, %v5247_v52  ;;  %v7813_v39 = vrot.slane %v4814_v44, %v7761_v32 }
  0x23   :  { %7796 = vst [vmem:[#allocation37_spill] sm:$0xff] %v5498_v28  ;;  %v5522_v28 = vrot.slane %v7802_v3, %v5247_v52  ;;  %7808 = vst [vmem:[#allocation42_spill] sm:$0xff] %v5540_v29  ;;  %v7809_v3 = vrot.slane %v4814_v44, %v4749_v13  ;;  %v7814_v22 = vrot.slane %v4822_v48, %v5247_v52 }
  0x24   :  { %7798 = vst [vmem:[#allocation38_spill] sm:$0xff] %v5504_v24  ;;  %v5528_v24 = vrot.slane %v7804_v31, %v5247_v52  ;;  %v7811_v31 = vrot.slane %v4814_v44, %v4752_v14  ;;  %v5558_v35 = vrot.slane %v7813_v39, %v5247_v52  ;;  %v7820_v44 = vrot.slane %v4822_v48, %v7761_v32 }
  0x25   :  { %7803 = vst [vmem:[#allocation40_spill] sm:$0xff] %v5522_v28  ;;  %v5546_v28 = vrot.slane %v7809_v3, %v5247_v52  ;;  %v5564_v29 = vrot.slane %v7814_v22, %v5247_v52  ;;  %v7816_v3 = vrot.slane %v4822_v48, %v4749_v13  ;;  %v7821_v22 = vrot.slane %v4833_v53, %v5247_v52 }
  0x26   :  { %7805 = vst [vmem:[#allocation41_spill] sm:$0xff] %v5528_v24  ;;  %v5552_v24 = vrot.slane %v7811_v31, %v5247_v52  ;;  %v7818_v31 = vrot.slane %v4822_v48, %v4752_v14  ;;  %v5582_v39 = vrot.slane %v7820_v44, %v5247_v52  ;;  %v7827_v48 = vrot.slane %v4833_v53, %v7761_v32 }
  0x27   :  { %7810 = vst [vmem:[#allocation43_spill] sm:$0xff] %v5546_v28  ;;  %7815 = vst [vmem:[#allocation45_spill] sm:$0xff] %v5564_v29  ;;  %v5570_v28 = vrot.slane %v7816_v3, %v5247_v52  ;;  %v5588_v29 = vrot.slane %v7821_v22, %v5247_v52  ;;  %v7823_v3 = vrot.slane %v4833_v53, %v4749_v13 }
  0x28   :  { %7812 = vst [vmem:[#allocation44_spill] sm:$0xff] %v5552_v24  ;;  %v5576_v24 = vrot.slane %v7818_v31, %v5247_v52  ;;  %v7825_v31 = vrot.slane %v4833_v53, %v4752_v14  ;;  %v5606_v44 = vrot.slane %v7827_v48, %v5247_v52  ;;  %v7828_v22 = vrot.slane %v4841_v57, %v5247_v52 }
  0x29   :  { %7817 = vst [vmem:[#allocation46_spill] sm:$0xff] %v5570_v28  ;;  %7822 = vst [vmem:[#allocation48_spill] sm:$0xff] %v5588_v29  ;;  %v5594_v28 = vrot.slane %v7823_v3, %v5247_v52  ;;  %v7830_v3 = vrot.slane %v4841_v57, %v4749_v13  ;;  %v7834_v53 = vrot.slane %v4841_v57, %v7761_v32 }
  0x2a   :  { %7819 = vst [vmem:[#allocation47_spill] sm:$0xff] %v5576_v24  ;;  %v5600_v24 = vrot.slane %v7825_v31, %v5247_v52  ;;  %v5612_v29 = vrot.slane %v7828_v22, %v5247_v52  ;;  %v7832_v31 = vrot.slane %v4841_v57, %v4752_v14  ;;  %v7835_v22 = vrot.slane %v4852_v62, %v5247_v52 }
  0x2b   :  { %7824 = vst [vmem:[#allocation49_spill] sm:$0xff] %v5594_v28  ;;  %v5618_v28 = vrot.slane %v7830_v3, %v5247_v52  ;;  %v5630_v48 = vrot.slane %v7834_v53, %v5247_v52  ;;  %v7837_v3 = vrot.slane %v4852_v62, %v4749_v13  ;;  %v7841_v57 = vrot.slane %v4852_v62, %v7761_v32 }
  0x2c   :  { %7826 = vst [vmem:[#allocation50_spill] sm:$0xff] %v5600_v24  ;;  %7829 = vst [vmem:[#allocation51_spill] sm:$0xff] %v5612_v29  ;;  %v5624_v24 = vrot.slane %v7832_v31, %v5247_v52  ;;  %v5636_v29 = vrot.slane %v7835_v22, %v5247_v52  ;;  %v7839_v31 = vrot.slane %v4852_v62, %v4752_v14 }
  0x2d   :  { %7831 = vst [vmem:[#allocation52_spill] sm:$0xff] %v5618_v28  ;;  %v5642_v28 = vrot.slane %v7837_v3, %v5247_v52  ;;  %v5654_v53 = vrot.slane %v7841_v57, %v5247_v52  ;;  %v7842_v22 = vrot.slane %v4860_v2, %v5247_v52  ;;  %v7844_v3 = vrot.slane %v4860_v2, %v4749_v13 }
  0x2e   :  { %7833 = vst [vmem:[#allocation53_spill] sm:$0xff] %v5624_v24  ;;  %7836 = vst [vmem:[#allocation54_spill] sm:$0xff] %v5636_v29  ;;  %v5648_v24 = vrot.slane %v7839_v31, %v5247_v52  ;;  %v7846_v31 = vrot.slane %v4860_v2, %v4752_v14  ;;  %v7848_v62 = vrot.slane %v4860_v2, %v7761_v32 }
  0x2f   :  { %7838 = vst [vmem:[#allocation55_spill] sm:$0xff] %v5642_v28  ;;  %v5660_v29 = vrot.slane %v7842_v22, %v5247_v52  ;;  %v5666_v28 = vrot.slane %v7844_v3, %v5247_v52  ;;  %v7849_v22 = vrot.slane %v4871_v25, %v5247_v52  ;;  %v7851_v3 = vrot.slane %v4871_v25, %v4749_v13 }
  0x30   :  { %7840 = vst [vmem:[#allocation56_spill] sm:$0xff] %v5648_v24  ;;  %v5672_v24 = vrot.slane %v7846_v31, %v5247_v52  ;;  %v5678_v57 = vrot.slane %v7848_v62, %v5247_v52  ;;  %v7853_v31 = vrot.slane %v4871_v25, %v4752_v14  ;;  %v7855_v2 = vrot.slane %v4871_v25, %v7761_v32 }
  0x31   :  { %7843 = vst [vmem:[#allocation57_spill] sm:$0xff] %v5660_v29  ;;  %7845 = vst [vmem:[#allocation58_spill] sm:$0xff] %v5666_v28  ;;  %v5684_v29 = vrot.slane %v7849_v22, %v5247_v52  ;;  %v5690_v28 = vrot.slane %v7851_v3, %v5247_v52  ;;  %v7856_v22 = vrot.slane %v4879_v17, %v5247_v52 }
  0x32   :  { %7847 = vst [vmem:[#allocation59_spill] sm:$0xff] %v5672_v24  ;;  %v5696_v24 = vrot.slane %v7853_v31, %v5247_v52  ;;  %v5702_v62 = vrot.slane %v7855_v2, %v5247_v52  ;;  %v7858_v3 = vrot.slane %v4879_v17, %v4749_v13  ;;  %v7860_v31 = vrot.slane %v4879_v17, %v4752_v14 }
  0x33   :  { %7850 = vst [vmem:[#allocation60_spill] sm:$0xff] %v5684_v29  ;;  %7852 = vst [vmem:[#allocation61_spill] sm:$0xff] %v5690_v28  ;;  %v5708_v29 = vrot.slane %v7856_v22, %v5247_v52  ;;  %v7862_v25 = vrot.slane %v4879_v17, %v7761_v32  ;;  %v7863_v22 = vrot.slane %v4890_v8, %v5247_v52 }
  0x34   :  { %7854 = vst [vmem:[#allocation62_spill] sm:$0xff] %v5696_v24  ;;  %v5714_v28 = vrot.slane %v7858_v3, %v5247_v52  ;;  %v5720_v24 = vrot.slane %v7860_v31, %v5247_v52  ;;  %v7865_v3 = vrot.slane %v4890_v8, %v4749_v13  ;;  %v7867_v31 = vrot.slane %v4890_v8, %v4752_v14 }
  0x35   :  { %7857 = vst [vmem:[#allocation63_spill] sm:$0xff] %v5708_v29  ;;  %v5726_v2 = vrot.slane %v7862_v25, %v5247_v52  ;;  %v5732_v29 = vrot.slane %v7863_v22, %v5247_v52  ;;  %v7869_v17 = vrot.slane %v4890_v8, %v7761_v32  ;;  %v7870_v22 = vrot.slane %v4898_v4, %v5247_v52 }
  0x36   :  { %7859 = vst [vmem:[#allocation64_spill] sm:$0xff] %v5714_v28  ;;  %7861 = vst [vmem:[#allocation65_spill] sm:$0xff] %v5720_v24  ;;  %v5738_v28 = vrot.slane %v7865_v3, %v5247_v52  ;;  %v5744_v24 = vrot.slane %v7867_v31, %v5247_v52  ;;  %v7872_v3 = vrot.slane %v4898_v4, %v4749_v13 }
  0x37   :  { %7864 = vst [vmem:[#allocation66_spill] sm:$0xff] %v5732_v29  ;;  %v5750_v25 = vrot.slane %v7869_v17, %v5247_v52  ;;  %v5756_v29 = vrot.slane %v7870_v22, %v5247_v52  ;;  %v7874_v31 = vrot.slane %v4898_v4, %v4752_v14  ;;  %v7876_v8 = vrot.slane %v4898_v4, %v7761_v32 }
  0x38   :  { %7866 = vst [vmem:[#allocation67_spill] sm:$0xff] %v5738_v28  ;;  %7868 = vst [vmem:[#allocation68_spill] sm:$0xff] %v5744_v24  ;;  %v5762_v28 = vrot.slane %v7872_v3, %v5247_v52  ;;  %v7877_v22 = vrot.slane %v4909_v1, %v5247_v52  ;;  %v7879_v3 = vrot.slane %v4909_v1, %v4749_v13 }
  0x39   :  { %7871 = vst [vmem:[#allocation69_spill] sm:$0xff] %v5756_v29  ;;  %v5768_v24 = vrot.slane %v7874_v31, %v5247_v52  ;;  %v5774_v17 = vrot.slane %v7876_v8, %v5247_v52  ;;  %v7881_v31 = vrot.slane %v4909_v1, %v4752_v14  ;;  %v7883_v4 = vrot.slane %v4909_v1, %v7761_v32 }
  0x3a   :  { %7873 = vst [vmem:[#allocation70_spill] sm:$0xff] %v5762_v28  ;;  %v5780_v29 = vrot.slane %v7877_v22, %v5247_v52  ;;  %v5786_v28 = vrot.slane %v7879_v3, %v5247_v52  ;;  %v7884_v22 = vrot.slane %v4917_v0, %v5247_v52  ;;  %v7886_v3 = vrot.slane %v4917_v0, %v4749_v13 }
  0x3b   :  { %7875 = vst [vmem:[#allocation71_spill] sm:$0xff] %v5768_v24  ;;  %v5792_v24 = vrot.slane %v7881_v31, %v5247_v52  ;;  %v5798_v8 = vrot.slane %v7883_v4, %v5247_v52  ;;  %v7888_v31 = vrot.slane %v4917_v0, %v4752_v14  ;;  %v7890_v1 = vrot.slane %v4917_v0, %v7761_v32 }
  0x3c   :  { %7878 = vst [vmem:[#allocation72_spill] sm:$0xff] %v5780_v29  ;;  %7880 = vst [vmem:[#allocation73_spill] sm:$0xff] %v5786_v28  ;;  %v5804_v29 = vrot.slane %v7884_v22, %v5247_v52  ;;  %v5810_v28 = vrot.slane %v7886_v3, %v5247_v52  ;;  %v7891_v22 = vrot.slane %v4928_v63, %v5247_v52 }
  0x3d   :  { %7882 = vst [vmem:[#allocation74_spill] sm:$0xff] %v5792_v24  ;;  %v5816_v24 = vrot.slane %v7888_v31, %v5247_v52  ;;  %v5822_v4 = vrot.slane %v7890_v1, %v5247_v52  ;;  %v7893_v3 = vrot.slane %v4928_v63, %v4749_v13  ;;  %v7895_v31 = vrot.slane %v4928_v63, %v4752_v14 }
  0x3e   :  { %7885 = vst [vmem:[#allocation75_spill] sm:$0xff] %v5804_v29  ;;  %7887 = vst [vmem:[#allocation76_spill] sm:$0xff] %v5810_v28  ;;  %v5828_v29 = vrot.slane %v7891_v22, %v5247_v52  ;;  %v7897_v0 = vrot.slane %v4928_v63, %v7761_v32  ;;  %v7898_v22 = vrot.slane %v4936_v60, %v5247_v52 }
  0x3f   :  { %7889 = vst [vmem:[#allocation77_spill] sm:$0xff] %v5816_v24  ;;  %v5834_v28 = vrot.slane %v7893_v3, %v5247_v52  ;;  %v5840_v24 = vrot.slane %v7895_v31, %v5247_v52  ;;  %v7900_v3 = vrot.slane %v4936_v60, %v4749_v13  ;;  %v7902_v31 = vrot.slane %v4936_v60, %v4752_v14 }
  0x40   :  { %7892 = vst [vmem:[#allocation78_spill] sm:$0xff] %v5828_v29  ;;  %v5846_v1 = vrot.slane %v7897_v0, %v5247_v52  ;;  %v5852_v29 = vrot.slane %v7898_v22, %v5247_v52  ;;  %v7904_v63 = vrot.slane %v4936_v60, %v7761_v32  ;;  %v7905_v22 = vrot.slane %v4947_v59, %v5247_v52 }
  0x41   :  { %7894 = vst [vmem:[#allocation79_spill] sm:$0xff] %v5834_v28  ;;  %7896 = vst [vmem:[#allocation80_spill] sm:$0xff] %v5840_v24  ;;  %v5858_v28 = vrot.slane %v7900_v3, %v5247_v52  ;;  %v5864_v24 = vrot.slane %v7902_v31, %v5247_v52  ;;  %v7907_v3 = vrot.slane %v4947_v59, %v4749_v13 }
  0x42   :  { %7899 = vst [vmem:[#allocation81_spill] sm:$0xff] %v5852_v29  ;;  %v5870_v0 = vrot.slane %v7904_v63, %v5247_v52  ;;  %v5876_v29 = vrot.slane %v7905_v22, %v5247_v52  ;;  %v7909_v31 = vrot.slane %v4947_v59, %v4752_v14  ;;  %v7911_v60 = vrot.slane %v4947_v59, %v7761_v32 }
  0x43   :  { %7901 = vst [vmem:[#allocation82_spill] sm:$0xff] %v5858_v28  ;;  %7903 = vst [vmem:[#allocation83_spill] sm:$0xff] %v5864_v24  ;;  %v5882_v28 = vrot.slane %v7907_v3, %v5247_v52  ;;  %v7912_v22 = vrot.slane %v4955_v58, %v5247_v52  ;;  %v7914_v3 = vrot.slane %v4955_v58, %v4749_v13 }
  0x44   :  { %7906 = vst [vmem:[#allocation84_spill] sm:$0xff] %v5876_v29  ;;  %v5888_v24 = vrot.slane %v7909_v31, %v5247_v52  ;;  %v5894_v63 = vrot.slane %v7911_v60, %v5247_v52  ;;  %v7916_v31 = vrot.slane %v4955_v58, %v4752_v14  ;;  %v7918_v59 = vrot.slane %v4955_v58, %v7761_v32 }
  0x45   :  { %7908 = vst [vmem:[#allocation85_spill] sm:$0xff] %v5882_v28  ;;  %v5900_v29 = vrot.slane %v7912_v22, %v5247_v52  ;;  %v5906_v28 = vrot.slane %v7914_v3, %v5247_v52  ;;  %v7919_v22 = vrot.slane %v4966_v56, %v5247_v52  ;;  %v7921_v3 = vrot.slane %v4966_v56, %v4749_v13 }
  0x46   :  { %7910 = vst [vmem:[#allocation86_spill] sm:$0xff] %v5888_v24  ;;  %v5912_v24 = vrot.slane %v7916_v31, %v5247_v52  ;;  %v5918_v60 = vrot.slane %v7918_v59, %v5247_v52  ;;  %v7923_v31 = vrot.slane %v4966_v56, %v4752_v14  ;;  %v7925_v58 = vrot.slane %v4966_v56, %v7761_v32 }
  0x47   :  { %7913 = vst [vmem:[#allocation87_spill] sm:$0xff] %v5900_v29  ;;  %7915 = vst [vmem:[#allocation88_spill] sm:$0xff] %v5906_v28  ;;  %v5924_v29 = vrot.slane %v7919_v22, %v5247_v52  ;;  %v5930_v28 = vrot.slane %v7921_v3, %v5247_v52  ;;  %v7926_v22 = vrot.slane %v4974_v55, %v5247_v52 }
  0x48   :  { %7917 = vst [vmem:[#allocation89_spill] sm:$0xff] %v5912_v24  ;;  %v5936_v24 = vrot.slane %v7923_v31, %v5247_v52  ;;  %v5942_v59 = vrot.slane %v7925_v58, %v5247_v52  ;;  %v7928_v3 = vrot.slane %v4974_v55, %v4749_v13  ;;  %v7930_v31 = vrot.slane %v4974_v55, %v4752_v14 }
  0x49   :  { %7920 = vst [vmem:[#allocation90_spill] sm:$0xff] %v5924_v29  ;;  %7922 = vst [vmem:[#allocation91_spill] sm:$0xff] %v5930_v28  ;;  %v5948_v29 = vrot.slane %v7926_v22, %v5247_v52  ;;  %v7932_v56 = vrot.slane %v4974_v55, %v7761_v32  ;;  %v7933_v22 = vrot.slane %v4985_v54, %v5247_v52 }
  0x4a   :  { %7924 = vst [vmem:[#allocation92_spill] sm:$0xff] %v5936_v24  ;;  %v5954_v28 = vrot.slane %v7928_v3, %v5247_v52  ;;  %v5960_v24 = vrot.slane %v7930_v31, %v5247_v52  ;;  %v7935_v3 = vrot.slane %v4985_v54, %v4749_v13  ;;  %v7937_v31 = vrot.slane %v4985_v54, %v4752_v14 }
  0x4b   :  { %7927 = vst [vmem:[#allocation93_spill] sm:$0xff] %v5948_v29  ;;  %v5966_v58 = vrot.slane %v7932_v56, %v5247_v52  ;;  %v5972_v29 = vrot.slane %v7933_v22, %v5247_v52  ;;  %v7939_v55 = vrot.slane %v4985_v54, %v7761_v32  ;;  %v7940_v22 = vrot.slane %v4993_v51, %v5247_v52 }
  0x4c   :  { %7929 = vst [vmem:[#allocation94_spill] sm:$0xff] %v5954_v28  ;;  %7931 = vst [vmem:[#allocation95_spill] sm:$0xff] %v5960_v24  ;;  %v5978_v28 = vrot.slane %v7935_v3, %v5247_v52  ;;  %v5984_v24 = vrot.slane %v7937_v31, %v5247_v52  ;;  %v7942_v3 = vrot.slane %v4993_v51, %v4749_v13 }
  0x4d   :  { %7934 = vst [vmem:[#allocation96_spill] sm:$0xff] %v5972_v29  ;;  %v5990_v56 = vrot.slane %v7939_v55, %v5247_v52  ;;  %v5996_v29 = vrot.slane %v7940_v22, %v5247_v52  ;;  %v7944_v31 = vrot.slane %v4993_v51, %v4752_v14  ;;  %v7946_v54 = vrot.slane %v4993_v51, %v7761_v32 }
  0x4e   :  { %7936 = vst [vmem:[#allocation97_spill] sm:$0xff] %v5978_v28  ;;  %7938 = vst [vmem:[#allocation98_spill] sm:$0xff] %v5984_v24  ;;  %v6002_v28 = vrot.slane %v7942_v3, %v5247_v52  ;;  %v7947_v22 = vrot.slane %v5004_v50, %v5247_v52  ;;  %v7949_v3 = vrot.slane %v5004_v50, %v4749_v13 }
  0x4f   :  { %7941 = vst [vmem:[#allocation99_spill] sm:$0xff] %v5996_v29  ;;  %v6008_v24 = vrot.slane %v7944_v31, %v5247_v52  ;;  %v6014_v55 = vrot.slane %v7946_v54, %v5247_v52  ;;  %v7951_v31 = vrot.slane %v5004_v50, %v4752_v14  ;;  %v7953_v51 = vrot.slane %v5004_v50, %v7761_v32 }
  0x50   :  { %7943 = vst [vmem:[#allocation100_spill] sm:$0xff] %v6002_v28  ;;  %v6020_v29 = vrot.slane %v7947_v22, %v5247_v52  ;;  %v6026_v28 = vrot.slane %v7949_v3, %v5247_v52  ;;  %v7954_v22 = vrot.slane %v5012_v49, %v5247_v52  ;;  %v7956_v3 = vrot.slane %v5012_v49, %v4749_v13 }
  0x51   :  { %7945 = vst [vmem:[#allocation101_spill] sm:$0xff] %v6008_v24  ;;  %v6032_v24 = vrot.slane %v7951_v31, %v5247_v52  ;;  %v6038_v54 = vrot.slane %v7953_v51, %v5247_v52  ;;  %v7958_v31 = vrot.slane %v5012_v49, %v4752_v14  ;;  %v7960_v50 = vrot.slane %v5012_v49, %v7761_v32 }
  0x52   :  { %7948 = vst [vmem:[#allocation102_spill] sm:$0xff] %v6020_v29  ;;  %7950 = vst [vmem:[#allocation103_spill] sm:$0xff] %v6026_v28  ;;  %v6044_v29 = vrot.slane %v7954_v22, %v5247_v52  ;;  %v6050_v28 = vrot.slane %v7956_v3, %v5247_v52  ;;  %v7961_v22 = vrot.slane %v5023_v47, %v5247_v52 }
  0x53   :  { %7952 = vst [vmem:[#allocation104_spill] sm:$0xff] %v6032_v24  ;;  %v6056_v24 = vrot.slane %v7958_v31, %v5247_v52  ;;  %v6062_v51 = vrot.slane %v7960_v50, %v5247_v52  ;;  %v7963_v3 = vrot.slane %v5023_v47, %v4749_v13  ;;  %v7965_v31 = vrot.slane %v5023_v47, %v4752_v14 }
  0x54   :  { %7955 = vst [vmem:[#allocation105_spill] sm:$0xff] %v6044_v29  ;;  %7957 = vst [vmem:[#allocation106_spill] sm:$0xff] %v6050_v28  ;;  %v6068_v29 = vrot.slane %v7961_v22, %v5247_v52  ;;  %v7967_v49 = vrot.slane %v5023_v47, %v7761_v32  ;;  %v7968_v22 = vrot.slane %v5031_v46, %v5247_v52 }
  0x55   :  { %7959 = vst [vmem:[#allocation107_spill] sm:$0xff] %v6056_v24  ;;  %v6074_v28 = vrot.slane %v7963_v3, %v5247_v52  ;;  %v6080_v24 = vrot.slane %v7965_v31, %v5247_v52  ;;  %v7970_v3 = vrot.slane %v5031_v46, %v4749_v13  ;;  %v7972_v31 = vrot.slane %v5031_v46, %v4752_v14 }
  0x56   :  { %7962 = vst [vmem:[#allocation108_spill] sm:$0xff] %v6068_v29  ;;  %v6086_v50 = vrot.slane %v7967_v49, %v5247_v52  ;;  %v6092_v29 = vrot.slane %v7968_v22, %v5247_v52  ;;  %v7974_v47 = vrot.slane %v5031_v46, %v7761_v32  ;;  %v7975_v22 = vrot.slane %v5042_v45, %v5247_v52 }
  0x57   :  { %7964 = vst [vmem:[#allocation109_spill] sm:$0xff] %v6074_v28  ;;  %7966 = vst [vmem:[#allocation110_spill] sm:$0xff] %v6080_v24  ;;  %v6098_v28 = vrot.slane %v7970_v3, %v5247_v52  ;;  %v6104_v24 = vrot.slane %v7972_v31, %v5247_v52  ;;  %v7977_v3 = vrot.slane %v5042_v45, %v4749_v13 }
  0x58   :  { %7969 = vst [vmem:[#allocation111_spill] sm:$0xff] %v6092_v29  ;;  %v6110_v49 = vrot.slane %v7974_v47, %v5247_v52  ;;  %v6116_v29 = vrot.slane %v7975_v22, %v5247_v52  ;;  %v7979_v31 = vrot.slane %v5042_v45, %v4752_v14  ;;  %v7981_v46 = vrot.slane %v5042_v45, %v7761_v32 }
  0x59   :  { %7971 = vst [vmem:[#allocation112_spill] sm:$0xff] %v6098_v28  ;;  %7973 = vst [vmem:[#allocation113_spill] sm:$0xff] %v6104_v24  ;;  %v6122_v28 = vrot.slane %v7977_v3, %v5247_v52  ;;  %v7982_v22 = vrot.slane %v5050_v42, %v5247_v52  ;;  %v7984_v3 = vrot.slane %v5050_v42, %v4749_v13 }
  0x5a   :  { %7976 = vst [vmem:[#allocation114_spill] sm:$0xff] %v6116_v29  ;;  %v6128_v24 = vrot.slane %v7979_v31, %v5247_v52  ;;  %v6134_v47 = vrot.slane %v7981_v46, %v5247_v52  ;;  %v7986_v31 = vrot.slane %v5050_v42, %v4752_v14  ;;  %v7988_v45 = vrot.slane %v5050_v42, %v7761_v32 }
  0x5b   :  { %7978 = vst [vmem:[#allocation115_spill] sm:$0xff] %v6122_v28  ;;  %v6140_v29 = vrot.slane %v7982_v22, %v5247_v52  ;;  %v6146_v28 = vrot.slane %v7984_v3, %v5247_v52  ;;  %v7989_v22 = vrot.slane %v5061_v41, %v5247_v52  ;;  %v7991_v3 = vrot.slane %v5061_v41, %v4749_v13 }
  0x5c   :  { %7980 = vst [vmem:[#allocation116_spill] sm:$0xff] %v6128_v24  ;;  %v6152_v24 = vrot.slane %v7986_v31, %v5247_v52  ;;  %v6158_v46 = vrot.slane %v7988_v45, %v5247_v52  ;;  %v7993_v31 = vrot.slane %v5061_v41, %v4752_v14  ;;  %v7995_v42 = vrot.slane %v5061_v41, %v7761_v32 }
  0x5d   :  { %7983 = vst [vmem:[#allocation117_spill] sm:$0xff] %v6140_v29  ;;  %7985 = vst [vmem:[#allocation118_spill] sm:$0xff] %v6146_v28  ;;  %v6164_v29 = vrot.slane %v7989_v22, %v5247_v52  ;;  %v6170_v28 = vrot.slane %v7991_v3, %v5247_v52  ;;  %v7996_v22 = vrot.slane %v5069_v40, %v5247_v52 }
  0x5e   :  { %7987 = vst [vmem:[#allocation119_spill] sm:$0xff] %v6152_v24  ;;  %v6176_v24 = vrot.slane %v7993_v31, %v5247_v52  ;;  %v6182_v45 = vrot.slane %v7995_v42, %v5247_v52  ;;  %v7998_v3 = vrot.slane %v5069_v40, %v4749_v13  ;;  %v8000_v31 = vrot.slane %v5069_v40, %v4752_v14 }
  0x5f   :  { %7990 = vst [vmem:[#allocation120_spill] sm:$0xff] %v6164_v29  ;;  %7992 = vst [vmem:[#allocation121_spill] sm:$0xff] %v6170_v28  ;;  %v6188_v29 = vrot.slane %v7996_v22, %v5247_v52  ;;  %v8002_v41 = vrot.slane %v5069_v40, %v7761_v32  ;;  %v8003_v22 = vrot.slane %v5080_v38, %v5247_v52 }
  0x60   :  { %7994 = vst [vmem:[#allocation122_spill] sm:$0xff] %v6176_v24  ;;  %v6194_v28 = vrot.slane %v7998_v3, %v5247_v52  ;;  %v6200_v24 = vrot.slane %v8000_v31, %v5247_v52  ;;  %v8005_v3 = vrot.slane %v5080_v38, %v4749_v13  ;;  %v8007_v31 = vrot.slane %v5080_v38, %v4752_v14 }
  0x61   :  { %7997 = vst [vmem:[#allocation123_spill] sm:$0xff] %v6188_v29  ;;  %v6206_v42 = vrot.slane %v8002_v41, %v5247_v52  ;;  %v6212_v29 = vrot.slane %v8003_v22, %v5247_v52  ;;  %v8009_v40 = vrot.slane %v5080_v38, %v7761_v32  ;;  %v8010_v22 = vrot.slane %v5088_v37, %v5247_v52 }
  0x62   :  { %7999 = vst [vmem:[#allocation124_spill] sm:$0xff] %v6194_v28  ;;  %8001 = vst [vmem:[#allocation125_spill] sm:$0xff] %v6200_v24  ;;  %v6218_v28 = vrot.slane %v8005_v3, %v5247_v52  ;;  %v6224_v24 = vrot.slane %v8007_v31, %v5247_v52  ;;  %v8012_v3 = vrot.slane %v5088_v37, %v4749_v13 }
  0x63   :  { %8004 = vst [vmem:[#allocation126_spill] sm:$0xff] %v6212_v29  ;;  %v6230_v41 = vrot.slane %v8009_v40, %v5247_v52  ;;  %v6236_v29 = vrot.slane %v8010_v22, %v5247_v52  ;;  %v8014_v31 = vrot.slane %v5088_v37, %v4752_v14  ;;  %v8016_v38 = vrot.slane %v5088_v37, %v7761_v32 }
  0x64   :  { %8006 = vst [vmem:[#allocation127_spill] sm:$0xff] %v6218_v28  ;;  %8008 = vst [vmem:[#allocation128_spill] sm:$0xff] %v6224_v24  ;;  %v6242_v28 = vrot.slane %v8012_v3, %v5247_v52  ;;  %v8017_v22 = vrot.slane %v5096_v36, %v5247_v52  ;;  %v8019_v3 = vrot.slane %v5096_v36, %v4749_v13 }
  0x65   :  { %8011 = vst [vmem:[#allocation129_spill] sm:$0xff] %v6236_v29  ;;  %v6248_v24 = vrot.slane %v8014_v31, %v5247_v52  ;;  %v6254_v40 = vrot.slane %v8016_v38, %v5247_v52  ;;  %v8021_v31 = vrot.slane %v5096_v36, %v4752_v14  ;;  %v8023_v37 = vrot.slane %v5096_v36, %v7761_v32 }
  0x66   :  { %8013 = vst [vmem:[#allocation130_spill] sm:$0xff] %v6242_v28  ;;  %v6260_v29 = vrot.slane %v8017_v22, %v5247_v52  ;;  %v6266_v28 = vrot.slane %v8019_v3, %v5247_v52  ;;  %v8024_v22 = vrot.slane %v5109_v10, %v5247_v52  ;;  %v8026_v3 = vrot.slane %v5109_v10, %v4749_v13 }
  0x67   :  { %8015 = vst [vmem:[#allocation131_spill] sm:$0xff] %v6248_v24  ;;  %v6272_v24 = vrot.slane %v8021_v31, %v5247_v52  ;;  %v6278_v38 = vrot.slane %v8023_v37, %v5247_v52  ;;  %v8027_v31 = vrot.slane %v5109_v10, %v4752_v14  ;;  %v2352_v36 = vcombine.low %v5342_v6, %v5348_v23 }
  0x68   :  { %8018 = vst [vmem:[#allocation132_spill] sm:$0xff] %v6260_v29  ;;  %8020 = vst [vmem:[#allocation133_spill] sm:$0xff] %v6266_v28  ;;  %v6284_v29 = vrot.slane %v8024_v22, %v5247_v52  ;;  %v6290_v28 = vrot.slane %v8026_v3, %v5247_v52  ;;  %v8029_v37 = vrot.slane %v5109_v10, %v7761_v32 }
  0x69   :  { %8022 = vst [vmem:[#allocation134_spill] sm:$0xff] %v6272_v24  ;;  %v6296_v24 = vrot.slane %v8027_v31, %v5247_v52  ;;  %v8030_v3 = vrot.slane %v5117_v43, %v5247_v52  ;;  %v8032_v31 = vrot.slane %v5117_v43, %v4749_v13  ;;  %v2353_v6 = vcombine.low %v5354_v16, %v5360_v18 }
  0x6a   :  { %8025 = vst [vmem:[#allocation135_spill] sm:$0xff] %v6284_v29  ;;  %v6304_v22 = vrot.slane %v8029_v37, %v5247_v52  ;;  %v8033_v10 = vrot.slane %v5117_v43, %v4752_v14  ;;  %v6327_v37 = vrot.slane %v2352_v36, %v5259_v33  ;;  %v8038_v36 = vld [vmem:[#allocation26_spill] sm:$0xff] }
  0x6b   :  { %8028 = vst [vmem:[#allocation136_spill] sm:$0xff] %v6296_v24  ;;  %v6310_v29 = vrot.slane %v8030_v3, %v5247_v52  ;;  %v6316_v24 = vrot.slane %v8032_v31, %v5247_v52  ;;  %v2369_v3 = vcombine.low %v5363_v5, %v5369_v19  ;;  %v8036_v31 = vrot.slane %v5117_v43, %v7761_v32 }
  0x6c   :  { %v6324_v23 = vrot.slane %v8033_v10, %v5247_v52  ;;  %v6340_v16 = vrot.slane %v2353_v6, %v5259_v33  ;;  %v8037_v10 = vld [vmem:[#allocation25_spill] sm:$0xff]  ;;  %v8045_v6 = vld [vmem:[#allocation34_spill] sm:$0xff] }
  0x6d   :  { %8031 = vst [vmem:[#allocation137_spill] sm:$0xff] %v6310_v29  ;;  %v8035_v29 = vld [vmem:[#allocation24_spill] sm:$0xff]  ;;  %v6337_v18 = vrot.slane %v8036_v31, %v5247_v52  ;;  %v2386_v14 = vcombine.low %v8037_v10, %v5390_v27  ;;  %v6347_v19 = vrot.slane %v2369_v3, %v5259_v33  ;;  %v8041_v3 = vld [vmem:[#allocation29_spill] sm:$0xff] }
  0x6e   :  { %8034 = vst [vmem:[#allocation138_spill] sm:$0xff] %v6324_v23  ;;  %v2370_v13 = vcombine.low %v8035_v29, %v5381_v34  ;;  %v2387_v23 = vcombine.low %v8038_v36, %v5402_v7  ;;  %v8039_v34 = vld [vmem:[#allocation27_spill] sm:$0xff]  ;;  %v8040_v29 = vld [vmem:[#allocation28_spill] sm:$0xff]  ;;  %v2420_v10 = vcombine.low %v8041_v3, %v5432_v61  ;;  %v8042_v36 = vld [vmem:[#allocation30_spill] sm:$0xff] }
  0x6f   :  { %v2403_v43 = vcombine.low %v8039_v34, %v5411_v15  ;;  %v2404_v31 = vcombine.low %v8040_v29, %v5423_v9  ;;  %v6359_v27 = vrot.slane %v2386_v14, %v5259_v33  ;;  %v2421_v34 = vcombine.low %v8042_v36, %v5444_v12  ;;  %v8043_v61 = vld [vmem:[#allocation31_spill] sm:$0xff]  ;;  %v8044_v3 = vld [vmem:[#allocation32_spill] sm:$0xff]  ;;  %v8046_v12 = vld [vmem:[#allocation33_spill] sm:$0xff] }
  0x70   :  { %v6350_v5 = vrot.slane %v2370_v13, %v5259_v33  ;;  %v6362_v7 = vrot.slane %v2387_v23, %v5259_v33  ;;  %v6379_v23 = vrot.slane %v2420_v10, %v5259_v33  ;;  %v2437_v29 = vcombine.low %v8043_v61, %v5453_v11  ;;  %v8047_v14 = vld [vmem:[#allocation35_spill] sm:$0xff]  ;;  %v8050_v61 = vld [vmem:[#allocation37_spill] sm:$0xff] }
  0x71   :  { %v6369_v15 = vrot.slane %v2403_v43, %v5259_v33  ;;  %v6372_v9 = vrot.slane %v2404_v31, %v5259_v33  ;;  %v2438_v13 = vcombine.low %v8044_v3, %v5465_v20  ;;  %v6388_v31 = vrot.slane %v2421_v34, %v5259_v33  ;;  %v8051_v20 = vld [vmem:[#allocation36_spill] sm:$0xff]  ;;  %v8052_v43 = vld [vmem:[#allocation38_spill] sm:$0xff]  ;;  %v8058_v34 = vld [vmem:[#allocation43_spill] sm:$0xff] }
  0x72   :  { %v2454_v36 = vcombine.low %v8046_v12, %v8045_v6  ;;  %v2455_v32 = vcombine.low %v8047_v14, %v5486_v21  ;;  %v6395_v10 = vrot.slane %v2437_v29, %v5259_v33  ;;  %v2471_v3 = vcombine.low %v8051_v20, %v8050_v61  ;;  %v8054_v14 = vld [vmem:[#allocation40_spill] sm:$0xff]  ;;  %v8055_v29 = vld [vmem:[#allocation39_spill] sm:$0xff] }
  0x73   :  { %v6398_v11 = vrot.slane %v2438_v13, %v5259_v33  ;;  %v2472_v52 = vcombine.low %v8052_v43, %v5510_v26  ;;  %v2488_v12 = vcombine.low %v8055_v29, %v8054_v14  ;;  %v8057_v43 = vld [vmem:[#allocation41_spill] sm:$0xff]  ;;  %v8059_v14 = vld [vmem:[#allocation42_spill] sm:$0xff]  ;;  %v8060_v13 = vld [vmem:[#allocation44_spill] sm:$0xff] }
  0x74   :  { %8048 = vst [vmem:[#allocation24_spill] sm:$0xff] %v6395_v10  ;;  %v6407_v6 = vrot.slane %v2454_v36, %v5259_v33  ;;  %v6410_v21 = vrot.slane %v2455_v32, %v5259_v33  ;;  %v6417_v61 = vrot.slane %v2471_v3, %v5259_v33  ;;  %v2489_v20 = vcombine.low %v8057_v43, %v5534_v30  ;;  %v8061_v10 = vld [vmem:[#allocation46_spill] sm:$0xff]  ;;  %v8062_v30 = vld [vmem:[#allocation45_spill] sm:$0xff]  ;;  %v8063_v36 = vld [vmem:[#allocation47_spill] sm:$0xff] }
  0x75   :  { %8049 = vst [vmem:[#allocation25_spill] sm:$0xff] %v6398_v11  ;;  %v6420_v26 = vrot.slane %v2472_v52, %v5259_v33  ;;  %v6427_v32 = vrot.slane %v2488_v12, %v5259_v33  ;;  %v2505_v29 = vcombine.low %v8059_v14, %v8058_v34  ;;  %v2506_v11 = vcombine.low %v8060_v13, %v5558_v35  ;;  %v8066_v14 = vld [vmem:[#allocation49_spill] sm:$0xff]  ;;  %v8067_v35 = vld [vmem:[#allocation48_spill] sm:$0xff]  ;;  %v8068_v3 = vld [vmem:[#allocation50_spill] sm:$0xff] }
  0x76   :  { %8053 = vst [vmem:[#allocation26_spill] sm:$0xff] %v6410_v21  ;;  %v6436_v52 = vrot.slane %v2489_v20, %v5259_v33  ;;  %v2522_v43 = vcombine.low %v8062_v30, %v8061_v10  ;;  %v2523_v21 = vcombine.low %v8063_v36, %v5582_v39  ;;  %v2539_v13 = vcombine.low %v8067_v35, %v8066_v14  ;;  %v8070_v36 = vld [vmem:[#allocation52_spill] sm:$0xff]  ;;  %v8074_v20 = vld [vmem:[#allocation55_spill] sm:$0xff] }
  0x77   :  { %8056 = vst [vmem:[#allocation27_spill] sm:$0xff] %v6420_v26  ;;  %v6443_v12 = vrot.slane %v2505_v29, %v5259_v33  ;;  %v6446_v34 = vrot.slane %v2506_v11, %v5259_v33  ;;  %v2540_v26 = vcombine.low %v8068_v3, %v5606_v44  ;;  %v8071_v29 = vld [vmem:[#allocation51_spill] sm:$0xff]  ;;  %v8073_v3 = vld [vmem:[#allocation53_spill] sm:$0xff]  ;;  %v8076_v11 = vld [vmem:[#allocation56_spill] sm:$0xff] }
  0x78   :  { %v6455_v10 = vrot.slane %v2522_v43, %v5259_v33  ;;  %v6458_v39 = vrot.slane %v2523_v21, %v5259_v33  ;;  %v2556_v30 = vcombine.low %v8071_v29, %v8070_v36  ;;  %v6465_v14 = vrot.slane %v2539_v13, %v5259_v33  ;;  %v8075_v36 = vld [vmem:[#allocation54_spill] sm:$0xff]  ;;  %v8079_v43 = vld [vmem:[#allocation59_spill] sm:$0xff] }
  0x79   :  { %8064 = vst [vmem:[#allocation28_spill] sm:$0xff] %v6443_v12  ;;  %8065 = vst [vmem:[#allocation29_spill] sm:$0xff] %v6446_v34  ;;  %v6468_v44 = vrot.slane %v2540_v26, %v5259_v33  ;;  %v2557_v35 = vcombine.low %v8073_v3, %v5630_v48  ;;  %v2573_v29 = vcombine.low %v8075_v36, %v8074_v20  ;;  %v8077_v12 = vld [vmem:[#allocation58_spill] sm:$0xff]  ;;  %v8078_v48 = vld [vmem:[#allocation57_spill] sm:$0xff] }
  0x7a   :  { %8069 = vst [vmem:[#allocation30_spill] sm:$0xff] %v6458_v39  ;;  %v6475_v21 = vrot.slane %v2556_v30, %v5259_v33  ;;  %v2574_v34 = vcombine.low %v8076_v11, %v5654_v53  ;;  %v2590_v3 = vcombine.low %v8078_v48, %v8077_v12  ;;  %v2591_v39 = vcombine.low %v8079_v43, %v5678_v57  ;;  %v8082_v36 = vld [vmem:[#allocation61_spill] sm:$0xff]  ;;  %v8083_v53 = vld [vmem:[#allocation60_spill] sm:$0xff]  ;;  %v8084_v13 = vld [vmem:[#allocation62_spill] sm:$0xff] }
  0x7b   :  { %8072 = vst [vmem:[#allocation31_spill] sm:$0xff] %v6468_v44  ;;  %v6484_v26 = vrot.slane %v2557_v35, %v5259_v33  ;;  %v6491_v30 = vrot.slane %v2573_v29, %v5259_v33  ;;  %v2607_v11 = vcombine.low %v8083_v53, %v8082_v36  ;;  %v2608_v44 = vcombine.low %v8084_v13, %v5702_v62  ;;  %v8086_v43 = vld [vmem:[#allocation64_spill] sm:$0xff]  ;;  %v8087_v29 = vld [vmem:[#allocation63_spill] sm:$0xff]  ;;  %v8089_v13 = vld [vmem:[#allocation65_spill] sm:$0xff] }
  0x7c   :  { %v6494_v20 = vrot.slane %v2574_v34, %v5259_v33  ;;  %v6503_v12 = vrot.slane %v2590_v3, %v5259_v33  ;;  %v6506_v57 = vrot.slane %v2591_v39, %v5259_v33  ;;  %v2624_v48 = vcombine.low %v8087_v29, %v8086_v43  ;;  %v8090_v35 = vld [vmem:[#allocation67_spill] sm:$0xff]  ;;  %v8091_v43 = vld [vmem:[#allocation66_spill] sm:$0xff]  ;;  %v8092_v34 = vld [vmem:[#allocation68_spill] sm:$0xff] }
  0x7d   :  { %8080 = vst [vmem:[#allocation32_spill] sm:$0xff] %v6491_v30  ;;  %v6513_v36 = vrot.slane %v2607_v11, %v5259_v33  ;;  %v6516_v62 = vrot.slane %v2608_v44, %v5259_v33  ;;  %v2625_v53 = vcombine.low %v8089_v13, %v5726_v2  ;;  %v2641_v29 = vcombine.low %v8091_v43, %v8090_v35  ;;  %v8093_v30 = vld [vmem:[#allocation70_spill] sm:$0xff]  ;;  %v8094_v2 = vld [vmem:[#allocation69_spill] sm:$0xff]  ;;  %v8095_v3 = vld [vmem:[#allocation71_spill] sm:$0xff] }
  0x7e   :  { %8081 = vst [vmem:[#allocation34_spill] sm:$0xff] %v6494_v20  ;;  %8085 = vst [vmem:[#allocation33_spill] sm:$0xff] %v6506_v57  ;;  %v6523_v39 = vrot.slane %v2624_v48, %v5259_v33  ;;  %v2642_v20 = vcombine.low %v8092_v34, %v5750_v25  ;;  %v2658_v13 = vcombine.low %v8094_v2, %v8093_v30  ;;  %v8098_v43 = vld [vmem:[#allocation73_spill] sm:$0xff]  ;;  %v8099_v25 = vld [vmem:[#allocation72_spill] sm:$0xff] }
  0x7f   :  { %8088 = vst [vmem:[#allocation35_spill] sm:$0xff] %v6516_v62  ;;  %v6532_v44 = vrot.slane %v2625_v53, %v5259_v33  ;;  %v2659_v57 = vcombine.low %v8095_v3, %v5774_v17  ;;  %v6539_v48 = vrot.slane %v2641_v29, %v5259_v33  ;;  %v2675_v34 = vcombine.low %v8099_v25, %v8098_v43  ;;  %v8100_v11 = vld [vmem:[#allocation74_spill] sm:$0xff]  ;;  %v8102_v3 = vld [vmem:[#allocation76_spill] sm:$0xff]  ;;  %v8103_v29 = vld [vmem:[#allocation75_spill] sm:$0xff] }
  0x80   :  { %v6542_v35 = vrot.slane %v2642_v20, %v5259_v33  ;;  %v2676_v62 = vcombine.low %v8100_v11, %v5798_v8  ;;  %v6551_v30 = vrot.slane %v2658_v13, %v5259_v33  ;;  %v2692_v2 = vcombine.low %v8103_v29, %v8102_v3  ;;  %v8105_v11 = vld [vmem:[#allocation77_spill] sm:$0xff]  ;;  %v8106_v53 = vld [vmem:[#allocation79_spill] sm:$0xff]  ;;  %v8107_v3 = vld [vmem:[#allocation78_spill] sm:$0xff] }
  0x81   :  { %8096 = vst [vmem:[#allocation37_spill] sm:$0xff] %v6539_v48  ;;  %v6554_v17 = vrot.slane %v2659_v57, %v5259_v33  ;;  %v6561_v43 = vrot.slane %v2675_v34, %v5259_v33  ;;  %v2693_v25 = vcombine.low %v8105_v11, %v5822_v4  ;;  %v2709_v29 = vcombine.low %v8107_v3, %v8106_v53  ;;  %v8108_v20 = vld [vmem:[#allocation80_spill] sm:$0xff]  ;;  %v8109_v48 = vld [vmem:[#allocation82_spill] sm:$0xff]  ;;  %v8110_v4 = vld [vmem:[#allocation81_spill] sm:$0xff] }
  0x82   :  { %8097 = vst [vmem:[#allocation36_spill] sm:$0xff] %v6542_v35  ;;  %v6564_v8 = vrot.slane %v2676_v62, %v5259_v33  ;;  %v6571_v57 = vrot.slane %v2692_v2, %v5259_v33  ;;  %v2710_v35 = vcombine.low %v8108_v20, %v5846_v1  ;;  %v2726_v11 = vcombine.low %v8110_v4, %v8109_v48  ;;  %v8111_v13 = vld [vmem:[#allocation83_spill] sm:$0xff]  ;;  %v8114_v3 = vld [vmem:[#allocation85_spill] sm:$0xff]  ;;  %v8115_v1 = vld [vmem:[#allocation84_spill] sm:$0xff] }
  0x83   :  { %8101 = vst [vmem:[#allocation38_spill] sm:$0xff] %v6554_v17  ;;  %v6580_v62 = vrot.slane %v2693_v25, %v5259_v33  ;;  %v2727_v17 = vcombine.low %v8111_v13, %v5870_v0  ;;  %v6587_v2 = vrot.slane %v2709_v29, %v5259_v33  ;;  %v2743_v20 = vcombine.low %v8115_v1, %v8114_v3  ;;  %v8116_v34 = vld [vmem:[#allocation86_spill] sm:$0xff]  ;;  %v8118_v13 = vld [vmem:[#allocation88_spill] sm:$0xff]  ;;  %v8119_v29 = vld [vmem:[#allocation87_spill] sm:$0xff] }
  0x84   :  { %8104 = vst [vmem:[#allocation40_spill] sm:$0xff] %v6564_v8  ;;  %v6590_v53 = vrot.slane %v2710_v35, %v5259_v33  ;;  %v2744_v8 = vcombine.low %v8116_v34, %v5894_v63  ;;  %v6599_v48 = vrot.slane %v2726_v11, %v5259_v33  ;;  %v2760_v4 = vcombine.low %v8119_v29, %v8118_v13  ;;  %v8121_v34 = vld [vmem:[#allocation89_spill] sm:$0xff]  ;;  %v8122_v25 = vld [vmem:[#allocation91_spill] sm:$0xff]  ;;  %v8123_v13 = vld [vmem:[#allocation90_spill] sm:$0xff] }
  0x85   :  { %8112 = vst [vmem:[#allocation39_spill] sm:$0xff] %v6587_v2  ;;  %v6602_v0 = vrot.slane %v2727_v17, %v5259_v33  ;;  %v6609_v3 = vrot.slane %v2743_v20, %v5259_v33  ;;  %v2761_v1 = vcombine.low %v8121_v34, %v5918_v60  ;;  %v2777_v29 = vcombine.low %v8123_v13, %v8122_v25  ;;  %v8124_v35 = vld [vmem:[#allocation92_spill] sm:$0xff]  ;;  %v8125_v2 = vld [vmem:[#allocation94_spill] sm:$0xff]  ;;  %v8126_v60 = vld [vmem:[#allocation93_spill] sm:$0xff] }
  0x86   :  { %8113 = vst [vmem:[#allocation41_spill] sm:$0xff] %v6590_v53  ;;  %v6612_v63 = vrot.slane %v2744_v8, %v5259_v33  ;;  %v6619_v17 = vrot.slane %v2760_v4, %v5259_v33  ;;  %v2778_v53 = vcombine.low %v8124_v35, %v5942_v59  ;;  %v2794_v34 = vcombine.low %v8126_v60, %v8125_v2  ;;  %v8127_v11 = vld [vmem:[#allocation95_spill] sm:$0xff]  ;;  %v8130_v13 = vld [vmem:[#allocation97_spill] sm:$0xff]  ;;  %v8131_v59 = vld [vmem:[#allocation96_spill] sm:$0xff] }
  0x87   :  { %8117 = vst [vmem:[#allocation43_spill] sm:$0xff] %v6602_v0  ;;  %v6628_v8 = vrot.slane %v2761_v1, %v5259_v33  ;;  %v2795_v0 = vcombine.low %v8127_v11, %v5966_v58  ;;  %v6635_v4 = vrot.slane %v2777_v29, %v5259_v33  ;;  %v2811_v35 = vcombine.low %v8131_v59, %v8130_v13  ;;  %v8132_v20 = vld [vmem:[#allocation98_spill] sm:$0xff]  ;;  %v8134_v11 = vld [vmem:[#allocation100_spill] sm:$0xff]  ;;  %v8135_v29 = vld [vmem:[#allocation99_spill] sm:$0xff] }
  0x88   :  { %8120 = vst [vmem:[#allocation42_spill] sm:$0xff] %v6612_v63  ;;  %v6638_v25 = vrot.slane %v2778_v53, %v5259_v33  ;;  %v2812_v63 = vcombine.low %v8132_v20, %v5990_v56  ;;  %v6647_v2 = vrot.slane %v2794_v34, %v5259_v33  ;;  %v2828_v60 = vcombine.low %v8135_v29, %v8134_v11  ;;  %v8137_v20 = vld [vmem:[#allocation101_spill] sm:$0xff]  ;;  %v8138_v1 = vld [vmem:[#allocation103_spill] sm:$0xff]  ;;  %v8139_v11 = vld [vmem:[#allocation102_spill] sm:$0xff] }
  0x89   :  { %8128 = vst [vmem:[#allocation44_spill] sm:$0xff] %v6635_v4  ;;  %v6650_v58 = vrot.slane %v2795_v0, %v5259_v33  ;;  %v6657_v13 = vrot.slane %v2811_v35, %v5259_v33  ;;  %v2829_v59 = vcombine.low %v8137_v20, %v6014_v55  ;;  %v2845_v29 = vcombine.low %v8139_v11, %v8138_v1  ;;  %v8140_v53 = vld [vmem:[#allocation104_spill] sm:$0xff]  ;;  %v8141_v4 = vld [vmem:[#allocation106_spill] sm:$0xff]  ;;  %v8142_v55 = vld [vmem:[#allocation105_spill] sm:$0xff] }
  0x8a   :  { %8129 = vst [vmem:[#allocation46_spill] sm:$0xff] %v6638_v25  ;;  %v6660_v56 = vrot.slane %v2812_v63, %v5259_v33  ;;  %v6667_v0 = vrot.slane %v2828_v60, %v5259_v33  ;;  %v2846_v25 = vcombine.low %v8140_v53, %v6038_v54  ;;  %v2862_v20 = vcombine.low %v8142_v55, %v8141_v4  ;;  %v8143_v34 = vld [vmem:[#allocation107_spill] sm:$0xff]  ;;  %v8146_v11 = vld [vmem:[#allocation109_spill] sm:$0xff]  ;;  %v8147_v54 = vld [vmem:[#allocation108_spill] sm:$0xff] }
  0x8b   :  { %8133 = vst [vmem:[#allocation45_spill] sm:$0xff] %v6650_v58  ;;  %v6676_v63 = vrot.slane %v2829_v59, %v5259_v33  ;;  %v2863_v58 = vcombine.low %v8143_v34, %v6062_v51  ;;  %v6683_v60 = vrot.slane %v2845_v29, %v5259_v33  ;;  %v2879_v53 = vcombine.low %v8147_v54, %v8146_v11  ;;  %v8148_v35 = vld [vmem:[#allocation110_spill] sm:$0xff]  ;;  %v8150_v34 = vld [vmem:[#allocation112_spill] sm:$0xff]  ;;  %v8151_v29 = vld [vmem:[#allocation111_spill] sm:$0xff] }
  0x8c   :  { %8136 = vst [vmem:[#allocation47_spill] sm:$0xff] %v6660_v56  ;;  %v6686_v1 = vrot.slane %v2846_v25, %v5259_v33  ;;  %v2880_v56 = vcombine.low %v8148_v35, %v6086_v50  ;;  %v6695_v4 = vrot.slane %v2862_v20, %v5259_v33  ;;  %v2896_v55 = vcombine.low %v8151_v29, %v8150_v34  ;;  %v8153_v35 = vld [vmem:[#allocation113_spill] sm:$0xff]  ;;  %v8155_v59 = vld [vmem:[#allocation115_spill] sm:$0xff]  ;;  %v8156_v34 = vld [vmem:[#allocation114_spill] sm:$0xff] }
  0x8d   :  { %8144 = vst [vmem:[#allocation49_spill] sm:$0xff] %v6683_v60  ;;  %v6698_v51 = vrot.slane %v2863_v58, %v5259_v33  ;;  %v6705_v11 = vrot.slane %v2879_v53, %v5259_v33  ;;  %v2897_v54 = vcombine.low %v8153_v35, %v6110_v49  ;;  %v2913_v29 = vcombine.low %v8156_v34, %v8155_v59  ;;  %v8157_v25 = vld [vmem:[#allocation116_spill] sm:$0xff]  ;;  %v8159_v60 = vld [vmem:[#allocation118_spill] sm:$0xff]  ;;  %v8160_v49 = vld [vmem:[#allocation117_spill] sm:$0xff] }
  0x8e   :  { %8145 = vst [vmem:[#allocation48_spill] sm:$0xff] %v6686_v1  ;;  %v6708_v50 = vrot.slane %v2880_v56, %v5259_v33  ;;  %v6715_v58 = vrot.slane %v2896_v55, %v5259_v33  ;;  %v2914_v1 = vcombine.low %v8157_v25, %v6134_v47  ;;  %v2930_v35 = vcombine.low %v8160_v49, %v8159_v60  ;;  %v8161_v20 = vld [vmem:[#allocation119_spill] sm:$0xff]  ;;  %v8164_v34 = vld [vmem:[#allocation121_spill] sm:$0xff]  ;;  %v8165_v47 = vld [vmem:[#allocation120_spill] sm:$0xff] }
  0x8f   :  { %8149 = vst [vmem:[#allocation50_spill] sm:$0xff] %v6698_v51  ;;  %v6724_v56 = vrot.slane %v2897_v54, %v5259_v33  ;;  %v2931_v51 = vcombine.low %v8161_v20, %v6158_v46  ;;  %v6731_v55 = vrot.slane %v2913_v29, %v5259_v33  ;;  %v2947_v25 = vcombine.low %v8165_v47, %v8164_v34  ;;  %v8166_v53 = vld [vmem:[#allocation122_spill] sm:$0xff]  ;;  %v8169_v20 = vld [vmem:[#allocation124_spill] sm:$0xff]  ;;  %v8170_v29 = vld [vmem:[#allocation123_spill] sm:$0xff] }
  0x90   :  { %8152 = vst [vmem:[#allocation52_spill] sm:$0xff] %v6708_v50  ;;  %8154 = vst [vmem:[#allocation51_spill] sm:$0xff] %v6715_v58  ;;  %v6734_v59 = vrot.slane %v2914_v1, %v5259_v33  ;;  %v2948_v50 = vcombine.low %v8166_v53, %v6182_v45  ;;  %v6743_v60 = vrot.slane %v2930_v35, %v5259_v33  ;;  %v8173_v53 = vld [vmem:[#allocation125_spill] sm:$0xff]  ;;  %v8175_v54 = vld [vmem:[#allocation127_spill] sm:$0xff] }
  0x91   :  { %8158 = vst [vmem:[#allocation53_spill] sm:$0xff] %v6724_v56  ;;  %8162 = vst [vmem:[#allocation55_spill] sm:$0xff] %v6731_v55  ;;  %v6746_v46 = vrot.slane %v2931_v51, %v5259_v33  ;;  %v2964_v49 = vcombine.low %v8170_v29, %v8169_v20  ;;  %v6753_v34 = vrot.slane %v2947_v25, %v5259_v33  ;;  %v8176_v20 = vld [vmem:[#allocation126_spill] sm:$0xff]  ;;  %v8177_v1 = vld [vmem:[#allocation128_spill] sm:$0xff] }
  0x92   :  { %8163 = vst [vmem:[#allocation54_spill] sm:$0xff] %v6734_v59  ;;  %8167 = vst [vmem:[#allocation56_spill] sm:$0xff] %v6743_v60  ;;  %v6756_v45 = vrot.slane %v2948_v50, %v5259_v33  ;;  %v2965_v47 = vcombine.low %v8173_v53, %v6206_v42  ;;  %v2981_v29 = vcombine.low %v8176_v20, %v8175_v54  ;;  %v8179_v55 = vld [vmem:[#allocation130_spill] sm:$0xff]  ;;  %v8180_v42 = vld [vmem:[#allocation129_spill] sm:$0xff] }
  0x93   :  { %8168 = vst [vmem:[#allocation58_spill] sm:$0xff] %v6746_v46  ;;  %8171 = vst [vmem:[#allocation57_spill] sm:$0xff] %v6753_v34  ;;  %v6763_v51 = vrot.slane %v2964_v49, %v5259_v33  ;;  %v2982_v59 = vcombine.low %v8177_v1, %v6230_v41  ;;  %v2998_v53 = vcombine.low %v8180_v42, %v8179_v55  ;;  %v8181_v35 = vld [vmem:[#allocation131_spill] sm:$0xff]  ;;  %v8182_v20 = vld [vmem:[#allocation133_spill] sm:$0xff] }
  0x94   :  { %8172 = vst [vmem:[#allocation59_spill] sm:$0xff] %v6756_v45  ;;  %v6772_v50 = vrot.slane %v2965_v47, %v5259_v33  ;;  %v2999_v46 = vcombine.low %v8181_v35, %v6254_v40  ;;  %v6779_v49 = vrot.slane %v2981_v29, %v5259_v33  ;;  %v8183_v41 = vld [vmem:[#allocation132_spill] sm:$0xff]  ;;  %v8184_v25 = vld [vmem:[#allocation134_spill] sm:$0xff]  ;;  %v8185_v35 = vld [vmem:[#allocation135_spill] sm:$0xff] }
  0x95   :  { %8174 = vst [vmem:[#allocation61_spill] sm:$0xff] %v6763_v51  ;;  %v6782_v54 = vrot.slane %v2982_v59, %v5259_v33  ;;  %v3015_v1 = vcombine.low %v8183_v41, %v8182_v20  ;;  %v3016_v45 = vcombine.low %v8184_v25, %v6278_v38  ;;  %v6791_v47 = vld [vmem:[%s7639_s0 + $0xa8] sm:$0xff]  ;;  %v6796_v55 = vrot.slane %v2998_v53, %v5259_v33  ;;  %v6806_v38 = vld [vmem:[%s7639_s0 + $0xb0] sm:$0xff]  ;;  %v40_v41 = vld [vmem:[%s7639_s0 + $0xc0] sm:$0xff] }
  0x96   :  { %8178 = vst [vmem:[#allocation60_spill] sm:$0xff] %v6772_v50  ;;  %v6799_v59 = vrot.slane %v2999_v46, %v5259_v33  ;;  %v3032_v29 = vcombine.low %v8185_v35, %v6290_v28  ;;  %v8186_v20 = vld [vmem:[#allocation136_spill] sm:$0xff]  ;;  %v39_v28 = vld [vmem:[%s7639_s0 + $0xb8] sm:$0xff]  ;;  %v85_v34 = vunpack.c.l.bf16 %v6806_v38  ;;  %v89_v60 = vunpack.c.l.bf16 %v40_v41  ;;  %v8189_v58 = vld [vmem:[#allocation3_spill] sm:$0xff] }
  0x97   :  { %v2997_v25 = vcombine.low %v6779_v49, %v6782_v54  ;;  %v6811_v42 = vrot.slane %v3015_v1, %v5259_v33  ;;  %v3030_v53 = vrot.slane %v3016_v45, %v5259_v33  ;;  %v3033_v46 = vcombine.low %v8186_v20, %v6304_v22  ;;  %v8187_v54 = vld [vmem:[#allocation137_spill] sm:$0xff]  ;;  %v8188_v45 = vld [vmem:[#allocation138_spill] sm:$0xff] }
  0x98   :  { %v3014_v35 = vcombine.low %v6796_v55, %v6799_v59  ;;  %v3040_v49 = vrot.slane %v3032_v29, %v5259_v33  ;;  %v3049_v1 = vcombine.low %v8187_v54, %v6316_v24  ;;  %v3050_v40 = vcombine.low %v8188_v45, %v6337_v18 }
  0x99   :  { %v83_v22 = vunpack.c.l.bf16 %v6791_v47  ;;  %v84_v20 = vunpack.c.h.bf16 %v6791_v47  ;;  %v3031_v50 = vcombine.low %v6811_v42, %v3030_v53  ;;  %v3047_v51 = vrot.slane %v3033_v46, %v5259_v33 }
  0x9a   :  { %v86_v55 = vunpack.c.h.bf16 %v6806_v38  ;;  %v3057_v59 = vrot.slane %v3049_v1, %v5259_v33  ;;  %v3064_v29 = vrot.slane %v3050_v40, %v5259_v33  ;;  %v87_v24 = vunpack.c.l.bf16 %v39_v28  ;;  %v8194_v40 = vld [vmem:[#allocation4_spill] sm:$0xff] }
  0x9b   :  { %v88_v54 = vunpack.c.h.bf16 %v39_v28  ;;  %v3048_v18 = vcombine.low %v3040_v49, %v3047_v51  ;;  %v90_v45 = vunpack.c.h.bf16 %v40_v41  ;;  %v8190_v47 = vunpack.c.l.bf16 %v8189_v58 }
  0x9c   :  { %v3065_v56 = vcombine.low %v3057_v59, %v3064_v29  ;;  %v8191_v42 = vcombine.low %v6327_v37, %v6340_v16  ;;  %v8192_v46 = vunpack.c.h.bf16 %v8189_v58  ;;  %v8193_v38 = vcombine.low %v6347_v19, %v6350_v5  ;;  %v8199_v58 = vld [vmem:[#allocation8_spill] sm:$0xff] }
  0x9d   :  { %v8195_v28 = vunpack.c.l.bf16 %v8194_v40  ;;  %v8196_v51 = vcombine.low %v6359_v27, %v6362_v7  ;;  %v8197_v49 = vunpack.c.h.bf16 %v8194_v40  ;;  %v8198_v37 = vcombine.low %v6369_v15, %v6372_v9  ;;  %v8204_v27 = vld [vmem:[#allocation25_spill] sm:$0xff]  ;;  %v8208_v15 = vld [vmem:[#allocation26_spill] sm:$0xff] }
  0x9e   :  { %v6842_v53 = vmul.f32 %v8191_v42, %v8190_v47  ;;  %v6849_v1 = vmul.f32 %v8193_v38, %v8192_v46  ;;  %v8200_v59 = vunpack.c.l.bf16 %v8199_v58  ;;  %v8201_v19 = vcombine.low %v6379_v23, %v6388_v31  ;;  %v8203_v47 = vld [vmem:[#allocation24_spill] sm:$0xff]  ;;  %v8206_v46 = vld [vmem:[#allocation9_spill] sm:$0xff]  ;;  %v8211_v23 = vld [vmem:[#allocation27_spill] sm:$0xff] }
  0x9f   :  { %v6856_v41 = vmul.f32 %v8196_v51, %v8195_v28  ;;  %v6863_v16 = vmul.f32 %v8198_v37, %v8197_v49  ;;  %v8202_v29 = vunpack.c.h.bf16 %v8199_v58  ;;  %v8205_v7 = vcombine.low %v8203_v47, %v8204_v27  ;;  %v8213_v49 = vld [vmem:[#allocation10_spill] sm:$0xff] }
  0xa0   :  { %v6870_v5 = vmul.f32 %v8201_v19, %v8200_v59  ;;  %v8207_v38 = vunpack.c.l.bf16 %v8206_v46  ;;  %v8209_v9 = vcombine.low %v6407_v6, %v8208_v15  ;;  %v8210_v28 = vunpack.c.h.bf16 %v8206_v46  ;;  %v8218_v6 = vld [vmem:[#allocation29_spill] sm:$0xff] }
  0xa1   :  { %v6877_v42 = vmul.f32 %v8205_v7, %v8202_v29  ;;  %v8212_v31 = vcombine.low %v6417_v61, %v8211_v23  ;;  %v8214_v37 = vunpack.c.l.bf16 %v8213_v49  ;;  %v8215_v58 = vcombine.low %v6427_v32, %v6436_v52  ;;  %v8217_v29 = vld [vmem:[#allocation28_spill] sm:$0xff]  ;;  %v8220_v7 = vld [vmem:[#allocation11_spill] sm:$0xff]  ;;  %v8222_v61 = vld [vmem:[#allocation30_spill] sm:$0xff] }
  0xa2   :  { %v6884_v40 = vmul.f32 %v8209_v9, %v8207_v38  ;;  %v8216_v19 = vunpack.c.h.bf16 %v8213_v49  ;;  %v8219_v47 = vcombine.low %v8217_v29, %v8218_v6  ;;  %v8221_v46 = vunpack.c.l.bf16 %v8220_v7  ;;  %v8225_v32 = vld [vmem:[#allocation31_spill] sm:$0xff]  ;;  %v8227_v23 = vld [vmem:[#allocation12_spill] sm:$0xff] }
  0xa3   :  { %v6891_v51 = vmul.f32 %v8212_v31, %v8210_v28  ;;  %v6898_v59 = vmul.f32 %v8215_v58, %v8214_v37  ;;  %v8223_v38 = vcombine.low %v6455_v10, %v8222_v61  ;;  %v8224_v9 = vunpack.c.h.bf16 %v8220_v7  ;;  %v8232_v10 = vld [vmem:[#allocation34_spill] sm:$0xff] }
  0xa4   :  { %v6905_v27 = vmul.f32 %v8219_v47, %v8216_v19  ;;  %v8226_v52 = vcombine.low %v6465_v14, %v8225_v32  ;;  %v8228_v31 = vunpack.c.l.bf16 %v8227_v23  ;;  %v8229_v49 = vcombine.low %v6475_v21, %v6484_v26  ;;  %v8231_v19 = vld [vmem:[#allocation32_spill] sm:$0xff]  ;;  %v8234_v47 = vld [vmem:[#allocation13_spill] sm:$0xff]  ;;  %v8239_v21 = vld [vmem:[#allocation35_spill] sm:$0xff] }
  0xa5   :  { %v6912_v15 = vmul.f32 %v8223_v38, %v8221_v46  ;;  %v8230_v58 = vunpack.c.h.bf16 %v8227_v23  ;;  %v8233_v29 = vcombine.low %v8231_v19, %v8232_v10  ;;  %v8235_v7 = vunpack.c.l.bf16 %v8234_v47  ;;  %v8236_v14 = vld [vmem:[#allocation33_spill] sm:$0xff]  ;;  %v8241_v32 = vld [vmem:[#allocation14_spill] sm:$0xff] }
  0xa6   :  { %v6919_v28 = vmul.f32 %v8226_v52, %v8224_v9  ;;  %v6926_v37 = vmul.f32 %v8229_v49, %v8228_v31  ;;  %v8237_v46 = vcombine.low %v6503_v12, %v8236_v14  ;;  %v8238_v38 = vunpack.c.h.bf16 %v8234_v47  ;;  %v8246_v12 = vld [vmem:[#allocation36_spill] sm:$0xff] }
  0xa7   :  { %v6933_v6 = vmul.f32 %v8233_v29, %v8230_v58  ;;  %v8240_v26 = vcombine.low %v6513_v36, %v8239_v21  ;;  %v8242_v52 = vunpack.c.l.bf16 %v8241_v32  ;;  %v8243_v23 = vcombine.low %v6523_v39, %v6532_v44  ;;  %v8245_v58 = vld [vmem:[#allocation37_spill] sm:$0xff]  ;;  %v8248_v29 = vld [vmem:[#allocation15_spill] sm:$0xff]  ;;  %v8250_v36 = vld [vmem:[#allocation38_spill] sm:$0xff] }
  0xa8   :  { %v6940_v61 = vmul.f32 %v8237_v46, %v8235_v7  ;;  %v8244_v49 = vunpack.c.h.bf16 %v8241_v32  ;;  %v8247_v19 = vcombine.low %v8245_v58, %v8246_v12  ;;  %v8249_v47 = vunpack.c.l.bf16 %v8248_v29  ;;  %v8253_v39 = vld [vmem:[#allocation40_spill] sm:$0xff] }
  0xa9   :  { %v6947_v9 = vmul.f32 %v8240_v26, %v8238_v38  ;;  %v6954_v31 = vmul.f32 %v8243_v23, %v8242_v52  ;;  %v8251_v7 = vcombine.low %v6551_v30, %v8250_v36  ;;  %v8252_v46 = vunpack.c.h.bf16 %v8248_v29  ;;  %v8255_v21 = vld [vmem:[#allocation16_spill] sm:$0xff]  ;;  %v8260_v30 = vld [vmem:[#allocation41_spill] sm:$0xff] }
  0xaa   :  { %v6961_v10 = vmul.f32 %v8247_v19, %v8244_v49  ;;  %v8254_v44 = vcombine.low %v6561_v43, %v8253_v39  ;;  %v8256_v26 = vunpack.c.l.bf16 %v8255_v21  ;;  %v8257_v32 = vcombine.low %v6571_v57, %v6580_v62  ;;  %v8259_v49 = vld [vmem:[#allocation39_spill] sm:$0xff]  ;;  %v8262_v19 = vld [vmem:[#allocation17_spill] sm:$0xff]  ;;  %v8267_v57 = vld [vmem:[#allocation42_spill] sm:$0xff] }
  0xab   :  { %v6968_v14 = vmul.f32 %v8251_v7, %v8249_v47  ;;  %v8258_v23 = vunpack.c.h.bf16 %v8255_v21  ;;  %v8261_v58 = vcombine.low %v8259_v49, %v8260_v30  ;;  %v8263_v29 = vunpack.c.l.bf16 %v8262_v19  ;;  %v8264_v43 = vld [vmem:[#allocation43_spill] sm:$0xff]  ;;  %v8269_v39 = vld [vmem:[#allocation18_spill] sm:$0xff] }
  0xac   :  { %v6975_v38 = vmul.f32 %v8254_v44, %v8252_v46  ;;  %v6982_v52 = vmul.f32 %v8257_v32, %v8256_v26  ;;  %v8265_v47 = vcombine.low %v6599_v48, %v8264_v43  ;;  %v8266_v7 = vunpack.c.h.bf16 %v8262_v19  ;;  %v8274_v48 = vld [vmem:[#allocation46_spill] sm:$0xff] }
  0xad   :  { %v6989_v12 = vmul.f32 %v8261_v58, %v8258_v23  ;;  %v8268_v62 = vcombine.low %v6609_v3, %v8267_v57  ;;  %v8270_v44 = vunpack.c.l.bf16 %v8269_v39  ;;  %v8271_v21 = vcombine.low %v6619_v17, %v6628_v8  ;;  %v8273_v23 = vld [vmem:[#allocation44_spill] sm:$0xff]  ;;  %v8276_v58 = vld [vmem:[#allocation19_spill] sm:$0xff]  ;;  %v8278_v3 = vld [vmem:[#allocation45_spill] sm:$0xff] }
  0xae   :  { %v6996_v36 = vmul.f32 %v8265_v47, %v8263_v29  ;;  %v8272_v32 = vunpack.c.h.bf16 %v8269_v39  ;;  %v8275_v49 = vcombine.low %v8273_v23, %v8274_v48  ;;  %v8277_v19 = vunpack.c.l.bf16 %v8276_v58  ;;  %v8282_v17 = vld [vmem:[#allocation47_spill] sm:$0xff]  ;;  %v8285_v57 = vld [vmem:[#allocation20_spill] sm:$0xff] }
  0xaf   :  { %v7003_v46 = vmul.f32 %v8268_v62, %v8266_v7  ;;  %v7010_v26 = vmul.f32 %v8271_v21, %v8270_v44  ;;  %v8279_v29 = vcombine.low %v6647_v2, %v8278_v3  ;;  %v8281_v47 = vunpack.c.h.bf16 %v8276_v58  ;;  %v8291_v2 = vld [vmem:[#allocation48_spill] sm:$0xff] }
  0xb0   :  { %v7017_v30 = vmul.f32 %v8275_v49, %v8272_v32  ;;  %v8283_v8 = vcombine.low %v6657_v13, %v8282_v17  ;;  %v8286_v62 = vunpack.c.l.bf16 %v8285_v57  ;;  %v8287_v39 = vcombine.low %v6667_v0, %v6676_v63  ;;  %v8290_v32 = vld [vmem:[#allocation49_spill] sm:$0xff]  ;;  %v8296_v13 = vld [vmem:[#allocation50_spill] sm:$0xff]  ;;  %v8300_v0 = vld [vmem:[#allocation52_spill] sm:$0xff] }
  0xb1   :  { %v7024_v43 = vmul.f32 %v8279_v29, %v8277_v19  ;;  %v8289_v21 = vunpack.c.h.bf16 %v8285_v57  ;;  %v8292_v23 = vcombine.low %v8290_v32, %v8291_v2  ;;  %v8294_v49 = vld [vmem:[#allocation21_spill] sm:$0xff]  ;;  %v8297_v19 = vcombine.low %v6695_v4, %v8296_v13  ;;  %v8303_v17 = vld [vmem:[#allocation22_spill] sm:$0xff]  ;;  %v8305_v57 = vld [vmem:[#allocation51_spill] sm:$0xff] }
  0xb2   :  { %v7031_v7 = vmul.f32 %v8283_v8, %v8281_v47  ;;  %v7038_v44 = vmul.f32 %v8287_v39, %v8286_v62  ;;  %v8295_v58 = vunpack.c.l.bf16 %v8294_v49  ;;  %v8299_v29 = vunpack.c.h.bf16 %v8294_v49  ;;  %v8306_v62 = vld [vmem:[#allocation53_spill] sm:$0xff]  ;;  %v8310_v2 = vld [vmem:[#allocation55_spill] sm:$0xff]  ;;  %v8311_v4 = vld [vmem:[#allocation54_spill] sm:$0xff] }
  0xb3   :  { %8280 = vst [vmem:[#allocation62_spill] sm:$0xff] %v7024_v43  ;;  %v7045_v48 = vmul.f32 %v8292_v23, %v8289_v21  ;;  %v8301_v63 = vcombine.low %v6705_v11, %v8300_v0  ;;  %v8304_v8 = vunpack.c.l.bf16 %v8303_v17  ;;  %v8307_v39 = vcombine.low %v8305_v57, %v8306_v62  ;;  %v8314_v49 = vld [vmem:[#allocation56_spill] sm:$0xff]  ;;  %v8315_v13 = vld [vmem:[#allocation58_spill] sm:$0xff]  ;;  %v8319_v0 = vld [vmem:[#allocation59_spill] sm:$0xff] }
  0xb4   :  { %8284 = vst [vmem:[#allocation64_spill] sm:$0xff] %v7031_v7  ;;  %8288 = vst [vmem:[#allocation63_spill] sm:$0xff] %v7038_v44  ;;  %v7052_v3 = vmul.f32 %v8297_v19, %v8295_v58  ;;  %v8309_v32 = vunpack.c.h.bf16 %v8303_v17  ;;  %v8312_v23 = vcombine.low %v8310_v2, %v8311_v4  ;;  %v8316_v19 = vcombine.low %v8314_v49, %v8315_v13  ;;  %v8322_v57 = vld [vmem:[#allocation61_spill] sm:$0xff]  ;;  %v8331_v49 = vld [vmem:[#allocation23_spill] sm:$0xff] }
  0xb5   :  { %8293 = vst [vmem:[#allocation65_spill] sm:$0xff] %v7045_v48  ;;  %v7059_v47 = vmul.f32 %v8301_v63, %v8299_v29  ;;  %v7066_v21 = vmul.f32 %v8307_v39, %v8304_v8  ;;  %v8318_v29 = vld [vmem:[#allocation57_spill] sm:$0xff]  ;;  %v8323_v8 = vld [vmem:[#allocation60_spill] sm:$0xff]  ;;  %v7090_v17 = vmul.f32 %v2997_v25, %v86_v55  ;;  %v7092_v2 = vmul.f32 %v3014_v35, %v87_v24  ;;  %v8334_v55 = vld [vmem:[#allocation7_spill] sm:$0xff] }
  0xb6   :  { %8298 = vst [vmem:[#allocation67_spill] sm:$0xff] %v7052_v3  ;;  %v7073_v58 = vmul.f32 %v8312_v23, %v8309_v32  ;;  %v7078_v11 = vmul.f32 %v8316_v19, %v83_v22  ;;  %v8320_v63 = vcombine.low %v8318_v29, %v8319_v0  ;;  %v8324_v62 = vcombine.low %v8322_v57, %v8323_v8  ;;  %v8332_v19 = vld [vmem:[#allocation5_spill] sm:$0xff]  ;;  %v8333_v29 = vld [vmem:[#allocation6_spill] sm:$0xff] }
  0xb7   :  { %8302 = vst [vmem:[#allocation66_spill] sm:$0xff] %v7059_v47  ;;  %8308 = vst [vmem:[#allocation68_spill] sm:$0xff] %v7066_v21  ;;  %v7094_v32 = vmul.f32 %v3031_v50, %v88_v54  ;;  %v7096_v4 = vmul.f32 %v3048_v18, %v89_v60  ;;  %v7098_v22 = vmul.f32 %v3065_v56, %v90_v45  ;;  %v92_v18 = vld [vmem:[%s7638_s1 + $0x8] sm:$0xff]  ;;  %v7184_v44 = vld [vmem:[%s7639_s0 + $0x10] sm:$0xff] }
  0xb8   :  { %8313 = vst [vmem:[#allocation70_spill] sm:$0xff] %v7073_v58  ;;  %8317 = vst [vmem:[#allocation69_spill] sm:$0xff] %v7078_v11  ;;  %v7083_v47 = vmul.f32 %v8320_v63, %v84_v20  ;;  %v7088_v39 = vmul.f32 %v8324_v62, %v85_v34  ;;  %v91_v20 = vld [vmem:[%s7638_s1] sm:$0xff] }
  0xb9   :  { %8326 = vst [vmem:[#allocation72_spill] sm:$0xff] %v7090_v17  ;;  %8327 = vst [vmem:[#allocation74_spill] sm:$0xff] %v7092_v2  ;;  %v116_v23 = vunpack.c.l.bf16 %v91_v20  ;;  %v117_v24 = vunpack.c.h.bf16 %v91_v20  ;;  %v118_v20 = vunpack.c.l.bf16 %v92_v18 }
  0xba   :  { %8321 = vst [vmem:[#allocation71_spill] sm:$0xff] %v7083_v47  ;;  %8325 = vst [vmem:[#allocation73_spill] sm:$0xff] %v7088_v39 }
  0xbb   :  { %8328 = vst [vmem:[#allocation76_spill] sm:$0xff] %v7094_v32  ;;  %8329 = vst [vmem:[#allocation75_spill] sm:$0xff] %v7096_v4  ;;  %v219_v13 = vrot.slane %v116_v23, %v8331_v49  ;;  %v223_v34 = vrot.slane %v116_v23, %v8332_v19  ;;  %v227_v25 = vrot.slane %v116_v23, %v8333_v29  ;;  %v16_v4 = vld [vmem:[%s7639_s0] sm:$0xff] }
  0xbc   :  { %8330 = vst [vmem:[#allocation77_spill] sm:$0xff] %v7098_v22  ;;  %v231_v35 = vrot.slane %v116_v23, %v8334_v55  ;;  %v235_v45 = vrot.slane %v117_v24, %v8331_v49  ;;  %v239_v0 = vrot.slane %v117_v24, %v8332_v19  ;;  %v243_v63 = vrot.slane %v117_v24, %v8333_v29 }
  0xbd   :  { %v1219_v50 = vrot.slane %v219_v13, %v8331_v49  ;;  %v1223_v60 = vrot.slane %v223_v34, %v8331_v49  ;;  %v1227_v56 = vrot.slane %v227_v25, %v8331_v49  ;;  %v247_v57 = vrot.slane %v117_v24, %v8334_v55 }
  0xbe   :  { %v1231_v54 = vrot.slane %v231_v35, %v8331_v49  ;;  %v1235_v23 = vrot.slane %v235_v45, %v8331_v49  ;;  %v1239_v13 = vrot.slane %v239_v0, %v8331_v49  ;;  %v1243_v34 = vrot.slane %v243_v63, %v8331_v49 }
  0xbf   :  { %v2216_v8 = vcombine.low %v1219_v50, %v1223_v60  ;;  %v1247_v25 = vrot.slane %v247_v57, %v8331_v49  ;;  %v251_v24 = vrot.slane %v118_v20, %v8331_v49  ;;  %v255_v50 = vrot.slane %v118_v20, %v8332_v19 }
  0xc0   :  { %v2217_v62 = vcombine.low %v1227_v56, %v1231_v54  ;;  %v259_v60 = vrot.slane %v118_v20, %v8333_v29  ;;  %v263_v56 = vrot.slane %v118_v20, %v8334_v55  ;;  %v2233_v54 = vcombine.low %v1235_v23, %v1239_v13  ;;  %v93_v20 = vld [vmem:[%s7638_s1 + $0x10] sm:$0xff] }
  0xc1   :  { %v2224_v35 = vrot.slane %v2216_v8, %v5259_v33  ;;  %v2234_v45 = vcombine.low %v1243_v34, %v1247_v25  ;;  %v41_v0 = vunpack.c.l.bf16 %v16_v4  ;;  %v119_v57 = vunpack.c.h.bf16 %v92_v18 }
  0xc2   :  { %v2231_v22 = vrot.slane %v2217_v62, %v5259_v33  ;;  %v1251_v8 = vrot.slane %v251_v24, %v8331_v49  ;;  %v1255_v62 = vrot.slane %v255_v50, %v8331_v49  ;;  %v1259_v32 = vrot.slane %v259_v60, %v8331_v49 }
  0xc3   :  { %v1263_v2 = vrot.slane %v263_v56, %v8331_v49  ;;  %v2241_v17 = vrot.slane %v2233_v54, %v5259_v33  ;;  %v2248_v39 = vrot.slane %v2234_v45, %v5259_v33  ;;  %v42_v47 = vunpack.c.h.bf16 %v16_v4 }
  0xc4   :  { %v2232_v63 = vcombine.low %v2224_v35, %v2231_v22  ;;  %v267_v22 = vrot.slane %v119_v57, %v8331_v49  ;;  %v271_v18 = vrot.slane %v119_v57, %v8332_v19  ;;  %v275_v13 = vrot.slane %v119_v57, %v8333_v29 }
  0xc5   :  { %v279_v34 = vrot.slane %v119_v57, %v8334_v55  ;;  %v2249_v25 = vcombine.low %v2241_v17, %v2248_v39  ;;  %v2250_v35 = vcombine.low %v1251_v8, %v1255_v62  ;;  %v2251_v24 = vcombine.low %v1259_v32, %v1263_v2 }
  0xc6   :  { %v3116_v23 = vmul.f32 %v2232_v63, %v41_v0  ;;  %v120_v60 = vunpack.c.l.bf16 %v93_v20  ;;  %v1267_v56 = vrot.slane %v267_v22, %v8331_v49  ;;  %v1271_v54 = vrot.slane %v271_v18, %v8331_v49  ;;  %v17_v63 = vld [vmem:[%s7639_s0 + $0x8] sm:$0xff] }
  0xc7   :  { %v1275_v45 = vrot.slane %v275_v13, %v8331_v49  ;;  %v1279_v0 = vrot.slane %v279_v34, %v8331_v49  ;;  %v2258_v39 = vrot.slane %v2250_v35, %v5259_v33  ;;  %v2265_v17 = vrot.slane %v2251_v24, %v5259_v33 }
  0xc8   :  { %v3216_v50 = vcombine.high %v3116_v23, %v3116_v23  ;;  %v3223_v4 = vrot.slane %v3116_v23, %v5259_v33  ;;  %v3117_v2 = vmul.f32 %v2249_v25, %v42_v47  ;;  %v283_v57 = vrot.slane %v120_v60, %v8331_v49 }
  0xc9   :  { %v287_v8 = vrot.slane %v120_v60, %v8332_v19  ;;  %v291_v62 = vrot.slane %v120_v60, %v8333_v29  ;;  %v295_v23 = vrot.slane %v120_v60, %v8334_v55  ;;  %v43_v18 = vunpack.c.l.bf16 %v17_v63 }
  0xca   :  { %v3230_v32 = vrot.slane %v3216_v50, %v5259_v33  ;;  %v3231_v22 = vcombine.high %v3223_v4, %v3223_v4  ;;  %v2267_v13 = vcombine.low %v1267_v56, %v1271_v54  ;;  %v2268_v34 = vcombine.low %v1275_v45, %v1279_v0 }
  0xcb   :  { %v2266_v11 = vcombine.low %v2258_v39, %v2265_v17  ;;  %v3233_v35 = vcombine.high %v3117_v2, %v3117_v2  ;;  %v3240_v24 = vrot.slane %v3117_v2, %v5259_v33  ;;  %v121_v47 = vunpack.c.h.bf16 %v93_v20 }
  0xcc   :  { %v3232_v58 = vcombine.high %v3230_v32, %v3230_v32  ;;  %v1283_v25 = vrot.slane %v283_v57, %v8331_v49  ;;  %v1287_v50 = vrot.slane %v287_v8, %v8331_v49  ;;  %v1291_v21 = vrot.slane %v291_v62, %v8331_v49 }
  0xcd   :  { %v1295_v3 = vrot.slane %v295_v23, %v8331_v49  ;;  %v4267_v60 = vsel %vm4266_vm0, %v3223_v4, 0.0  ;;  %v4268_v56 = vsel %vm4266_vm0, %v3231_v22, 0.0  ;;  %v2275_v54 = vrot.slane %v2267_v13, %v5259_v33  ;;  %v94_v4 = vld [vmem:[%s7638_s1 + $0x18] sm:$0xff] }
  0xce   :  { %v2282_v45 = vrot.slane %v2268_v34, %v5259_v33  ;;  %v4269_v0 = vadd.f32 %v4268_v56, %v4267_v60  ;;  %v4270_v20 = vsel %vm4266_vm0, %v3230_v32, 0.0  ;;  %v3118_v39 = vmul.f32 %v2266_v11, %v43_v18 }
  0xcf   :  { %v3247_v17 = vrot.slane %v3233_v35, %v5259_v33  ;;  %v3248_v2 = vcombine.high %v3240_v24, %v3240_v24  ;;  %v4272_v57 = vsel %vm4266_vm0, %v3232_v58, 0.0  ;;  %v44_v8 = vunpack.c.h.bf16 %v17_v63 }
  0xd0   :  { %v299_v62 = vrot.slane %v121_v47, %v8331_v49  ;;  %v4271_v23 = vadd.f32 %v4270_v20, %v4269_v0  ;;  %v303_v22 = vrot.slane %v121_v47, %v8332_v19  ;;  %v307_v13 = vrot.slane %v121_v47, %v8333_v29 }
  0xd1   :  { %v311_v32 = vrot.slane %v121_v47, %v8334_v55  ;;  %v4274_v11 = vsel %vm4266_vm0, %v3240_v24, 0.0  ;;  %v2283_v18 = vcombine.low %v2275_v54, %v2282_v45  ;;  %v2284_v34 = vcombine.low %v1283_v25, %v1287_v50 }
  0xd2   :  { %v2285_v35 = vcombine.low %v1291_v21, %v1295_v3  ;;  %v4273_v58 = vadd.f32 %v4272_v57, %v4271_v23  ;;  %v3249_v63 = vcombine.high %v3247_v17, %v3247_v17  ;;  %v3250_v60 = vcombine.high %v3118_v39, %v3118_v39 }
  0xd3   :  { %v3257_v56 = vrot.slane %v3118_v39, %v5259_v33  ;;  %v4276_v0 = vsel %vm4266_vm0, %v3248_v2, 0.0  ;;  %v122_v20 = vunpack.c.l.bf16 %v94_v4  ;;  %v1299_v47 = vrot.slane %v299_v62, %v8331_v49 }
  0xd4   :  { %v4275_v48 = vadd.f32 %v4274_v11, %v4273_v58  ;;  %v1303_v24 = vrot.slane %v303_v22, %v8331_v49  ;;  %v1307_v3 = vrot.slane %v307_v13, %v8331_v49  ;;  %v4278_v21 = vsel %vm4266_vm0, %v3247_v17, 0.0 }
  0xd5   :  { %v1311_v25 = vrot.slane %v311_v32, %v8331_v49  ;;  %v2292_v50 = vrot.slane %v2284_v34, %v5259_v33  ;;  %v2299_v54 = vrot.slane %v2285_v35, %v5259_v33  ;;  %v3119_v39 = vmul.f32 %v2283_v18, %v44_v8 }
  0xd6   :  { %v4277_v45 = vadd.f32 %v4276_v0, %v4275_v48  ;;  %v3264_v2 = vrot.slane %v3250_v60, %v5259_v33  ;;  %v3265_v57 = vcombine.high %v3257_v56, %v3257_v56  ;;  %v4280_v23 = vsel %vm4266_vm0, %v3249_v63, 0.0 }
  0xd7   :  { %v45_v62 = vunpack.c.l.bf16 %v7184_v44  ;;  %v315_v22 = vrot.slane %v122_v20, %v8331_v49  ;;  %v319_v17 = vrot.slane %v122_v20, %v8332_v19  ;;  %v323_v32 = vrot.slane %v122_v20, %v8333_v29 }
  0xd8   :  { %v4279_v13 = vadd.f32 %v4278_v21, %v4277_v45  ;;  %v327_v11 = vrot.slane %v122_v20, %v8334_v55  ;;  %v4282_v34 = vsel %vm4266_vm0, %v3257_v56, 0.0  ;;  %v2300_v48 = vcombine.low %v2292_v50, %v2299_v54 }
  0xd9   :  { %v2301_v8 = vcombine.low %v1299_v47, %v1303_v24  ;;  %v2302_v18 = vcombine.low %v1307_v3, %v1311_v25  ;;  %v3266_v58 = vcombine.high %v3264_v2, %v3264_v2  ;;  %v3267_v60 = vcombine.high %v3119_v39, %v3119_v39 }
  0xda   :  { %v4281_v35 = vadd.f32 %v4280_v23, %v4279_v13  ;;  %v3274_v63 = vrot.slane %v3119_v39, %v5259_v33  ;;  %v4284_v0 = vsel %vm4266_vm0, %v3265_v57, 0.0  ;;  %v123_v7 = vunpack.c.h.bf16 %v94_v4 }
  0xdb   :  { %v1315_v45 = vrot.slane %v315_v22, %v8331_v49  ;;  %v1319_v43 = vrot.slane %v319_v17, %v8331_v49  ;;  %v1323_v20 = vrot.slane %v323_v32, %v8331_v49  ;;  %v4286_v56 = vsel %vm4266_vm0, %v3264_v2, 0.0 }
  0xdc   :  { %v4283_v21 = vadd.f32 %v4282_v34, %v4281_v35  ;;  %v1327_v47 = vrot.slane %v327_v11, %v8331_v49  ;;  %v2309_v24 = vrot.slane %v2301_v8, %v5259_v33  ;;  %v2316_v3 = vrot.slane %v2302_v18, %v5259_v33 }
  0xdd   :  { %v3120_v50 = vmul.f32 %v2300_v48, %v45_v62  ;;  %v3281_v54 = vrot.slane %v3267_v60, %v5259_v33  ;;  %v3282_v4 = vcombine.high %v3274_v63, %v3274_v63  ;;  %v4288_v39 = vsel %vm4266_vm0, %v3266_v58, 0.0 }
  0xde   :  { %v4285_v25 = vadd.f32 %v4284_v0, %v4283_v21  ;;  %v46_v57 = vunpack.c.h.bf16 %v7184_v44  ;;  %v331_v23 = vrot.slane %v123_v7, %v8331_v49  ;;  %v335_v2 = vrot.slane %v123_v7, %v8332_v19 }
  0xdf   :  { %v339_v13 = vrot.slane %v123_v7, %v8333_v29  ;;  %v343_v17 = vrot.slane %v123_v7, %v8334_v55  ;;  %v4290_v32 = vsel %vm4266_vm0, %v3274_v63, 0.0  ;;  %v2317_v11 = vcombine.low %v2309_v24, %v2316_v3 }
  0xe0   :  { %v4287_v22 = vadd.f32 %v4286_v56, %v4285_v25  ;;  %v2318_v62 = vcombine.low %v1315_v45, %v1319_v43  ;;  %v2319_v34 = vcombine.low %v1323_v20, %v1327_v47  ;;  %v3283_v8 = vcombine.high %v3281_v54, %v3281_v54  ;;  %v19_v43 = vld [vmem:[%s7639_s0 + $0x18] sm:$0xff] }
  0xe1   :  { %v3284_v18 = vcombine.high %v3120_v50, %v3120_v50  ;;  %v3291_v35 = vrot.slane %v3120_v50, %v5259_v33  ;;  %v4292_v44 = vsel %vm4266_vm0, %v3282_v4, 0.0  ;;  %v1331_v60 = vrot.slane %v331_v23, %v8331_v49 }
  0xe2   :  { %v4289_v48 = vadd.f32 %v4288_v39, %v4287_v22  ;;  %v1335_v19 = vrot.slane %v335_v2, %v8331_v49  ;;  %v1339_v29 = vrot.slane %v339_v13, %v8331_v49  ;;  %v4294_v7 = vsel %vm4266_vm0, %v3281_v54, 0.0 }
  0xe3   :  { %v1343_v55 = vrot.slane %v343_v17, %v8331_v49  ;;  %v2326_v63 = vrot.slane %v2318_v62, %v5259_v33  ;;  %v2333_v0 = vrot.slane %v2319_v34, %v5259_v33  ;;  %v3121_v45 = vmul.f32 %v2317_v11, %v46_v57 }
  0xe4   :  { %v4291_v58 = vadd.f32 %v4290_v32, %v4289_v48  ;;  %v3298_v20 = vrot.slane %v3284_v18, %v5259_v33  ;;  %v3299_v56 = vcombine.high %v3291_v35, %v3291_v35  ;;  %v4296_v47 = vsel %vm4266_vm0, %v3283_v8, 0.0 }
  0xe5   :  { %v47_v3 = vunpack.c.l.bf16 %v19_v43  ;;  %v4298_v25 = vsel %vm4266_vm0, %v3291_v35, 0.0  ;;  %v2334_v50 = vcombine.low %v2326_v63, %v2333_v0  ;;  %v2335_v54 = vcombine.low %v1331_v60, %v1335_v19 }
  0xe6   :  { %v4293_v21 = vadd.f32 %v4292_v44, %v4291_v58  ;;  %v2336_v4 = vcombine.low %v1339_v29, %v1343_v55  ;;  %v3300_v49 = vcombine.high %v3298_v20, %v3298_v20  ;;  %v3301_v23 = vcombine.high %v3121_v45, %v3121_v45 }
  0xe7   :  { %v3308_v22 = vrot.slane %v3121_v45, %v5259_v33  ;;  %v4300_v2 = vsel %vm4266_vm0, %v3299_v56, 0.0  ;;  %v4302_v13 = vsel %vm4266_vm0, %v3298_v20, 0.0  ;;  %v2343_v17 = vrot.slane %v2335_v54, %v5259_v33 }
  0xe8   :  { %v4295_v24 = vadd.f32 %v4294_v7, %v4293_v21  ;;  %v2350_v32 = vrot.slane %v2336_v4, %v5259_v33  ;;  %v3122_v62 = vmul.f32 %v2334_v50, %v47_v3  ;;  %v3315_v34 = vrot.slane %v3301_v23, %v5259_v33 }
  0xe9   :  { %v3316_v48 = vcombine.high %v3308_v22, %v3308_v22  ;;  %v4304_v8 = vsel %vm4266_vm0, %v3300_v49, 0.0  ;;  %v4306_v35 = vsel %vm4266_vm0, %v3308_v22, 0.0  ;;  %v48_v44 = vunpack.c.h.bf16 %v19_v43 }
  0xea   :  { %v4297_v39 = vadd.f32 %v4296_v47, %v4295_v24  ;;  %v2351_v58 = vcombine.low %v2343_v17, %v2350_v32  ;;  %v3317_v19 = vcombine.high %v3315_v34, %v3315_v34  ;;  %v3318_v29 = vcombine.high %v3122_v62, %v3122_v62 }
  0xeb   :  { %v3325_v7 = vrot.slane %v3122_v62, %v5259_v33  ;;  %v4308_v55 = vsel %vm4266_vm0, %v3316_v48, 0.0  ;;  %v4310_v0 = vsel %vm4266_vm0, %v3315_v34, 0.0  ;;  %v3352_v62 = vcombine.high %v6842_v53, %v6842_v53 }
  0xec   :  { %v4299_v57 = vadd.f32 %v4298_v25, %v4297_v39  ;;  %v3123_v45 = vmul.f32 %v2351_v58, %v48_v44  ;;  %v3332_v20 = vrot.slane %v3318_v29, %v5259_v33  ;;  %v4312_v47 = vsel %vm4266_vm0, %v3317_v19, 0.0 }
  0xed   :  { %v3333_v56 = vcombine.high %v3325_v7, %v3325_v7  ;;  %v4314_v43 = vsel %vm4266_vm0, %v3325_v7, 0.0  ;;  %v3359_v34 = vrot.slane %v6842_v53, %v5259_v33  ;;  %v3366_v44 = vrot.slane %v3352_v62, %v5259_v33 }
  0xee   :  { %v4301_v11 = vadd.f32 %v4300_v2, %v4299_v57  ;;  %v3334_v25 = vcombine.high %v3332_v20, %v3332_v20  ;;  %v3335_v50 = vcombine.high %v3123_v45, %v3123_v45  ;;  %v3342_v54 = vrot.slane %v3123_v45, %v5259_v33 }
  0xef   :  { %v4316_v4 = vsel %vm4266_vm0, %v3333_v56, 0.0  ;;  %v4318_v49 = vsel %vm4266_vm0, %v3332_v20, 0.0  ;;  %v3367_v58 = vcombine.high %v3359_v34, %v3359_v34  ;;  %v4330_v29 = vsel %vm4266_vm0, %v3359_v34, 0.0 }
  0xf0   :  { %v4303_v18 = vadd.f32 %v4302_v13, %v4301_v11  ;;  %v3349_v22 = vrot.slane %v3335_v50, %v5259_v33  ;;  %v3350_v2 = vcombine.high %v3342_v54, %v3342_v54  ;;  %v4320_v57 = vsel %vm4266_vm0, %v3334_v25, 0.0 }
  0xf1   :  { %v4322_v17 = vsel %vm4266_vm0, %v3342_v54, 0.0  ;;  %v3376_v53 = vrot.slane %v6849_v1, %v5259_v33  ;;  %v4334_v45 = vsel %vm4266_vm0, %v3366_v44, 0.0  ;;  %v3386_v54 = vcombine.high %v6856_v41, %v6856_v41 }
  0xf2   :  { %v4305_v60 = vadd.f32 %v4304_v8, %v4303_v18  ;;  %v3351_v11 = vcombine.high %v3349_v22, %v3349_v22  ;;  %v4324_v48 = vsel %vm4266_vm0, %v3350_v2, 0.0  ;;  %v4326_v18 = vsel %vm4266_vm0, %v3349_v22, 0.0 }
  0xf3   :  { %v3400_v22 = vrot.slane %v3386_v54, %v5259_v33  ;;  %v3403_v62 = vcombine.high %v6863_v16, %v6863_v16 }
  0xf4   :  { %v4307_v63 = vadd.f32 %v4306_v35, %v4305_v60  ;;  %v4328_v60 = vsel %vm4266_vm0, %v3351_v11, 0.0 }
  0xf5   :  { %v3402_v11 = vcombine.high %v3400_v22, %v3400_v22 }
  0xf6   :  { %v4309_v21 = vadd.f32 %v4308_v55, %v4307_v63  ;;  %v3368_v55 = vcombine.high %v3366_v44, %v3366_v44  ;;  %v3369_v63 = vcombine.high %v6849_v1, %v6849_v1  ;;  %v3393_v1 = vrot.slane %v6856_v41, %v5259_v33 }
  0xf7   :  { %v3410_v41 = vrot.slane %v6863_v16, %v5259_v33  ;;  %v3427_v16 = vrot.slane %v6870_v5, %v5259_v33 }
  0xf8   :  { %v4311_v24 = vadd.f32 %v4310_v0, %v4309_v21  ;;  %v4332_v0 = vsel %vm4266_vm0, %v3367_v58, 0.0  ;;  %v3383_v56 = vrot.slane %v3369_v63, %v5259_v33  ;;  %v3401_v2 = vcombine.high %v3393_v1, %v3393_v1 }
  0xf9   :  { %v3418_v44 = vcombine.high %v3410_v41, %v3410_v41  ;;  %v4352_v58 = vsel %vm4266_vm0, %v3402_v11, 0.0 }
  0xfa   :  { %v4313_v3 = vadd.f32 %v4312_v47, %v4311_v24  ;;  %v3384_v47 = vcombine.high %v3376_v53, %v3376_v53  ;;  %v4336_v24 = vsel %vm4266_vm0, %v3368_v55, 0.0  ;;  %v3385_v50 = vcombine.high %v3383_v56, %v3383_v56 }
  0xfb   :  { %v4348_v34 = vsel %vm4266_vm0, %v3401_v2, 0.0  ;;  %v3420_v55 = vcombine.high %v6870_v5, %v6870_v5  ;;  %v4356_v63 = vsel %vm4266_vm0, %v3418_v44, 0.0  ;;  %v3444_v5 = vrot.slane %v6877_v42, %v5259_v33 }
  0xfc   :  { %v4315_v39 = vadd.f32 %v4314_v43, %v4313_v3  ;;  %v4338_v3 = vsel %vm4266_vm0, %v3376_v53, 0.0 }
  0xfd   :  { %v4370_v2 = vsel %vm4266_vm0, %v3444_v5, 0.0 }
  0xfe   :  { %v4317_v23 = vadd.f32 %v4316_v4, %v4315_v39  ;;  %v4340_v4 = vsel %vm4266_vm0, %v3384_v47, 0.0 }
 0x100   :  { %v4319_v13 = vadd.f32 %v4318_v49, %v4317_v23  ;;  %v4342_v49 = vsel %vm4266_vm0, %v3383_v56, 0.0 }
 0x102   :  { %v4321_v32 = vadd.f32 %v4320_v57, %v4319_v13  ;;  %v4344_v57 = vsel %vm4266_vm0, %v3385_v50, 0.0 }
 0x104   :  { %v4323_v8 = vadd.f32 %v4322_v17, %v4321_v32  ;;  %v4346_v17 = vsel %vm4266_vm0, %v3393_v1, 0.0 }
 0x106   :  { %v4325_v35 = vadd.f32 %v4324_v48, %v4323_v8  ;;  %v4350_v8 = vsel %vm4266_vm0, %v3400_v22, 0.0 }
 0x108   :  { %v4327_v19 = vadd.f32 %v4326_v18, %v4325_v35  ;;  %v3417_v35 = vrot.slane %v3403_v62, %v5259_v33 }
 0x10a   :  { %v4329_v7 = vadd.f32 %v4328_v60, %v4327_v19  ;;  %v4354_v19 = vsel %vm4266_vm0, %v3410_v41, 0.0 }
 0x10c   :  { %v4331_v21 = vadd.f32 %v4330_v29, %v4329_v7  ;;  %v3419_v7 = vcombine.high %v3417_v35, %v3417_v35 }
 0x10e   :  { %v4333_v20 = vadd.f32 %v4332_v0, %v4331_v21  ;;  %v4358_v0 = vsel %vm4266_vm0, %v3417_v35, 0.0  ;;  %v4360_v56 = vsel %vm4266_vm0, %v3419_v7, 0.0 }
 0x110   :  { %v4335_v43 = vadd.f32 %v4334_v45, %v4333_v20  ;;  %v3434_v45 = vrot.slane %v3420_v55, %v5259_v33  ;;  %v3435_v20 = vcombine.high %v3427_v16, %v3427_v16 }
 0x112   :  { %v4337_v25 = vadd.f32 %v4336_v24, %v4335_v43  ;;  %v4362_v24 = vsel %vm4266_vm0, %v3427_v16, 0.0  ;;  %v4364_v50 = vsel %vm4266_vm0, %v3435_v20, 0.0  ;;  %v4366_v1 = vsel %vm4266_vm0, %v3434_v45, 0.0 }
 0x114   :  { %v4339_v39 = vadd.f32 %v4338_v3, %v4337_v25  ;;  %v3436_v3 = vcombine.high %v3434_v45, %v3434_v45  ;;  %v3437_v25 = vcombine.high %v6877_v42, %v6877_v42  ;;  %v3461_v42 = vrot.slane %v6884_v40, %v5259_v33 }
 0x116   :  { %v4341_v23 = vadd.f32 %v4340_v4, %v4339_v39  ;;  %v3451_v39 = vrot.slane %v3437_v25, %v5259_v33  ;;  %v4378_v35 = vsel %vm4266_vm0, %v3461_v42, 0.0 }
 0x118   :  { %v4343_v13 = vadd.f32 %v4342_v49, %v4341_v23  ;;  %v3452_v49 = vcombine.high %v3444_v5, %v3444_v5  ;;  %v4368_v23 = vsel %vm4266_vm0, %v3436_v3, 0.0  ;;  %v4374_v62 = vsel %vm4266_vm0, %v3451_v39, 0.0 }
 0x11a   :  { %v4345_v32 = vadd.f32 %v4344_v57, %v4343_v13  ;;  %v3453_v13 = vcombine.high %v3451_v39, %v3451_v39 }
 0x11c   :  { %v4347_v48 = vadd.f32 %v4346_v17, %v4345_v32  ;;  %v3454_v17 = vcombine.high %v6884_v40, %v6884_v40  ;;  %v4372_v32 = vsel %vm4266_vm0, %v3452_v49, 0.0  ;;  %v3478_v40 = vrot.slane %v6891_v51, %v5259_v33 }
 0x11d   :  { %v3505_v49 = vcombine.high %v6905_v27, %v6905_v27 }
 0x11e   :  { %v4349_v18 = vadd.f32 %v4348_v34, %v4347_v48  ;;  %v3468_v34 = vrot.slane %v3454_v17, %v5259_v33  ;;  %v3469_v48 = vcombine.high %v3461_v42, %v3461_v42 }
 0x120   :  { %v4351_v60 = vadd.f32 %v4350_v8, %v4349_v18  ;;  %v4376_v8 = vsel %vm4266_vm0, %v3453_v13, 0.0  ;;  %v4382_v7 = vsel %vm4266_vm0, %v3468_v34, 0.0  ;;  %v3519_v13 = vrot.slane %v3505_v49, %v5259_v33 }
 0x122   :  { %v4353_v29 = vadd.f32 %v4352_v58, %v4351_v60  ;;  %v3470_v58 = vcombine.high %v3468_v34, %v3468_v34  ;;  %v3471_v60 = vcombine.high %v6891_v51, %v6891_v51  ;;  %v3495_v51 = vrot.slane %v6898_v59, %v5259_v33 }
 0x123   :  { %v3522_v34 = vcombine.high %v6912_v15, %v6912_v15 }
 0x124   :  { %v4355_v53 = vadd.f32 %v4354_v19, %v4353_v29  ;;  %v4380_v19 = vsel %vm4266_vm0, %v3469_v48, 0.0  ;;  %v3485_v16 = vrot.slane %v3471_v60, %v5259_v33  ;;  %v3503_v5 = vcombine.high %v3495_v51, %v3495_v51 }
 0x126   :  { %v4357_v21 = vadd.f32 %v4356_v63, %v4355_v53  ;;  %v3486_v63 = vcombine.high %v3478_v40, %v3478_v40  ;;  %v4384_v53 = vsel %vm4266_vm0, %v3470_v58, 0.0  ;;  %v3487_v20 = vcombine.high %v3485_v16, %v3485_v16 }
 0x128   :  { %v4359_v47 = vadd.f32 %v4358_v0, %v4357_v21  ;;  %v4386_v21 = vsel %vm4266_vm0, %v3478_v40, 0.0 }
 0x12a   :  { %v4361_v43 = vadd.f32 %v4360_v56, %v4359_v47  ;;  %v3488_v56 = vcombine.high %v6898_v59, %v6898_v59  ;;  %v4388_v47 = vsel %vm4266_vm0, %v3486_v63, 0.0  ;;  %v3512_v59 = vrot.slane %v6905_v27, %v5259_v33 }
 0x12b   :  { %v3529_v27 = vrot.slane %v6912_v15, %v5259_v33  ;;  %v3546_v15 = vrot.slane %v6919_v28, %v5259_v33 }
 0x12c   :  { %v4363_v54 = vadd.f32 %v4362_v24, %v4361_v43  ;;  %v4390_v43 = vsel %vm4266_vm0, %v3485_v16, 0.0  ;;  %v3502_v25 = vrot.slane %v3488_v56, %v5259_v33  ;;  %v3520_v17 = vcombine.high %v3512_v59, %v3512_v59 }
 0x12d   :  { %v3537_v58 = vcombine.high %v3529_v27, %v3529_v27 }
 0x12e   :  { %v4365_v4 = vadd.f32 %v4364_v50, %v4363_v54  ;;  %v4392_v50 = vsel %vm4266_vm0, %v3487_v20, 0.0  ;;  %v3504_v39 = vcombine.high %v3502_v25, %v3502_v25  ;;  %v4404_v48 = vsel %vm4266_vm0, %v3520_v17, 0.0 }
 0x12f   :  { %v4412_v16 = vsel %vm4266_vm0, %v3537_v58, 0.0 }
 0x130   :  { %v4367_v22 = vadd.f32 %v4366_v1, %v4365_v4  ;;  %v4394_v1 = vsel %vm4266_vm0, %v3495_v51, 0.0  ;;  %v4400_v42 = vsel %vm4266_vm0, %v3504_v39, 0.0  ;;  %v4418_v51 = vsel %vm4266_vm0, %v3546_v15, 0.0 }
 0x132   :  { %v4369_v57 = vadd.f32 %v4368_v23, %v4367_v22  ;;  %v4396_v23 = vsel %vm4266_vm0, %v3503_v5, 0.0 }
 0x134   :  { %v4371_v11 = vadd.f32 %v4370_v2, %v4369_v57  ;;  %v4398_v2 = vsel %vm4266_vm0, %v3502_v25, 0.0 }
 0x136   :  { %v4373_v41 = vadd.f32 %v4372_v32, %v4371_v11  ;;  %v4402_v11 = vsel %vm4266_vm0, %v3512_v59, 0.0 }
 0x138   :  { %v4375_v18 = vadd.f32 %v4374_v62, %v4373_v41  ;;  %v3521_v41 = vcombine.high %v3519_v13, %v3519_v13 }
 0x13a   :  { %v4377_v44 = vadd.f32 %v4376_v8, %v4375_v18  ;;  %v4406_v18 = vsel %vm4266_vm0, %v3519_v13, 0.0  ;;  %v4408_v60 = vsel %vm4266_vm0, %v3521_v41, 0.0 }
 0x13c   :  { %v4379_v29 = vadd.f32 %v4378_v35, %v4377_v44  ;;  %v3536_v44 = vrot.slane %v3522_v34, %v5259_v33 }
 0x13e   :  { %v4381_v55 = vadd.f32 %v4380_v19, %v4379_v29  ;;  %v4410_v19 = vsel %vm4266_vm0, %v3529_v27, 0.0 }
 0x140   :  { %v4383_v0 = vadd.f32 %v4382_v7, %v4381_v55  ;;  %v3538_v7 = vcombine.high %v3536_v44, %v3536_v44  ;;  %v3539_v55 = vcombine.high %v6919_v28, %v6919_v28  ;;  %v3563_v28 = vrot.slane %v6926_v37, %v5259_v33 }
 0x142   :  { %v4385_v45 = vadd.f32 %v4384_v53, %v4383_v0  ;;  %v4414_v53 = vsel %vm4266_vm0, %v3536_v44, 0.0  ;;  %v4416_v20 = vsel %vm4266_vm0, %v3538_v7, 0.0  ;;  %v4426_v49 = vsel %vm4266_vm0, %v3563_v28, 0.0 }
 0x144   :  { %v4387_v24 = vadd.f32 %v4386_v21, %v4385_v45  ;;  %v3553_v21 = vrot.slane %v3539_v55, %v5259_v33  ;;  %v3554_v45 = vcombine.high %v3546_v15, %v3546_v15  ;;  %v3607_v15 = vcombine.high %v6947_v9, %v6947_v9 }
 0x146   :  { %v4389_v3 = vadd.f32 %v4388_v47, %v4387_v24  ;;  %v3555_v24 = vcombine.high %v3553_v21, %v3553_v21  ;;  %v4422_v5 = vsel %vm4266_vm0, %v3553_v21, 0.0  ;;  %v3621_v21 = vrot.slane %v3607_v15, %v5259_v33 }
 0x148   :  { %v4391_v54 = vadd.f32 %v4390_v43, %v4389_v3  ;;  %v3556_v43 = vcombine.high %v6926_v37, %v6926_v37  ;;  %v4420_v3 = vsel %vm4266_vm0, %v3554_v45, 0.0  ;;  %v3580_v37 = vrot.slane %v6933_v6, %v5259_v33 }
 0x14a   :  { %v4393_v4 = vadd.f32 %v4392_v50, %v4391_v54  ;;  %v3570_v54 = vrot.slane %v3556_v43, %v5259_v33  ;;  %v4434_v41 = vsel %vm4266_vm0, %v3580_v37, 0.0  ;;  %v3624_v43 = vcombine.high %v6954_v31, %v6954_v31 }
 0x14c   :  { %v4395_v22 = vadd.f32 %v4394_v1, %v4393_v4  ;;  %v3571_v1 = vcombine.high %v3563_v28, %v3563_v28  ;;  %v4424_v4 = vsel %vm4266_vm0, %v3555_v24, 0.0  ;;  %v4430_v13 = vsel %vm4266_vm0, %v3570_v54, 0.0 }
 0x14d   :  { %v3623_v24 = vcombine.high %v3621_v21, %v3621_v21 }
 0x14e   :  { %v4397_v57 = vadd.f32 %v4396_v23, %v4395_v22  ;;  %v3572_v23 = vcombine.high %v3570_v54, %v3570_v54  ;;  %v3573_v22 = vcombine.high %v6933_v6, %v6933_v6  ;;  %v3597_v6 = vrot.slane %v6940_v61, %v5259_v33 }
 0x150   :  { %v4399_v32 = vadd.f32 %v4398_v2, %v4397_v57  ;;  %v4428_v2 = vsel %vm4266_vm0, %v3571_v1, 0.0  ;;  %v4456_v1 = vsel %vm4266_vm0, %v3623_v24, 0.0 }
 0x152   :  { %v4401_v62 = vadd.f32 %v4400_v42, %v4399_v32  ;;  %v3587_v42 = vrot.slane %v3573_v22, %v5259_v33  ;;  %v3588_v32 = vcombine.high %v3580_v37, %v3580_v37 }
 0x154   :  { %v4403_v8 = vadd.f32 %v4402_v11, %v4401_v62  ;;  %v4432_v11 = vsel %vm4266_vm0, %v3572_v23, 0.0  ;;  %v3589_v27 = vcombine.high %v3587_v42, %v3587_v42  ;;  %v3641_v23 = vcombine.high %v6961_v10, %v6961_v10 }
 0x156   :  { %v4405_v35 = vadd.f32 %v4404_v48, %v4403_v8  ;;  %v3590_v48 = vcombine.high %v6940_v61, %v6940_v61  ;;  %v4436_v8 = vsel %vm4266_vm0, %v3588_v32, 0.0  ;;  %v3614_v61 = vrot.slane %v6947_v9, %v5259_v33 }
 0x157   :  { %v3631_v9 = vrot.slane %v6954_v31, %v5259_v33  ;;  %v3648_v31 = vrot.slane %v6961_v10, %v5259_v33  ;;  %v3665_v10 = vrot.slane %v6968_v14, %v5259_v33 }
 0x158   :  { %v4407_v40 = vadd.f32 %v4406_v18, %v4405_v35  ;;  %v4438_v35 = vsel %vm4266_vm0, %v3587_v42, 0.0  ;;  %v3604_v58 = vrot.slane %v3590_v48, %v5259_v33  ;;  %v3622_v45 = vcombine.high %v3614_v61, %v3614_v61 }
 0x159   :  { %v3639_v54 = vcombine.high %v3631_v9, %v3631_v9 }
 0x15a   :  { %v4409_v29 = vadd.f32 %v4408_v60, %v4407_v40  ;;  %v3605_v60 = vcombine.high %v3597_v6, %v3597_v6  ;;  %v4440_v40 = vsel %vm4266_vm0, %v3589_v27, 0.0  ;;  %v3606_v55 = vcombine.high %v3604_v58, %v3604_v58 }
 0x15b   :  { %v4452_v28 = vsel %vm4266_vm0, %v3622_v45, 0.0  ;;  %v4460_v22 = vsel %vm4266_vm0, %v3639_v54, 0.0 }
 0x15c   :  { %v4411_v63 = vadd.f32 %v4410_v19, %v4409_v29  ;;  %v4442_v29 = vsel %vm4266_vm0, %v3597_v6, 0.0 }
 0x15e   :  { %v4413_v0 = vadd.f32 %v4412_v16, %v4411_v63  ;;  %v4444_v16 = vsel %vm4266_vm0, %v3605_v60, 0.0  ;;  %v4474_v60 = vsel %vm4266_vm0, %v3665_v10, 0.0 }
 0x160   :  { %v4415_v56 = vadd.f32 %v4414_v53, %v4413_v0  ;;  %v4446_v53 = vsel %vm4266_vm0, %v3604_v58, 0.0 }
 0x162   :  { %v4417_v47 = vadd.f32 %v4416_v20, %v4415_v56  ;;  %v4448_v20 = vsel %vm4266_vm0, %v3606_v55, 0.0 }
 0x164   :  { %v4419_v25 = vadd.f32 %v4418_v51, %v4417_v47  ;;  %v4450_v51 = vsel %vm4266_vm0, %v3614_v61, 0.0 }
 0x166   :  { %v4421_v50 = vadd.f32 %v4420_v3, %v4419_v25  ;;  %v4454_v25 = vsel %vm4266_vm0, %v3621_v21, 0.0 }
 0x168   :  { %v4423_v39 = vadd.f32 %v4422_v5, %v4421_v50  ;;  %v3638_v50 = vrot.slane %v3624_v43, %v5259_v33 }
 0x16a   :  { %v4425_v59 = vadd.f32 %v4424_v4, %v4423_v39  ;;  %v4458_v39 = vsel %vm4266_vm0, %v3631_v9, 0.0 }
 0x16c   :  { %v4427_v57 = vadd.f32 %v4426_v49, %v4425_v59  ;;  %v3640_v59 = vcombine.high %v3638_v50, %v3638_v50 }
 0x16e   :  { %v4429_v17 = vadd.f32 %v4428_v2, %v4427_v57  ;;  %v4462_v2 = vsel %vm4266_vm0, %v3638_v50, 0.0  ;;  %v4464_v42 = vsel %vm4266_vm0, %v3640_v59, 0.0 }
 0x170   :  { %v4431_v62 = vadd.f32 %v4430_v13, %v4429_v17  ;;  %v3655_v13 = vrot.slane %v3641_v23, %v5259_v33  ;;  %v3656_v17 = vcombine.high %v3648_v31, %v3648_v31 }
 0x172   :  { %v4433_v34 = vadd.f32 %v4432_v11, %v4431_v62  ;;  %v4466_v11 = vsel %vm4266_vm0, %v3648_v31, 0.0  ;;  %v4468_v27 = vsel %vm4266_vm0, %v3656_v17, 0.0  ;;  %v4470_v6 = vsel %vm4266_vm0, %v3655_v13, 0.0 }
 0x173   :  { %v3726_v17 = vcombine.high %v6996_v36, %v6996_v36 }
 0x174   :  { %v4435_v18 = vadd.f32 %v4434_v41, %v4433_v34  ;;  %v3657_v41 = vcombine.high %v3655_v13, %v3655_v13  ;;  %v3658_v34 = vcombine.high %v6968_v14, %v6968_v14  ;;  %v3682_v14 = vrot.slane %v6975_v38, %v5259_v33 }
 0x176   :  { %v4437_v44 = vadd.f32 %v4436_v8, %v4435_v18  ;;  %v3672_v18 = vrot.slane %v3658_v34, %v5259_v33  ;;  %v4482_v21 = vsel %vm4266_vm0, %v3682_v14, 0.0 }
 0x178   :  { %v4439_v19 = vadd.f32 %v4438_v35, %v4437_v44  ;;  %v3673_v35 = vcombine.high %v3665_v10, %v3665_v10  ;;  %v4472_v44 = vsel %vm4266_vm0, %v3657_v41, 0.0  ;;  %v4478_v15 = vsel %vm4266_vm0, %v3672_v18, 0.0 }
 0x179   :  { %v3740_v41 = vrot.slane %v3726_v17, %v5259_v33 }
 0x17a   :  { %v4441_v7 = vadd.f32 %v4440_v40, %v4439_v19  ;;  %v3674_v19 = vcombine.high %v3672_v18, %v3672_v18  ;;  %v3743_v18 = vcombine.high %v7003_v46, %v7003_v46 }
 0x17c   :  { %v4443_v63 = vadd.f32 %v4442_v29, %v4441_v7  ;;  %v3675_v29 = vcombine.high %v6975_v38, %v6975_v38  ;;  %v4476_v7 = vsel %vm4266_vm0, %v3673_v35, 0.0  ;;  %v3699_v38 = vrot.slane %v6982_v52, %v5259_v33 }
 0x17e   :  { %v4445_v0 = vadd.f32 %v4444_v16, %v4443_v63  ;;  %v3689_v16 = vrot.slane %v3675_v29, %v5259_v33  ;;  %v3690_v63 = vcombine.high %v3682_v14, %v3682_v14 }
 0x180   :  { %v4447_v56 = vadd.f32 %v4446_v53, %v4445_v0  ;;  %v4480_v53 = vsel %vm4266_vm0, %v3674_v19, 0.0  ;;  %v4486_v24 = vsel %vm4266_vm0, %v3689_v16, 0.0 }
 0x182   :  { %v4449_v47 = vadd.f32 %v4448_v20, %v4447_v56  ;;  %v3691_v20 = vcombine.high %v3689_v16, %v3689_v16  ;;  %v3692_v56 = vcombine.high %v6982_v52, %v6982_v52  ;;  %v3716_v52 = vrot.slane %v6989_v12, %v5259_v33 }
 0x184   :  { %v4451_v3 = vadd.f32 %v4450_v51, %v4449_v47  ;;  %v4484_v51 = vsel %vm4266_vm0, %v3690_v63, 0.0  ;;  %v3706_v9 = vrot.slane %v3692_v56, %v5259_v33  ;;  %v3724_v31 = vcombine.high %v3716_v52, %v3716_v52 }
 0x186   :  { %v4453_v5 = vadd.f32 %v4452_v28, %v4451_v3  ;;  %v3707_v28 = vcombine.high %v3699_v38, %v3699_v38  ;;  %v4488_v3 = vsel %vm4266_vm0, %v3691_v20, 0.0  ;;  %v3708_v54 = vcombine.high %v3706_v9, %v3706_v9 }
 0x188   :  { %v4455_v4 = vadd.f32 %v4454_v25, %v4453_v5  ;;  %v4490_v5 = vsel %vm4266_vm0, %v3699_v38, 0.0 }
 0x18a   :  { %v4457_v49 = vadd.f32 %v4456_v1, %v4455_v4  ;;  %v3709_v1 = vcombine.high %v6989_v12, %v6989_v12  ;;  %v4492_v4 = vsel %vm4266_vm0, %v3707_v28, 0.0  ;;  %v3733_v12 = vrot.slane %v6996_v36, %v5259_v33 }
 0x18b   :  { %v3750_v36 = vrot.slane %v7003_v46, %v5259_v33  ;;  %v3767_v46 = vrot.slane %v7010_v26, %v5259_v33 }
 0x18c   :  { %v4459_v37 = vadd.f32 %v4458_v39, %v4457_v49  ;;  %v4494_v49 = vsel %vm4266_vm0, %v3706_v9, 0.0  ;;  %v3723_v23 = vrot.slane %v3709_v1, %v5259_v33  ;;  %v3741_v34 = vcombine.high %v3733_v12, %v3733_v12 }
 0x18d   :  { %v3758_v19 = vcombine.high %v3750_v36, %v3750_v36  ;;  %v4522_v38 = vsel %vm4266_vm0, %v3767_v46, 0.0 }
 0x18e   :  { %v4461_v57 = vadd.f32 %v4460_v22, %v4459_v37  ;;  %v4496_v22 = vsel %vm4266_vm0, %v3708_v54, 0.0  ;;  %v3725_v13 = vcombine.high %v3723_v23, %v3723_v23  ;;  %v4508_v35 = vsel %vm4266_vm0, %v3741_v34, 0.0 }
 0x18f   :  { %v4516_v16 = vsel %vm4266_vm0, %v3758_v19, 0.0 }
 0x190   :  { %v4463_v32 = vadd.f32 %v4462_v2, %v4461_v57  ;;  %v4498_v2 = vsel %vm4266_vm0, %v3716_v52, 0.0  ;;  %v4504_v10 = vsel %vm4266_vm0, %v3725_v13, 0.0 }
 0x192   :  { %v4465_v62 = vadd.f32 %v4464_v42, %v4463_v32  ;;  %v4500_v42 = vsel %vm4266_vm0, %v3724_v31, 0.0 }
 0x194   :  { %v4467_v48 = vadd.f32 %v4466_v11, %v4465_v62  ;;  %v4502_v11 = vsel %vm4266_vm0, %v3723_v23, 0.0 }
 0x196   :  { %v4469_v8 = vadd.f32 %v4468_v27, %v4467_v48  ;;  %v4506_v48 = vsel %vm4266_vm0, %v3733_v12, 0.0 }
 0x198   :  { %v4471_v58 = vadd.f32 %v4470_v6, %v4469_v8  ;;  %v3742_v8 = vcombine.high %v3740_v41, %v3740_v41 }
 0x19a   :  { %v4473_v40 = vadd.f32 %v4472_v44, %v4471_v58  ;;  %v4510_v58 = vsel %vm4266_vm0, %v3740_v41, 0.0  ;;  %v4512_v29 = vsel %vm4266_vm0, %v3742_v8, 0.0 }
 0x19c   :  { %v4475_v55 = vadd.f32 %v4474_v60, %v4473_v40  ;;  %v3757_v40 = vrot.slane %v3743_v18, %v5259_v33 }
 0x19e   :  { %v4477_v61 = vadd.f32 %v4476_v7, %v4475_v55  ;;  %v4514_v7 = vsel %vm4266_vm0, %v3750_v36, 0.0 }
 0x1a0   :  { %v4479_v0 = vadd.f32 %v4478_v15, %v4477_v61  ;;  %v3759_v15 = vcombine.high %v3757_v40, %v3757_v40  ;;  %v3760_v61 = vcombine.high %v7010_v26, %v7010_v26  ;;  %v3784_v26 = vrot.slane %v7017_v30, %v5259_v33 }
 0x1a2   :  { %v4481_v45 = vadd.f32 %v4480_v53, %v4479_v0  ;;  %v4518_v53 = vsel %vm4266_vm0, %v3757_v40, 0.0  ;;  %v4520_v20 = vsel %vm4266_vm0, %v3759_v15, 0.0  ;;  %v4530_v1 = vsel %vm4266_vm0, %v3784_v26, 0.0 }
 0x1a4   :  { %v4483_v47 = vadd.f32 %v4482_v21, %v4481_v45  ;;  %v3774_v21 = vrot.slane %v3760_v61, %v5259_v33  ;;  %v3775_v45 = vcombine.high %v3767_v46, %v3767_v46 }
 0x1a6   :  { %v4485_v43 = vadd.f32 %v4484_v51, %v4483_v47  ;;  %v3776_v47 = vcombine.high %v3774_v21, %v3774_v21  ;;  %v4526_v28 = vsel %vm4266_vm0, %v3774_v21, 0.0 }
 0x1a8   :  { %v4487_v25 = vadd.f32 %v4486_v24, %v4485_v43  ;;  %v3777_v24 = vcombine.high %v7017_v30, %v7017_v30  ;;  %v4524_v43 = vsel %vm4266_vm0, %v3775_v45, 0.0 }
 0x1aa   :  { %v4489_v50 = vadd.f32 %v4488_v3, %v4487_v25  ;;  %v3791_v25 = vrot.slane %v3777_v24, %v5259_v33 }
 0x1ac   :  { %v4491_v39 = vadd.f32 %v4490_v5, %v4489_v50  ;;  %v3792_v5 = vcombine.high %v3784_v26, %v3784_v26  ;;  %v4528_v50 = vsel %vm4266_vm0, %v3776_v47, 0.0  ;;  %v4534_v31 = vsel %vm4266_vm0, %v3791_v25, 0.0 }
 0x1ae   :  { %v4493_v59 = vadd.f32 %v4492_v4, %v4491_v39  ;;  %v3793_v4 = vcombine.high %v3791_v25, %v3791_v25  ;;  %v8335_v39 = vld [vmem:[#allocation62_spill] sm:$0xff]  ;;  %v8339_v25 = vld [vmem:[#allocation67_spill] sm:$0xff] }
 0x1af   :  { %v3801_v30 = vrot.slane %v8335_v39, %v5259_v33 }
 0x1b0   :  { %v4495_v37 = vadd.f32 %v4494_v49, %v4493_v59  ;;  %v3794_v49 = vcombine.high %v8335_v39, %v8335_v39  ;;  %v4532_v59 = vsel %vm4266_vm0, %v3792_v5, 0.0  ;;  %v3862_v5 = vcombine.high %v8339_v25, %v8339_v25 }
 0x1b1   :  { %v4538_v17 = vsel %vm4266_vm0, %v3801_v30, 0.0 }
 0x1b2   :  { %v4497_v57 = vadd.f32 %v4496_v22, %v4495_v37  ;;  %v3808_v37 = vrot.slane %v3794_v49, %v5259_v33  ;;  %v3876_v39 = vrot.slane %v3862_v5, %v5259_v33 }
 0x1b4   :  { %v4499_v32 = vadd.f32 %v4498_v2, %v4497_v57  ;;  %v3809_v2 = vcombine.high %v3801_v30, %v3801_v30  ;;  %v4536_v57 = vsel %vm4266_vm0, %v3793_v4, 0.0 }
 0x1b6   :  { %v4501_v62 = vadd.f32 %v4500_v42, %v4499_v32  ;;  %v3810_v42 = vcombine.high %v3808_v37, %v3808_v37  ;;  %v8336_v32 = vld [vmem:[#allocation64_spill] sm:$0xff]  ;;  %v4540_v41 = vsel %vm4266_vm0, %v3809_v2, 0.0 }
 0x1b8   :  { %v4503_v27 = vadd.f32 %v4502_v11, %v4501_v62  ;;  %v3811_v11 = vcombine.high %v8336_v32, %v8336_v32  ;;  %v3818_v62 = vrot.slane %v8336_v32, %v5259_v33  ;;  %v4544_v8 = vsel %vm4266_vm0, %v3810_v42, 0.0 }
 0x1ba   :  { %v4505_v6 = vadd.f32 %v4504_v10, %v4503_v27  ;;  %v4542_v10 = vsel %vm4266_vm0, %v3808_v37, 0.0  ;;  %v4546_v36 = vsel %vm4266_vm0, %v3818_v62, 0.0  ;;  %v8340_v37 = vld [vmem:[#allocation66_spill] sm:$0xff] }
 0x1bb   :  { %v3879_v2 = vcombine.high %v8340_v37, %v8340_v37 }
 0x1bc   :  { %v4507_v44 = vadd.f32 %v4506_v48, %v4505_v6  ;;  %v3825_v48 = vrot.slane %v3811_v11, %v5259_v33  ;;  %v3826_v6 = vcombine.high %v3818_v62, %v3818_v62 }
 0x1bd   :  { %v3893_v32 = vrot.slane %v3879_v2, %v5259_v33 }
 0x1be   :  { %v4509_v60 = vadd.f32 %v4508_v35, %v4507_v44  ;;  %v3827_v44 = vcombine.high %v3825_v48, %v3825_v48  ;;  %v4548_v19 = vsel %vm4266_vm0, %v3826_v6, 0.0 }
 0x1c0   :  { %v4511_v14 = vadd.f32 %v4510_v58, %v4509_v60  ;;  %v8337_v58 = vld [vmem:[#allocation63_spill] sm:$0xff]  ;;  %v4552_v61 = vsel %vm4266_vm0, %v3827_v44, 0.0 }
 0x1c1   :  { %v3828_v60 = vcombine.high %v8337_v58, %v8337_v58  ;;  %v3835_v40 = vrot.slane %v8337_v58, %v5259_v33 }
 0x1c2   :  { %v4513_v55 = vadd.f32 %v4512_v29, %v4511_v14  ;;  %v4550_v14 = vsel %vm4266_vm0, %v3825_v48, 0.0  ;;  %v8341_v48 = vld [vmem:[#allocation68_spill] sm:$0xff] }
 0x1c3   :  { %v3843_v15 = vcombine.high %v3835_v40, %v3835_v40  ;;  %v3896_v6 = vcombine.high %v8341_v48, %v8341_v48 }
 0x1c4   :  { %v4515_v63 = vadd.f32 %v4514_v7, %v4513_v55  ;;  %v3842_v55 = vrot.slane %v3828_v60, %v5259_v33 }
 0x1c5   :  { %v3910_v58 = vrot.slane %v3896_v6, %v5259_v33 }
 0x1c6   :  { %v4517_v0 = vadd.f32 %v4516_v16, %v4515_v63  ;;  %v4554_v16 = vsel %vm4266_vm0, %v3835_v40, 0.0 }
 0x1c8   :  { %v4519_v56 = vadd.f32 %v4518_v53, %v4517_v0  ;;  %v3844_v53 = vcombine.high %v3842_v55, %v3842_v55  ;;  %v8338_v0 = vld [vmem:[#allocation65_spill] sm:$0xff] }
 0x1c9   :  { %v3845_v21 = vcombine.high %v8338_v0, %v8338_v0  ;;  %v3852_v45 = vrot.slane %v8338_v0, %v5259_v33 }
 0x1ca   :  { %v4521_v51 = vadd.f32 %v4520_v20, %v4519_v56  ;;  %v4556_v20 = vsel %vm4266_vm0, %v3843_v15, 0.0  ;;  %v4560_v26 = vsel %vm4266_vm0, %v3844_v53, 0.0 }
 0x1cb   :  { %v3859_v47 = vrot.slane %v3845_v21, %v5259_v33  ;;  %v3860_v24 = vcombine.high %v3852_v45, %v3852_v45 }
 0x1cc   :  { %v4523_v9 = vadd.f32 %v4522_v38, %v4521_v51  ;;  %v4558_v38 = vsel %vm4266_vm0, %v3842_v55, 0.0  ;;  %v8342_v55 = vld [vmem:[#allocation70_spill] sm:$0xff] }
 0x1cd   :  { %v3913_v15 = vcombine.high %v8342_v55, %v8342_v55 }
 0x1ce   :  { %v4525_v3 = vadd.f32 %v4524_v43, %v4523_v9  ;;  %v4562_v9 = vsel %vm4266_vm0, %v3852_v45, 0.0 }
 0x1cf   :  { %v3927_v0 = vrot.slane %v3913_v15, %v5259_v33 }
 0x1d0   :  { %v4527_v54 = vadd.f32 %v4526_v28, %v4525_v3  ;;  %v3861_v3 = vcombine.high %v3859_v47, %v3859_v47 }
 0x1d2   :  { %v4529_v52 = vadd.f32 %v4528_v50, %v4527_v54  ;;  %v3869_v50 = vrot.slane %v8339_v25, %v5259_v33  ;;  %v4564_v54 = vsel %vm4266_vm0, %v3860_v24, 0.0  ;;  %v4568_v30 = vsel %vm4266_vm0, %v3861_v3, 0.0 }
 0x1d4   :  { %v4531_v23 = vadd.f32 %v4530_v1, %v4529_v52  ;;  %v4566_v52 = vsel %vm4266_vm0, %v3859_v47, 0.0  ;;  %v3877_v49 = vcombine.high %v3869_v50, %v3869_v50  ;;  %v8343_v47 = vld [vmem:[#allocation69_spill] sm:$0xff] }
 0x1d5   :  { %v3930_v24 = vcombine.high %v8343_v47, %v8343_v47 }
 0x1d6   :  { %v4533_v22 = vadd.f32 %v4532_v59, %v4531_v23  ;;  %v4570_v23 = vsel %vm4266_vm0, %v3869_v50, 0.0 }
 0x1d7   :  { %v3944_v25 = vrot.slane %v3930_v24, %v5259_v33 }
 0x1d8   :  { %v4535_v13 = vadd.f32 %v4534_v31, %v4533_v22  ;;  %v3878_v22 = vcombine.high %v3876_v39, %v3876_v39 }
 0x1da   :  { %v4537_v12 = vadd.f32 %v4536_v57, %v4535_v13  ;;  %v3886_v57 = vrot.slane %v8340_v37, %v5259_v33  ;;  %v4572_v13 = vsel %vm4266_vm0, %v3877_v49, 0.0  ;;  %v4576_v62 = vsel %vm4266_vm0, %v3878_v22, 0.0 }
 0x1dc   :  { %v4539_v34 = vadd.f32 %v4538_v17, %v4537_v12  ;;  %v4574_v12 = vsel %vm4266_vm0, %v3876_v39, 0.0  ;;  %v3894_v11 = vcombine.high %v3886_v57, %v3886_v57  ;;  %v8344_v39 = vld [vmem:[#allocation71_spill] sm:$0xff] }
 0x1dd   :  { %v3947_v49 = vcombine.high %v8344_v39, %v8344_v39 }
 0x1de   :  { %v4541_v27 = vadd.f32 %v4540_v41, %v4539_v34  ;;  %v4578_v34 = vsel %vm4266_vm0, %v3886_v57, 0.0 }
 0x1df   :  { %v3961_v37 = vrot.slane %v3947_v49, %v5259_v33 }
 0x1e0   :  { %v4543_v18 = vadd.f32 %v4542_v10, %v4541_v27  ;;  %v3895_v27 = vcombine.high %v3893_v32, %v3893_v32 }
 0x1e2   :  { %v4545_v35 = vadd.f32 %v4544_v8, %v4543_v18  ;;  %v3903_v8 = vrot.slane %v8341_v48, %v5259_v33  ;;  %v4580_v18 = vsel %vm4266_vm0, %v3894_v11, 0.0  ;;  %v4584_v40 = vsel %vm4266_vm0, %v3895_v27, 0.0 }
 0x1e4   :  { %v4547_v29 = vadd.f32 %v4546_v36, %v4545_v35  ;;  %v4582_v35 = vsel %vm4266_vm0, %v3893_v32, 0.0  ;;  %v3911_v60 = vcombine.high %v3903_v8, %v3903_v8  ;;  %v8345_v32 = vld [vmem:[#allocation73_spill] sm:$0xff] }
 0x1e5   :  { %v3964_v11 = vcombine.high %v8345_v32, %v8345_v32 }
 0x1e6   :  { %v4549_v7 = vadd.f32 %v4548_v19, %v4547_v29  ;;  %v4586_v29 = vsel %vm4266_vm0, %v3903_v8, 0.0 }
 0x1e7   :  { %v3978_v48 = vrot.slane %v3964_v11, %v5259_v33 }
 0x1e8   :  { %v4551_v46 = vadd.f32 %v4550_v14, %v4549_v7  ;;  %v3912_v7 = vcombine.high %v3910_v58, %v3910_v58 }
 0x1ea   :  { %v4553_v63 = vadd.f32 %v4552_v61, %v4551_v46  ;;  %v3920_v61 = vrot.slane %v8342_v55, %v5259_v33  ;;  %v4588_v46 = vsel %vm4266_vm0, %v3911_v60, 0.0  ;;  %v4592_v45 = vsel %vm4266_vm0, %v3912_v7, 0.0 }
 0x1ec   :  { %v4555_v56 = vadd.f32 %v4554_v16, %v4553_v63  ;;  %v4590_v63 = vsel %vm4266_vm0, %v3910_v58, 0.0  ;;  %v3928_v21 = vcombine.high %v3920_v61, %v3920_v61  ;;  %v8346_v58 = vld [vmem:[#allocation72_spill] sm:$0xff] }
 0x1ed   :  { %v3981_v60 = vcombine.high %v8346_v58, %v8346_v58 }
 0x1ee   :  { %v4557_v51 = vadd.f32 %v4556_v20, %v4555_v56  ;;  %v4594_v56 = vsel %vm4266_vm0, %v3920_v61, 0.0 }
 0x1ef   :  { %v3995_v55 = vrot.slane %v3981_v60, %v5259_v33 }
 0x1f0   :  { %v4559_v43 = vadd.f32 %v4558_v38, %v4557_v51  ;;  %v3929_v51 = vcombine.high %v3927_v0, %v3927_v0 }
 0x1f2   :  { %v4561_v28 = vadd.f32 %v4560_v26, %v4559_v43  ;;  %v3937_v26 = vrot.slane %v8343_v47, %v5259_v33  ;;  %v4596_v43 = vsel %vm4266_vm0, %v3928_v21, 0.0  ;;  %v4600_v50 = vsel %vm4266_vm0, %v3929_v51, 0.0 }
 0x1f4   :  { %v4563_v1 = vadd.f32 %v4562_v9, %v4561_v28  ;;  %v4598_v28 = vsel %vm4266_vm0, %v3927_v0, 0.0  ;;  %v3945_v5 = vcombine.high %v3937_v26, %v3937_v26  ;;  %v8347_v0 = vld [vmem:[#allocation74_spill] sm:$0xff] }
 0x1f5   :  { %v3998_v21 = vcombine.high %v8347_v0, %v8347_v0 }
 0x1f6   :  { %v4565_v4 = vadd.f32 %v4564_v54, %v4563_v1  ;;  %v4602_v1 = vsel %vm4266_vm0, %v3937_v26, 0.0 }
 0x1f7   :  { %v4012_v47 = vrot.slane %v3998_v21, %v5259_v33 }
 0x1f8   :  { %v4567_v59 = vadd.f32 %v4566_v52, %v4565_v4  ;;  %v3946_v4 = vcombine.high %v3944_v25, %v3944_v25 }
 0x1fa   :  { %v4569_v31 = vadd.f32 %v4568_v30, %v4567_v59  ;;  %v3954_v30 = vrot.slane %v8344_v39, %v5259_v33  ;;  %v4604_v59 = vsel %vm4266_vm0, %v3945_v5, 0.0  ;;  %v4608_v57 = vsel %vm4266_vm0, %v3946_v4, 0.0 }
 0x1fc   :  { %v4571_v17 = vadd.f32 %v4570_v23, %v4569_v31  ;;  %v4606_v31 = vsel %vm4266_vm0, %v3944_v25, 0.0  ;;  %v3962_v2 = vcombine.high %v3954_v30, %v3954_v30  ;;  %v8348_v25 = vld [vmem:[#allocation76_spill] sm:$0xff] }
 0x1fd   :  { %v4015_v5 = vcombine.high %v8348_v25, %v8348_v25 }
 0x1fe   :  { %v4573_v42 = vadd.f32 %v4572_v13, %v4571_v17  ;;  %v4610_v17 = vsel %vm4266_vm0, %v3954_v30, 0.0 }
 0x1ff   :  { %v4029_v39 = vrot.slane %v4015_v5, %v5259_v33 }
 0x200   :  { %v4575_v41 = vadd.f32 %v4574_v12, %v4573_v42  ;;  %v3963_v42 = vcombine.high %v3961_v37, %v3961_v37 }
 0x202   :  { %v4577_v10 = vadd.f32 %v4576_v62, %v4575_v41  ;;  %v3971_v62 = vrot.slane %v8345_v32, %v5259_v33  ;;  %v4612_v41 = vsel %vm4266_vm0, %v3962_v2, 0.0  ;;  %v4616_v8 = vsel %vm4266_vm0, %v3963_v42, 0.0 }
 0x204   :  { %v4579_v36 = vadd.f32 %v4578_v34, %v4577_v10  ;;  %v4614_v10 = vsel %vm4266_vm0, %v3961_v37, 0.0  ;;  %v3979_v6 = vcombine.high %v3971_v62, %v3971_v62  ;;  %v8349_v37 = vld [vmem:[#allocation75_spill] sm:$0xff] }
 0x205   :  { %v4032_v2 = vcombine.high %v8349_v37, %v8349_v37 }
 0x206   :  { %v4581_v44 = vadd.f32 %v4580_v18, %v4579_v36  ;;  %v4618_v36 = vsel %vm4266_vm0, %v3971_v62, 0.0 }
 0x207   :  { %v4046_v32 = vrot.slane %v4032_v2, %v5259_v33 }
 0x208   :  { %v4583_v19 = vadd.f32 %v4582_v35, %v4581_v44  ;;  %v3980_v44 = vcombine.high %v3978_v48, %v3978_v48 }
 0x20a   :  { %v4585_v14 = vadd.f32 %v4584_v40, %v4583_v19  ;;  %v3988_v40 = vrot.slane %v8346_v58, %v5259_v33  ;;  %v4620_v19 = vsel %vm4266_vm0, %v3979_v6, 0.0  ;;  %v4624_v61 = vsel %vm4266_vm0, %v3980_v44, 0.0 }
 0x20c   :  { %v4587_v16 = vadd.f32 %v4586_v29, %v4585_v14  ;;  %v4622_v14 = vsel %vm4266_vm0, %v3978_v48, 0.0  ;;  %v3996_v15 = vcombine.high %v3988_v40, %v3988_v40  ;;  %v8350_v48 = vld [vmem:[#allocation77_spill] sm:$0xff] }
 0x20d   :  { %v4049_v6 = vcombine.high %v8350_v48, %v8350_v48 }
 0x20e   :  { %v4589_v53 = vadd.f32 %v4588_v46, %v4587_v16  ;;  %v4626_v16 = vsel %vm4266_vm0, %v3988_v40, 0.0 }
 0x20f   :  { %v4063_v58 = vrot.slane %v4049_v6, %v5259_v33 }
 0x210   :  { %v4591_v20 = vadd.f32 %v4590_v63, %v4589_v53  ;;  %v3997_v53 = vcombine.high %v3995_v55, %v3995_v55 }
 0x212   :  { %v4593_v38 = vadd.f32 %v4592_v45, %v4591_v20  ;;  %v4005_v45 = vrot.slane %v8347_v0, %v5259_v33  ;;  %v4628_v20 = vsel %vm4266_vm0, %v3996_v15, 0.0  ;;  %v4632_v26 = vsel %vm4266_vm0, %v3997_v53, 0.0 }
 0x214   :  { %v4595_v9 = vadd.f32 %v4594_v56, %v4593_v38  ;;  %v4630_v38 = vsel %vm4266_vm0, %v3995_v55, 0.0  ;;  %v4013_v24 = vcombine.high %v4005_v45, %v4005_v45 }
 0x216   :  { %v4597_v3 = vadd.f32 %v4596_v43, %v4595_v9  ;;  %v4634_v9 = vsel %vm4266_vm0, %v4005_v45, 0.0 }
 0x218   :  { %v4599_v54 = vadd.f32 %v4598_v28, %v4597_v3  ;;  %v4014_v3 = vcombine.high %v4012_v47, %v4012_v47 }
 0x21a   :  { %v4601_v52 = vadd.f32 %v4600_v50, %v4599_v54  ;;  %v4022_v50 = vrot.slane %v8348_v25, %v5259_v33  ;;  %v4636_v54 = vsel %vm4266_vm0, %v4013_v24, 0.0  ;;  %v4640_v30 = vsel %vm4266_vm0, %v4014_v3, 0.0 }
 0x21c   :  { %v4603_v23 = vadd.f32 %v4602_v1, %v4601_v52  ;;  %v4638_v52 = vsel %vm4266_vm0, %v4012_v47, 0.0  ;;  %v4030_v49 = vcombine.high %v4022_v50, %v4022_v50 }
 0x21e   :  { %v4605_v22 = vadd.f32 %v4604_v59, %v4603_v23  ;;  %v4642_v23 = vsel %vm4266_vm0, %v4022_v50, 0.0 }
 0x220   :  { %v4607_v13 = vadd.f32 %v4606_v31, %v4605_v22  ;;  %v4031_v22 = vcombine.high %v4029_v39, %v4029_v39 }
 0x222   :  { %v4609_v12 = vadd.f32 %v4608_v57, %v4607_v13  ;;  %v4039_v57 = vrot.slane %v8349_v37, %v5259_v33  ;;  %v4644_v13 = vsel %vm4266_vm0, %v4030_v49, 0.0  ;;  %v4648_v62 = vsel %vm4266_vm0, %v4031_v22, 0.0 }
 0x224   :  { %v4611_v34 = vadd.f32 %v4610_v17, %v4609_v12  ;;  %v4646_v12 = vsel %vm4266_vm0, %v4029_v39, 0.0  ;;  %v4047_v11 = vcombine.high %v4039_v57, %v4039_v57 }
 0x226   :  { %v4613_v27 = vadd.f32 %v4612_v41, %v4611_v34  ;;  %v4650_v34 = vsel %vm4266_vm0, %v4039_v57, 0.0 }
 0x228   :  { %v4615_v18 = vadd.f32 %v4614_v10, %v4613_v27  ;;  %v4048_v27 = vcombine.high %v4046_v32, %v4046_v32 }
 0x22a   :  { %v4617_v35 = vadd.f32 %v4616_v8, %v4615_v18  ;;  %v4056_v8 = vrot.slane %v8350_v48, %v5259_v33  ;;  %v4652_v18 = vsel %vm4266_vm0, %v4047_v11, 0.0  ;;  %v4656_v40 = vsel %vm4266_vm0, %v4048_v27, 0.0  ;;  %v4688_v33 = vld [vmem:[#allocation2] ss:$0 sm:$0xff] }
 0x22c   :  { %v4619_v29 = vadd.f32 %v4618_v36, %v4617_v35  ;;  %v4654_v35 = vsel %vm4266_vm0, %v4046_v32, 0.0  ;;  %v4064_v60 = vcombine.high %v4056_v8, %v4056_v8 }
 0x22e   :  { %v4621_v7 = vadd.f32 %v4620_v19, %v4619_v29  ;;  %v4658_v29 = vsel %vm4266_vm0, %v4056_v8, 0.0  ;;  %v4660_v55 = vsel %vm4266_vm0, %v4064_v60, 0.0 }
 0x230   :  { %v4623_v46 = vadd.f32 %v4622_v14, %v4621_v7  ;;  %v4065_v7 = vcombine.high %v4063_v58, %v4063_v58 }
 0x232   :  { %v4625_v63 = vadd.f32 %v4624_v61, %v4623_v46  ;;  %v4662_v61 = vsel %vm4266_vm0, %v4063_v58, 0.0 }
 0x234   :  { %v4627_v56 = vadd.f32 %v4626_v16, %v4625_v63  ;;  %v4664_v16 = vsel %vm4266_vm0, %v4065_v7, 0.0 }
 0x236   :  { %v4629_v51 = vadd.f32 %v4628_v20, %v4627_v56 }
 0x238   :  { %v4631_v43 = vadd.f32 %v4630_v38, %v4629_v51 }
 0x23a   :  { %v4633_v28 = vadd.f32 %v4632_v26, %v4631_v43 }
 0x23c   :  { %v4635_v1 = vadd.f32 %v4634_v9, %v4633_v28 }
 0x23e   :  { %v4637_v4 = vadd.f32 %v4636_v54, %v4635_v1 }
 0x240   :  { %v4639_v59 = vadd.f32 %v4638_v52, %v4637_v4 }
 0x242   :  { %v4641_v31 = vadd.f32 %v4640_v30, %v4639_v59 }
 0x244   :  { %v4643_v17 = vadd.f32 %v4642_v23, %v4641_v31 }
 0x246   :  { %v4645_v42 = vadd.f32 %v4644_v13, %v4643_v17 }
 0x248   :  { %v4647_v41 = vadd.f32 %v4646_v12, %v4645_v42 }
 0x24a   :  { %v4649_v10 = vadd.f32 %v4648_v62, %v4647_v41 }
 0x24c   :  { %v4651_v36 = vadd.f32 %v4650_v34, %v4649_v10 }
 0x24e   :  { %v4653_v44 = vadd.f32 %v4652_v18, %v4651_v36 }
 0x250   :  { %v4655_v19 = vadd.f32 %v4654_v35, %v4653_v44 }
 0x252   :  { %v4657_v14 = vadd.f32 %v4656_v40, %v4655_v19 }
 0x254   :  { %v4659_v15 = vadd.f32 %v4658_v29, %v4657_v14 }
 0x256   :  { %v4661_v46 = vadd.f32 %v4660_v55, %v4659_v15 }
 0x258   :  { %v4663_v63 = vadd.f32 %v4662_v61, %v4661_v46 }
 0x25a   :  { %v4665_v53 = vadd.f32 %v4664_v16, %v4663_v63 }
 0x25c   :  { %4666 = vadd.xlane.f32.xlu0 %v4665_v53 }
 0x2e9   :  { %v4667_v0 = vpop.xlane.xlu0 %4666 }
 0x2ea   :  { %v4675_v21 = vadd.f32 %v4688_v33, %v4667_v0 }
 0x2ec   :  { %v4689_v45 = vmul.f32 -1.442695, %v4675_v21 }
 0x2ee   :  { %4691 = vpow2.f32 %v4689_v45 }
 0x2f8   :  { %v4692_v20 = vpop.eup %4691 }
 0x2f9   :  { %v4679_v56 = vadd.f32 1.0, %v4692_v20 }
 0x2fb   :  { %4693 = vrcp.f32 %v4679_v56 }
 0x305   :  { %v4694_v38 = vpop.eup %4693 }
 0x306   :  { %4683 = vst.msk [vmem:[%s7640_s3] sm:$0x3] %vm4682_vm1, %v4694_v38 }

</bundles_post_ra>
